<compile_context>
chip_gen: v6e
topology: v6e:2x2x1
jax: 0.10.0
libtpu: 0.0.40
codegen_flags: <defaults>
</compile_context>

<pallas_src>
import functools

import jax
import jax.numpy as jnp
from jax import lax
from jax.experimental import pallas as pl
from jax.experimental.pallas import tpu as pltpu

_LANE = 128


def _round_up(x, m):
    return -(-x // m) * m


_VMEM_LIMIT_CACHE = None


def _vmem_limit_bytes():
    """~75% of physical VMEM (96 MiB on v5e/v6e, 48 MiB on v7x)."""
    global _VMEM_LIMIT_CACHE
    if _VMEM_LIMIT_CACHE is None:
        try:
            cap = int(pltpu.get_tpu_info().vmem_capacity_bytes)
        except Exception:
            cap = 64 * 1024 * 1024
        _VMEM_LIMIT_CACHE = max(32 * 1024 * 1024, (cap * 3) // 4)
    return _VMEM_LIMIT_CACHE


def _conv_vmem_bytes(th, wp2, cpi, cpo, dsize):
    """Conservative per-grid-step VMEM estimate for the conv kernel."""
    w = wp2 - 2
    blk_in = th * wp2 * cpi * dsize
    halo = 2 * wp2 * cpi * dsize
    blk_out = th * wp2 * cpo * dsize
    weights = 9 * cpi * cpo * dsize
    pipelined = 2 * (blk_in + halo + blk_out) + 2 * weights
    temps = ((th + 2) * wp2 * cpi * 4                 # concatenated / activated ext tile
             + 2 * th * w * 3 * cpi * max(dsize, 4)   # im2col slab + slice temps
             + 2 * th * w * cpo * 4                   # f32 accumulator + reshape copy
             + th * wp2 * cpo * 4)                    # full-width value before store
    return pipelined + temps


def _pick_row_tile(h, wp2, cpi, cpo, dsize, budget):
    # Largest divisor of H whose per-step footprint fits the budget.
    # TODO(synk): mask ragged row tiles so prime/odd H doesn't degrade to th=1.
    best = 1
    for th in range(1, h + 1):
        if h % th == 0 and _conv_vmem_bytes(th, wp2, cpi, cpo, dsize) <= budget:
            best = th
    return best


def _pick_m_tile(m, cp, budget):
    # Row tile for the final BN+ReLU pass (partial last block is fine).
    tm = 8
    for cand in (16384, 8192, 4096, 2048, 1024, 512, 256, 128, 64, 32, 16, 8):
        if 6 * cand * cp * 4 <= budget:
            tm = cand
            break
    return tm if tm < m else m


# ----------------------------- Pallas kernels ------------------------------

def _conv3x3_kernel(xc_ref, xt_ref, xb_ref, w_ref, sc_ref, sh_ref,
                    y_ref, st_ref, *, fuse_input_act):
    """One (batch, row-block) tile of a 3x3 'same' conv with fused im2col.

    Inputs are three views of the same width-padded NHWC activation:
      xc_ref : (1, th, W+2, Cpi)  rows covering this output row block
      xt_ref : (1, 1,  W+2, Cpi)  row above the block (zeroed for block 0)
      xb_ref : (1, 1,  W+2, Cpi)  row below the block (zeroed for last block)
    With `fuse_input_act`, the previous layer's BatchNorm+ReLU
    (relu(x*scale+shift), pad columns re-zeroed) is applied to each tile
    right after it lands in VMEM.  Outputs: width-padded conv output block
    (pad cols = 0) and per-tile [sum; sum-of-squares] BatchNorm partials.
    """
    i = pl.program_id(1)
    nrb = pl.num_programs(1)
    _, th, wp2, cpi = xc_ref.shape
    cpo = y_ref.shape[3]
    w_img = wp2 - 2
    cdt = xc_ref.dtype

    xc = xc_ref[0]
    xt = xt_ref[0]
    xb = xb_ref[0]

    if fuse_input_act:
        scale = sc_ref[...].reshape(1, 1, cpi)
        shift = sh_ref[...].reshape(1, 1, cpi)
        col = lax.broadcasted_iota(jnp.int32, (1, wp2, cpi), 1)
        in_img = (col >= 1) & (col <= w_img)

        def act(v):
            a = jnp.maximum(v.astype(jnp.float32) * scale + shift, 0.0)
            return jnp.where(in_img, a, 0.0).astype(cdt)

        xc, xt, xb = act(xc), act(xt), act(xb)

    # Vertical zero padding: halo rows of the first / last row block lie
    # outside the image (their index_map was clamped) -> zero them.
    xt = xt * (i > 0).astype(cdt)
    xb = xb * (i < nrb - 1).astype(cdt)

    ext = jnp.concatenate([xt, xc, xb], axis=0)            # (th+2, W+2, Cpi)
    # Three horizontally shifted copies; K-fused so each kh is ONE matmul
    # with K = 3*Cpi (fills the 256-deep MXU on v6e/v7x).
    cols = [ext[:, kw:kw + w_img, :] for kw in range(3)]    # 3 x (th+2, W, Cpi)

    acc = jnp.zeros((th * w_img, cpo), jnp.float32)
    for kh in range(3):
        lhs = jnp.concatenate([c[kh:kh + th] for c in cols], axis=-1)
        acc = acc + jnp.dot(lhs.reshape(th * w_img, 3 * cpi), w_ref[kh],
                            preferred_element_type=jnp.float32)

    # Per-tile partial BatchNorm statistics (no second pass over y needed).
    st_ref[0, 0] = jnp.concatenate(
        [jnp.sum(acc, axis=0, keepdims=True),
         jnp.sum(acc * acc, axis=0, keepdims=True)], axis=0)

    # Single dense, lane-aligned store of the width-padded output block.
    zcol = jnp.zeros((th, 1, cpo), jnp.float32)
    yfull = jnp.concatenate([zcol, acc.reshape(th, w_img, cpo), zcol], axis=1)
    y_ref[0] = yfull.astype(y_ref.dtype)


def _bn_relu_kernel(y_ref, sc_ref, sh_ref, o_ref):
    # Per-channel affine + ReLU; batch mean/var already folded into scale/shift.
    y = y_ref[...].astype(jnp.float32)
    o_ref[...] = jnp.maximum(y * sc_ref[...] + sh_ref[...], 0.0)


# ------------------------------ wrappers ------------------------------------

def _conv3x3_layer(x, w9, scale, shift, *, fuse_input_act, row_tile, vmem_limit):
    """x: (N, H, W+2, Cpi) width-padded NHWC; w9: (3, 3*Cpi, Cpo)."""
    n, h, wp2, cpi = x.shape
    cpo = w9.shape[-1]
    th = row_tile
    nrb = h // th

    kern = functools.partial(_conv3x3_kernel, fuse_input_act=fuse_input_act)
    return pl.pallas_call(
        kern,
        out_shape=(jax.ShapeDtypeStruct((n, h, wp2, cpo), x.dtype),
                   jax.ShapeDtypeStruct((n, nrb, 2, cpo), jnp.float32)),
        grid_spec=pltpu.PrefetchScalarGridSpec(
            num_scalar_prefetch=0,
            grid=(n, nrb),
            in_specs=[
                pl.BlockSpec((1, th, wp2, cpi), lambda b, i: (b, i, 0, 0)),
                pl.BlockSpec((1, 1, wp2, cpi),
                             lambda b, i: (b, jnp.maximum(i * th - 1, 0), 0, 0)),
                pl.BlockSpec((1, 1, wp2, cpi),
                             lambda b, i: (b, jnp.minimum((i + 1) * th, h - 1), 0, 0)),
                pl.BlockSpec((3, 3 * cpi, cpo), lambda b, i: (0, 0, 0)),
                pl.BlockSpec((1, cpi), lambda b, i: (0, 0)),
                pl.BlockSpec((1, cpi), lambda b, i: (0, 0)),
            ],
            out_specs=[
                pl.BlockSpec((1, th, wp2, cpo), lambda b, i: (b, i, 0, 0)),
                pl.BlockSpec((1, 1, 2, cpo), lambda b, i: (b, i, 0, 0)),
            ],
        ),
        compiler_params=pltpu.CompilerParams(
            dimension_semantics=("parallel", "parallel"),
            vmem_limit_bytes=vmem_limit,
        ),
    )(x, x, x, w9, scale, shift)


def _bn_relu(y2d, scale, shift, tm, vmem_limit):
    m, cp = y2d.shape
    return pl.pallas_call(
        _bn_relu_kernel,
        out_shape=jax.ShapeDtypeStruct((m, cp), jnp.float32),
        grid_spec=pltpu.PrefetchScalarGridSpec(
            num_scalar_prefetch=0,
            grid=(pl.cdiv(m, tm),),
            in_specs=[
                pl.BlockSpec((tm, cp), lambda i: (i, 0)),
                pl.BlockSpec((1, cp), lambda i: (0, 0)),
                pl.BlockSpec((1, cp), lambda i: (0, 0)),
            ],
            out_specs=pl.BlockSpec((tm, cp), lambda i: (i, 0)),
        ),
        compiler_params=pltpu.CompilerParams(
            dimension_semantics=("parallel",),
            vmem_limit_bytes=vmem_limit,
        ),
    )(y2d, scale, shift)


def _prep_weight(w_oihw, cpi, cpo, dtype):
    # Torch (Cout, Cin, 3, 3) -> (3, 3*Cpi, Cpo), K index = kw*Cpi + cin.
    cout, cin = w_oihw.shape[0], w_oihw.shape[1]
    w = jnp.transpose(w_oihw, (2, 3, 1, 0)).astype(jnp.float32)
    w = jnp.pad(w, ((0, 0), (0, 0), (0, cpi - cin), (0, cpo - cout)))
    return w.reshape(3, 3 * cpi, cpo).astype(dtype)


def _fold_bn(stats, gamma, beta, count, cp, eps=1e-5):
    # Fold per-tile partials into batch mean/var (biased, matching training-
    # mode nn.BatchNorm2d), then into per-channel scale/shift (kept in f32).
    ssum = jnp.sum(stats[:, :, 0, :], axis=(0, 1))
    ssq = jnp.sum(stats[:, :, 1, :], axis=(0, 1))
    mean = ssum / count
    var = jnp.maximum(ssq / count - mean * mean, 0.0)
    inv = lax.rsqrt(var + eps)
    g = jnp.pad(gamma.astype(jnp.float32), (0, cp - gamma.shape[0]))
    b = jnp.pad(beta.astype(jnp.float32), (0, cp - beta.shape[0]))
    scale = g * inv
    shift = b - mean * scale
    return scale.reshape(1, cp), shift.reshape(1, cp)


@functools.partial(jax.jit, static_argnames=("compute_dtype",))
def double_conv(x_nchw, params, compute_dtype=jnp.float32):
    n, cin, h, w = x_nchw.shape
    mid = params["w1"].shape[0]
    cout = params["w2"].shape[0]
    cp_in = _round_up(cin, _LANE)
    cp_mid = _round_up(mid, _LANE)
    cp_out = _round_up(cout, _LANE)
    wp2 = w + 2
    dsize = jnp.dtype(compute_dtype).itemsize
    vmem_limit = _vmem_limit_bytes()
    budget = vmem_limit // 2
    cnt = float(n * h * w)

    # NCHW -> width-padded, channel-padded NHWC (the only activation copy
    # made outside the conv kernels themselves).
    # TODO(synk): pack 9*Cin into K for the low-Cin first conv instead of
    # lane-padding Cin (3 -> 128 inflates conv1 input bytes ~40x).
    x = jnp.transpose(x_nchw, (0, 2, 3, 1)).astype(compute_dtype)
    x = jnp.pad(x, ((0, 0), (0, 0), (1, 1), (0, cp_in - cin)))

    # NOTE: conv biases b1/b2 are intentionally dropped -- a per-channel
    # constant is removed exactly by the batch-stat BatchNorm mean subtraction.
    # TODO(synk): for Cout >= 512 add a Cout grid axis with (3, 3*Cpi, 256)
    # weight tiles instead of keeping the whole weight resident (v7x 64 MiB).
    w1 = _prep_weight(params["w1"], cp_in, cp_mid, compute_dtype)
    w2 = _prep_weight(params["w2"], cp_mid, cp_out, compute_dtype)

    # ---- layer 1: conv + BN partial stats (BN1+ReLU deferred into layer 2).
    th1 = _pick_row_tile(h, wp2, cp_in, cp_mid, dsize, budget)
    zeros_in = jnp.zeros((1, cp_in), jnp.float32)
    y1, st1 = _conv3x3_layer(x, w1, zeros_in, zeros_in,
                             fuse_input_act=False, row_tile=th1,
                             vmem_limit=vmem_limit)
    sc1, sh1 = _fold_bn(st1, params["g1"], params["be1"], cnt, cp_mid)

    # ---- layer 2: BN1+ReLU fused into the input read, conv, BN partials.
    th2 = _pick_row_tile(h, wp2, cp_mid, cp_out, dsize, budget)
    y2, st2 = _conv3x3_layer(y1, w2, sc1, sh1,
                             fuse_input_act=True, row_tile=th2,
                             vmem_limit=vmem_limit)
    sc2, sh2 = _fold_bn(st2, params["g2"], params["be2"], cnt, cp_out)

    # ---- final BN2 + ReLU (the only standalone elementwise pass).
    m = n * h * wp2
    tm = _pick_m_tile(m, cp_out, budget)
    z = _bn_relu(y2.reshape(m, cp_out), sc2, sh2, tm, vmem_limit)
    z = z.reshape(n, h, wp2, cp_out)[:, :, 1:w + 1, :cout]
    return jnp.transpose(z, (0, 3, 1, 2))                    # NHWC -> NCHW


# ------------------------------ reference -----------------------------------

def _reference(x_nchw, params):
    def conv(x, w, b):
        out = lax.conv_general_dilated(
            x, w, window_strides=(1, 1), padding="SAME",
            dimension_numbers=("NCHW", "OIHW", "NCHW"))
        return out + b[None, :, None, None]

    def bn_relu(y, g, be):
        mean = jnp.mean(y, axis=(0, 2, 3), keepdims=True)
        var = jnp.mean((y - mean) ** 2, axis=(0, 2, 3), keepdims=True)
        y_hat = (y - mean) * lax.rsqrt(var + 1e-5)
        return jnp.maximum(
            y_hat * g[None, :, None, None] + be[None, :, None, None], 0.0)

    y = bn_relu(conv(x_nchw, params["w1"], params["b1"]),
                params["g1"], params["be1"])
    y = bn_relu(conv(y, params["w2"], params["b2"]),
                params["g2"], params["be2"])
    return y


# --------------------------------- main --------------------------------------

if __name__ == "__main__":
    N, Cin, H, W = 2, 4, 16, 16
    Cout = 8
    mid = Cout  # mid_channels=None -> mid_channels = out_channels

    key = jax.random.PRNGKey(0)
    k1, k2, k3, k4, kx = jax.random.split(key, 5)

    params = {
        "w1": 0.1 * jax.random.normal(k1, (mid, Cin, 3, 3), jnp.float32),
        "b1": 0.1 * jax.random.normal(k2, (mid,), jnp.float32),
        "g1": jnp.ones((mid,), jnp.float32),    # BatchNorm2d default weight
        "be1": jnp.zeros((mid,), jnp.float32),  # BatchNorm2d default bias
        "w2": 0.1 * jax.random.normal(k3, (Cout, mid, 3, 3), jnp.float32),
        "b2": 0.1 * jax.random.normal(k4, (Cout,), jnp.float32),
        "g2": jnp.ones((Cout,), jnp.float32),
        "be2": jnp.zeros((Cout,), jnp.float32),
    }

    x = jax.random.normal(kx, (N, Cin, H, W), jnp.float32)

    # f32 datapath: exact check against the XLA reference.
    out = jax.block_until_ready(double_conv(x, params))
    ref = jax.block_until_ready(_reference(x, params))
    assert out.shape == (N, Cout, H, W)
    err = float(jnp.max(jnp.abs(out - ref)))
    assert jnp.allclose(out, ref, atol=1e-4, rtol=1e-4), (
        f"f32 mismatch vs reference: max abs err = {err:.3e}")

    # bf16 datapath (v6e/v7x fast path: ~2x HBM bytes + MXU throughput).
    out_bf = jax.block_until_ready(
        double_conv(x, params, compute_dtype=jnp.bfloat16))
    assert out_bf.shape == (N, Cout, H, W)
    assert bool(jnp.all(jnp.isfinite(out_bf)))
    err_bf = float(jnp.max(jnp.abs(out_bf - ref)))
    assert err_bf < 0.5, f"bf16 path diverged: max abs err = {err_bf:.3e}"

    print("KERNEL_OK")
</pallas_src>

<mosaic_0001>
module attributes {stable_mosaic.version = 11 : i64} {
  func.func @_conv3x3_kernel(%arg0: i32, %arg1: i32, %arg2: memref<1x16x18x128xf32, #tpu.memory_space<vmem>>, %arg3: memref<1x1x18x128xf32, #tpu.memory_space<vmem>>, %arg4: memref<1x1x18x128xf32, #tpu.memory_space<vmem>>, %arg5: memref<3x384x128xf32, #tpu.memory_space<vmem>>, %arg6: memref<1x128xf32, #tpu.memory_space<vmem>>, %arg7: memref<1x128xf32, #tpu.memory_space<vmem>>, %arg8: memref<1x16x18x128xf32, #tpu.memory_space<vmem>>, %arg9: memref<1x1x2x128xf32, #tpu.memory_space<vmem>>) attributes {dimension_semantics = [#tpu.dimension_semantics<parallel>, #tpu.dimension_semantics<parallel>], iteration_bounds = array<i64: 2, 1>, scalar_prefetch = 0 : i64, scratch_operands = 0 : i64, tpu.core_type = #tpu.core_type<tc>, window_params = [{transform_indices = @transform_0, window_bounds = array<i64: 1, 16, 18, 128>}, {transform_indices = @transform_1, window_bounds = array<i64: 1, 1, 18, 128>}, {transform_indices = @transform_2, window_bounds = array<i64: 1, 1, 18, 128>}, {pipeline_mode = #tpu.pipeline_mode<synchronous>, transform_indices = @transform_3, window_bounds = array<i64: 3, 384, 128>}, {pipeline_mode = #tpu.pipeline_mode<synchronous>, transform_indices = @transform_4, window_bounds = array<i64: 1, 128>}, {pipeline_mode = #tpu.pipeline_mode<synchronous>, transform_indices = @transform_5, window_bounds = array<i64: 1, 128>}, {transform_indices = @transform_6, window_bounds = array<i64: 1, 16, 18, 128>}, {transform_indices = @transform_7, window_bounds = array<i64: 1, 1, 2, 128>}]} {
    %c0 = arith.constant 0 : index
    %c0_0 = arith.constant 0 : index
    %c0_1 = arith.constant 0 : index
    %c0_2 = arith.constant 0 : index
    %0 = vector.load %arg2[%c0, %c0_0, %c0_1, %c0_2] : memref<1x16x18x128xf32, #tpu.memory_space<vmem>>, vector<1x16x18x128xf32>
    %1 = vector.shape_cast %0 : vector<1x16x18x128xf32> to vector<16x18x128xf32>
    %c0_3 = arith.constant 0 : index
    %c0_4 = arith.constant 0 : index
    %c0_5 = arith.constant 0 : index
    %c0_6 = arith.constant 0 : index
    %2 = vector.load %arg3[%c0_3, %c0_4, %c0_5, %c0_6] : memref<1x1x18x128xf32, #tpu.memory_space<vmem>>, vector<1x1x18x128xf32>
    %3 = vector.shape_cast %2 : vector<1x1x18x128xf32> to vector<1x18x128xf32>
    %c0_7 = arith.constant 0 : index
    %c0_8 = arith.constant 0 : index
    %c0_9 = arith.constant 0 : index
    %c0_10 = arith.constant 0 : index
    %4 = vector.load %arg4[%c0_7, %c0_8, %c0_9, %c0_10] : memref<1x1x18x128xf32, #tpu.memory_space<vmem>>, vector<1x1x18x128xf32>
    %5 = vector.shape_cast %4 : vector<1x1x18x128xf32> to vector<1x18x128xf32>
    %c0_i32 = arith.constant 0 : i32
    %6 = arith.cmpi sgt, %arg1, %c0_i32 : i32
    %7 = arith.extui %6 : i1 to i32
    %8 = arith.sitofp %7 : i32 to f32
    %9 = vector.broadcast %8 : f32 to vector<1x18x128xf32>
    %10 = arith.mulf %3, %9 : vector<1x18x128xf32>
    %c0_i32_11 = arith.constant 0 : i32
    %11 = arith.cmpi slt, %arg1, %c0_i32_11 : i32
    %12 = arith.extui %11 : i1 to i32
    %13 = arith.sitofp %12 : i32 to f32
    %14 = vector.broadcast %13 : f32 to vector<1x18x128xf32>
    %15 = arith.mulf %5, %14 : vector<1x18x128xf32>
    %16 = tpu.concatenate %10, %1, %15 in 0 : vector<1x18x128xf32>, vector<16x18x128xf32>, vector<1x18x128xf32> -> vector<18x18x128xf32>
    %17 = vector.extract_strided_slice %16 {offsets = [0, 0, 0], sizes = [18, 16, 128], strides = [1, 1, 1]} : vector<18x18x128xf32> to vector<18x16x128xf32>
    %18 = vector.extract_strided_slice %16 {offsets = [0, 1, 0], sizes = [18, 16, 128], strides = [1, 1, 1]} : vector<18x18x128xf32> to vector<18x16x128xf32>
    %19 = vector.extract_strided_slice %16 {offsets = [0, 2, 0], sizes = [18, 16, 128], strides = [1, 1, 1]} : vector<18x18x128xf32> to vector<18x16x128xf32>
    %cst = arith.constant 0.000000e+00 : f32
    %20 = vector.broadcast %cst : f32 to vector<256x128xf32>
    %21 = vector.extract_strided_slice %17 {offsets = [0, 0, 0], sizes = [16, 16, 128], strides = [1, 1, 1]} : vector<18x16x128xf32> to vector<16x16x128xf32>
    %22 = vector.extract_strided_slice %18 {offsets = [0, 0, 0], sizes = [16, 16, 128], strides = [1, 1, 1]} : vector<18x16x128xf32> to vector<16x16x128xf32>
    %23 = vector.extract_strided_slice %19 {offsets = [0, 0, 0], sizes = [16, 16, 128], strides = [1, 1, 1]} : vector<18x16x128xf32> to vector<16x16x128xf32>
    %24 = tpu.concatenate %21, %22, %23 in 2 : vector<16x16x128xf32>, vector<16x16x128xf32>, vector<16x16x128xf32> -> vector<16x16x384xf32>
    %25 = vector.shape_cast %24 : vector<16x16x384xf32> to vector<256x384xf32>
    %c0_12 = arith.constant 0 : index
    %c0_13 = arith.constant 0 : index
    %c0_14 = arith.constant 0 : index
    %26 = vector.load %arg5[%c0_12, %c0_13, %c0_14] : memref<3x384x128xf32, #tpu.memory_space<vmem>>, vector<1x384x128xf32>
    %27 = vector.shape_cast %26 : vector<1x384x128xf32> to vector<384x128xf32>
    %cst_15 = arith.constant dense<0.000000e+00> : vector<256x128xf32>
    %28 = tpu.matmul %25, %27, %cst_15 {dimension_numbers = #tpu.dot_dimension_numbers<[1], [0], [0], [1], [0, 0, 1, 1], [], []>} : vector<256x384xf32>, vector<384x128xf32>, vector<256x128xf32> -> vector<256x128xf32>
    %29 = arith.addf %20, %28 : vector<256x128xf32>
    %30 = vector.extract_strided_slice %17 {offsets = [1, 0, 0], sizes = [16, 16, 128], strides = [1, 1, 1]} : vector<18x16x128xf32> to vector<16x16x128xf32>
    %31 = vector.extract_strided_slice %18 {offsets = [1, 0, 0], sizes = [16, 16, 128], strides = [1, 1, 1]} : vector<18x16x128xf32> to vector<16x16x128xf32>
    %32 = vector.extract_strided_slice %19 {offsets = [1, 0, 0], sizes = [16, 16, 128], strides = [1, 1, 1]} : vector<18x16x128xf32> to vector<16x16x128xf32>
    %33 = tpu.concatenate %30, %31, %32 in 2 : vector<16x16x128xf32>, vector<16x16x128xf32>, vector<16x16x128xf32> -> vector<16x16x384xf32>
    %34 = vector.shape_cast %33 : vector<16x16x384xf32> to vector<256x384xf32>
    %c1 = arith.constant 1 : index
    %c0_16 = arith.constant 0 : index
    %c0_17 = arith.constant 0 : index
    %35 = vector.load %arg5[%c1, %c0_16, %c0_17] : memref<3x384x128xf32, #tpu.memory_space<vmem>>, vector<1x384x128xf32>
    %36 = vector.shape_cast %35 : vector<1x384x128xf32> to vector<384x128xf32>
    %cst_18 = arith.constant dense<0.000000e+00> : vector<256x128xf32>
    %37 = tpu.matmul %34, %36, %cst_18 {dimension_numbers = #tpu.dot_dimension_numbers<[1], [0], [0], [1], [0, 0, 1, 1], [], []>} : vector<256x384xf32>, vector<384x128xf32>, vector<256x128xf32> -> vector<256x128xf32>
    %38 = arith.addf %29, %37 : vector<256x128xf32>
    %39 = vector.extract_strided_slice %17 {offsets = [2, 0, 0], sizes = [16, 16, 128], strides = [1, 1, 1]} : vector<18x16x128xf32> to vector<16x16x128xf32>
    %40 = vector.extract_strided_slice %18 {offsets = [2, 0, 0], sizes = [16, 16, 128], strides = [1, 1, 1]} : vector<18x16x128xf32> to vector<16x16x128xf32>
    %41 = vector.extract_strided_slice %19 {offsets = [2, 0, 0], sizes = [16, 16, 128], strides = [1, 1, 1]} : vector<18x16x128xf32> to vector<16x16x128xf32>
    %42 = tpu.concatenate %39, %40, %41 in 2 : vector<16x16x128xf32>, vector<16x16x128xf32>, vector<16x16x128xf32> -> vector<16x16x384xf32>
    %43 = vector.shape_cast %42 : vector<16x16x384xf32> to vector<256x384xf32>
    %c2 = arith.constant 2 : index
    %c0_19 = arith.constant 0 : index
    %c0_20 = arith.constant 0 : index
    %44 = vector.load %arg5[%c2, %c0_19, %c0_20] : memref<3x384x128xf32, #tpu.memory_space<vmem>>, vector<1x384x128xf32>
    %45 = vector.shape_cast %44 : vector<1x384x128xf32> to vector<384x128xf32>
    %cst_21 = arith.constant dense<0.000000e+00> : vector<256x128xf32>
    %46 = tpu.matmul %43, %45, %cst_21 {dimension_numbers = #tpu.dot_dimension_numbers<[1], [0], [0], [1], [0, 0, 1, 1], [], []>} : vector<256x384xf32>, vector<384x128xf32>, vector<256x128xf32> -> vector<256x128xf32>
    %47 = arith.addf %38, %46 : vector<256x128xf32>
    %cst_22 = arith.constant dense<0.000000e+00> : vector<128xf32>
    %48 = vector.multi_reduction <add>, %47, %cst_22 [0] : vector<256x128xf32> to vector<128xf32>
    %49 = vector.shape_cast %48 : vector<128xf32> to vector<1x128xf32>
    %50 = arith.mulf %47, %47 : vector<256x128xf32>
    %cst_23 = arith.constant dense<0.000000e+00> : vector<128xf32>
    %51 = vector.multi_reduction <add>, %50, %cst_23 [0] : vector<256x128xf32> to vector<128xf32>
    %52 = vector.shape_cast %51 : vector<128xf32> to vector<1x128xf32>
    %53 = tpu.concatenate %49, %52 in 0 : vector<1x128xf32>, vector<1x128xf32> -> vector<2x128xf32>
    %c0_24 = arith.constant 0 : index
    %c0_25 = arith.constant 0 : index
    %c0_26 = arith.constant 0 : index
    %c0_27 = arith.constant 0 : index
    %54 = vector.load %arg9[%c0_24, %c0_25, %c0_26, %c0_27] : memref<1x1x2x128xf32, #tpu.memory_space<vmem>>, vector<1x1x2x128xf32>
    %55 = vector.shape_cast %54 : vector<1x1x2x128xf32> to vector<2x128xf32>
    %56 = vector.shape_cast %53 : vector<2x128xf32> to vector<1x1x2x128xf32>
    tpu.vector_store %arg9[%c0_24, %c0_25, %c0_26, %c0_27], %56 {strides = array<i32>} : memref<1x1x2x128xf32, #tpu.memory_space<vmem>>, vector<1x1x2x128xf32>,
    %cst_28 = arith.constant 0.000000e+00 : f32
    %57 = vector.broadcast %cst_28 : f32 to vector<16x1x128xf32>
    %58 = vector.shape_cast %47 : vector<256x128xf32> to vector<16x16x128xf32>
    %59 = tpu.concatenate %57, %58, %57 in 1 : vector<16x1x128xf32>, vector<16x16x128xf32>, vector<16x1x128xf32> -> vector<16x18x128xf32>
    %c0_29 = arith.constant 0 : index
    %c0_30 = arith.constant 0 : index
    %c0_31 = arith.constant 0 : index
    %c0_32 = arith.constant 0 : index
    %60 = vector.load %arg8[%c0_29, %c0_30, %c0_31, %c0_32] : memref<1x16x18x128xf32, #tpu.memory_space<vmem>>, vector<1x16x18x128xf32>
    %61 = vector.shape_cast %60 : vector<1x16x18x128xf32> to vector<16x18x128xf32>
    %62 = vector.shape_cast %59 : vector<16x18x128xf32> to vector<1x16x18x128xf32>
    tpu.vector_store %arg8[%c0_29, %c0_30, %c0_31, %c0_32], %62 {strides = array<i32>} : memref<1x16x18x128xf32, #tpu.memory_space<vmem>>, vector<1x16x18x128xf32>,
    return
  }
  func.func @transform_0(%arg0: i32, %arg1: i32) -> (i32, i32, i32, i32) {
    %c0_i32 = arith.constant 0 : i32
    %c0_i32_0 = arith.constant 0 : i32
    %c0_i32_1 = arith.constant 0 : i32
    return %arg0, %arg1, %c0_i32, %c0_i32_0 : i32, i32, i32, i32
  }
  func.func @transform_1(%arg0: i32, %arg1: i32) -> (i32, i32, i32, i32) {
    %c16_i32 = arith.constant 16 : i32
    %0 = arith.muli %arg1, %c16_i32 : i32
    %c1_i32 = arith.constant 1 : i32
    %1 = arith.subi %0, %c1_i32 : i32
    %c0_i32 = arith.constant 0 : i32
    %2 = arith.maxsi %1, %c0_i32 : i32
    %c0_i32_0 = arith.constant 0 : i32
    %c0_i32_1 = arith.constant 0 : i32
    %c0_i32_2 = arith.constant 0 : i32
    return %arg0, %2, %c0_i32_0, %c0_i32_1 : i32, i32, i32, i32
  }
  func.func @transform_2(%arg0: i32, %arg1: i32) -> (i32, i32, i32, i32) {
    %c1_i32 = arith.constant 1 : i32
    %0 = arith.addi %arg1, %c1_i32 : i32
    %c16_i32 = arith.constant 16 : i32
    %1 = arith.muli %0, %c16_i32 : i32
    %c15_i32 = arith.constant 15 : i32
    %2 = arith.minsi %1, %c15_i32 : i32
    %c0_i32 = arith.constant 0 : i32
    %c0_i32_0 = arith.constant 0 : i32
    %c0_i32_1 = arith.constant 0 : i32
    return %arg0, %2, %c0_i32, %c0_i32_0 : i32, i32, i32, i32
  }
  func.func @transform_3(%arg0: i32, %arg1: i32) -> (i32, i32, i32) {
    %c0_i32 = arith.constant 0 : i32
    %c0_i32_0 = arith.constant 0 : i32
    %c0_i32_1 = arith.constant 0 : i32
    %c0_i32_2 = arith.constant 0 : i32
    return %c0_i32, %c0_i32_0, %c0_i32_1 : i32, i32, i32
  }
  func.func @transform_4(%arg0: i32, %arg1: i32) -> (i32, i32) {
    %c0_i32 = arith.constant 0 : i32
    %c0_i32_0 = arith.constant 0 : i32
    %c0_i32_1 = arith.constant 0 : i32
    return %c0_i32, %c0_i32_0 : i32, i32
  }
  func.func @transform_5(%arg0: i32, %arg1: i32) -> (i32, i32) {
    %c0_i32 = arith.constant 0 : i32
    %c0_i32_0 = arith.constant 0 : i32
    %c0_i32_1 = arith.constant 0 : i32
    return %c0_i32, %c0_i32_0 : i32, i32
  }
  func.func @transform_6(%arg0: i32, %arg1: i32) -> (i32, i32, i32, i32) {
    %c0_i32 = arith.constant 0 : i32
    %c0_i32_0 = arith.constant 0 : i32
    %c0_i32_1 = arith.constant 0 : i32
    return %arg0, %arg1, %c0_i32, %c0_i32_0 : i32, i32, i32, i32
  }
  func.func @transform_7(%arg0: i32, %arg1: i32) -> (i32, i32, i32, i32) {
    %c0_i32 = arith.constant 0 : i32
    %c0_i32_0 = arith.constant 0 : i32
    %c0_i32_1 = arith.constant 0 : i32
    return %arg0, %arg1, %c0_i32, %c0_i32_0 : i32, i32, i32, i32
  }
}

module attributes {stable_mosaic.version = 11 : i64} {
  func.func @_conv3x3_kernel(%arg0: i32, %arg1: i32, %arg2: memref<1x16x18x128xf32, #tpu.memory_space<vmem>>, %arg3: memref<1x1x18x128xf32, #tpu.memory_space<vmem>>, %arg4: memref<1x1x18x128xf32, #tpu.memory_space<vmem>>, %arg5: memref<3x384x128xf32, #tpu.memory_space<vmem>>, %arg6: memref<1x128xf32, #tpu.memory_space<vmem>>, %arg7: memref<1x128xf32, #tpu.memory_space<vmem>>, %arg8: memref<1x16x18x128xf32, #tpu.memory_space<vmem>>, %arg9: memref<1x1x2x128xf32, #tpu.memory_space<vmem>>) attributes {dimension_semantics = [#tpu.dimension_semantics<parallel>, #tpu.dimension_semantics<parallel>], iteration_bounds = array<i64: 2, 1>, scalar_prefetch = 0 : i64, scratch_operands = 0 : i64, tpu.core_type = #tpu.core_type<tc>, window_params = [{transform_indices = @transform_0, window_bounds = array<i64: 1, 16, 18, 128>}, {transform_indices = @transform_1, window_bounds = array<i64: 1, 1, 18, 128>}, {transform_indices = @transform_2, window_bounds = array<i64: 1, 1, 18, 128>}, {pipeline_mode = #tpu.pipeline_mode<synchronous>, transform_indices = @transform_3, window_bounds = array<i64: 3, 384, 128>}, {pipeline_mode = #tpu.pipeline_mode<synchronous>, transform_indices = @transform_4, window_bounds = array<i64: 1, 128>}, {pipeline_mode = #tpu.pipeline_mode<synchronous>, transform_indices = @transform_5, window_bounds = array<i64: 1, 128>}, {transform_indices = @transform_6, window_bounds = array<i64: 1, 16, 18, 128>}, {transform_indices = @transform_7, window_bounds = array<i64: 1, 1, 2, 128>}]} {
    %c0 = arith.constant 0 : index
    %c0_0 = arith.constant 0 : index
    %c0_1 = arith.constant 0 : index
    %c0_2 = arith.constant 0 : index
    %0 = vector.load %arg2[%c0, %c0_0, %c0_1, %c0_2] : memref<1x16x18x128xf32, #tpu.memory_space<vmem>>, vector<1x16x18x128xf32>
    %1 = vector.shape_cast %0 : vector<1x16x18x128xf32> to vector<16x18x128xf32>
    %c0_3 = arith.constant 0 : index
    %c0_4 = arith.constant 0 : index
    %c0_5 = arith.constant 0 : index
    %c0_6 = arith.constant 0 : index
    %2 = vector.load %arg3[%c0_3, %c0_4, %c0_5, %c0_6] : memref<1x1x18x128xf32, #tpu.memory_space<vmem>>, vector<1x1x18x128xf32>
    %3 = vector.shape_cast %2 : vector<1x1x18x128xf32> to vector<1x18x128xf32>
    %c0_7 = arith.constant 0 : index
    %c0_8 = arith.constant 0 : index
    %c0_9 = arith.constant 0 : index
    %c0_10 = arith.constant 0 : index
    %4 = vector.load %arg4[%c0_7, %c0_8, %c0_9, %c0_10] : memref<1x1x18x128xf32, #tpu.memory_space<vmem>>, vector<1x1x18x128xf32>
    %5 = vector.shape_cast %4 : vector<1x1x18x128xf32> to vector<1x18x128xf32>
    %c0_11 = arith.constant 0 : index
    %c0_12 = arith.constant 0 : index
    %6 = vector.load %arg6[%c0_11, %c0_12] : memref<1x128xf32, #tpu.memory_space<vmem>>, vector<1x128xf32>
    %7 = vector.shape_cast %6 : vector<1x128xf32> to vector<1x1x128xf32>
    %c0_13 = arith.constant 0 : index
    %c0_14 = arith.constant 0 : index
    %8 = vector.load %arg7[%c0_13, %c0_14] : memref<1x128xf32, #tpu.memory_space<vmem>>, vector<1x128xf32>
    %9 = vector.shape_cast %8 : vector<1x128xf32> to vector<1x1x128xf32>
    %10 = tpu.iota {dimensions = array<i32: 1>} : vector<1x18x128xi32>
    %c1_i32 = arith.constant 1 : i32
    %11 = vector.broadcast %c1_i32 : i32 to vector<1x18x128xi32>
    %12 = arith.cmpi sge, %10, %11 : vector<1x18x128xi32>
    %c16_i32 = arith.constant 16 : i32
    %13 = vector.broadcast %c16_i32 : i32 to vector<1x18x128xi32>
    %14 = arith.cmpi sle, %10, %13 : vector<1x18x128xi32>
    %15 = arith.andi %12, %14 : vector<1x18x128xi1>
    %16 = vector.broadcast %7 : vector<1x1x128xf32> to vector<16x18x128xf32>
    %17 = arith.mulf %1, %16 : vector<16x18x128xf32>
    %18 = vector.broadcast %9 : vector<1x1x128xf32> to vector<16x18x128xf32>
    %19 = arith.addf %17, %18 : vector<16x18x128xf32>
    %cst = arith.constant 0.000000e+00 : f32
    %20 = vector.broadcast %cst : f32 to vector<16x18x128xf32>
    %21 = arith.maximumf %19, %20 : vector<16x18x128xf32>
    %cst_15 = arith.constant 0.000000e+00 : f32
    %22 = vector.shape_cast %15 : vector<1x18x128xi1> to vector<1x18x128xi1>
    %23 = vector.broadcast %22 : vector<1x18x128xi1> to vector<16x18x128xi1>
    %24 = vector.broadcast %cst_15 : f32 to vector<16x18x128xf32>
    %25 = arith.select %23, %21, %24 : vector<16x18x128xi1>, vector<16x18x128xf32>
    %26 = vector.broadcast %7 : vector<1x1x128xf32> to vector<1x18x128xf32>
    %27 = arith.mulf %3, %26 : vector<1x18x128xf32>
    %28 = vector.broadcast %9 : vector<1x1x128xf32> to vector<1x18x128xf32>
    %29 = arith.addf %27, %28 : vector<1x18x128xf32>
    %cst_16 = arith.constant 0.000000e+00 : f32
    %30 = vector.broadcast %cst_16 : f32 to vector<1x18x128xf32>
    %31 = arith.maximumf %29, %30 : vector<1x18x128xf32>
    %cst_17 = arith.constant 0.000000e+00 : f32
    %32 = vector.broadcast %cst_17 : f32 to vector<1x18x128xf32>
    %33 = arith.select %15, %31, %32 : vector<1x18x128xi1>, vector<1x18x128xf32>
    %34 = vector.broadcast %7 : vector<1x1x128xf32> to vector<1x18x128xf32>
    %35 = arith.mulf %5, %34 : vector<1x18x128xf32>
    %36 = vector.broadcast %9 : vector<1x1x128xf32> to vector<1x18x128xf32>
    %37 = arith.addf %35, %36 : vector<1x18x128xf32>
    %cst_18 = arith.constant 0.000000e+00 : f32
    %38 = vector.broadcast %cst_18 : f32 to vector<1x18x128xf32>
    %39 = arith.maximumf %37, %38 : vector<1x18x128xf32>
    %cst_19 = arith.constant 0.000000e+00 : f32
    %40 = vector.broadcast %cst_19 : f32 to vector<1x18x128xf32>
    %41 = arith.select %15, %39, %40 : vector<1x18x128xi1>, vector<1x18x128xf32>
    %c0_i32 = arith.constant 0 : i32
    %42 = arith.cmpi sgt, %arg1, %c0_i32 : i32
    %43 = arith.extui %42 : i1 to i32
    %44 = arith.sitofp %43 : i32 to f32
    %45 = vector.broadcast %44 : f32 to vector<1x18x128xf32>
    %46 = arith.mulf %33, %45 : vector<1x18x128xf32>
    %c0_i32_20 = arith.constant 0 : i32
    %47 = arith.cmpi slt, %arg1, %c0_i32_20 : i32
    %48 = arith.extui %47 : i1 to i32
    %49 = arith.sitofp %48 : i32 to f32
    %50 = vector.broadcast %49 : f32 to vector<1x18x128xf32>
    %51 = arith.mulf %41, %50 : vector<1x18x128xf32>
    %52 = tpu.concatenate %46, %25, %51 in 0 : vector<1x18x128xf32>, vector<16x18x128xf32>, vector<1x18x128xf32> -> vector<18x18x128xf32>
    %53 = vector.extract_strided_slice %52 {offsets = [0, 0, 0], sizes = [18, 16, 128], strides = [1, 1, 1]} : vector<18x18x128xf32> to vector<18x16x128xf32>
    %54 = vector.extract_strided_slice %52 {offsets = [0, 1, 0], sizes = [18, 16, 128], strides = [1, 1, 1]} : vector<18x18x128xf32> to vector<18x16x128xf32>
    %55 = vector.extract_strided_slice %52 {offsets = [0, 2, 0], sizes = [18, 16, 128], strides = [1, 1, 1]} : vector<18x18x128xf32> to vector<18x16x128xf32>
    %cst_21 = arith.constant 0.000000e+00 : f32
    %56 = vector.broadcast %cst_21 : f32 to vector<256x128xf32>
    %57 = vector.extract_strided_slice %53 {offsets = [0, 0, 0], sizes = [16, 16, 128], strides = [1, 1, 1]} : vector<18x16x128xf32> to vector<16x16x128xf32>
    %58 = vector.extract_strided_slice %54 {offsets = [0, 0, 0], sizes = [16, 16, 128], strides = [1, 1, 1]} : vector<18x16x128xf32> to vector<16x16x128xf32>
    %59 = vector.extract_strided_slice %55 {offsets = [0, 0, 0], sizes = [16, 16, 128], strides = [1, 1, 1]} : vector<18x16x128xf32> to vector<16x16x128xf32>
    %60 = tpu.concatenate %57, %58, %59 in 2 : vector<16x16x128xf32>, vector<16x16x128xf32>, vector<16x16x128xf32> -> vector<16x16x384xf32>
    %61 = vector.shape_cast %60 : vector<16x16x384xf32> to vector<256x384xf32>
    %c0_22 = arith.constant 0 : index
    %c0_23 = arith.constant 0 : index
    %c0_24 = arith.constant 0 : index
    %62 = vector.load %arg5[%c0_22, %c0_23, %c0_24] : memref<3x384x128xf32, #tpu.memory_space<vmem>>, vector<1x384x128xf32>
    %63 = vector.shape_cast %62 : vector<1x384x128xf32> to vector<384x128xf32>
    %cst_25 = arith.constant dense<0.000000e+00> : vector<256x128xf32>
    %64 = tpu.matmul %61, %63, %cst_25 {dimension_numbers = #tpu.dot_dimension_numbers<[1], [0], [0], [1], [0, 0, 1, 1], [], []>} : vector<256x384xf32>, vector<384x128xf32>, vector<256x128xf32> -> vector<256x128xf32>
    %65 = arith.addf %56, %64 : vector<256x128xf32>
    %66 = vector.extract_strided_slice %53 {offsets = [1, 0, 0], sizes = [16, 16, 128], strides = [1, 1, 1]} : vector<18x16x128xf32> to vector<16x16x128xf32>
    %67 = vector.extract_strided_slice %54 {offsets = [1, 0, 0], sizes = [16, 16, 128], strides = [1, 1, 1]} : vector<18x16x128xf32> to vector<16x16x128xf32>
    %68 = vector.extract_strided_slice %55 {offsets = [1, 0, 0], sizes = [16, 16, 128], strides = [1, 1, 1]} : vector<18x16x128xf32> to vector<16x16x128xf32>
    %69 = tpu.concatenate %66, %67, %68 in 2 : vector<16x16x128xf32>, vector<16x16x128xf32>, vector<16x16x128xf32> -> vector<16x16x384xf32>
    %70 = vector.shape_cast %69 : vector<16x16x384xf32> to vector<256x384xf32>
    %c1 = arith.constant 1 : index
    %c0_26 = arith.constant 0 : index
    %c0_27 = arith.constant 0 : index
    %71 = vector.load %arg5[%c1, %c0_26, %c0_27] : memref<3x384x128xf32, #tpu.memory_space<vmem>>, vector<1x384x128xf32>
    %72 = vector.shape_cast %71 : vector<1x384x128xf32> to vector<384x128xf32>
    %cst_28 = arith.constant dense<0.000000e+00> : vector<256x128xf32>
    %73 = tpu.matmul %70, %72, %cst_28 {dimension_numbers = #tpu.dot_dimension_numbers<[1], [0], [0], [1], [0, 0, 1, 1], [], []>} : vector<256x384xf32>, vector<384x128xf32>, vector<256x128xf32> -> vector<256x128xf32>
    %74 = arith.addf %65, %73 : vector<256x128xf32>
    %75 = vector.extract_strided_slice %53 {offsets = [2, 0, 0], sizes = [16, 16, 128], strides = [1, 1, 1]} : vector<18x16x128xf32> to vector<16x16x128xf32>
    %76 = vector.extract_strided_slice %54 {offsets = [2, 0, 0], sizes = [16, 16, 128], strides = [1, 1, 1]} : vector<18x16x128xf32> to vector<16x16x128xf32>
    %77 = vector.extract_strided_slice %55 {offsets = [2, 0, 0], sizes = [16, 16, 128], strides = [1, 1, 1]} : vector<18x16x128xf32> to vector<16x16x128xf32>
    %78 = tpu.concatenate %75, %76, %77 in 2 : vector<16x16x128xf32>, vector<16x16x128xf32>, vector<16x16x128xf32> -> vector<16x16x384xf32>
    %79 = vector.shape_cast %78 : vector<16x16x384xf32> to vector<256x384xf32>
    %c2 = arith.constant 2 : index
    %c0_29 = arith.constant 0 : index
    %c0_30 = arith.constant 0 : index
    %80 = vector.load %arg5[%c2, %c0_29, %c0_30] : memref<3x384x128xf32, #tpu.memory_space<vmem>>, vector<1x384x128xf32>
    %81 = vector.shape_cast %80 : vector<1x384x128xf32> to vector<384x128xf32>
    %cst_31 = arith.constant dense<0.000000e+00> : vector<256x128xf32>
    %82 = tpu.matmul %79, %81, %cst_31 {dimension_numbers = #tpu.dot_dimension_numbers<[1], [0], [0], [1], [0, 0, 1, 1], [], []>} : vector<256x384xf32>, vector<384x128xf32>, vector<256x128xf32> -> vector<256x128xf32>
    %83 = arith.addf %74, %82 : vector<256x128xf32>
    %cst_32 = arith.constant dense<0.000000e+00> : vector<128xf32>
    %84 = vector.multi_reduction <add>, %83, %cst_32 [0] : vector<256x128xf32> to vector<128xf32>
    %85 = vector.shape_cast %84 : vector<128xf32> to vector<1x128xf32>
    %86 = arith.mulf %83, %83 : vector<256x128xf32>
    %cst_33 = arith.constant dense<0.000000e+00> : vector<128xf32>
    %87 = vector.multi_reduction <add>, %86, %cst_33 [0] : vector<256x128xf32> to vector<128xf32>
    %88 = vector.shape_cast %87 : vector<128xf32> to vector<1x128xf32>
    %89 = tpu.concatenate %85, %88 in 0 : vector<1x128xf32>, vector<1x128xf32> -> vector<2x128xf32>
    %c0_34 = arith.constant 0 : index
    %c0_35 = arith.constant 0 : index
    %c0_36 = arith.constant 0 : index
    %c0_37 = arith.constant 0 : index
    %90 = vector.load %arg9[%c0_34, %c0_35, %c0_36, %c0_37] : memref<1x1x2x128xf32, #tpu.memory_space<vmem>>, vector<1x1x2x128xf32>
    %91 = vector.shape_cast %90 : vector<1x1x2x128xf32> to vector<2x128xf32>
    %92 = vector.shape_cast %89 : vector<2x128xf32> to vector<1x1x2x128xf32>
    tpu.vector_store %arg9[%c0_34, %c0_35, %c0_36, %c0_37], %92 {strides = array<i32>} : memref<1x1x2x128xf32, #tpu.memory_space<vmem>>, vector<1x1x2x128xf32>,
    %cst_38 = arith.constant 0.000000e+00 : f32
    %93 = vector.broadcast %cst_38 : f32 to vector<16x1x128xf32>
    %94 = vector.shape_cast %83 : vector<256x128xf32> to vector<16x16x128xf32>
    %95 = tpu.concatenate %93, %94, %93 in 1 : vector<16x1x128xf32>, vector<16x16x128xf32>, vector<16x1x128xf32> -> vector<16x18x128xf32>
    %c0_39 = arith.constant 0 : index
    %c0_40 = arith.constant 0 : index
    %c0_41 = arith.constant 0 : index
    %c0_42 = arith.constant 0 : index
    %96 = vector.load %arg8[%c0_39, %c0_40, %c0_41, %c0_42] : memref<1x16x18x128xf32, #tpu.memory_space<vmem>>, vector<1x16x18x128xf32>
    %97 = vector.shape_cast %96 : vector<1x16x18x128xf32> to vector<16x18x128xf32>
    %98 = vector.shape_cast %95 : vector<16x18x128xf32> to vector<1x16x18x128xf32>
    tpu.vector_store %arg8[%c0_39, %c0_40, %c0_41, %c0_42], %98 {strides = array<i32>} : memref<1x16x18x128xf32, #tpu.memory_space<vmem>>, vector<1x16x18x128xf32>,
    return
  }
  func.func @transform_0(%arg0: i32, %arg1: i32) -> (i32, i32, i32, i32) {
    %c0_i32 = arith.constant 0 : i32
    %c0_i32_0 = arith.constant 0 : i32
    %c0_i32_1 = arith.constant 0 : i32
    return %arg0, %arg1, %c0_i32, %c0_i32_0 : i32, i32, i32, i32
  }
  func.func @transform_1(%arg0: i32, %arg1: i32) -> (i32, i32, i32, i32) {
    %c16_i32 = arith.constant 16 : i32
    %0 = arith.muli %arg1, %c16_i32 : i32
    %c1_i32 = arith.constant 1 : i32
    %1 = arith.subi %0, %c1_i32 : i32
    %c0_i32 = arith.constant 0 : i32
    %2 = arith.maxsi %1, %c0_i32 : i32
    %c0_i32_0 = arith.constant 0 : i32
    %c0_i32_1 = arith.constant 0 : i32
    %c0_i32_2 = arith.constant 0 : i32
    return %arg0, %2, %c0_i32_0, %c0_i32_1 : i32, i32, i32, i32
  }
  func.func @transform_2(%arg0: i32, %arg1: i32) -> (i32, i32, i32, i32) {
    %c1_i32 = arith.constant 1 : i32
    %0 = arith.addi %arg1, %c1_i32 : i32
    %c16_i32 = arith.constant 16 : i32
    %1 = arith.muli %0, %c16_i32 : i32
    %c15_i32 = arith.constant 15 : i32
    %2 = arith.minsi %1, %c15_i32 : i32
    %c0_i32 = arith.constant 0 : i32
    %c0_i32_0 = arith.constant 0 : i32
    %c0_i32_1 = arith.constant 0 : i32
    return %arg0, %2, %c0_i32, %c0_i32_0 : i32, i32, i32, i32
  }
  func.func @transform_3(%arg0: i32, %arg1: i32) -> (i32, i32, i32) {
    %c0_i32 = arith.constant 0 : i32
    %c0_i32_0 = arith.constant 0 : i32
    %c0_i32_1 = arith.constant 0 : i32
    %c0_i32_2 = arith.constant 0 : i32
    return %c0_i32, %c0_i32_0, %c0_i32_1 : i32, i32, i32
  }
  func.func @transform_4(%arg0: i32, %arg1: i32) -> (i32, i32) {
    %c0_i32 = arith.constant 0 : i32
    %c0_i32_0 = arith.constant 0 : i32
    %c0_i32_1 = arith.constant 0 : i32
    return %c0_i32, %c0_i32_0 : i32, i32
  }
  func.func @transform_5(%arg0: i32, %arg1: i32) -> (i32, i32) {
    %c0_i32 = arith.constant 0 : i32
    %c0_i32_0 = arith.constant 0 : i32
    %c0_i32_1 = arith.constant 0 : i32
    return %c0_i32, %c0_i32_0 : i32, i32
  }
  func.func @transform_6(%arg0: i32, %arg1: i32) -> (i32, i32, i32, i32) {
    %c0_i32 = arith.constant 0 : i32
    %c0_i32_0 = arith.constant 0 : i32
    %c0_i32_1 = arith.constant 0 : i32
    return %arg0, %arg1, %c0_i32, %c0_i32_0 : i32, i32, i32, i32
  }
  func.func @transform_7(%arg0: i32, %arg1: i32) -> (i32, i32, i32, i32) {
    %c0_i32 = arith.constant 0 : i32
    %c0_i32_0 = arith.constant 0 : i32
    %c0_i32_1 = arith.constant 0 : i32
    return %arg0, %arg1, %c0_i32, %c0_i32_0 : i32, i32, i32, i32
  }
}

module attributes {stable_mosaic.version = 11 : i64} {
  func.func @_bn_relu_kernel(%arg0: i32, %arg1: memref<576x128xf32, #tpu.memory_space<vmem>>, %arg2: memref<1x128xf32, #tpu.memory_space<vmem>>, %arg3: memref<1x128xf32, #tpu.memory_space<vmem>>, %arg4: memref<576x128xf32, #tpu.memory_space<vmem>>) attributes {dimension_semantics = [#tpu.dimension_semantics<parallel>], iteration_bounds = array<i64: 1>, scalar_prefetch = 0 : i64, scratch_operands = 0 : i64, tpu.core_type = #tpu.core_type<tc>, window_params = [{transform_indices = @transform_0, window_bounds = array<i64: 576, 128>}, {pipeline_mode = #tpu.pipeline_mode<synchronous>, transform_indices = @transform_1, window_bounds = array<i64: 1, 128>}, {pipeline_mode = #tpu.pipeline_mode<synchronous>, transform_indices = @transform_2, window_bounds = array<i64: 1, 128>}, {transform_indices = @transform_3, window_bounds = array<i64: 576, 128>}]} {
    %c0 = arith.constant 0 : index
    %c0_0 = arith.constant 0 : index
    %0 = vector.load %arg1[%c0, %c0_0] : memref<576x128xf32, #tpu.memory_space<vmem>>, vector<576x128xf32>
    %c0_1 = arith.constant 0 : index
    %c0_2 = arith.constant 0 : index
    %1 = vector.load %arg2[%c0_1, %c0_2] : memref<1x128xf32, #tpu.memory_space<vmem>>, vector<1x128xf32>
    %2 = vector.broadcast %1 : vector<1x128xf32> to vector<576x128xf32>
    %3 = arith.mulf %0, %2 : vector<576x128xf32>
    %c0_3 = arith.constant 0 : index
    %c0_4 = arith.constant 0 : index
    %4 = vector.load %arg3[%c0_3, %c0_4] : memref<1x128xf32, #tpu.memory_space<vmem>>, vector<1x128xf32>
    %5 = vector.broadcast %4 : vector<1x128xf32> to vector<576x128xf32>
    %6 = arith.addf %3, %5 : vector<576x128xf32>
    %cst = arith.constant 0.000000e+00 : f32
    %7 = vector.broadcast %cst : f32 to vector<576x128xf32>
    %8 = arith.maximumf %6, %7 : vector<576x128xf32>
    %c0_5 = arith.constant 0 : index
    %c0_6 = arith.constant 0 : index
    %9 = vector.load %arg4[%c0_5, %c0_6] : memref<576x128xf32, #tpu.memory_space<vmem>>, vector<576x128xf32>
    tpu.vector_store %arg4[%c0_5, %c0_6], %8 {strides = array<i32>} : memref<576x128xf32, #tpu.memory_space<vmem>>, vector<576x128xf32>,
    return
  }
  func.func @transform_0(%arg0: i32) -> (i32, i32) {
    %c0_i32 = arith.constant 0 : i32
    %c0_i32_0 = arith.constant 0 : i32
    return %arg0, %c0_i32 : i32, i32
  }
  func.func @transform_1(%arg0: i32) -> (i32, i32) {
    %c0_i32 = arith.constant 0 : i32
    %c0_i32_0 = arith.constant 0 : i32
    %c0_i32_1 = arith.constant 0 : i32
    return %c0_i32, %c0_i32_0 : i32, i32
  }
  func.func @transform_2(%arg0: i32) -> (i32, i32) {
    %c0_i32 = arith.constant 0 : i32
    %c0_i32_0 = arith.constant 0 : i32
    %c0_i32_1 = arith.constant 0 : i32
    return %c0_i32, %c0_i32_0 : i32, i32
  }
  func.func @transform_3(%arg0: i32) -> (i32, i32) {
    %c0_i32 = arith.constant 0 : i32
    %c0_i32_0 = arith.constant 0 : i32
    return %arg0, %c0_i32 : i32, i32
  }
}

</mosaic_0001>

<bundles_post_ra>
// kernel: double_conv.5
= control target key start
LH: loop header
LB: loop body
LE: loop exit
PB: predicated region body
PF: predicated region fallthrough
CT: control target
= control target key end

     0   :  { %s1000_s0 = inlined_call_operand.vmem [shape: f32[576,128], index: 0, kind: input, shape index: {}]   ;;  %s1001_s1 = inlined_call_operand.vmem [shape: f32[1,128], index: 1, kind: input, shape index: {}]   ;;  %s1002_s2 = inlined_call_operand.vmem [shape: f32[1,128], index: 2, kind: input, shape index: {}]   ;;  %s1003_s3 = inlined_call_operand.vmem [shape: f32[576,128], index: 3, kind: output, shape index: {}]  }
   0x1   :  { %v14_v0 = vld [vmem:[%s1000_s0] sm:$0xff]  ;;  %v15_v4 = vld [vmem:[%s1000_s0 + $0x8] sm:$0xff]  ;;  %v16_v5 = vld [vmem:[%s1000_s0 + $0x10] sm:$0xff] }
   0x2   :  { %v420_v1 = vld [vmem:[%s1001_s1] ss:$0 sm:$0xff]  ;;  %v17_v6 = vld [vmem:[%s1000_s0 + $0x18] sm:$0xff]  ;;  %v19_v11 = vld [vmem:[%s1000_s0 + $0x28] sm:$0xff] }
   0x3   :  { %v425_v2 = vld [vmem:[%s1002_s2] ss:$0 sm:$0xff]  ;;  %v93_v3 = vmul.f32 %v420_v1, %v14_v0  ;;  %v94_v7 = vmul.f32 %v420_v1, %v15_v4  ;;  %v95_v8 = vmul.f32 %v420_v1, %v16_v5  ;;  %v96_v9 = vmul.f32 %v420_v1, %v17_v6  ;;  %v20_v12 = vld [vmem:[%s1000_s0 + $0x30] sm:$0xff]  ;;  %v21_v17 = vld [vmem:[%s1000_s0 + $0x38] sm:$0xff] }
   0x4   :  { %v18_v10 = vld [vmem:[%s1000_s0 + $0x20] sm:$0xff]  ;;  %v98_v15 = vmul.f32 %v420_v1, %v19_v11  ;;  %v99_v16 = vmul.f32 %v420_v1, %v20_v12  ;;  %v100_v21 = vmul.f32 %v420_v1, %v21_v17  ;;  %v23_v27 = vld [vmem:[%s1000_s0 + $0x48] sm:$0xff]  ;;  %v24_v28 = vld [vmem:[%s1000_s0 + $0x50] sm:$0xff] }
   0x5   :  { %v172_v13 = vadd.f32 %v425_v2, %v93_v3  ;;  %v97_v14 = vmul.f32 %v420_v1, %v18_v10  ;;  %v173_v18 = vadd.f32 %v425_v2, %v94_v7  ;;  %v174_v19 = vadd.f32 %v425_v2, %v95_v8  ;;  %v22_v22 = vld [vmem:[%s1000_s0 + $0x40] sm:$0xff]  ;;  %v25_v29 = vld [vmem:[%s1000_s0 + $0x58] sm:$0xff]  ;;  %v27_v35 = vld [vmem:[%s1000_s0 + $0x68] sm:$0xff] }
   0x6   :  { %v175_v20 = vadd.f32 %v425_v2, %v96_v9  ;;  %v177_v25 = vadd.f32 %v425_v2, %v98_v15  ;;  %v178_v26 = vadd.f32 %v425_v2, %v99_v16  ;;  %v179_v33 = vadd.f32 %v425_v2, %v100_v21  ;;  %v26_v34 = vld [vmem:[%s1000_s0 + $0x60] sm:$0xff]  ;;  %v28_v36 = vld [vmem:[%s1000_s0 + $0x70] sm:$0xff]  ;;  %v29_v41 = vld [vmem:[%s1000_s0 + $0x78] sm:$0xff] }
   0x7   :  { %v244_v23 = vmax.f32 %v172_v13, 0.0  ;;  %v176_v24 = vadd.f32 %v425_v2, %v97_v14  ;;  %v245_v30 = vmax.f32 %v173_v18, 0.0  ;;  %v246_v31 = vmax.f32 %v174_v19, 0.0  ;;  %v30_v54 = vld [vmem:[%s1000_s0 + $0x80] sm:$0xff]  ;;  %v31_v59 = vld [vmem:[%s1000_s0 + $0x88] sm:$0xff]  ;;  %v32_v60 = vld [vmem:[%s1000_s0 + $0x90] sm:$0xff] }
   0x8   :  { %v247_v32 = vmax.f32 %v175_v20, 0.0  ;;  %v249_v38 = vmax.f32 %v177_v25, 0.0  ;;  %v250_v39 = vmax.f32 %v178_v26, 0.0  ;;  %v101_v40 = vmul.f32 %v420_v1, %v22_v22  ;;  %v33_v61 = vld [vmem:[%s1000_s0 + $0x98] sm:$0xff]  ;;  %v34_v4 = vld [vmem:[%s1000_s0 + $0xa0] sm:$0xff]  ;;  %v35_v5 = vld [vmem:[%s1000_s0 + $0xa8] sm:$0xff] }
   0x9   :  { %316 = vst [vmem:[%s1003_s3] sm:$0xff] %v244_v23  ;;  %v248_v37 = vmax.f32 %v176_v24, 0.0  ;;  %317 = vst [vmem:[%s1003_s3 + $0x8] sm:$0xff] %v245_v30  ;;  %v251_v42 = vmax.f32 %v179_v33, 0.0  ;;  %v102_v43 = vmul.f32 %v420_v1, %v23_v27  ;;  %v103_v44 = vmul.f32 %v420_v1, %v24_v28  ;;  %v36_v6 = vld [vmem:[%s1000_s0 + $0xb0] sm:$0xff]  ;;  %v37_v11 = vld [vmem:[%s1000_s0 + $0xb8] sm:$0xff] }
   0xa   :  { %318 = vst [vmem:[%s1003_s3 + $0x10] sm:$0xff] %v246_v31  ;;  %319 = vst [vmem:[%s1003_s3 + $0x18] sm:$0xff] %v247_v32  ;;  %v104_v45 = vmul.f32 %v420_v1, %v25_v29  ;;  %v180_v46 = vadd.f32 %v425_v2, %v101_v40  ;;  %v105_v47 = vmul.f32 %v420_v1, %v26_v34  ;;  %v38_v24 = vld [vmem:[%s1000_s0 + $0xc0] sm:$0xff]  ;;  %v39_v29 = vld [vmem:[%s1000_s0 + $0xc8] sm:$0xff] }
   0xb   :  { %320 = vst [vmem:[%s1003_s3 + $0x20] sm:$0xff] %v248_v37  ;;  %321 = vst [vmem:[%s1003_s3 + $0x28] sm:$0xff] %v249_v38  ;;  %v106_v48 = vmul.f32 %v420_v1, %v27_v35  ;;  %v107_v49 = vmul.f32 %v420_v1, %v28_v36  ;;  %v181_v50 = vadd.f32 %v425_v2, %v102_v43  ;;  %v40_v30 = vld [vmem:[%s1000_s0 + $0xd0] sm:$0xff]  ;;  %v41_v31 = vld [vmem:[%s1000_s0 + $0xd8] sm:$0xff] }
   0xc   :  { %322 = vst [vmem:[%s1003_s3 + $0x30] sm:$0xff] %v250_v39  ;;  %323 = vst [vmem:[%s1003_s3 + $0x38] sm:$0xff] %v251_v42  ;;  %v182_v51 = vadd.f32 %v425_v2, %v103_v44  ;;  %v183_v52 = vadd.f32 %v425_v2, %v104_v45  ;;  %v108_v53 = vmul.f32 %v420_v1, %v29_v41  ;;  %v252_v55 = vmax.f32 %v180_v46, 0.0  ;;  %v42_v36 = vld [vmem:[%s1000_s0 + $0xe0] sm:$0xff]  ;;  %v43_v37 = vld [vmem:[%s1000_s0 + $0xe8] sm:$0xff] }
   0xd   :  { %v184_v56 = vadd.f32 %v425_v2, %v105_v47  ;;  %v185_v57 = vadd.f32 %v425_v2, %v106_v48  ;;  %v186_v58 = vadd.f32 %v425_v2, %v107_v49  ;;  %v253_v62 = vmax.f32 %v181_v50, 0.0  ;;  %v44_v38 = vld [vmem:[%s1000_s0 + $0xf0] sm:$0xff]  ;;  %v45_v43 = vld [vmem:[%s1000_s0 + $0xf8] sm:$0xff] }
   0xe   :  { %v254_v63 = vmax.f32 %v182_v51, 0.0  ;;  %v255_v0 = vmax.f32 %v183_v52, 0.0  ;;  %v187_v3 = vadd.f32 %v425_v2, %v108_v53  ;;  %324 = vst [vmem:[%s1003_s3 + $0x40] sm:$0xff] %v252_v55  ;;  %v109_v10 = vmul.f32 %v420_v1, %v30_v54 }
   0xf   :  { %v256_v7 = vmax.f32 %v184_v56, 0.0  ;;  %v257_v8 = vmax.f32 %v185_v57, 0.0  ;;  %v258_v9 = vmax.f32 %v186_v58, 0.0  ;;  %325 = vst [vmem:[%s1003_s3 + $0x48] sm:$0xff] %v253_v62  ;;  %v110_v13 = vmul.f32 %v420_v1, %v31_v59  ;;  %v46_v56 = vld [vmem:[%s1000_s0 + $0x100] sm:$0xff]  ;;  %v48_v62 = vld [vmem:[%s1000_s0 + $0x110] sm:$0xff] }
  0x10   :  { %326 = vst [vmem:[%s1003_s3 + $0x50] sm:$0xff] %v254_v63  ;;  %327 = vst [vmem:[%s1003_s3 + $0x58] sm:$0xff] %v255_v0  ;;  %v259_v12 = vmax.f32 %v187_v3, 0.0  ;;  %v111_v14 = vmul.f32 %v420_v1, %v32_v60  ;;  %v112_v15 = vmul.f32 %v420_v1, %v33_v61  ;;  %v188_v16 = vadd.f32 %v425_v2, %v109_v10  ;;  %v47_v61 = vld [vmem:[%s1000_s0 + $0x108] sm:$0xff]  ;;  %v49_v63 = vld [vmem:[%s1000_s0 + $0x118] sm:$0xff] }
  0x11   :  { %328 = vst [vmem:[%s1003_s3 + $0x60] sm:$0xff] %v256_v7  ;;  %329 = vst [vmem:[%s1003_s3 + $0x68] sm:$0xff] %v257_v8  ;;  %v113_v17 = vmul.f32 %v420_v1, %v34_v4  ;;  %v114_v18 = vmul.f32 %v420_v1, %v35_v5  ;;  %v115_v19 = vmul.f32 %v420_v1, %v36_v6  ;;  %v50_v6 = vld [vmem:[%s1000_s0 + $0x120] sm:$0xff]  ;;  %v51_v7 = vld [vmem:[%s1000_s0 + $0x128] sm:$0xff] }
  0x12   :  { %330 = vst [vmem:[%s1003_s3 + $0x70] sm:$0xff] %v258_v9  ;;  %331 = vst [vmem:[%s1003_s3 + $0x78] sm:$0xff] %v259_v12  ;;  %v189_v20 = vadd.f32 %v425_v2, %v110_v13  ;;  %v190_v21 = vadd.f32 %v425_v2, %v111_v14  ;;  %v191_v22 = vadd.f32 %v425_v2, %v112_v15  ;;  %v260_v25 = vmax.f32 %v188_v16, 0.0  ;;  %v52_v8 = vld [vmem:[%s1000_s0 + $0x130] sm:$0xff]  ;;  %v53_v13 = vld [vmem:[%s1000_s0 + $0x138] sm:$0xff] }
  0x13   :  { %v116_v23 = vmul.f32 %v420_v1, %v37_v11  ;;  %v192_v26 = vadd.f32 %v425_v2, %v113_v17  ;;  %v193_v27 = vadd.f32 %v425_v2, %v114_v18  ;;  %v194_v28 = vadd.f32 %v425_v2, %v115_v19 }
  0x14   :  { %v261_v32 = vmax.f32 %v189_v20, 0.0  ;;  %v262_v33 = vmax.f32 %v190_v21, 0.0  ;;  %v263_v34 = vmax.f32 %v191_v22, 0.0  ;;  %332 = vst [vmem:[%s1003_s3 + $0x80] sm:$0xff] %v260_v25  ;;  %v117_v42 = vmul.f32 %v420_v1, %v38_v24 }
  0x15   :  { %v195_v35 = vadd.f32 %v425_v2, %v116_v23  ;;  %v264_v39 = vmax.f32 %v192_v26, 0.0  ;;  %v265_v40 = vmax.f32 %v193_v27, 0.0  ;;  %v266_v41 = vmax.f32 %v194_v28, 0.0  ;;  %v54_v26 = vld [vmem:[%s1000_s0 + $0x140] sm:$0xff] }
  0x16   :  { %333 = vst [vmem:[%s1003_s3 + $0x88] sm:$0xff] %v261_v32  ;;  %334 = vst [vmem:[%s1003_s3 + $0x90] sm:$0xff] %v262_v33  ;;  %v118_v45 = vmul.f32 %v420_v1, %v39_v29  ;;  %v119_v46 = vmul.f32 %v420_v1, %v40_v30  ;;  %v120_v47 = vmul.f32 %v420_v1, %v41_v31  ;;  %v55_v31 = vld [vmem:[%s1000_s0 + $0x148] sm:$0xff]  ;;  %v56_v32 = vld [vmem:[%s1000_s0 + $0x150] sm:$0xff] }
  0x17   :  { %335 = vst [vmem:[%s1003_s3 + $0x98] sm:$0xff] %v263_v34  ;;  %v267_v44 = vmax.f32 %v195_v35, 0.0  ;;  %336 = vst [vmem:[%s1003_s3 + $0xa0] sm:$0xff] %v264_v39  ;;  %v196_v48 = vadd.f32 %v425_v2, %v117_v42  ;;  %v121_v49 = vmul.f32 %v420_v1, %v42_v36  ;;  %v122_v50 = vmul.f32 %v420_v1, %v43_v37  ;;  %v57_v33 = vld [vmem:[%s1000_s0 + $0x158] sm:$0xff]  ;;  %v59_v39 = vld [vmem:[%s1000_s0 + $0x168] sm:$0xff] }
  0x18   :  { %337 = vst [vmem:[%s1003_s3 + $0xa8] sm:$0xff] %v265_v40  ;;  %338 = vst [vmem:[%s1003_s3 + $0xb0] sm:$0xff] %v266_v41  ;;  %v123_v51 = vmul.f32 %v420_v1, %v44_v38  ;;  %v197_v52 = vadd.f32 %v425_v2, %v118_v45  ;;  %v198_v53 = vadd.f32 %v425_v2, %v119_v46  ;;  %v58_v38 = vld [vmem:[%s1000_s0 + $0x160] sm:$0xff]  ;;  %v60_v40 = vld [vmem:[%s1000_s0 + $0x170] sm:$0xff] }
  0x19   :  { %339 = vst [vmem:[%s1003_s3 + $0xb8] sm:$0xff] %v267_v44  ;;  %v199_v54 = vadd.f32 %v425_v2, %v120_v47  ;;  %v124_v55 = vmul.f32 %v420_v1, %v45_v43  ;;  %v268_v57 = vmax.f32 %v196_v48, 0.0  ;;  %v200_v58 = vadd.f32 %v425_v2, %v121_v49  ;;  %v61_v45 = vld [vmem:[%s1000_s0 + $0x178] sm:$0xff] }
  0x1a   :  { %v201_v59 = vadd.f32 %v425_v2, %v122_v50  ;;  %v202_v60 = vadd.f32 %v425_v2, %v123_v51  ;;  %v269_v0 = vmax.f32 %v197_v52, 0.0  ;;  %v270_v3 = vmax.f32 %v198_v53, 0.0 }
  0x1b   :  { %v271_v4 = vmax.f32 %v199_v54, 0.0  ;;  %v203_v5 = vadd.f32 %v425_v2, %v124_v55  ;;  %340 = vst [vmem:[%s1003_s3 + $0xc0] sm:$0xff] %v268_v57  ;;  %v272_v9 = vmax.f32 %v200_v58, 0.0  ;;  %v125_v12 = vmul.f32 %v420_v1, %v46_v56  ;;  %v62_v58 = vld [vmem:[%s1000_s0 + $0x180] sm:$0xff] }
  0x1c   :  { %v273_v10 = vmax.f32 %v201_v59, 0.0  ;;  %v274_v11 = vmax.f32 %v202_v60, 0.0  ;;  %341 = vst [vmem:[%s1003_s3 + $0xc8] sm:$0xff] %v269_v0  ;;  %342 = vst [vmem:[%s1003_s3 + $0xd0] sm:$0xff] %v270_v3  ;;  %v126_v15 = vmul.f32 %v420_v1, %v47_v61  ;;  %v127_v16 = vmul.f32 %v420_v1, %v48_v62  ;;  %v64_v0 = vld [vmem:[%s1000_s0 + $0x190] sm:$0xff]  ;;  %v65_v3 = vld [vmem:[%s1000_s0 + $0x198] sm:$0xff] }
  0x1d   :  { %343 = vst [vmem:[%s1003_s3 + $0xd8] sm:$0xff] %v271_v4  ;;  %v275_v14 = vmax.f32 %v203_v5, 0.0  ;;  %v128_v17 = vmul.f32 %v420_v1, %v49_v63  ;;  %344 = vst [vmem:[%s1003_s3 + $0xe0] sm:$0xff] %v272_v9  ;;  %v204_v18 = vadd.f32 %v425_v2, %v125_v12  ;;  %v129_v19 = vmul.f32 %v420_v1, %v50_v6  ;;  %v63_v63 = vld [vmem:[%s1000_s0 + $0x188] sm:$0xff] }
  0x1e   :  { %345 = vst [vmem:[%s1003_s3 + $0xe8] sm:$0xff] %v273_v10  ;;  %346 = vst [vmem:[%s1003_s3 + $0xf0] sm:$0xff] %v274_v11  ;;  %v130_v20 = vmul.f32 %v420_v1, %v51_v7  ;;  %v131_v21 = vmul.f32 %v420_v1, %v52_v8  ;;  %v205_v22 = vadd.f32 %v425_v2, %v126_v15  ;;  %v66_v8 = vld [vmem:[%s1000_s0 + $0x1a0] sm:$0xff]  ;;  %v67_v9 = vld [vmem:[%s1000_s0 + $0x1a8] sm:$0xff] }
  0x1f   :  { %347 = vst [vmem:[%s1003_s3 + $0xf8] sm:$0xff] %v275_v14  ;;  %v206_v23 = vadd.f32 %v425_v2, %v127_v16  ;;  %v207_v24 = vadd.f32 %v425_v2, %v128_v17  ;;  %v132_v25 = vmul.f32 %v420_v1, %v53_v13  ;;  %v276_v27 = vmax.f32 %v204_v18, 0.0  ;;  %v68_v10 = vld [vmem:[%s1000_s0 + $0x1b0] sm:$0xff]  ;;  %v69_v15 = vld [vmem:[%s1000_s0 + $0x1b8] sm:$0xff] }
  0x20   :  { %v208_v28 = vadd.f32 %v425_v2, %v129_v19  ;;  %v209_v29 = vadd.f32 %v425_v2, %v130_v20  ;;  %v210_v30 = vadd.f32 %v425_v2, %v131_v21  ;;  %v277_v34 = vmax.f32 %v205_v22, 0.0 }
  0x21   :  { %v278_v35 = vmax.f32 %v206_v23, 0.0  ;;  %v279_v36 = vmax.f32 %v207_v24, 0.0  ;;  %v211_v37 = vadd.f32 %v425_v2, %v132_v25  ;;  %348 = vst [vmem:[%s1003_s3 + $0x100] sm:$0xff] %v276_v27  ;;  %v133_v44 = vmul.f32 %v420_v1, %v54_v26 }
  0x22   :  { %v280_v41 = vmax.f32 %v208_v28, 0.0  ;;  %v281_v42 = vmax.f32 %v209_v29, 0.0  ;;  %v282_v43 = vmax.f32 %v210_v30, 0.0  ;;  %349 = vst [vmem:[%s1003_s3 + $0x108] sm:$0xff] %v277_v34  ;;  %v134_v47 = vmul.f32 %v420_v1, %v55_v31  ;;  %v70_v28 = vld [vmem:[%s1000_s0 + $0x1c0] sm:$0xff]  ;;  %v72_v34 = vld [vmem:[%s1000_s0 + $0x1d0] sm:$0xff] }
  0x23   :  { %350 = vst [vmem:[%s1003_s3 + $0x110] sm:$0xff] %v278_v35  ;;  %351 = vst [vmem:[%s1003_s3 + $0x118] sm:$0xff] %v279_v36  ;;  %v283_v46 = vmax.f32 %v211_v37, 0.0  ;;  %v135_v48 = vmul.f32 %v420_v1, %v56_v32  ;;  %v136_v49 = vmul.f32 %v420_v1, %v57_v33  ;;  %v212_v50 = vadd.f32 %v425_v2, %v133_v44  ;;  %v71_v33 = vld [vmem:[%s1000_s0 + $0x1c8] sm:$0xff]  ;;  %v73_v35 = vld [vmem:[%s1000_s0 + $0x1d8] sm:$0xff] }
  0x24   :  { %352 = vst [vmem:[%s1003_s3 + $0x120] sm:$0xff] %v280_v41  ;;  %353 = vst [vmem:[%s1003_s3 + $0x128] sm:$0xff] %v281_v42  ;;  %v137_v51 = vmul.f32 %v420_v1, %v58_v38  ;;  %v138_v52 = vmul.f32 %v420_v1, %v59_v39  ;;  %v139_v53 = vmul.f32 %v420_v1, %v60_v40  ;;  %v74_v40 = vld [vmem:[%s1000_s0 + $0x1e0] sm:$0xff]  ;;  %v75_v41 = vld [vmem:[%s1000_s0 + $0x1e8] sm:$0xff] }
  0x25   :  { %354 = vst [vmem:[%s1003_s3 + $0x130] sm:$0xff] %v282_v43  ;;  %355 = vst [vmem:[%s1003_s3 + $0x138] sm:$0xff] %v283_v46  ;;  %v213_v54 = vadd.f32 %v425_v2, %v134_v47  ;;  %v214_v55 = vadd.f32 %v425_v2, %v135_v48  ;;  %v215_v56 = vadd.f32 %v425_v2, %v136_v49  ;;  %v284_v59 = vmax.f32 %v212_v50, 0.0  ;;  %v76_v42 = vld [vmem:[%s1000_s0 + $0x1f0] sm:$0xff]  ;;  %v77_v47 = vld [vmem:[%s1000_s0 + $0x1f8] sm:$0xff] }
  0x26   :  { %v140_v57 = vmul.f32 %v420_v1, %v61_v45  ;;  %v216_v60 = vadd.f32 %v425_v2, %v137_v51  ;;  %v217_v61 = vadd.f32 %v425_v2, %v138_v52  ;;  %v218_v62 = vadd.f32 %v425_v2, %v139_v53 }
  0x27   :  { %v285_v4 = vmax.f32 %v213_v54, 0.0  ;;  %v286_v5 = vmax.f32 %v214_v55, 0.0  ;;  %v287_v6 = vmax.f32 %v215_v56, 0.0  ;;  %356 = vst [vmem:[%s1003_s3 + $0x140] sm:$0xff] %v284_v59  ;;  %v141_v14 = vmul.f32 %v420_v1, %v62_v58 }
  0x28   :  { %v219_v7 = vadd.f32 %v425_v2, %v140_v57  ;;  %v288_v11 = vmax.f32 %v216_v60, 0.0  ;;  %v289_v12 = vmax.f32 %v217_v61, 0.0  ;;  %v290_v13 = vmax.f32 %v218_v62, 0.0  ;;  %v78_v60 = vld [vmem:[%s1000_s0 + $0x200] sm:$0xff] }
  0x29   :  { %357 = vst [vmem:[%s1003_s3 + $0x148] sm:$0xff] %v285_v4  ;;  %358 = vst [vmem:[%s1003_s3 + $0x150] sm:$0xff] %v286_v5  ;;  %v142_v17 = vmul.f32 %v420_v1, %v63_v63  ;;  %v143_v18 = vmul.f32 %v420_v1, %v64_v0  ;;  %v144_v19 = vmul.f32 %v420_v1, %v65_v3  ;;  %v79_v3 = vld [vmem:[%s1000_s0 + $0x208] sm:$0xff]  ;;  %v80_v4 = vld [vmem:[%s1000_s0 + $0x210] sm:$0xff] }
  0x2a   :  { %359 = vst [vmem:[%s1003_s3 + $0x158] sm:$0xff] %v287_v6  ;;  %v291_v16 = vmax.f32 %v219_v7, 0.0  ;;  %360 = vst [vmem:[%s1003_s3 + $0x160] sm:$0xff] %v288_v11  ;;  %v220_v20 = vadd.f32 %v425_v2, %v141_v14  ;;  %v145_v21 = vmul.f32 %v420_v1, %v66_v8  ;;  %v146_v22 = vmul.f32 %v420_v1, %v67_v9  ;;  %v81_v5 = vld [vmem:[%s1000_s0 + $0x218] sm:$0xff]  ;;  %v83_v11 = vld [vmem:[%s1000_s0 + $0x228] sm:$0xff] }
  0x2b   :  { %361 = vst [vmem:[%s1003_s3 + $0x168] sm:$0xff] %v289_v12  ;;  %362 = vst [vmem:[%s1003_s3 + $0x170] sm:$0xff] %v290_v13  ;;  %v147_v23 = vmul.f32 %v420_v1, %v68_v10  ;;  %v221_v24 = vadd.f32 %v425_v2, %v142_v17  ;;  %v222_v25 = vadd.f32 %v425_v2, %v143_v18  ;;  %v82_v10 = vld [vmem:[%s1000_s0 + $0x220] sm:$0xff]  ;;  %v84_v12 = vld [vmem:[%s1000_s0 + $0x230] sm:$0xff] }
  0x2c   :  { %363 = vst [vmem:[%s1003_s3 + $0x178] sm:$0xff] %v291_v16  ;;  %v223_v26 = vadd.f32 %v425_v2, %v144_v19  ;;  %v148_v27 = vmul.f32 %v420_v1, %v69_v15  ;;  %v292_v29 = vmax.f32 %v220_v20, 0.0  ;;  %v224_v30 = vadd.f32 %v425_v2, %v145_v21  ;;  %v85_v17 = vld [vmem:[%s1000_s0 + $0x238] sm:$0xff] }
  0x2d   :  { %v225_v31 = vadd.f32 %v425_v2, %v146_v22  ;;  %v226_v32 = vadd.f32 %v425_v2, %v147_v23  ;;  %v293_v36 = vmax.f32 %v221_v24, 0.0  ;;  %v294_v37 = vmax.f32 %v222_v25, 0.0 }
  0x2e   :  { %v295_v38 = vmax.f32 %v223_v26, 0.0  ;;  %v227_v39 = vadd.f32 %v425_v2, %v148_v27  ;;  %364 = vst [vmem:[%s1003_s3 + $0x180] sm:$0xff] %v292_v29  ;;  %v296_v43 = vmax.f32 %v224_v30, 0.0  ;;  %v149_v46 = vmul.f32 %v420_v1, %v70_v28 }
  0x2f   :  { %v297_v44 = vmax.f32 %v225_v31, 0.0  ;;  %v298_v45 = vmax.f32 %v226_v32, 0.0  ;;  %365 = vst [vmem:[%s1003_s3 + $0x188] sm:$0xff] %v293_v36  ;;  %366 = vst [vmem:[%s1003_s3 + $0x190] sm:$0xff] %v294_v37  ;;  %v150_v49 = vmul.f32 %v420_v1, %v71_v33  ;;  %v151_v50 = vmul.f32 %v420_v1, %v72_v34 }
  0x30   :  { %367 = vst [vmem:[%s1003_s3 + $0x198] sm:$0xff] %v295_v38  ;;  %v299_v48 = vmax.f32 %v227_v39, 0.0  ;;  %v152_v51 = vmul.f32 %v420_v1, %v73_v35  ;;  %368 = vst [vmem:[%s1003_s3 + $0x1a0] sm:$0xff] %v296_v43  ;;  %v228_v52 = vadd.f32 %v425_v2, %v149_v46  ;;  %v153_v53 = vmul.f32 %v420_v1, %v74_v40 }
  0x31   :  { %369 = vst [vmem:[%s1003_s3 + $0x1a8] sm:$0xff] %v297_v44  ;;  %370 = vst [vmem:[%s1003_s3 + $0x1b0] sm:$0xff] %v298_v45  ;;  %v154_v54 = vmul.f32 %v420_v1, %v75_v41  ;;  %v155_v55 = vmul.f32 %v420_v1, %v76_v42  ;;  %v229_v56 = vadd.f32 %v425_v2, %v150_v49 }
  0x32   :  { %371 = vst [vmem:[%s1003_s3 + $0x1b8] sm:$0xff] %v299_v48  ;;  %v230_v57 = vadd.f32 %v425_v2, %v151_v50  ;;  %v231_v58 = vadd.f32 %v425_v2, %v152_v51  ;;  %v156_v59 = vmul.f32 %v420_v1, %v77_v47  ;;  %v300_v61 = vmax.f32 %v228_v52, 0.0 }
  0x33   :  { %v232_v62 = vadd.f32 %v425_v2, %v153_v53  ;;  %v233_v63 = vadd.f32 %v425_v2, %v154_v54  ;;  %v234_v0 = vadd.f32 %v425_v2, %v155_v55  ;;  %v301_v6 = vmax.f32 %v229_v56, 0.0 }
  0x34   :  { %v302_v7 = vmax.f32 %v230_v57, 0.0  ;;  %v303_v8 = vmax.f32 %v231_v58, 0.0  ;;  %v235_v9 = vadd.f32 %v425_v2, %v156_v59  ;;  %372 = vst [vmem:[%s1003_s3 + $0x1c0] sm:$0xff] %v300_v61  ;;  %v157_v16 = vmul.f32 %v420_v1, %v78_v60 }
  0x35   :  { %v304_v13 = vmax.f32 %v232_v62, 0.0  ;;  %v305_v14 = vmax.f32 %v233_v63, 0.0  ;;  %v306_v15 = vmax.f32 %v234_v0, 0.0  ;;  %373 = vst [vmem:[%s1003_s3 + $0x1c8] sm:$0xff] %v301_v6  ;;  %v158_v19 = vmul.f32 %v420_v1, %v79_v3 }
  0x36   :  { %374 = vst [vmem:[%s1003_s3 + $0x1d0] sm:$0xff] %v302_v7  ;;  %375 = vst [vmem:[%s1003_s3 + $0x1d8] sm:$0xff] %v303_v8  ;;  %v307_v18 = vmax.f32 %v235_v9, 0.0  ;;  %v159_v20 = vmul.f32 %v420_v1, %v80_v4  ;;  %v160_v21 = vmul.f32 %v420_v1, %v81_v5  ;;  %v236_v22 = vadd.f32 %v425_v2, %v157_v16 }
  0x37   :  { %376 = vst [vmem:[%s1003_s3 + $0x1e0] sm:$0xff] %v304_v13  ;;  %377 = vst [vmem:[%s1003_s3 + $0x1e8] sm:$0xff] %v305_v14  ;;  %v161_v23 = vmul.f32 %v420_v1, %v82_v10  ;;  %v162_v24 = vmul.f32 %v420_v1, %v83_v11  ;;  %v163_v25 = vmul.f32 %v420_v1, %v84_v12 }
  0x38   :  { %378 = vst [vmem:[%s1003_s3 + $0x1f0] sm:$0xff] %v306_v15  ;;  %379 = vst [vmem:[%s1003_s3 + $0x1f8] sm:$0xff] %v307_v18  ;;  %v237_v26 = vadd.f32 %v425_v2, %v158_v19  ;;  %v238_v27 = vadd.f32 %v425_v2, %v159_v20  ;;  %v239_v28 = vadd.f32 %v425_v2, %v160_v21  ;;  %v308_v30 = vmax.f32 %v236_v22, 0.0 }
  0x39   :  { %v164_v29 = vmul.f32 %v420_v1, %v85_v17  ;;  %v240_v31 = vadd.f32 %v425_v2, %v161_v23  ;;  %v241_v32 = vadd.f32 %v425_v2, %v162_v24  ;;  %v242_v33 = vadd.f32 %v425_v2, %v163_v25 }
  0x3a   :  { %v309_v34 = vmax.f32 %v237_v26, 0.0  ;;  %v310_v35 = vmax.f32 %v238_v27, 0.0  ;;  %v311_v36 = vmax.f32 %v239_v28, 0.0  ;;  %380 = vst [vmem:[%s1003_s3 + $0x200] sm:$0xff] %v308_v30 }
  0x3b   :  { %v243_v37 = vadd.f32 %v425_v2, %v164_v29  ;;  %v312_v38 = vmax.f32 %v240_v31, 0.0  ;;  %v313_v39 = vmax.f32 %v241_v32, 0.0  ;;  %v314_v40 = vmax.f32 %v242_v33, 0.0 }
  0x3c   :  { %381 = vst [vmem:[%s1003_s3 + $0x208] sm:$0xff] %v309_v34  ;;  %382 = vst [vmem:[%s1003_s3 + $0x210] sm:$0xff] %v310_v35 }
  0x3d   :  { %383 = vst [vmem:[%s1003_s3 + $0x218] sm:$0xff] %v311_v36  ;;  %v315_v1 = vmax.f32 %v243_v37, 0.0  ;;  %384 = vst [vmem:[%s1003_s3 + $0x220] sm:$0xff] %v312_v38 }
  0x3e   :  { %385 = vst [vmem:[%s1003_s3 + $0x228] sm:$0xff] %v313_v39  ;;  %386 = vst [vmem:[%s1003_s3 + $0x230] sm:$0xff] %v314_v40 }
  0x3f   :  { %387 = vst [vmem:[%s1003_s3 + $0x238] sm:$0xff] %v315_v1 }

// kernel: double_conv.3
= control target key start
LH: loop header
LB: loop body
LE: loop exit
PB: predicated region body
PF: predicated region fallthrough
CT: control target
= control target key end

     0   :  { %s3483_s24 = smov 0   ;;  %s3485_s25 = smov 0   ;;  %s5266_s0 = inlined_call_operand.vmem [shape: f32[2,16,18,128], index: 0, kind: input, shape index: {}, may-alias: {0,1,2}]   ;;  %s5267_s1 = inlined_call_operand.vmem [shape: f32[2,16,18,128], index: 1, kind: input, shape index: {}, may-alias: {0,1,2}]   ;;  %s5268_s2 = inlined_call_operand.vmem [shape: f32[2,16,18,128], index: 2, kind: input, shape index: {}, may-alias: {0,1,2}]   ;;  %s5269_s3 = inlined_call_operand.vmem [shape: f32[3,384,128], index: 3, kind: input, shape index: {}]   ;;  %s5270_s4 = inlined_call_operand.vmem [shape: f32[1,128], index: 4, kind: input, shape index: {}, may-alias: {4,5}]   ;;  %s5271_s5 = inlined_call_operand.vmem [shape: f32[1,128], index: 5, kind: input, shape index: {}, may-alias: {4,5}]   ;;  %s5272_s6 = inlined_call_operand.vmem [shape: f32[2,16,18,128], index: 6, kind: output, shape index: {0}]   ;;  %s5273_s7 = inlined_call_operand.vmem [shape: f32[2,1,2,128], index: 7, kind: output, shape index: {1}]  }
   0x1   :  { %s3487_s26 = smov 0  }
   0x2 LB: > { %s30_s4 = sadd.s32 1, %s3436_s25  ;;  %p2870_p0 = scmp.ge.s32.totalorder %s3440_s26, 1  ;;  %s3440_s26 = sphi %s3487_s26, %s18_s26   ;;  %s3436_s25 = sphi %s3485_s25, %s5450_s25   ;;  %s3432_s24 = sphi %s3483_s24, %s5449_s24  }
   0x3   : > { %p32_p1 = scmp.ge.s32.totalorder %s30_s4, 2  ;;  %p328_p2 = scmp.lt.s32.totalorder %s3440_s26, 3 }
   0x5   : > { %s5452_s4 = smov (%p32_p1, %s30_s4), 0  ;;  %p329_p3 = pnand %p2870_p0, %p328_p2 }
   0x7   : > { %332 = sbr.rel (%p329_p3) target bundleno = 586 (0x24a), region = 44 }
   0xc   : > { %v2923_v0 = vld [vmem:[%s5269_s3 + $0x2f8] sm:$0xff]  ;;  %v2922_v2 = vld [vmem:[%s5269_s3 + $0x2f0] sm:$0xff]  ;;  %p404_p4 = scmp.lt.s32.totalorder %s3432_s24, 1  ;;  %v5286_v3 = vmov 0.0   ;;  %v2921_v5 = vld [vmem:[%s5269_s3 + $0x2e8] sm:$0xff]  ;;  %vm695_vm0 = vcmask 1045504  }
   0xd   : > { %v2891_v1 = vld [vmem:[%s5269_s3 + $0x1f8] sm:$0xff]  ;;  %922 = vmatprep.subr.mxu0 %v5286_v3  ;;  %3120 = vmatprep.subr.mxu1 %v2923_v0  ;;  %v2890_v4 = vld [vmem:[%s5269_s3 + $0x1f0] sm:$0xff]  ;;  %v2889_v6 = vld [vmem:[%s5269_s3 + $0x1e8] sm:$0xff]  ;;  %vm582_vm1 = vcmask 1046528   ;;  %vm2476_vm2 = vcmask 1040384  }
   0xe   : > { %923 = vmatpush1.msra.mxu0 %v2891_v1  ;;  %3121 = vmatpush3.msra.mxu1 %v2923_v0  ;;  %s5454_s24 = smov (!%p404_p4, %s3432_s24), 1  ;;  %v2920_v7 = vld [vmem:[%s5269_s3 + $0x2e0] sm:$0xff]  ;;  %v2919_v9 = vld [vmem:[%s5269_s3 + $0x2d8] sm:$0xff]  ;;  %v2918_v11 = vld [vmem:[%s5269_s3 + $0x2d0] sm:$0xff] }
   0xf   : > { %924 = vmatprep.subr.mxu0 %v5286_v3  ;;  %3122 = vmatprep.subr.mxu1 %v2922_v2  ;;  %v2888_v8 = vld [vmem:[%s5269_s3 + $0x1e0] sm:$0xff]  ;;  %v2887_v10 = vld [vmem:[%s5269_s3 + $0x1d8] sm:$0xff]  ;;  %v2886_v12 = vld [vmem:[%s5269_s3 + $0x1d0] sm:$0xff]  ;;  %s3569_s20 = smul.u32 384, %s5454_s24 }
  0x10   : > { %925 = vmatpush1.msra.mxu0 %v2890_v4  ;;  %3123 = vmatpush3.msra.mxu1 %v2922_v2  ;;  %v2917_v13 = vld [vmem:[%s5269_s3 + $0x2c8] sm:$0xff]  ;;  %v2916_v15 = vld [vmem:[%s5269_s3 + $0x2c0] sm:$0xff]  ;;  %v2915_v17 = vld [vmem:[%s5269_s3 + $0x2b8] sm:$0xff] }
  0x11   : > { %926 = vmatprep.subr.mxu0 %v5286_v3  ;;  %3124 = vmatprep.subr.mxu1 %v2921_v5  ;;  %v2885_v14 = vld [vmem:[%s5269_s3 + $0x1c8] sm:$0xff]  ;;  %v2884_v16 = vld [vmem:[%s5269_s3 + $0x1c0] sm:$0xff]  ;;  %v2883_v18 = vld [vmem:[%s5269_s3 + $0x1b8] sm:$0xff]  ;;  %s3589_s10 = scalar_lea.vmem %s5266_s0, %s3569_s20  ;;  %s4115_s21 = scalar_lea.vmem %s5267_s1, %s3569_s20 }
  0x12   : > { %927 = vmatpush1.msra.mxu0 %v2889_v6  ;;  %3125 = vmatpush3.msra.mxu1 %v2921_v5  ;;  %v2914_v19 = vld [vmem:[%s5269_s3 + $0x2b0] sm:$0xff]  ;;  %v2913_v21 = vld [vmem:[%s5269_s3 + $0x2a8] sm:$0xff]  ;;  %v2912_v23 = vld [vmem:[%s5269_s3 + $0x2a0] sm:$0xff]  ;;  %s2975_s8 = sadd.s32 360, %s3569_s20  ;;  %s5117_s14 = scalar_lea.vmem %s5272_s6, %s3569_s20 }
  0x13   : > { %928 = vmatprep.subr.mxu0 %v5286_v3  ;;  %3126 = vmatprep.subr.mxu1 %v2920_v7  ;;  %v2882_v20 = vld [vmem:[%s5269_s3 + $0x1b0] sm:$0xff]  ;;  %v2881_v22 = vld [vmem:[%s5269_s3 + $0x1a8] sm:$0xff]  ;;  %v2880_v24 = vld [vmem:[%s5269_s3 + $0x1a0] sm:$0xff]  ;;  %s443_s12 = scalar_lea.vmem %s5268_s2, %s2975_s8  ;;  %s2875_s20 = sshll.u32 %s5454_s24, 1 }
  0x14   : > { %929 = vmatpush1.msra.mxu0 %v2888_v8  ;;  %3127 = vmatpush3.msra.mxu1 %v2920_v7  ;;  %v2911_v25 = vld [vmem:[%s5269_s3 + $0x298] sm:$0xff]  ;;  %v3603_v27 = vld [vmem:[%s3589_s10] sm:$0xff]  ;;  %v3606_v28 = vld [vmem:[%s3589_s10 + $0x8] sm:$0xff]  ;;  %s465_s17 = scalar_lea.vmem %s5273_s7, %s2875_s20 }
  0x15   : > { %930 = vmatprep.subr.mxu0 %v5286_v3  ;;  %3128 = vmatprep.subr.mxu1 %v2919_v9  ;;  %v2879_v26 = vld [vmem:[%s5269_s3 + $0x198] sm:$0xff]  ;;  %v2910_v29 = vld [vmem:[%s5269_s3 + $0x290] sm:$0xff]  ;;  %v2909_v32 = vld [vmem:[%s5269_s3 + $0x288] sm:$0xff]  ;;  %v701_v33 = vrot.slane %v3603_v27, 2  ;;  %v702_v34 = vrot.slane %v3606_v28, 2 }
  0x16   : > { %931 = vmatpush1.msra.mxu0 %v2887_v10  ;;  %3129 = vmatpush3.msra.mxu1 %v2919_v9  ;;  %v3612_v30 = vld [vmem:[%s3589_s10 + $0x10] sm:$0x3]  ;;  %v2877_v35 = vld [vmem:[%s5269_s3 + $0x188] sm:$0xff]  ;;  %v3629_v37 = vld [vmem:[%s3589_s10 + $0x18] sm:$0xff] }
  0x17   : > { %932 = vmatprep.subr.mxu0 %v5286_v3  ;;  %3130 = vmatprep.subr.mxu1 %v2918_v11  ;;  %v2878_v31 = vld [vmem:[%s5269_s3 + $0x190] sm:$0xff]  ;;  %v704_v36 = vrot.slane %v3612_v30, 2  ;;  %v3632_v38 = vld [vmem:[%s3589_s10 + $0x20] sm:$0xff]  ;;  %v3642_v41 = vld [vmem:[%s3589_s10 + $0x28] sm:$0x3]  ;;  %v3645_v42 = vsel %vm695_vm0, %v701_v33, %v702_v34  ;;  %v706_v43 = vrot.slane %v3629_v37, 2 }
  0x18   : > { %933 = vmatpush1.msra.mxu0 %v2886_v12  ;;  %3131 = vmatpush3.msra.mxu1 %v2918_v11  ;;  %v2908_v39 = vld [vmem:[%s5269_s3 + $0x280] sm:$0xff]  ;;  %5354 = vst [vmem:[#allocation2_spill] sm:$0xff] %v3645_v42  ;;  %v707_v44 = vrot.slane %v3632_v38, 2  ;;  %v2907_v46 = vld [vmem:[%s5269_s3 + $0x278] sm:$0xff]  ;;  %v709_v48 = vrot.slane %v3642_v41, 2  ;;  %v3661_v49 = vld [vmem:[%s3589_s10 + $0x30] sm:$0xff] }
  0x19   : > { %934 = vmatprep.subr.mxu0 %v5286_v3  ;;  %3132 = vmatprep.subr.mxu1 %v2917_v13  ;;  %v2876_v40 = vld [vmem:[%s5269_s3 + $0x180] sm:$0xff]  ;;  %v3651_v45 = vsel %vm695_vm0, %v702_v34, %v704_v36  ;;  %v823_v47 = vld [vmem:[%s5269_s3 + $0x78] sm:$0xff]  ;;  %v2906_v51 = vld [vmem:[%s5269_s3 + $0x270] sm:$0xff]  ;;  %v711_v55 = vrot.slane %v3661_v49, 2 }
  0x1a   : > { %935 = vmatpush1.msra.mxu0 %v2885_v14  ;;  %3133 = vmatpush3.msra.mxu1 %v2917_v13  ;;  %5355 = vst [vmem:[#allocation3_spill] sm:$0xff] %v3651_v45  ;;  %v3664_v50 = vld [vmem:[%s3589_s10 + $0x38] sm:$0xff]  ;;  %v3674_v52 = vsel %vm695_vm0, %v706_v43, %v707_v44  ;;  %v3677_v53 = vld [vmem:[%s3589_s10 + $0x40] sm:$0x3]  ;;  %v822_v54 = vld [vmem:[%s5269_s3 + $0x70] sm:$0xff]  ;;  %v3687_v57 = vsel %vm695_vm0, %v707_v44, %v709_v48 }
  0x1b   : > { %936 = vmatprep.subr.mxu0 %v5286_v3  ;;  %3134 = vmatprep.subr.mxu1 %v2916_v15  ;;  %5356 = vst [vmem:[#allocation4_spill] sm:$0xff] %v3674_v52  ;;  %v712_v56 = vrot.slane %v3664_v50, 2  ;;  %5357 = vst [vmem:[#allocation5_spill] sm:$0xff] %v3687_v57  ;;  %v2905_v58 = vld [vmem:[%s5269_s3 + $0x268] sm:$0xff]  ;;  %v714_v60 = vrot.slane %v3677_v53, 2  ;;  %v3701_v62 = vld [vmem:[%s3589_s10 + $0x50] sm:$0xff] }
  0x1c   : > { %937 = vmatpush1.msra.mxu0 %v2884_v16  ;;  %3135 = vmatpush3.msra.mxu1 %v2916_v15  ;;  %v821_v59 = vld [vmem:[%s5269_s3 + $0x68] sm:$0xff]  ;;  %v2904_v63 = vld [vmem:[%s5269_s3 + $0x260] sm:$0xff]  ;;  %v3713_v1 = vld [vmem:[%s3589_s10 + $0x58] sm:$0x3]  ;;  %v717_v5 = vrot.slane %v3701_v62, 2 }
  0x1d   : > { %938 = vmatprep.subr.mxu0 %v5286_v3  ;;  %3136 = vmatprep.subr.mxu1 %v2915_v17  ;;  %v3698_v61 = vld [vmem:[%s3589_s10 + $0x48] sm:$0xff]  ;;  %v3710_v0 = vsel %vm695_vm0, %v711_v55, %v712_v56  ;;  %v820_v2 = vld [vmem:[%s5269_s3 + $0x60] sm:$0xff]  ;;  %v3723_v6 = vsel %vm695_vm0, %v712_v56, %v714_v60  ;;  %v2903_v7 = vld [vmem:[%s5269_s3 + $0x258] sm:$0xff]  ;;  %v719_v9 = vrot.slane %v3713_v1, 2 }
  0x1e   : > { %939 = vmatpush1.msra.mxu0 %v2883_v18  ;;  %3137 = vmatpush3.msra.mxu1 %v2915_v17  ;;  %5358 = vst [vmem:[#allocation6_spill] sm:$0xff] %v3710_v0  ;;  %v716_v4 = vrot.slane %v3698_v61, 2  ;;  %5359 = vst [vmem:[#allocation7_spill] sm:$0xff] %v3723_v6  ;;  %v819_v8 = vld [vmem:[%s5269_s3 + $0x58] sm:$0xff]  ;;  %v3734_v10 = vld [vmem:[%s3589_s10 + $0x60] sm:$0xff] }
  0x1f   : > { %940 = vmatprep.subr.mxu0 %v5286_v3  ;;  %3138 = vmatprep.subr.mxu1 %v2914_v19  ;;  %v3737_v11 = vld [vmem:[%s3589_s10 + $0x68] sm:$0xff]  ;;  %v2902_v12 = vld [vmem:[%s5269_s3 + $0x250] sm:$0xff]  ;;  %v721_v16 = vrot.slane %v3734_v10, 2  ;;  %v3759_v18 = vsel %vm695_vm0, %v717_v5, %v719_v9  ;;  %v2899_v34 = vld [vmem:[%s5269_s3 + $0x238] sm:$0xff] }
  0x20   : > { %941 = vmatpush1.msra.mxu0 %v2882_v20  ;;  %3139 = vmatpush3.msra.mxu1 %v2914_v19  ;;  %v3746_v13 = vsel %vm695_vm0, %v716_v4, %v717_v5  ;;  %v3749_v14 = vld [vmem:[%s3589_s10 + $0x70] sm:$0x3]  ;;  %v722_v17 = vrot.slane %v3737_v11, 2  ;;  %5361 = vst [vmem:[#allocation9_spill] sm:$0xff] %v3759_v18  ;;  %v2901_v19 = vld [vmem:[%s5269_s3 + $0x248] sm:$0xff]  ;;  %v812_v5 = vld [vmem:[%s5269_s3 + $0x20] sm:$0xff] }
  0x21   : > { %942 = vmatprep.subr.mxu0 %v5286_v3  ;;  %3140 = vmatprep.subr.mxu1 %v2913_v21  ;;  %5360 = vst [vmem:[#allocation8_spill] sm:$0xff] %v3746_v13  ;;  %v818_v15 = vld [vmem:[%s5269_s3 + $0x50] sm:$0xff]  ;;  %v817_v20 = vld [vmem:[%s5269_s3 + $0x48] sm:$0xff]  ;;  %v3857_v4 = vld [vmem:[%s3589_s10 + $0xb8] sm:$0x3] }
  0x22   : > { %943 = vmatpush1.msra.mxu0 %v2881_v22  ;;  %3141 = vmatpush3.msra.mxu1 %v2913_v21  ;;  %v724_v21 = vrot.slane %v3749_v14, 2  ;;  %v3770_v22 = vld [vmem:[%s3589_s10 + $0x78] sm:$0xff]  ;;  %v2898_v43 = vld [vmem:[%s5269_s3 + $0x230] sm:$0xff]  ;;  %v2897_v55 = vld [vmem:[%s5269_s3 + $0x228] sm:$0xff] }
  0x23   : > { %944 = vmatprep.subr.mxu0 %v5286_v3  ;;  %3142 = vmatprep.subr.mxu1 %v2912_v23  ;;  %v813_v56 = vld [vmem:[%s5269_s3 + $0x28] sm:$0xff]  ;;  %v3845_v60 = vld [vmem:[%s3589_s10 + $0xb0] sm:$0xff] }
  0x24   : > { %945 = vmatpush1.msra.mxu0 %v2880_v24  ;;  %3143 = vmatpush3.msra.mxu1 %v2912_v23  ;;  %v3773_v23 = vld [vmem:[%s3589_s10 + $0x80] sm:$0xff]  ;;  %v3795_v33 = vsel %vm695_vm0, %v722_v17, %v724_v21 }
  0x25   : > { %946 = vmatprep.subr.mxu0 %v5286_v3  ;;  %3144 = vmatprep.subr.mxu1 %v2911_v25  ;;  %v2900_v24 = vld [vmem:[%s5269_s3 + $0x240] sm:$0xff]  ;;  %5363 = vst [vmem:[#allocation11_spill] sm:$0xff] %v3795_v33 }
  0x26   : > { %947 = vmatpush1.msra.mxu0 %v2879_v26  ;;  %3145 = vmatpush3.msra.mxu1 %v2911_v25  ;;  %v3782_v25 = vsel %vm695_vm0, %v721_v16, %v722_v17  ;;  %v3785_v26 = vld [vmem:[%s3589_s10 + $0x88] sm:$0x3]  ;;  %v739_v16 = vrot.slane %v3857_v4, 2  ;;  %v3879_v17 = vld [vmem:[%s3589_s10 + $0xc0] sm:$0xff] }
  0x27   : > { %948 = vmatprep.subr.mxu0 %v5286_v3  ;;  %3146 = vmatprep.subr.mxu1 %v2910_v29  ;;  %5362 = vst [vmem:[#allocation10_spill] sm:$0xff] %v3782_v25  ;;  %v729_v36 = vrot.slane %v3785_v26, 2 }
  0x28   : > { %949 = vmatpush1.msra.mxu0 %v2878_v31  ;;  %3147 = vmatpush3.msra.mxu1 %v2910_v29  ;;  %v816_v29 = vld [vmem:[%s5269_s3 + $0x40] sm:$0xff]  ;;  %v726_v31 = vrot.slane %v3770_v22, 2 }
  0x29   : > { %950 = vmatprep.subr.mxu0 %v5286_v3  ;;  %3148 = vmatprep.subr.mxu1 %v2909_v32 }
  0x2a   : > { %951 = vmatpush1.msra.mxu0 %v2877_v35  ;;  %3149 = vmatpush3.msra.mxu1 %v2909_v32  ;;  %v727_v32 = vrot.slane %v3773_v23, 2  ;;  %v815_v35 = vld [vmem:[%s5269_s3 + $0x38] sm:$0xff] }
  0x2b   : > { %952 = vmatprep.subr.mxu0 %v5286_v3  ;;  %3150 = vmatprep.subr.mxu1 %v2908_v39 }
  0x2c   : > { %953 = vmatpush1.msra.mxu0 %v2876_v40  ;;  %3151 = vmatpush3.msra.mxu1 %v2908_v39  ;;  %v3806_v39 = vld [vmem:[%s3589_s10 + $0x90] sm:$0xff]  ;;  %v3809_v40 = vld [vmem:[%s3589_s10 + $0x98] sm:$0xff]  ;;  %v3818_v44 = vsel %vm695_vm0, %v726_v31, %v727_v32  ;;  %v588_v31 = vrot.slane %v3603_v27, 1 }
  0x2d   : > { %3152 = vmatprep.mubr.f32.mxu1 %v3645_v42  ;;  %954 = vmatprep.subr.mxu0 %v5286_v3  ;;  %5364 = vst [vmem:[#allocation12_spill] sm:$0xff] %v3818_v44  ;;  %v731_v48 = vrot.slane %v3806_v39, 2 }
  0x2e   : > { %3153 = vmatmul.mubr.f32.vlgmr.msra.gmra.mxu1 %v3651_v45  ;;  %1372 = vmatprep.subr.mxu1 %v5286_v3  ;;  %v4129_v45 = vld [vmem:[%s3589_s10 + $0x168] sm:$0xff] }
  0x2f   : > { %955 = vmatpush2.msra.mxu0 %v2907_v46  ;;  %1373 = vmatpush1.msra.mxu1 %v823_v47  ;;  %v3821_v46 = vld [vmem:[%s3589_s10 + $0xa0] sm:$0x3]  ;;  %v814_v47 = vld [vmem:[%s5269_s3 + $0x30] sm:$0xff] }
  0x30   : > { %956 = vmatprep.subr.mxu0 %v5286_v3  ;;  %1374 = vmatprep.subr.mxu1 %v5286_v3 }
  0x31   : > { %957 = vmatpush2.msra.mxu0 %v2906_v51  ;;  %3155 = vmatprep.mubr.f32.mxu1 %v3674_v52  ;;  %v732_v51 = vrot.slane %v3809_v40, 2  ;;  %v830_v52 = vld [vmem:[%s5269_s3 + $0xb0] sm:$0xff] }
  0x32   : > { %1375 = vmatpush1.msra.mxu1 %v822_v54  ;;  %958 = vmatprep.subr.mxu0 %v5286_v3  ;;  %v3831_v54 = vsel %vm695_vm0, %v727_v32, %v729_v36  ;;  %v589_v32 = vrot.slane %v3606_v28, 1 }
  0x33   : > { %3156 = vmatmul.mubr.f32.gmra.mxu1 %v3687_v57  ;;  %1376 = vmatprep.subr.mxu1 %v5286_v3  ;;  %5365 = vst [vmem:[#allocation13_spill] sm:$0xff] %v3831_v54 }
  0x34   : > { %959 = vmatpush2.msra.mxu0 %v2905_v58  ;;  %1377 = vmatpush1.msra.mxu1 %v821_v59  ;;  %v734_v58 = vrot.slane %v3821_v46, 2  ;;  %v3842_v59 = vld [vmem:[%s3589_s10 + $0xa8] sm:$0xff] }
  0x35   : > { %960 = vmatprep.subr.mxu0 %v5286_v3  ;;  %1378 = vmatprep.subr.mxu1 %v5286_v3 }
  0x36   : > { %961 = vmatpush2.msra.mxu0 %v2904_v63  ;;  %3158 = vmatprep.mubr.f32.mxu1 %v3710_v0  ;;  %v2896_v63 = vld [vmem:[%s5269_s3 + $0x220] sm:$0xff]  ;;  %v3867_v9 = vsel %vm695_vm0, %v732_v51, %v734_v58 }
  0x37   : > { %1379 = vmatpush1.msra.mxu1 %v820_v2  ;;  %962 = vmatprep.subr.mxu0 %v5286_v3  ;;  %v3854_v2 = vsel %vm695_vm0, %v731_v48, %v732_v51  ;;  %5367 = vst [vmem:[#allocation15_spill] sm:$0xff] %v3867_v9  ;;  %v2893_v48 = vld [vmem:[%s5269_s3 + $0x208] sm:$0xff]  ;;  %v2892_v58 = vld [vmem:[%s5269_s3 + $0x200] sm:$0xff] }
  0x38   : > { %3159 = vmatmul.mubr.f32.gmra.mxu1 %v3723_v6  ;;  %1380 = vmatprep.subr.mxu1 %v5286_v3  ;;  %5366 = vst [vmem:[#allocation14_spill] sm:$0xff] %v3854_v2  ;;  %v809_v51 = vld [vmem:[%s5269_s3 + $0x8] sm:$0xff] }
  0x39   : > { %963 = vmatpush2.msra.mxu0 %v2903_v7  ;;  %1381 = vmatpush1.msra.mxu1 %v819_v8  ;;  %v736_v7 = vrot.slane %v3842_v59, 2  ;;  %v737_v8 = vrot.slane %v3845_v60, 2  ;;  %v4074_v6 = vld [vmem:[%s3589_s10 + $0x148] sm:$0x3] }
  0x3a   : > { %964 = vmatprep.subr.mxu0 %v5286_v3  ;;  %1382 = vmatprep.subr.mxu1 %v5286_v3  ;;  %5380 = vst [vmem:[#allocation27_spill] sm:$0xff] %v4074_v6  ;;  %v769_v0 = vrot.slane %v4074_v6, 2  ;;  %v606_v6 = vrot.slane %v3713_v1, 1  ;;  %v828_v1 = vld [vmem:[%s5269_s3 + $0xa0] sm:$0xff] }
  0x3b   : > { %965 = vmatpush2.msra.mxu0 %v2902_v12  ;;  %3161 = vmatprep.mubr.f32.mxu1 %v3746_v13  ;;  %v2895_v12 = vld [vmem:[%s5269_s3 + $0x218] sm:$0xff]  ;;  %v3890_v21 = vsel %vm695_vm0, %v736_v7, %v737_v8 }
  0x3c   : > { %1383 = vmatpush1.msra.mxu1 %v818_v15  ;;  %966 = vmatprep.subr.mxu0 %v5286_v3  ;;  %v811_v15 = vld [vmem:[%s5269_s3 + $0x18] sm:$0xff]  ;;  %5368 = vst [vmem:[#allocation16_spill] sm:$0xff] %v3890_v21 }
  0x3d   : > { %3162 = vmatmul.mubr.f32.gmra.mxu1 %v3759_v18  ;;  %1384 = vmatprep.subr.mxu1 %v5286_v3 }
  0x3e   : > { %967 = vmatpush2.msra.mxu0 %v2901_v19  ;;  %1385 = vmatpush1.msra.mxu1 %v817_v20  ;;  %v3882_v19 = vld [vmem:[%s3589_s10 + $0xc8] sm:$0xff]  ;;  %v2894_v20 = vld [vmem:[%s5269_s3 + $0x210] sm:$0xff] }
  0x3f   : > { %968 = vmatprep.subr.mxu0 %v5286_v3  ;;  %1386 = vmatprep.subr.mxu1 %v5286_v3  ;;  %v742_v36 = vrot.slane %v3882_v19, 2 }
  0x40   : > { %969 = vmatpush2.msra.mxu0 %v2900_v24  ;;  %3164 = vmatprep.mubr.f32.mxu1 %v3782_v25  ;;  %v3893_v24 = vld [vmem:[%s3589_s10 + $0xd0] sm:$0x3] }
  0x41   : > { %1387 = vmatpush1.msra.mxu1 %v816_v29  ;;  %970 = vmatprep.subr.mxu0 %v5286_v3  ;;  %v810_v29 = vld [vmem:[%s5269_s3 + $0x10] sm:$0xff] }
  0x42   : > { %3165 = vmatmul.mubr.f32.gmra.mxu1 %v3795_v33  ;;  %1388 = vmatprep.subr.mxu1 %v5286_v3 }
  0x43   : > { %971 = vmatpush2.msra.mxu0 %v2899_v34  ;;  %1389 = vmatpush1.msra.mxu1 %v815_v35  ;;  %v3903_v34 = vsel %vm695_vm0, %v737_v8, %v739_v16  ;;  %v741_v35 = vrot.slane %v3879_v17, 2  ;;  %v3934_v8 = vld [vmem:[%s3589_s10 + $0xe8] sm:$0x3]  ;;  %v3948_v16 = vld [vmem:[%s3589_s10 + $0xf0] sm:$0xff] }
  0x44   : > { %972 = vmatprep.subr.mxu0 %v5286_v3  ;;  %1390 = vmatprep.subr.mxu1 %v5286_v3  ;;  %5369 = vst [vmem:[#allocation17_spill] sm:$0xff] %v3903_v34 }
  0x45   : > { %973 = vmatpush2.msra.mxu0 %v2898_v43  ;;  %3167 = vmatprep.mubr.f32.mxu1 %v3818_v44  ;;  %v3908_v43 = vld [vmem:[%s3589_s10 + $0xd8] sm:$0xff] }
  0x46   : > { %1391 = vmatpush1.msra.mxu1 %v814_v47  ;;  %974 = vmatprep.subr.mxu0 %v5286_v3  ;;  %v3911_v47 = vld [vmem:[%s3589_s10 + $0xe0] sm:$0xff] }
  0x47   : > { %3168 = vmatmul.mubr.f32.gmra.mxu1 %v3831_v54  ;;  %1392 = vmatprep.subr.mxu1 %v5286_v3  ;;  %v747_v7 = vrot.slane %v3911_v47, 2 }
  0x48   : > { %975 = vmatpush2.msra.mxu0 %v2897_v55  ;;  %1393 = vmatpush1.msra.mxu1 %v813_v56  ;;  %v744_v55 = vrot.slane %v3893_v24, 2  ;;  %v591_v56 = vrot.slane %v3612_v30, 1  ;;  %v3937_v30 = vsel %vm695_vm0, %v741_v35, %v742_v36  ;;  %v839_v35 = vld [vmem:[%s5269_s3 + $0xf8] sm:$0xff] }
  0x49   : > { %976 = vmatprep.subr.mxu0 %v5286_v3  ;;  %1394 = vmatprep.subr.mxu1 %v5286_v3  ;;  %5370 = vst [vmem:[#allocation18_spill] sm:$0xff] %v3937_v30 }
  0x4a   : > { %977 = vmatpush2.msra.mxu0 %v2896_v63  ;;  %3170 = vmatprep.mubr.f32.mxu1 %v3854_v2  ;;  %v3929_v63 = vsel %vm582_vm1, %v588_v31, %v589_v32  ;;  %v749_v31 = vrot.slane %v3934_v8, 2  ;;  %v4004_v2 = vld [vmem:[%s3589_s10 + $0x118] sm:$0x3] }
  0x4b   : > { %1395 = vmatpush1.msra.mxu1 %v812_v5  ;;  %978 = vmatprep.subr.mxu0 %v5286_v3  ;;  %v746_v5 = vrot.slane %v3908_v43, 2  ;;  %v759_v54 = vrot.slane %v4004_v2, 2 }
  0x4c   : > { %3171 = vmatmul.mubr.f32.gmra.mxu1 %v3867_v9  ;;  %1396 = vmatprep.subr.mxu1 %v5286_v3 }
  0x4d   : > { %979 = vmatpush2.msra.mxu0 %v2895_v12  ;;  %1397 = vmatpush1.msra.mxu1 %v811_v15  ;;  %v808_v12 = vld [vmem:[%s5269_s3] sm:$0xff]  ;;  %v3945_v15 = vsel %vm695_vm0, %v742_v36, %v744_v55  ;;  %v3963_v36 = vsel %vm695_vm0, %v746_v5, %v747_v7  ;;  %v751_v55 = vrot.slane %v3948_v16, 2  ;;  %v838_v5 = vld [vmem:[%s5269_s3 + $0xf0] sm:$0xff] }
  0x4e   : > { %980 = vmatprep.subr.mxu0 %v5286_v3  ;;  %1398 = vmatprep.subr.mxu1 %v5286_v3  ;;  %5371 = vst [vmem:[#allocation19_spill] sm:$0xff] %v3945_v15  ;;  %5372 = vst [vmem:[#allocation20_spill] sm:$0xff] %v3963_v36 }
  0x4f   : > { %981 = vmatpush2.msra.mxu0 %v2894_v20  ;;  %3173 = vmatprep.mubr.f32.mxu1 %v3890_v21  ;;  %v3951_v20 = vld [vmem:[%s3589_s10 + $0xf8] sm:$0xff]  ;;  %v837_v21 = vld [vmem:[%s5269_s3 + $0xe8] sm:$0xff] }
  0x50   : > { %1399 = vmatpush1.msra.mxu1 %v810_v29  ;;  %982 = vmatprep.subr.mxu0 %v5286_v3  ;;  %v3955_v29 = vsel %vm582_vm1, %v589_v32, %v591_v56  ;;  %v3968_v32 = vld [vmem:[%s3589_s10 + $0x100] sm:$0x3]  ;;  %v752_v56 = vrot.slane %v3951_v20, 2 }
  0x51   : > { %3174 = vmatmul.mubr.f32.gmra.mxu1 %v3903_v34  ;;  %1400 = vmatprep.subr.mxu1 %v5286_v3  ;;  %v754_v34 = vrot.slane %v3968_v32, 2 }
  0x52   : > { %983 = vmatpush2.msra.mxu0 %v2893_v48  ;;  %1401 = vmatpush1.msra.mxu1 %v809_v51  ;;  %v593_v48 = vrot.slane %v3629_v37, 1  ;;  %v594_v51 = vrot.slane %v3632_v38, 1 }
  0x53   : > { %984 = vmatprep.subr.mxu0 %v5286_v3  ;;  %1402 = vmatprep.subr.mxu1 %v5286_v3 }
  0x54   : > { %985 = vmatpush2.msra.mxu0 %v2892_v58  ;;  %986 = vmatprep.mubr.f32.mxu0 %v3929_v63  ;;  %v3977_v58 = vld [vmem:[%s5269_s3 + $0x178] sm:$0xff]  ;;  %v4000_v9 = vsel %vm582_vm1, %v593_v48, %v594_v51  ;;  %v5375_v48 = vmov 0.0  }
  0x55   : > { %3176 = vmatprep.mubr.f32.mxu1 %v3937_v30  ;;  %1403 = vmatpush1.msra.mxu1 %v808_v12  ;;  %v3985_v12 = vld [vmem:[%s3589_s10 + $0x108] sm:$0xff]  ;;  %v3992_v30 = vsel %vm695_vm0, %v747_v7, %v749_v31  ;;  %v4009_v7 = vsel %vm695_vm0, %v751_v55, %v752_v56  ;;  %v4026_v55 = vsel %vm695_vm0, %v752_v56, %v754_v34  ;;  %v599_v34 = vrot.slane %v3664_v50, 1  ;;  %v4040_v56 = vld [vmem:[%s3589_s10 + $0x130] sm:$0x3] }
  0x56   : > { %987 = vmatmul.mubr.f32.vlgmr.msra.gmra.mxu0 %v3603_v27  ;;  %3177 = vmatmul.mubr.f32.gmra.mxu1 %v3945_v15  ;;  %v3988_v15 = vld [vmem:[%s3589_s10 + $0x110] sm:$0xff]  ;;  %5373 = vst [vmem:[#allocation21_spill] sm:$0xff] %v3992_v30  ;;  %5374 = vst [vmem:[#allocation22_spill] sm:$0xff] %v4009_v7  ;;  %v756_v31 = vrot.slane %v3985_v12, 2  ;;  %v764_v18 = vrot.slane %v4040_v56, 2 }
  0x57   : > { %1404 = vmatprep.subr.mxu1 %v5286_v3  ;;  %991 = vmatprep.mubr.f32.mxu0 %v3955_v29  ;;  %5376 = vst [vmem:[#allocation23_spill] sm:$0xff] %v4026_v55 }
  0x58   : > { %1405 = vmatpush2.msra.mxu1 %v839_v35  ;;  %3179 = vmatprep.mubr.f32.mxu1 %v3963_v36  ;;  %v596_v35 = vrot.slane %v3642_v41, 1  ;;  %v836_v41 = vld [vmem:[%s5269_s3 + $0xe0] sm:$0xff] }
  0x59   : > { %1406 = vmatprep.subr.mxu1 %v5286_v3  ;;  %3200 = vmatprep.subr.mxu0 %v3977_v58  ;;  %v757_v3 = vrot.slane %v3988_v15, 2  ;;  %v4019_v36 = vld [vmem:[%s3589_s10 + $0x120] sm:$0xff] }
  0x5a   : > { %1407 = vmatpush2.msra.mxu1 %v838_v5  ;;  %992 = vmatmul.mubr.f32.gmra.mxu0 %v3606_v28  ;;  %v4022_v5 = vld [vmem:[%s3589_s10 + $0x128] sm:$0xff]  ;;  %v4035_v44 = vsel %vm582_vm1, %v594_v51, %v596_v35  ;;  %v834_v51 = vld [vmem:[%s5269_s3 + $0xd0] sm:$0xff]  ;;  %v4054_v35 = vld [vmem:[%s3589_s10 + $0x138] sm:$0xff] }
  0x5b   : > { %3180 = vmatmul.mubr.f32.gmra.mxu1 %v3992_v30  ;;  %1408 = vmatprep.subr.mxu1 %v5375_v48  ;;  %v835_v30 = vld [vmem:[%s5269_s3 + $0xd8] sm:$0xff]  ;;  %v4044_v33 = vsel %vm695_vm0, %v756_v31, %v757_v3  ;;  %v762_v25 = vrot.slane %v4022_v5, 2  ;;  %v4061_v31 = vsel %vm695_vm0, %v757_v3, %v759_v54  ;;  %v766_v54 = vrot.slane %v4054_v35, 2 }
  0x5c   : > { %1409 = vmatpush2.msra.mxu1 %v837_v21  ;;  %996 = vmatprep.mubr.f32.mxu0 %v4000_v9  ;;  %v598_v21 = vrot.slane %v3661_v49, 1  ;;  %5377 = vst [vmem:[#allocation24_spill] sm:$0xff] %v4044_v33  ;;  %5379 = vst [vmem:[#allocation26_spill] sm:$0xff] %v4061_v31 }
  0x5d   : > { %1410 = vmatprep.subr.mxu1 %v5375_v48  ;;  %3182 = vmatprep.mubr.f32.mxu1 %v4009_v7  ;;  %v761_v7 = vrot.slane %v4019_v36, 2 }
  0x5e   : > { %1411 = vmatpush2.msra.mxu1 %v836_v41  ;;  %997 = vmatmul.mubr.f32.gmra.mxu0 %v3629_v37  ;;  %v4057_v41 = vld [vmem:[%s3589_s10 + $0x140] sm:$0xff]  ;;  %v4070_v13 = vsel %vm582_vm1, %v598_v21, %v599_v34  ;;  %v4088_v21 = vld [vmem:[%s3589_s10 + $0x150] sm:$0xff] }
  0x5f   : > { %3183 = vmatmul.mubr.f32.gmra.mxu1 %v4026_v55  ;;  %1412 = vmatprep.subr.mxu1 %v5375_v48  ;;  %5378 = vst [vmem:[#allocation25_spill] sm:$0xff] %v4057_v41  ;;  %v833_v55 = vld [vmem:[%s5269_s3 + $0xc8] sm:$0xff]  ;;  %v4078_v3 = vsel %vm695_vm0, %v761_v7, %v762_v25  ;;  %5382 = vst [vmem:[#allocation29_spill] sm:$0xff] %v4088_v21  ;;  %v4095_v7 = vsel %vm695_vm0, %v762_v25, %v764_v18  ;;  %v604_v18 = vrot.slane %v3701_v62, 1  ;;  %v4109_v25 = vld [vmem:[%s3589_s10 + $0x160] sm:$0x3] }
  0x60   : > { %1413 = vmatpush2.msra.mxu1 %v835_v30  ;;  %1001 = vmatprep.mubr.f32.mxu0 %v4035_v44  ;;  %v601_v30 = vrot.slane %v3677_v53, 1  ;;  %5381 = vst [vmem:[#allocation28_spill] sm:$0xff] %v4078_v3  ;;  %v832_v53 = vld [vmem:[%s5269_s3 + $0xc0] sm:$0xff]  ;;  %5384 = vst [vmem:[#allocation31_spill] sm:$0xff] %v4095_v7  ;;  %v774_v42 = vrot.slane %v4109_v25, 2 }
  0x61   : > { %1414 = vmatprep.subr.mxu1 %v5375_v48  ;;  %3185 = vmatprep.mubr.f32.mxu1 %v4044_v33  ;;  %v767_v33 = vrot.slane %v4057_v41, 2  ;;  %5385 = vst [vmem:[#allocation32_spill] sm:$0xff] %v4109_v25  ;;  %v866_v25 = vrot.slane %v4129_v45, 2  ;;  %v516_v41 = vld [vmem:[%s4115_s21 + $0x10] sm:$0x3] }
  0x62   : > { %1415 = vmatpush2.msra.mxu1 %v834_v51  ;;  %1002 = vmatmul.mubr.f32.gmra.mxu0 %v3632_v38  ;;  %v4091_v51 = vld [vmem:[%s3589_s10 + $0x158] sm:$0xff]  ;;  %v4104_v57 = vsel %vm582_vm1, %v599_v34, %v601_v30  ;;  %v771_v34 = vrot.slane %v4088_v21, 2  ;;  %v829_v21 = vld [vmem:[%s5269_s3 + $0xa8] sm:$0xff] }
  0x63   : > { %3186 = vmatmul.mubr.f32.gmra.mxu1 %v4061_v31  ;;  %1416 = vmatprep.subr.mxu1 %v5375_v48  ;;  %5383 = vst [vmem:[#allocation30_spill] sm:$0xff] %v4091_v51  ;;  %v831_v31 = vld [vmem:[%s5269_s3 + $0xb8] sm:$0xff]  ;;  %v772_v30 = vrot.slane %v4091_v51, 2  ;;  %v515_v51 = vld [vmem:[%s4115_s21 + $0x8] sm:$0xff] }
  0x64   : > { %1417 = vmatpush2.msra.mxu1 %v833_v55  ;;  %1006 = vmatprep.mubr.f32.mxu0 %v4070_v13  ;;  %v603_v55 = vrot.slane %v3698_v61, 1 }
  0x65   : > { %1418 = vmatprep.subr.mxu1 %v5375_v48  ;;  %3188 = vmatprep.mubr.f32.mxu1 %v4078_v3  ;;  %v4119_v3 = vsel %vm695_vm0, %v766_v54, %v767_v33  ;;  %v4136_v54 = vsel %vm695_vm0, %v767_v33, %v769_v0  ;;  %v4151_v0 = vld [vmem:[%s3589_s10 + $0x178] sm:$0x3]  ;;  %v4155_v33 = vsel %vm695_vm0, %v771_v34, %v772_v30 }
  0x66   : > { %1419 = vmatpush2.msra.mxu1 %v832_v53  ;;  %1007 = vmatmul.mubr.f32.gmra.mxu0 %v3661_v49  ;;  %5386 = vst [vmem:[#allocation33_spill] sm:$0xff] %v4119_v3  ;;  %v4132_v53 = vld [vmem:[%s3589_s10 + $0x170] sm:$0xff]  ;;  %5388 = vst [vmem:[#allocation35_spill] sm:$0xff] %v4136_v54  ;;  %v4171_v34 = vsel %vm695_vm0, %v772_v30, %v774_v42  ;;  %v608_v42 = vrot.slane %v3734_v10, 1  ;;  %v609_v30 = vrot.slane %v3737_v11, 1 }
  0x67   : > { %3189 = vmatmul.mubr.f32.gmra.mxu1 %v4095_v7  ;;  %1420 = vmatprep.subr.mxu1 %v5375_v48  ;;  %5387 = vst [vmem:[#allocation34_spill] sm:$0xff] %v4132_v53  ;;  %v514_v7 = vld [vmem:[%s4115_s21] sm:$0xff]  ;;  %5389 = vst [vmem:[#allocation36_spill] sm:$0xff] %v4155_v33 }
  0x68   : > { %1421 = vmatpush2.msra.mxu1 %v831_v31  ;;  %1011 = vmatprep.mubr.f32.mxu0 %v4104_v57  ;;  %v4147_v31 = vsel %vm582_vm1, %v603_v55, %v604_v18  ;;  %v4164_v55 = vmul.f32 0.0, %v514_v7  ;;  %5390 = vst [vmem:[#allocation37_spill] sm:$0xff] %v4171_v34  ;;  %v827_v7 = vld [vmem:[%s5269_s3 + $0x98] sm:$0xff] }
  0x69   : > { %1422 = vmatprep.subr.mxu1 %v5375_v48  ;;  %3191 = vmatprep.mubr.f32.mxu1 %v4119_v3  ;;  %v867_v3 = vrot.slane %v4132_v53, 2  ;;  %v869_v53 = vrot.slane %v4151_v0, 2 }
  0x6a   : > { %1423 = vmatpush2.msra.mxu1 %v830_v52  ;;  %1012 = vmatmul.mubr.f32.gmra.mxu0 %v3664_v50  ;;  %v4166_v52 = vmul.f32 0.0, %v515_v51  ;;  %v4180_v51 = vsel %vm582_vm1, %v604_v18, %v606_v6  ;;  %v826_v6 = vld [vmem:[%s5269_s3 + $0x90] sm:$0xff]  ;;  %v583_v18 = vrot.slane %v4164_v55, 1 }
  0x6b   : > { %3192 = vmatmul.mubr.f32.gmra.mxu1 %v4136_v54  ;;  %1424 = vmatprep.subr.mxu1 %v5375_v48  ;;  %v4188_v54 = vmul.f32 0.0, %v516_v41  ;;  %v825_v41 = vld [vmem:[%s5269_s3 + $0x88] sm:$0xff] }
  0x6c   : > { %1425 = vmatpush2.msra.mxu1 %v829_v21  ;;  %1016 = vmatprep.mubr.f32.mxu0 %v4147_v31  ;;  %v4184_v21 = vsel %vm695_vm0, %v866_v25, %v867_v3  ;;  %v4199_v25 = vsel %vm695_vm0, %v867_v3, %v869_v53  ;;  %v824_v3 = vld [vmem:[%s5269_s3 + $0x80] sm:$0xff] }
  0x6d   : > { %1426 = vmatprep.subr.mxu1 %v5375_v48  ;;  %3194 = vmatprep.mubr.f32.mxu1 %v4155_v33  ;;  %5391 = vst [vmem:[#allocation38_spill] sm:$0xff] %v4184_v21  ;;  %5392 = vst [vmem:[#allocation39_spill] sm:$0xff] %v4199_v25  ;;  %v586_v33 = vrot.slane %v4188_v54, 1 }
  0x6e   : > { %1427 = vmatpush2.msra.mxu1 %v828_v1  ;;  %1017 = vmatmul.mubr.f32.gmra.mxu0 %v3698_v61  ;;  %v584_v1 = vrot.slane %v4166_v52, 1 }
  0x6f   : > { %3195 = vmatmul.mubr.f32.gmra.mxu1 %v4171_v34  ;;  %1428 = vmatprep.subr.mxu1 %v5375_v48  ;;  %v611_v34 = vrot.slane %v3749_v14, 1 }
  0x70   : > { %1429 = vmatpush2.msra.mxu1 %v827_v7  ;;  %1021 = vmatprep.mubr.f32.mxu0 %v4180_v51  ;;  %v4209_v7 = vsel %vm582_vm1, %v608_v42, %v609_v30  ;;  %v585_v53 = vsel %vm582_vm1, %v583_v18, %v584_v1  ;;  %v2939_v42 = vld [vmem:[%s5269_s3 + $0x378] sm:$0xff]  ;;  %v613_v18 = vrot.slane %v3770_v22, 1 }
  0x71   : > { %1430 = vmatprep.subr.mxu1 %v5375_v48  ;;  %3197 = vmatprep.mubr.f32.mxu1 %v4184_v21  ;;  %v4222_v14 = vsel %vm582_vm1, %v609_v30, %v611_v34  ;;  %v616_v34 = vrot.slane %v3785_v26, 1  ;;  %v2937_v26 = vld [vmem:[%s5269_s3 + $0x368] sm:$0xff] }
  0x72   : > { %1431 = vmatpush2.msra.mxu1 %v826_v6  ;;  %1022 = vmatmul.mubr.f32.gmra.mxu0 %v3701_v62  ;;  %v587_v6 = vsel %vm582_vm1, %v584_v1, %v586_v33  ;;  %v2938_v33 = vld [vmem:[%s5269_s3 + $0x370] sm:$0xff]  ;;  %v853_v1 = vld [vmem:[%s5269_s3 + $0x168] sm:$0xff] }
  0x73   : > { %3198 = vmatmul.mubr.f32.gmra.mxu1 %v4199_v25  ;;  %1432 = vmatprep.subr.mxu1 %v5375_v48  ;;  %v3395_v25 = vld [vmem:[%s3589_s10 + $0x68] sm:$0xff] }
  0x74   : > { %1433 = vmatpush2.msra.mxu1 %v825_v41  ;;  %3201 = vmatpush3.msra.mxu0 %v3977_v58  ;;  %v614_v41 = vrot.slane %v3773_v23, 1  ;;  %v854_v58 = vld [vmem:[%s5269_s3 + $0x170] sm:$0xff] }
  0x75   : > { %1434 = vmatprep.subr.mxu1 %v5375_v48  ;;  %1026 = vmatprep.mubr.f32.mxu0 %v4209_v7 }
  0x76   : > { %1435 = vmatpush2.msra.mxu1 %v824_v3  ;;  %1436 = vmatprep.mubr.f32.mxu1 %v585_v53  ;;  %v4243_v30 = vsel %vm582_vm1, %v613_v18, %v614_v41  ;;  %v4256_v3 = vsel %vm582_vm1, %v614_v41, %v616_v34  ;;  %v618_v53 = vrot.slane %v3806_v39, 1  ;;  %v621_v18 = vrot.slane %v3821_v46, 1 }
  0x77   : > { %1027 = vmatmul.mubr.f32.gmra.mxu0 %v3734_v10  ;;  %1437 = vmatmul.mubr.f32.vlgmr.msra.gmra.mxu1 %v4164_v55  ;;  %v623_v41 = vrot.slane %v3842_v59, 1 }
  0x78   : > { %1888 = vmatprep.subr.mxu1 %v5375_v48  ;;  %1031 = vmatprep.mubr.f32.mxu0 %v4222_v14 }
  0x79   : > { %1889 = vmatpush1.msra.mxu1 %v2939_v42  ;;  %1441 = vmatprep.mubr.f32.mxu1 %v587_v6  ;;  %v619_v42 = vrot.slane %v3809_v40, 1 }
  0x7a   : > { %3202 = vmatprep.subr.mxu0 %v854_v58  ;;  %1890 = vmatprep.subr.mxu1 %v5375_v48 }
  0x7b   : > { %1032 = vmatmul.mubr.f32.gmra.mxu0 %v3737_v11  ;;  %1442 = vmatmul.mubr.f32.gmra.mxu1 %v4166_v52  ;;  %v4270_v6 = vsel %vm582_vm1, %v618_v53, %v619_v42  ;;  %v4285_v46 = vsel %vm582_vm1, %v619_v42, %v621_v18  ;;  %v628_v53 = vrot.slane %v3879_v17, 1  ;;  %v629_v42 = vrot.slane %v3882_v19, 1 }
  0x7c   : > { %3203 = vmatpush3.msra.mxu0 %v854_v58  ;;  %1891 = vmatpush1.msra.mxu1 %v2938_v33  ;;  %v624_v58 = vrot.slane %v3845_v60, 1  ;;  %v2934_v33 = vld [vmem:[%s5269_s3 + $0x350] sm:$0xff] }
  0x7d   : > { %1036 = vmatprep.mubr.f32.mxu0 %v4243_v30  ;;  %1446 = vmatprep.mubr.f32.mxu1 %v3929_v63  ;;  %v2936_v63 = vld [vmem:[%s5269_s3 + $0x360] sm:$0xff]  ;;  %v4332_v18 = vsel %vm582_vm1, %v628_v53, %v629_v42  ;;  %v639_v53 = vrot.slane %v3951_v20, 1 }
  0x7e   : > { %1892 = vmatprep.subr.mxu1 %v5375_v48  ;;  %3204 = vmatprep.subr.mxu0 %v853_v1  ;;  %v4301_v34 = vsel %vm582_vm1, %v623_v41, %v624_v58  ;;  %v633_v41 = vrot.slane %v3908_v43, 1 }
  0x7f   : > { %1037 = vmatmul.mubr.f32.gmra.mxu0 %v3770_v22  ;;  %1447 = vmatmul.mubr.f32.gmra.mxu1 %v3603_v27  ;;  %v852_v27 = vld [vmem:[%s5269_s3 + $0x160] sm:$0xff] }
  0x80   : > { %1893 = vmatpush1.msra.mxu1 %v2937_v26  ;;  %1041 = vmatprep.mubr.f32.mxu0 %v4256_v3  ;;  %v2933_v26 = vld [vmem:[%s5269_s3 + $0x348] sm:$0xff] }
  0x81   : > { %1451 = vmatprep.mubr.f32.mxu1 %v3955_v29  ;;  %1894 = vmatprep.subr.mxu1 %v5375_v48  ;;  %v2935_v29 = vld [vmem:[%s5269_s3 + $0x358] sm:$0xff] }
  0x82   : > { %3205 = vmatpush3.msra.mxu0 %v853_v1  ;;  %1895 = vmatpush1.msra.mxu1 %v2936_v63  ;;  %v626_v1 = vrot.slane %v3857_v4, 1  ;;  %v2932_v63 = vld [vmem:[%s5269_s3 + $0x340] sm:$0xff] }
  0x83   : > { %1042 = vmatmul.mubr.f32.gmra.mxu0 %v3773_v23  ;;  %1452 = vmatmul.mubr.f32.gmra.mxu1 %v3606_v28  ;;  %v851_v28 = vld [vmem:[%s5269_s3 + $0x158] sm:$0xff] }
  0x84   : > { %1046 = vmatprep.mubr.f32.mxu0 %v4270_v6  ;;  %1456 = vmatprep.mubr.f32.mxu1 %v4000_v9  ;;  %v4316_v4 = vsel %vm582_vm1, %v624_v58, %v626_v1  ;;  %v634_v58 = vrot.slane %v3911_v47, 1  ;;  %v636_v1 = vrot.slane %v3934_v8, 1 }
  0x85   : > { %1896 = vmatprep.subr.mxu1 %v5375_v48  ;;  %3206 = vmatprep.subr.mxu0 %v852_v27 }
  0x86   : > { %1897 = vmatpush1.msra.mxu1 %v2935_v29  ;;  %3207 = vmatpush3.msra.mxu0 %v852_v27  ;;  %v631_v27 = vrot.slane %v3893_v24, 1  ;;  %v2931_v29 = vld [vmem:[%s5269_s3 + $0x338] sm:$0xff]  ;;  %v4378_v8 = vsel %vm582_vm1, %v634_v58, %v636_v1  ;;  %v648_v1 = vrot.slane %v4019_v36, 1 }
  0x87   : > { %1047 = vmatmul.mubr.f32.gmra.mxu0 %v3806_v39  ;;  %1457 = vmatmul.mubr.f32.gmra.mxu1 %v3629_v37  ;;  %v850_v37 = vld [vmem:[%s5269_s3 + $0x150] sm:$0xff] }
  0x88   : > { %1051 = vmatprep.mubr.f32.mxu0 %v4285_v46  ;;  %1461 = vmatprep.mubr.f32.mxu1 %v4035_v44  ;;  %v4347_v24 = vsel %vm582_vm1, %v629_v42, %v631_v27  ;;  %v2928_v42 = vld [vmem:[%s5269_s3 + $0x320] sm:$0xff]  ;;  %v2927_v27 = vld [vmem:[%s5269_s3 + $0x318] sm:$0xff] }
  0x89   : > { %1898 = vmatprep.subr.mxu1 %v5375_v48  ;;  %3208 = vmatprep.subr.mxu0 %v851_v28 }
  0x8a   : > { %1899 = vmatpush1.msra.mxu1 %v2934_v33  ;;  %3209 = vmatpush3.msra.mxu0 %v851_v28  ;;  %v2930_v28 = vld [vmem:[%s5269_s3 + $0x330] sm:$0xff]  ;;  %v4363_v33 = vsel %vm582_vm1, %v633_v41, %v634_v58 }
  0x8b   : > { %1052 = vmatmul.mubr.f32.gmra.mxu0 %v3809_v40  ;;  %1462 = vmatmul.mubr.f32.gmra.mxu1 %v3632_v38  ;;  %v849_v38 = vld [vmem:[%s5269_s3 + $0x148] sm:$0xff]  ;;  %v2926_v41 = vld [vmem:[%s5269_s3 + $0x310] sm:$0xff] }
  0x8c   : > { %1056 = vmatprep.mubr.f32.mxu0 %v4301_v34  ;;  %1466 = vmatprep.mubr.f32.mxu1 %v4070_v13 }
  0x8d   : > { %1900 = vmatprep.subr.mxu1 %v5375_v48  ;;  %3210 = vmatprep.subr.mxu0 %v850_v37 }
  0x8e   : > { %1901 = vmatpush1.msra.mxu1 %v2933_v26  ;;  %3211 = vmatpush3.msra.mxu0 %v850_v37  ;;  %v2929_v37 = vld [vmem:[%s5269_s3 + $0x328] sm:$0xff]  ;;  %v638_v26 = vrot.slane %v3948_v16, 1 }
  0x8f   : > { %1057 = vmatmul.mubr.f32.gmra.mxu0 %v3842_v59  ;;  %1467 = vmatmul.mubr.f32.gmra.mxu1 %v3661_v49  ;;  %v848_v49 = vld [vmem:[%s5269_s3 + $0x140] sm:$0xff] }
  0x90   : > { %1061 = vmatprep.mubr.f32.mxu0 %v4316_v4  ;;  %1471 = vmatprep.mubr.f32.mxu1 %v4104_v57 }
  0x91   : > { %1902 = vmatprep.subr.mxu1 %v5375_v48  ;;  %3212 = vmatprep.subr.mxu0 %v849_v38 }
  0x92   : > { %1903 = vmatpush1.msra.mxu1 %v2932_v63  ;;  %3213 = vmatpush3.msra.mxu0 %v849_v38  ;;  %v4394_v38 = vsel %vm582_vm1, %v638_v26, %v639_v53  ;;  %v641_v63 = vrot.slane %v3968_v32, 1 }
  0x93   : > { %1062 = vmatmul.mubr.f32.gmra.mxu0 %v3845_v60  ;;  %1472 = vmatmul.mubr.f32.gmra.mxu1 %v3664_v50  ;;  %v847_v50 = vld [vmem:[%s5269_s3 + $0x138] sm:$0xff] }
  0x94   : > { %1066 = vmatprep.mubr.f32.mxu0 %v4332_v18  ;;  %1476 = vmatprep.mubr.f32.mxu1 %v4147_v31  ;;  %v4409_v32 = vsel %vm582_vm1, %v639_v53, %v641_v63  ;;  %v651_v53 = vrot.slane %v4040_v56, 1  ;;  %v5395_v63 = vld [vmem:[#allocation25_spill] sm:$0xff] }
  0x95   : > { %1904 = vmatprep.subr.mxu1 %v5375_v48  ;;  %3214 = vmatprep.subr.mxu0 %v848_v49 }
  0x96   : > { %1905 = vmatpush1.msra.mxu1 %v2931_v29  ;;  %3215 = vmatpush3.msra.mxu0 %v848_v49  ;;  %v643_v49 = vrot.slane %v3985_v12, 1  ;;  %v644_v29 = vrot.slane %v3988_v15, 1 }
  0x97   : > { %1067 = vmatmul.mubr.f32.gmra.mxu0 %v3879_v17  ;;  %1477 = vmatmul.mubr.f32.gmra.mxu1 %v3698_v61  ;;  %v846_v61 = vld [vmem:[%s5269_s3 + $0x130] sm:$0xff] }
  0x98   : > { %1071 = vmatprep.mubr.f32.mxu0 %v4347_v24  ;;  %1481 = vmatprep.mubr.f32.mxu1 %v4180_v51  ;;  %v4425_v58 = vsel %vm582_vm1, %v643_v49, %v644_v29 }
  0x99   : > { %1906 = vmatprep.subr.mxu1 %v5375_v48  ;;  %3216 = vmatprep.subr.mxu0 %v847_v50 }
  0x9a   : > { %1907 = vmatpush1.msra.mxu1 %v2930_v28  ;;  %3217 = vmatpush3.msra.mxu0 %v847_v50  ;;  %v646_v50 = vrot.slane %v4004_v2, 1  ;;  %v2925_v28 = vld [vmem:[%s5269_s3 + $0x308] sm:$0xff] }
  0x9b   : > { %1072 = vmatmul.mubr.f32.gmra.mxu0 %v3882_v19  ;;  %1482 = vmatmul.mubr.f32.gmra.mxu1 %v3701_v62  ;;  %v845_v62 = vld [vmem:[%s5269_s3 + $0x128] sm:$0xff] }
  0x9c   : > { %1076 = vmatprep.mubr.f32.mxu0 %v4363_v33  ;;  %1486 = vmatprep.mubr.f32.mxu1 %v4209_v7  ;;  %v4440_v2 = vsel %vm582_vm1, %v644_v29, %v646_v50  ;;  %v5397_v29 = vld [vmem:[#allocation27_spill] sm:$0xff]  ;;  %v5399_v50 = vld [vmem:[#allocation29_spill] sm:$0xff] }
  0x9d   : > { %1908 = vmatprep.subr.mxu1 %v5375_v48  ;;  %3218 = vmatprep.subr.mxu0 %v846_v61 }
  0x9e   : > { %1909 = vmatpush1.msra.mxu1 %v2929_v37  ;;  %3219 = vmatpush3.msra.mxu0 %v846_v61  ;;  %v649_v61 = vrot.slane %v4022_v5, 1  ;;  %v2924_v37 = vld [vmem:[%s5269_s3 + $0x300] sm:$0xff] }
  0x9f   : > { %1077 = vmatmul.mubr.f32.gmra.mxu0 %v3908_v43  ;;  %1487 = vmatmul.mubr.f32.gmra.mxu1 %v3734_v10  ;;  %v844_v10 = vld [vmem:[%s5269_s3 + $0x120] sm:$0xff] }
  0xa0   : > { %1081 = vmatprep.mubr.f32.mxu0 %v4378_v8  ;;  %1491 = vmatprep.mubr.f32.mxu1 %v4222_v14  ;;  %v4456_v26 = vsel %vm582_vm1, %v648_v1, %v649_v61  ;;  %v4471_v56 = vsel %vm582_vm1, %v649_v61, %v651_v53 }
  0xa1   : > { %1910 = vmatprep.subr.mxu1 %v5375_v48  ;;  %3220 = vmatprep.subr.mxu0 %v845_v62  ;;  %5393 = vst [vmem:[#allocation40_spill] sm:$0xff] %v4456_v26  ;;  %5394 = vst [vmem:[#allocation41_spill] sm:$0xff] %v4471_v56 }
  0xa2   : > { %1911 = vmatpush1.msra.mxu1 %v2928_v42  ;;  %3221 = vmatpush3.msra.mxu0 %v845_v62  ;;  %v2955_v62 = vld [vmem:[%s5269_s3 + $0x3f8] sm:$0xff]  ;;  %v653_v42 = vrot.slane %v4054_v35, 1 }
  0xa3   : > { %1082 = vmatmul.mubr.f32.gmra.mxu0 %v3911_v47  ;;  %1492 = vmatmul.mubr.f32.gmra.mxu1 %v3737_v11  ;;  %v843_v11 = vld [vmem:[%s5269_s3 + $0x118] sm:$0xff] }
  0xa4   : > { %1086 = vmatprep.mubr.f32.mxu0 %v4394_v38  ;;  %1496 = vmatprep.mubr.f32.mxu1 %v4243_v30 }
  0xa5   : > { %1912 = vmatprep.subr.mxu1 %v5375_v48  ;;  %3222 = vmatprep.subr.mxu0 %v844_v10 }
  0xa6   : > { %1913 = vmatpush1.msra.mxu1 %v2927_v27  ;;  %3223 = vmatpush3.msra.mxu0 %v844_v10  ;;  %v654_v10 = vrot.slane %v5395_v63, 1  ;;  %v2954_v27 = vld [vmem:[%s5269_s3 + $0x3f0] sm:$0xff] }
  0xa7   : > { %1087 = vmatmul.mubr.f32.gmra.mxu0 %v3948_v16  ;;  %1497 = vmatmul.mubr.f32.gmra.mxu1 %v3770_v22  ;;  %v842_v22 = vld [vmem:[%s5269_s3 + $0x110] sm:$0xff] }
  0xa8   : > { %1091 = vmatprep.mubr.f32.mxu0 %v4409_v32  ;;  %1501 = vmatprep.mubr.f32.mxu1 %v4256_v3  ;;  %v4489_v49 = vsel %vm582_vm1, %v653_v42, %v654_v10 }
  0xa9   : > { %1914 = vmatprep.subr.mxu1 %v5375_v48  ;;  %3224 = vmatprep.subr.mxu0 %v843_v11  ;;  %5396 = vst [vmem:[#allocation25_spill] sm:$0xff] %v4489_v49 }
  0xaa   : > { %1915 = vmatpush1.msra.mxu1 %v2926_v41  ;;  %3225 = vmatpush3.msra.mxu0 %v843_v11  ;;  %v656_v11 = vrot.slane %v5397_v29, 1 }
  0xab   : > { %1092 = vmatmul.mubr.f32.gmra.mxu0 %v3951_v20  ;;  %1502 = vmatmul.mubr.f32.gmra.mxu1 %v3773_v23  ;;  %v841_v23 = vld [vmem:[%s5269_s3 + $0x108] sm:$0xff] }
  0xac   : > { %1096 = vmatprep.mubr.f32.mxu0 %v4425_v58  ;;  %1506 = vmatprep.mubr.f32.mxu1 %v4270_v6  ;;  %v4502_v41 = vsel %vm582_vm1, %v654_v10, %v656_v11  ;;  %v697_v11 = vrot.slane %v4166_v52, 2  ;;  %v5407_v52 = vld [vmem:[#allocation2_spill] sm:$0xff] }
  0xad   : > { %1916 = vmatprep.subr.mxu1 %v5375_v48  ;;  %3226 = vmatprep.subr.mxu0 %v842_v22  ;;  %5398 = vst [vmem:[#allocation27_spill] sm:$0xff] %v4502_v41 }
  0xae   : > { %1917 = vmatpush1.msra.mxu1 %v2925_v28  ;;  %3227 = vmatpush3.msra.mxu0 %v842_v22  ;;  %v658_v22 = vrot.slane %v5399_v50, 1  ;;  %v5400_v28 = vld [vmem:[#allocation30_spill] sm:$0xff] }
  0xaf   : > { %1097 = vmatmul.mubr.f32.gmra.mxu0 %v3985_v12  ;;  %1507 = vmatmul.mubr.f32.gmra.mxu1 %v3806_v39  ;;  %v840_v39 = vld [vmem:[%s5269_s3 + $0x100] sm:$0xff]  ;;  %v659_v1 = vrot.slane %v5400_v28, 1 }
  0xb0   : > { %1101 = vmatprep.mubr.f32.mxu0 %v4440_v2  ;;  %1511 = vmatprep.mubr.f32.mxu1 %v4285_v46 }
  0xb1   : > { %1918 = vmatprep.subr.mxu1 %v5375_v48  ;;  %3228 = vmatprep.subr.mxu0 %v841_v23  ;;  %v4515_v61 = vsel %vm582_vm1, %v658_v22, %v659_v1  ;;  %v2945_v22 = vld [vmem:[%s5269_s3 + $0x3a8] sm:$0xff] }
  0xb2   : > { %1919 = vmatpush1.msra.mxu1 %v2924_v37  ;;  %3229 = vmatpush3.msra.mxu0 %v841_v23  ;;  %5401 = vst [vmem:[#allocation29_spill] sm:$0xff] %v4515_v61  ;;  %v5402_v23 = vld [vmem:[#allocation32_spill] sm:$0xff] }
  0xb3   : > { %1102 = vmatmul.mubr.f32.gmra.mxu0 %v3988_v15  ;;  %1512 = vmatmul.mubr.f32.gmra.mxu1 %v3809_v40  ;;  %v4478_v40 = vld [vmem:[%s5269_s3 + $0x478] sm:$0xff]  ;;  %v661_v37 = vrot.slane %v5402_v23, 1  ;;  %v2968_v23 = vld [vmem:[%s5269_s3 + $0x460] sm:$0xff] }
  0xb4   : > { %1106 = vmatprep.mubr.f32.mxu0 %v4456_v26  ;;  %1516 = vmatprep.mubr.f32.mxu1 %v4301_v34 }
  0xb5   : > { %1920 = vmatprep.subr.mxu1 %v5375_v48  ;;  %3230 = vmatprep.subr.mxu0 %v840_v39  ;;  %v4527_v53 = vsel %vm582_vm1, %v659_v1, %v661_v37  ;;  %v2969_v1 = vld [vmem:[%s5269_s3 + $0x468] sm:$0xff]  ;;  %v5411_v37 = vld [vmem:[#allocation6_spill] sm:$0xff] }
  0xb6   : > { %1921 = vmatpush2.msra.mxu1 %v2955_v62  ;;  %3231 = vmatpush3.msra.mxu0 %v840_v39  ;;  %5403 = vst [vmem:[#allocation30_spill] sm:$0xff] %v4527_v53  ;;  %v859_v39 = vrot.slane %v4129_v45, 1  ;;  %v5404_v62 = vld [vmem:[#allocation34_spill] sm:$0xff] }
  0xb7   : > { %1107 = vmatmul.mubr.f32.gmra.mxu0 %v4019_v36  ;;  %1517 = vmatmul.mubr.f32.gmra.mxu1 %v3842_v59  ;;  %v2953_v59 = vld [vmem:[%s5269_s3 + $0x3e8] sm:$0xff]  ;;  %v860_v42 = vrot.slane %v5404_v62, 1 }
  0xb8   : > { %1111 = vmatprep.mubr.f32.mxu0 %v4471_v56  ;;  %1521 = vmatprep.mubr.f32.mxu1 %v4316_v4 }
  0xb9   : > { %1922 = vmatprep.subr.mxu1 %v5375_v48  ;;  %3280 = vmatprep.subr.mxu0 %v4478_v40  ;;  %v4540_v10 = vsel %vm582_vm1, %v859_v39, %v860_v42  ;;  %v2967_v39 = vld [vmem:[%s5269_s3 + $0x458] sm:$0xff] }
  0xba   : > { %1923 = vmatpush2.msra.mxu1 %v2954_v27  ;;  %5405 = vst [vmem:[#allocation32_spill] sm:$0xff] %v4540_v10  ;;  %v862_v27 = vrot.slane %v4151_v0, 1  ;;  %v696_v0 = vrot.slane %v4164_v55, 2 }
  0xbb   : > { %1112 = vmatmul.mubr.f32.gmra.mxu0 %v4022_v5  ;;  %1522 = vmatmul.mubr.f32.gmra.mxu1 %v3845_v60  ;;  %v2952_v60 = vld [vmem:[%s5269_s3 + $0x3e0] sm:$0xff] }
  0xbc   : > { %1116 = vmatprep.mubr.f32.mxu0 %v4489_v49  ;;  %1526 = vmatprep.mubr.f32.mxu1 %v4332_v18  ;;  %v4552_v29 = vsel %vm582_vm1, %v860_v42, %v862_v27  ;;  %v698_v55 = vsel %vm695_vm0, %v696_v0, %v697_v11  ;;  %v2942_v42 = vld [vmem:[%s5269_s3 + $0x390] sm:$0xff]  ;;  %v5415_v27 = vld [vmem:[#allocation10_spill] sm:$0xff]  ;;  %v2965_v0 = vld [vmem:[%s5269_s3 + $0x448] sm:$0xff] }
  0xbd   : > { %1924 = vmatprep.subr.mxu1 %v5375_v48  ;;  %5406 = vst [vmem:[#allocation34_spill] sm:$0xff] %v4552_v29 }
  0xbe   : > { %1925 = vmatpush2.msra.mxu1 %v2953_v59  ;;  %v699_v59 = vrot.slane %v4188_v54, 2  ;;  %v2946_v54 = vld [vmem:[%s5269_s3 + $0x3b0] sm:$0xff] }
  0xbf   : > { %1117 = vmatmul.mubr.f32.gmra.mxu0 %v4054_v35  ;;  %1527 = vmatmul.mubr.f32.gmra.mxu1 %v3879_v17  ;;  %v2951_v17 = vld [vmem:[%s5269_s3 + $0x3d8] sm:$0xff] }
  0xc0   : > { %1121 = vmatprep.mubr.f32.mxu0 %v4502_v41  ;;  %1531 = vmatprep.mubr.f32.mxu1 %v4347_v24 }
  0xc1   : > { %1926 = vmatprep.subr.mxu1 %v5375_v48 }
  0xc2   : > { %1927 = vmatpush2.msra.mxu1 %v2952_v60  ;;  %v5409_v60 = vld [vmem:[#allocation4_spill] sm:$0xff] }
  0xc3   : > { %1122 = vmatmul.mubr.f32.gmra.mxu0 %v5395_v63  ;;  %1532 = vmatmul.mubr.f32.gmra.mxu1 %v3882_v19  ;;  %v2950_v19 = vld [vmem:[%s5269_s3 + $0x3d0] sm:$0xff] }
  0xc4   : > { %1126 = vmatprep.mubr.f32.mxu0 %v4515_v61  ;;  %1536 = vmatprep.mubr.f32.mxu1 %v4363_v33 }
  0xc5   : > { %1928 = vmatprep.subr.mxu1 %v5375_v48 }
  0xc6   : > { %1929 = vmatpush2.msra.mxu1 %v2951_v17  ;;  %v2943_v17 = vld [vmem:[%s5269_s3 + $0x398] sm:$0xff] }
  0xc7   : > { %1127 = vmatmul.mubr.f32.gmra.mxu0 %v5399_v50  ;;  %1537 = vmatmul.mubr.f32.gmra.mxu1 %v3908_v43  ;;  %v2949_v43 = vld [vmem:[%s5269_s3 + $0x3c8] sm:$0xff] }
  0xc8   : > { %1131 = vmatprep.mubr.f32.mxu0 %v4527_v53  ;;  %1541 = vmatprep.mubr.f32.mxu1 %v4378_v8 }
  0xc9   : > { %1930 = vmatprep.subr.mxu1 %v5375_v48 }
  0xca   : > { %1931 = vmatpush2.msra.mxu1 %v2950_v19  ;;  %v2966_v19 = vld [vmem:[%s5269_s3 + $0x450] sm:$0xff] }
  0xcb   : > { %1132 = vmatmul.mubr.f32.gmra.mxu0 %v5400_v28  ;;  %1542 = vmatmul.mubr.f32.gmra.mxu1 %v3911_v47  ;;  %v2948_v47 = vld [vmem:[%s5269_s3 + $0x3c0] sm:$0xff] }
  0xcc   : > { %1136 = vmatprep.mubr.f32.mxu0 %v4540_v10  ;;  %1546 = vmatprep.mubr.f32.mxu1 %v4394_v38  ;;  %v5431_v10 = vld [vmem:[#allocation28_spill] sm:$0xff] }
  0xcd   : > { %1932 = vmatprep.subr.mxu1 %v5375_v48 }
  0xce   : > { %1933 = vmatpush2.msra.mxu1 %v2949_v43  ;;  %v2941_v43 = vld [vmem:[%s5269_s3 + $0x388] sm:$0xff] }
  0xcf   : > { %1137 = vmatmul.mubr.f32.gmra.mxu0 %v4129_v45  ;;  %1547 = vmatmul.mubr.f32.gmra.mxu1 %v3948_v16  ;;  %v2947_v45 = vld [vmem:[%s5269_s3 + $0x3b8] sm:$0xff]  ;;  %v700_v16 = vsel %vm695_vm0, %v697_v11, %v699_v59  ;;  %v5417_v11 = vld [vmem:[#allocation12_spill] sm:$0xff]  ;;  %v2940_v59 = vld [vmem:[%s5269_s3 + $0x380] sm:$0xff] }
  0xd0   : > { %1141 = vmatprep.mubr.f32.mxu0 %v4552_v29  ;;  %1551 = vmatprep.mubr.f32.mxu1 %v4409_v32 }
  0xd1   : > { %1934 = vmatprep.subr.mxu1 %v5375_v48 }
  0xd2   : > { %1935 = vmatpush2.msra.mxu1 %v2948_v47 }
  0xd3   : > { %1142 = vmatmul.mubr.f32.gmra.mxu0 %v5404_v62  ;;  %1552 = vmatmul.mubr.f32.gmra.mxu1 %v3951_v20  ;;  %v2970_v20 = vld [vmem:[%s5269_s3 + $0x470] sm:$0xff] }
  0xd4   : > { %1556 = vmatprep.mubr.f32.mxu1 %v4425_v58  ;;  %3232 = vmatprep.mubr.f32.mxu0 %v698_v55  ;;  %v5413_v62 = vld [vmem:[#allocation8_spill] sm:$0xff]  ;;  %v2964_v55 = vld [vmem:[%s5269_s3 + $0x440] sm:$0xff] }
  0xd5   : > { %1936 = vmatprep.subr.mxu1 %v5375_v48 }
  0xd6   : > { %1937 = vmatpush2.msra.mxu1 %v2947_v45  ;;  %v5419_v45 = vld [vmem:[#allocation14_spill] sm:$0xff] }
  0xd7   : > { %1557 = vmatmul.mubr.f32.gmra.mxu1 %v3985_v12  ;;  %3233 = vmatmul.mubr.f32.vlgmr.msra.gmra.mxu0 %v700_v16  ;;  %v5408_v12 = vld [vmem:[#allocation3_spill] sm:$0xff] }
  0xd8   : > { %1561 = vmatprep.mubr.f32.mxu1 %v4440_v2  ;;  %3235 = vmatprep.mubr.f32.mxu0 %v5407_v52  ;;  %v5421_v52 = vld [vmem:[#allocation16_spill] sm:$0xff] }
  0xd9   : > { %1938 = vmatprep.subr.mxu1 %v5375_v48  ;;  %3281 = vmatpush3.msra.mxu0 %v4478_v40  ;;  %v2944_v40 = vld [vmem:[%s5269_s3 + $0x3a0] sm:$0xff] }
  0xda   : > { %1939 = vmatpush2.msra.mxu1 %v2946_v54  ;;  %3282 = vmatprep.subr.mxu0 %v2970_v20 }
  0xdb   : > { %1562 = vmatmul.mubr.f32.gmra.mxu1 %v3988_v15  ;;  %3236 = vmatmul.mubr.f32.gmra.mxu0 %v5408_v12  ;;  %v5410_v15 = vld [vmem:[#allocation5_spill] sm:$0xff] }
  0xdc   : > { %1566 = vmatprep.mubr.f32.mxu1 %v4456_v26  ;;  %3238 = vmatprep.mubr.f32.mxu0 %v5409_v60 }
  0xdd   : > { %1940 = vmatprep.subr.mxu1 %v5375_v48  ;;  %3283 = vmatpush3.msra.mxu0 %v2970_v20  ;;  %v2963_v20 = vld [vmem:[%s5269_s3 + $0x438] sm:$0xff] }
  0xde   : > { %1941 = vmatpush2.msra.mxu1 %v2945_v22  ;;  %3284 = vmatprep.subr.mxu0 %v2969_v1  ;;  %v2962_v22 = vld [vmem:[%s5269_s3 + $0x430] sm:$0xff] }
  0xdf   : > { %1567 = vmatmul.mubr.f32.gmra.mxu1 %v4019_v36  ;;  %3239 = vmatmul.mubr.f32.gmra.mxu0 %v5410_v15  ;;  %v5412_v36 = vld [vmem:[#allocation7_spill] sm:$0xff] }
  0xe0   : > { %1571 = vmatprep.mubr.f32.mxu1 %v4471_v56  ;;  %3241 = vmatprep.mubr.f32.mxu0 %v5411_v37  ;;  %v5435_v56 = vld [vmem:[#allocation36_spill] sm:$0xff] }
  0xe1   : > { %1942 = vmatprep.subr.mxu1 %v5375_v48  ;;  %3285 = vmatpush3.msra.mxu0 %v2969_v1  ;;  %v5423_v1 = vld [vmem:[#allocation18_spill] sm:$0xff] }
  0xe2   : > { %1943 = vmatpush2.msra.mxu1 %v2944_v40  ;;  %3286 = vmatprep.subr.mxu0 %v2968_v23 }
  0xe3   : > { %1572 = vmatmul.mubr.f32.gmra.mxu1 %v4022_v5  ;;  %3242 = vmatmul.mubr.f32.gmra.mxu0 %v5412_v36  ;;  %v5414_v5 = vld [vmem:[#allocation9_spill] sm:$0xff] }
  0xe4   : > { %1576 = vmatprep.mubr.f32.mxu1 %v4489_v49  ;;  %3244 = vmatprep.mubr.f32.mxu0 %v5413_v62  ;;  %v3394_v49 = vld [vmem:[%s3589_s10 + $0x60] sm:$0xff] }
  0xe5   : > { %1944 = vmatprep.subr.mxu1 %v5375_v48  ;;  %3287 = vmatpush3.msra.mxu0 %v2968_v23  ;;  %v5424_v23 = vld [vmem:[#allocation19_spill] sm:$0xff] }
  0xe6   : > { %1945 = vmatpush2.msra.mxu1 %v2943_v17  ;;  %3288 = vmatprep.subr.mxu0 %v2967_v39  ;;  %v3389_v17 = vld [vmem:[%s3589_s10 + $0x20] sm:$0xff] }
  0xe7   : > { %1577 = vmatmul.mubr.f32.gmra.mxu1 %v4054_v35  ;;  %3245 = vmatmul.mubr.f32.gmra.mxu0 %v5414_v5  ;;  %v5416_v35 = vld [vmem:[#allocation11_spill] sm:$0xff] }
  0xe8   : > { %1581 = vmatprep.mubr.f32.mxu1 %v4502_v41  ;;  %3247 = vmatprep.mubr.f32.mxu0 %v5415_v27 }
  0xe9   : > { %1946 = vmatprep.subr.mxu1 %v5375_v48  ;;  %3289 = vmatpush3.msra.mxu0 %v2967_v39  ;;  %v2961_v39 = vld [vmem:[%s5269_s3 + $0x428] sm:$0xff] }
  0xea   : > { %1947 = vmatpush2.msra.mxu1 %v2942_v42  ;;  %3290 = vmatprep.subr.mxu0 %v2966_v19  ;;  %v5425_v42 = vld [vmem:[#allocation20_spill] sm:$0xff] }
  0xeb   : > { %1582 = vmatmul.mubr.f32.gmra.mxu1 %v5395_v63  ;;  %3248 = vmatmul.mubr.f32.gmra.mxu0 %v5416_v35  ;;  %v5418_v63 = vld [vmem:[#allocation13_spill] sm:$0xff] }
  0xec   : > { %1586 = vmatprep.mubr.f32.mxu1 %v4515_v61  ;;  %3250 = vmatprep.mubr.f32.mxu0 %v5417_v11  ;;  %v5433_v61 = vld [vmem:[#allocation33_spill] sm:$0xff] }
  0xed   : > { %1948 = vmatprep.subr.mxu1 %v5375_v48  ;;  %3291 = vmatpush3.msra.mxu0 %v2966_v19  ;;  %v5426_v19 = vld [vmem:[#allocation21_spill] sm:$0xff] }
  0xee   : > { %1949 = vmatpush2.msra.mxu1 %v2941_v43  ;;  %v4640_v47 = vpop.f32.mrf.mxu1  ;;  %3292 = vmatprep.subr.mxu0 %v2965_v0  ;;  %v3390_v43 = vld [vmem:[%s3589_s10 + $0x30] sm:$0xff] }
  0xef   : > { %1587 = vmatmul.mubr.f32.gmra.mxu1 %v5399_v50  ;;  %3251 = vmatmul.mubr.f32.gmra.mxu0 %v5418_v63  ;;  %v5420_v50 = vld [vmem:[#allocation15_spill] sm:$0xff] }
  0xf0   : > { %1591 = vmatprep.mubr.f32.mxu1 %v4527_v53  ;;  %3253 = vmatprep.mubr.f32.mxu0 %v5419_v45  ;;  %v4652_v16 = vpop.f32.mrf.mxu1  ;;  %v3393_v53 = vld [vmem:[%s3589_s10 + $0x50] sm:$0xff] }
  0xf1   : > { %1950 = vmatprep.subr.mxu1 %v5375_v48  ;;  %3293 = vmatpush3.msra.mxu0 %v2965_v0  ;;  %v5422_v48 = vld [vmem:[#allocation17_spill] sm:$0xff] }
  0xf2   : > { %1951 = vmatpush2.msra.mxu1 %v2940_v59  ;;  %3294 = vmatprep.subr.mxu0 %v2964_v55  ;;  %v2960_v59 = vld [vmem:[%s5269_s3 + $0x420] sm:$0xff] }
  0xf3   : > { %1592 = vmatmul.mubr.f32.gmra.mxu1 %v5400_v28  ;;  %3254 = vmatmul.mubr.f32.gmra.mxu0 %v5420_v50  ;;  %v4657_v54 = vpop.f32.mrf.mxu1  ;;  %v3388_v28 = vld [vmem:[%s3589_s10 + $0x18] sm:$0xff] }
  0xf4   : > { %3256 = vmatprep.mubr.f32.mxu0 %v5421_v52  ;;  %1952 = vmatprep.mubr.f32.mxu1 %v4000_v9 }
  0xf5   : > { %v4664_v12 = vpop.f32.mrf.mxu1  ;;  %3295 = vmatpush3.msra.mxu0 %v2964_v55  ;;  %v5427_v55 = vld [vmem:[#allocation22_spill] sm:$0xff] }
  0xf6   : > { %3296 = vmatprep.subr.mxu0 %v2963_v20 }
  0xf7   : > { %3257 = vmatmul.mubr.f32.gmra.mxu0 %v5422_v48  ;;  %1953 = vmatmul.mubr.f32.vlgmr.msra.gmra.mxu1 %v3388_v28  ;;  %v3391_v28 = vld [vmem:[%s3589_s10 + $0x38] sm:$0xff] }
  0xf8   : > { %3259 = vmatprep.mubr.f32.mxu0 %v5423_v1  ;;  %1957 = vmatprep.mubr.f32.mxu1 %v4035_v44  ;;  %v4673_v40 = vpop.f32.mrf.mxu1 }
  0xf9   : > { %3297 = vmatpush3.msra.mxu0 %v2963_v20  ;;  %v5428_v20 = vld [vmem:[#allocation23_spill] sm:$0xff] }
  0xfa   : > { %v4675_v9 = vpop.f32.mrf.mxu1  ;;  %3298 = vmatprep.subr.mxu0 %v2962_v22 }
  0xfb   : > { %3260 = vmatmul.mubr.f32.gmra.mxu0 %v5424_v23  ;;  %1958 = vmatmul.mubr.f32.gmra.mxu1 %v3389_v17  ;;  %v5429_v17 = vld [vmem:[#allocation24_spill] sm:$0xff] }
  0xfc   : > { %3262 = vmatprep.mubr.f32.mxu0 %v5425_v42  ;;  %1962 = vmatprep.mubr.f32.mxu1 %v4070_v13 }
  0xfd   : > { %v4684_v44 = vpop.f32.mrf.mxu1  ;;  %3299 = vmatpush3.msra.mxu0 %v2962_v22  ;;  %v2959_v22 = vld [vmem:[%s5269_s3 + $0x418] sm:$0xff] }
  0xfe   : > { %3300 = vmatprep.subr.mxu0 %v2961_v39 }
  0xff   : > { %3263 = vmatmul.mubr.f32.gmra.mxu0 %v5426_v19  ;;  %1963 = vmatmul.mubr.f32.gmra.mxu1 %v3390_v43  ;;  %v4688_v0 = vpop.f32.mrf.mxu1 }
 0x100   : > { %3265 = vmatprep.mubr.f32.mxu0 %v5427_v55  ;;  %1967 = vmatprep.mubr.f32.mxu1 %v4104_v57  ;;  %v5430_v57 = vld [vmem:[#allocation26_spill] sm:$0xff] }
 0x101   : > { %3301 = vmatpush3.msra.mxu0 %v2961_v39  ;;  %v3392_v39 = vld [vmem:[%s3589_s10 + $0x48] sm:$0xff] }
 0x102   : > { %v4695_v13 = vpop.f32.mrf.mxu1  ;;  %3302 = vmatprep.subr.mxu0 %v2960_v59 }
 0x103   : > { %3266 = vmatmul.mubr.f32.gmra.mxu0 %v5428_v20  ;;  %1968 = vmatmul.mubr.f32.gmra.mxu1 %v3391_v28  ;;  %v2958_v28 = vld [vmem:[%s5269_s3 + $0x410] sm:$0xff] }
 0x104   : > { %3268 = vmatprep.mubr.f32.mxu0 %v5429_v17  ;;  %1972 = vmatprep.mubr.f32.mxu1 %v4147_v31  ;;  %v4704_v43 = vpop.f32.mrf.mxu1 }
 0x105   : > { %3303 = vmatpush3.msra.mxu0 %v2960_v59  ;;  %v5432_v59 = vld [vmem:[#allocation31_spill] sm:$0xff] }
 0x106   : > { %3304 = vmatprep.subr.mxu0 %v2959_v22 }
 0x107   : > { %3269 = vmatmul.mubr.f32.gmra.mxu0 %v5430_v57  ;;  %1973 = vmatmul.mubr.f32.gmra.mxu1 %v3392_v39  ;;  %v4708_v29 = vpop.f32.mrf.mxu1  ;;  %v2957_v39 = vld [vmem:[%s5269_s3 + $0x408] sm:$0xff] }
 0x108   : > { %3271 = vmatprep.mubr.f32.mxu0 %v5431_v10  ;;  %1977 = vmatprep.mubr.f32.mxu1 %v4180_v51 }
 0x109   : > { %v4715_v31 = vpop.f32.mrf.mxu1  ;;  %3305 = vmatpush3.msra.mxu0 %v2959_v22  ;;  %v5434_v22 = vld [vmem:[#allocation35_spill] sm:$0xff] }
 0x10a   : > { %3306 = vmatprep.subr.mxu0 %v2958_v28 }
 0x10b   : > { %3272 = vmatmul.mubr.f32.gmra.mxu0 %v5432_v59  ;;  %1978 = vmatmul.mubr.f32.gmra.mxu1 %v3393_v53  ;;  %v2956_v53 = vld [vmem:[%s5269_s3 + $0x400] sm:$0xff] }
 0x10c   : > { %3274 = vmatprep.mubr.f32.mxu0 %v5433_v61  ;;  %1982 = vmatprep.mubr.f32.mxu1 %v4209_v7  ;;  %v4724_v41 = vpop.f32.mrf.mxu1 }
 0x10d   : > { %3307 = vmatpush3.msra.mxu0 %v2958_v28  ;;  %v5437_v28 = vld [vmem:[#allocation37_spill] sm:$0xff] }
 0x10e   : > { %v4726_v51 = vpop.f32.mrf.mxu1  ;;  %3308 = vmatprep.subr.mxu0 %v2957_v39 }
 0x10f   : > { %3275 = vmatmul.mubr.f32.gmra.mxu0 %v5434_v22  ;;  %1983 = vmatmul.mubr.f32.gmra.mxu1 %v3394_v49 }
 0x110   : > { %3277 = vmatprep.mubr.f32.mxu0 %v5435_v56  ;;  %1987 = vmatprep.mubr.f32.mxu1 %v4222_v14 }
 0x111   : > { %v4735_v7 = vpop.f32.mrf.mxu1  ;;  %3309 = vmatpush3.msra.mxu0 %v2957_v39  ;;  %v3396_v39 = vld [vmem:[%s3589_s10 + $0x78] sm:$0xff] }
 0x112   : > { %5436 = vst [vmem:[#allocation2_spill] sm:$0xff] %v4735_v7  ;;  %3310 = vmatprep.subr.mxu0 %v2956_v53 }
 0x113   : > { %3278 = vmatmul.mubr.f32.gmra.mxu0 %v5437_v28  ;;  %1988 = vmatmul.mubr.f32.gmra.mxu1 %v3395_v25  ;;  %v4739_v21 = vpop.f32.mrf.mxu1 }
 0x114   : > { %1992 = vmatprep.mubr.f32.mxu1 %v4243_v30  ;;  %3311 = vmatpush3.msra.mxu0 %v2956_v53 }
 0x115   : > { %3312 = vmatprep.mubr.f32.mxu0 %v5409_v60 }
 0x116   : > { %v988_v49 = vpop.f32.mrf.mxu0  ;;  %v4743_v26 = vpop.f32.mrf.mxu1 }
 0x117   : > { %v4746_v14 = vadd.f32 %v4652_v16, %v988_v49  ;;  %1993 = vmatmul.mubr.f32.gmra.mxu1 %v3396_v39  ;;  %3313 = vmatmul.mubr.f32.vlgmr.msra.gmra.mxu0 %v5410_v15  ;;  %v3397_v16 = vld [vmem:[%s3589_s10 + $0x80] sm:$0xff] }
 0x118   : > { %v990_v7 = vpop.f32.mrf.mxu0  ;;  %v4750_v25 = vpop.f32.mrf.mxu1  ;;  %1997 = vmatprep.mubr.f32.mxu1 %v4256_v3  ;;  %3315 = vmatprep.mubr.f32.mxu0 %v5411_v37 }
 0x119   : > { %v3398_v7 = vld [vmem:[%s3589_s10 + $0x90] sm:$0xff] }
 0x11a   : > { %v993_v30 = vpop.f32.mrf.mxu0 }
 0x11b   : > { %v4755_v60 = vadd.f32 %v4640_v47, %v993_v30  ;;  %v4757_v53 = vpop.f32.mrf.mxu1  ;;  %1998 = vmatmul.mubr.f32.gmra.mxu1 %v3397_v16  ;;  %3316 = vmatmul.mubr.f32.gmra.mxu0 %v5412_v36  ;;  %v3399_v30 = vld [vmem:[%s3589_s10 + $0x98] sm:$0xff] }
 0x11c   : > { %v995_v49 = vpop.f32.mrf.mxu0  ;;  %2002 = vmatprep.mubr.f32.mxu1 %v4270_v6  ;;  %3318 = vmatprep.mubr.f32.mxu0 %v5413_v62 }
 0x11d   : > { %v4763_v15 = vpop.f32.mrf.mxu1  ;;  %v3400_v49 = vld [vmem:[%s3589_s10 + $0xa8] sm:$0xff] }
 0x11e   : > { %v998_v3 = vpop.f32.mrf.mxu0 }
 0x11f   : > { %v4766_v37 = vadd.f32 %v4664_v12, %v998_v3  ;;  %v4768_v47 = vpop.f32.mrf.mxu1  ;;  %2003 = vmatmul.mubr.f32.gmra.mxu1 %v3398_v7  ;;  %3319 = vmatmul.mubr.f32.gmra.mxu0 %v5414_v5  ;;  %v3401_v7 = vld [vmem:[%s3589_s10 + $0xb0] sm:$0xff] }
 0x120   : > { %v1000_v39 = vpop.f32.mrf.mxu0  ;;  %2007 = vmatprep.mubr.f32.mxu1 %v4285_v46  ;;  %3321 = vmatprep.mubr.f32.mxu0 %v5415_v27 }
 0x121   : > { %v4774_v6 = vpop.f32.mrf.mxu1 }
 0x122   : > { %v1003_v36 = vpop.f32.mrf.mxu0 }
 0x123   : > { %v4777_v62 = vadd.f32 %v4657_v54, %v1003_v36  ;;  %v4779_v12 = vpop.f32.mrf.mxu1  ;;  %2008 = vmatmul.mubr.f32.gmra.mxu1 %v3399_v30  ;;  %3322 = vmatmul.mubr.f32.gmra.mxu0 %v5416_v35  ;;  %v3402_v36 = vld [vmem:[%s3589_s10 + $0xc0] sm:$0xff] }
 0x124   : > { %v1005_v16 = vpop.f32.mrf.mxu0  ;;  %2012 = vmatprep.mubr.f32.mxu1 %v4301_v34  ;;  %3324 = vmatprep.mubr.f32.mxu0 %v5417_v11 }
 0x125   : > { %v4785_v46 = vpop.f32.mrf.mxu1  ;;  %v3403_v16 = vld [vmem:[%s3589_s10 + $0xc8] sm:$0xff] }
 0x126   : > { %v1008_v5 = vpop.f32.mrf.mxu0 }
 0x127   : > { %v4788_v27 = vadd.f32 %v4675_v9, %v1008_v5  ;;  %v4790_v54 = vpop.f32.mrf.mxu1  ;;  %2013 = vmatmul.mubr.f32.gmra.mxu1 %v3400_v49  ;;  %3325 = vmatmul.mubr.f32.gmra.mxu0 %v5418_v63  ;;  %v3404_v49 = vld [vmem:[%s3589_s10 + $0xd8] sm:$0xff] }
 0x128   : > { %v1010_v3 = vpop.f32.mrf.mxu0  ;;  %2017 = vmatprep.mubr.f32.mxu1 %v4316_v4  ;;  %3327 = vmatprep.mubr.f32.mxu0 %v5419_v45 }
 0x129   : > { %v4796_v34 = vpop.f32.mrf.mxu1 }
 0x12a   : > { %v1013_v35 = vpop.f32.mrf.mxu0 }
 0x12b   : > { %v4799_v11 = vadd.f32 %v4673_v40, %v1013_v35  ;;  %v4801_v9 = vpop.f32.mrf.mxu1  ;;  %2018 = vmatmul.mubr.f32.gmra.mxu1 %v3401_v7  ;;  %3328 = vmatmul.mubr.f32.gmra.mxu0 %v5420_v50  ;;  %v3405_v7 = vld [vmem:[%s3589_s10 + $0xe0] sm:$0xff] }
 0x12c   : > { %v1015_v39 = vpop.f32.mrf.mxu0  ;;  %2022 = vmatprep.mubr.f32.mxu1 %v4332_v18  ;;  %3330 = vmatprep.mubr.f32.mxu0 %v5421_v52 }
 0x12d   : > { %v4807_v4 = vpop.f32.mrf.mxu1 }
 0x12e   : > { %v1018_v63 = vpop.f32.mrf.mxu0 }
 0x12f   : > { %v4810_v45 = vadd.f32 %v4688_v0, %v1018_v63  ;;  %v4812_v40 = vpop.f32.mrf.mxu1  ;;  %2023 = vmatmul.mubr.f32.gmra.mxu1 %v3402_v36  ;;  %3331 = vmatmul.mubr.f32.gmra.mxu0 %v5422_v48  ;;  %v3406_v63 = vld [vmem:[%s3589_s10 + $0xf0] sm:$0xff]  ;;  %v518_v36 = vld [vmem:[%s443_s12 + $0x8] sm:$0xff] }
 0x130   : > { %v1020_v30 = vpop.f32.mrf.mxu0  ;;  %2027 = vmatprep.mubr.f32.mxu1 %v4347_v24  ;;  %3333 = vmatprep.mubr.f32.mxu0 %v5423_v1 }
 0x131   : > { %v4818_v18 = vpop.f32.mrf.mxu1 }
 0x132   : > { %v1023_v50 = vpop.f32.mrf.mxu0 }
 0x133   : > { %v4821_v52 = vadd.f32 %v4684_v44, %v1023_v50  ;;  %v4823_v0 = vpop.f32.mrf.mxu1  ;;  %2028 = vmatmul.mubr.f32.gmra.mxu1 %v3403_v16  ;;  %3334 = vmatmul.mubr.f32.gmra.mxu0 %v5424_v23  ;;  %v3407_v50 = vld [vmem:[%s3589_s10 + $0xf8] sm:$0xff] }
 0x134   : > { %v1025_v5 = vpop.f32.mrf.mxu0  ;;  %2032 = vmatprep.mubr.f32.mxu1 %v4363_v33  ;;  %3336 = vmatprep.mubr.f32.mxu0 %v5425_v42 }
 0x135   : > { %v4829_v24 = vpop.f32.mrf.mxu1  ;;  %v4877_v5 = vmul.f32 0.0, %v518_v36 }
 0x137   : > { %v1028_v48 = vpop.f32.mrf.mxu0  ;;  %v1438_v1 = vpop.f32.mrf.mxu1  ;;  %2033 = vmatmul.mubr.f32.gmra.mxu1 %v3404_v49  ;;  %3337 = vmatmul.mubr.f32.gmra.mxu0 %v5426_v19  ;;  %v3408_v49 = vld [vmem:[%s3589_s10 + $0x108] sm:$0xff] }
 0x138   : > { %v4834_v44 = vadd.f32 %v4704_v43, %v1028_v48  ;;  %v4837_v23 = vadd.f32 %v1438_v1, %v4746_v14  ;;  %2037 = vmatprep.mubr.f32.mxu1 %v4378_v8  ;;  %3339 = vmatprep.mubr.f32.mxu0 %v5427_v55  ;;  %v519_v48 = vld [vmem:[%s443_s12 + $0x10] sm:$0x3] }
 0x139   : > { %v1030_v33 = vpop.f32.mrf.mxu0  ;;  %v1440_v42 = vpop.f32.mrf.mxu1 }
 0x13b   : > { %v1033_v3 = vpop.f32.mrf.mxu0  ;;  %v1443_v35 = vpop.f32.mrf.mxu1  ;;  %2038 = vmatmul.mubr.f32.gmra.mxu1 %v3405_v7  ;;  %3340 = vmatmul.mubr.f32.gmra.mxu0 %v5428_v20  ;;  %v5439_v7 = vld [vmem:[#allocation38_spill] sm:$0xff] }
 0x13c   : > { %v4844_v19 = vadd.f32 %v4695_v13, %v1033_v3  ;;  %v4847_v43 = vadd.f32 %v1443_v35, %v4755_v60  ;;  %2042 = vmatprep.mubr.f32.mxu1 %v4394_v38  ;;  %3342 = vmatprep.mubr.f32.mxu0 %v5429_v17  ;;  %v517_v60 = vld [vmem:[%s443_s12] sm:$0xff]  ;;  %v1833_v3 = vrot.slane %v4877_v5, 2 }
 0x13d   : > { %v1035_v8 = vpop.f32.mrf.mxu0  ;;  %v1445_v55 = vpop.f32.mrf.mxu1  ;;  %v4875_v16 = vmul.f32 0.0, %v517_v60  ;;  %v5441_v60 = vld [vmem:[#allocation41_spill] sm:$0xff] }
 0x13f   : > { %v1038_v14 = vpop.f32.mrf.mxu0  ;;  %v1448_v39 = vpop.f32.mrf.mxu1  ;;  %2043 = vmatmul.mubr.f32.gmra.mxu1 %v3406_v63  ;;  %3343 = vmatmul.mubr.f32.gmra.mxu0 %v5430_v57  ;;  %v1832_v42 = vrot.slane %v4875_v16, 2 }
 0x140   : > { %v4858_v13 = vadd.f32 %v4715_v31, %v1038_v14  ;;  %v4861_v38 = vadd.f32 %v1448_v39, %v4766_v37  ;;  %2047 = vmatprep.mubr.f32.mxu1 %v4409_v32  ;;  %3345 = vmatprep.mubr.f32.mxu0 %v5431_v10 }
 0x141   : > { %v1040_v20 = vpop.f32.mrf.mxu0  ;;  %v1450_v17 = vpop.f32.mrf.mxu1  ;;  %v1834_v39 = vsel %vm695_vm0, %v1832_v42, %v1833_v3 }
 0x143   : > { %v1043_v30 = vpop.f32.mrf.mxu0  ;;  %v1453_v57 = vpop.f32.mrf.mxu1  ;;  %2048 = vmatmul.mubr.f32.gmra.mxu1 %v3407_v50  ;;  %3346 = vmatmul.mubr.f32.gmra.mxu0 %v5432_v59 }
 0x144   : > { %v4868_v31 = vadd.f32 %v4708_v29, %v1043_v30  ;;  %v4871_v37 = vadd.f32 %v1453_v57, %v4777_v62  ;;  %2052 = vmatprep.mubr.f32.mxu1 %v4425_v58  ;;  %3348 = vmatprep.mubr.f32.mxu0 %v5433_v61  ;;  %v4889_v61 = vmul.f32 0.0, %v519_v48 }
 0x145   : > { %v1045_v32 = vpop.f32.mrf.mxu0  ;;  %v1455_v10 = vpop.f32.mrf.mxu1 }
 0x146   : > { %v1835_v8 = vrot.slane %v4889_v61, 2  ;;  %v3411_v10 = vld [vmem:[%s3589_s10 + $0x128] sm:$0xff] }
 0x147   : > { %v1048_v1 = vpop.f32.mrf.mxu0  ;;  %v1458_v59 = vpop.f32.mrf.mxu1  ;;  %2053 = vmatmul.mubr.f32.gmra.mxu1 %v3408_v49  ;;  %3349 = vmatmul.mubr.f32.gmra.mxu0 %v5434_v22 }
 0x148   : > { %v4882_v29 = vadd.f32 %v4726_v51, %v1048_v1  ;;  %v4885_v58 = vadd.f32 %v1458_v59, %v4788_v27  ;;  %2057 = vmatprep.mubr.f32.mxu1 %v4440_v2  ;;  %3351 = vmatprep.mubr.f32.mxu0 %v5435_v56  ;;  %v3409_v51 = vld [vmem:[%s3589_s10 + $0x110] sm:$0xff]  ;;  %v1836_v36 = vsel %vm695_vm0, %v1833_v3, %v1835_v8  ;;  %v5443_v3 = vld [vmem:[#allocation27_spill] sm:$0xff]  ;;  %v5444_v8 = vld [vmem:[#allocation29_spill] sm:$0xff] }
 0x149   : > { %v1050_v62 = vpop.f32.mrf.mxu0  ;;  %v1460_v33 = vpop.f32.mrf.mxu1  ;;  %v5438_v56 = vld [vmem:[#allocation40_spill] sm:$0xff] }
 0x14a   : > { %v3412_v62 = vld [vmem:[%s3589_s10 + $0x138] sm:$0xff] }
 0x14b   : > { %v1053_v22 = vpop.f32.mrf.mxu0  ;;  %v1463_v35 = vpop.f32.mrf.mxu1  ;;  %2058 = vmatmul.mubr.f32.gmra.mxu1 %v3409_v51  ;;  %3352 = vmatmul.mubr.f32.gmra.mxu0 %v5437_v28  ;;  %v3410_v28 = vld [vmem:[%s3589_s10 + $0x120] sm:$0xff] }
 0x14c   : > { %v4896_v27 = vadd.f32 %v4724_v41, %v1053_v22  ;;  %v4899_v2 = vadd.f32 %v1463_v35, %v4799_v11  ;;  %2062 = vmatprep.mubr.f32.mxu1 %v5438_v56  ;;  %3354 = vmatprep.mubr.f32.mxu0 %v5439_v7  ;;  %v5440_v41 = vld [vmem:[#allocation39_spill] sm:$0xff]  ;;  %v3413_v56 = vld [vmem:[%s3589_s10 + $0x140] sm:$0xff] }
 0x14d   : > { %v1055_v55 = vpop.f32.mrf.mxu0  ;;  %v1465_v14 = vpop.f32.mrf.mxu1 }
 0x14f   : > { %v1058_v63 = vpop.f32.mrf.mxu0  ;;  %v1468_v20 = vpop.f32.mrf.mxu1  ;;  %2063 = vmatmul.mubr.f32.gmra.mxu1 %v3410_v28  ;;  %3355 = vmatmul.mubr.f32.gmra.mxu0 %v5440_v41 }
 0x150   : > { %v4908_v11 = vadd.f32 %v4739_v21, %v1058_v63  ;;  %v4911_v17 = vadd.f32 %v1468_v20, %v4810_v45  ;;  %2067 = vmatprep.mubr.f32.mxu1 %v5441_v60  ;;  %3357 = vmatprep.mubr.f32.mxu0 %v1834_v39  ;;  %v5442_v45 = vld [vmem:[#allocation25_spill] sm:$0xff]  ;;  %v3414_v39 = vld [vmem:[%s3589_s10 + $0x150] sm:$0xff]  ;;  %v5445_v20 = vld [vmem:[#allocation30_spill] sm:$0xff] }
 0x151   : > { %v1060_v30 = vpop.f32.mrf.mxu0  ;;  %v1470_v57 = vpop.f32.mrf.mxu1 }
 0x152   : > { %v5446_v57 = vld [vmem:[#allocation32_spill] sm:$0xff] }
 0x153   : > { %v4915_v50 = vpop.f32.mrf.mxu0  ;;  %v1473_v32 = vpop.f32.mrf.mxu1  ;;  %2068 = vmatmul.mubr.f32.gmra.mxu1 %v3411_v10  ;;  %3358 = vmatmul.mubr.f32.gmra.mxu0 %v1836_v36 }
 0x154   : > { %v4919_v21 = vadd.f32 %v1473_v32, %v4821_v52  ;;  %2072 = vmatprep.mubr.f32.mxu1 %v5442_v45  ;;  %v1826_v45 = vrot.slane %v4877_v5, 1 }
 0x155   : > { %v1065_v48 = vpop.f32.mrf.mxu0  ;;  %v1475_v1 = vpop.f32.mrf.mxu1 }
 0x157   : > { %v1068_v59 = vpop.f32.mrf.mxu0  ;;  %v1478_v49 = vpop.f32.mrf.mxu1  ;;  %2073 = vmatmul.mubr.f32.gmra.mxu1 %v3412_v62  ;;  %v5447_v62 = vld [vmem:[#allocation34_spill] sm:$0xff] }
 0x158   : > { %v4924_v33 = vadd.f32 %v4750_v25, %v1068_v59  ;;  %v4927_v42 = vadd.f32 %v1478_v49, %v4834_v44  ;;  %2077 = vmatprep.mubr.f32.mxu1 %v5443_v3  ;;  %v3416_v59 = vld [vmem:[%s3589_s10 + $0x168] sm:$0xff] }
 0x159   : > { %v1070_v22 = vpop.f32.mrf.mxu0  ;;  %v1480_v52 = vpop.f32.mrf.mxu1 }
 0x15a   : > { %v1828_v52 = vrot.slane %v4889_v61, 1 }
 0x15b   : > { %v4930_v35 = vpop.f32.mrf.mxu0  ;;  %v1483_v51 = vpop.f32.mrf.mxu1  ;;  %2078 = vmatmul.mubr.f32.gmra.mxu1 %v3413_v56 }
 0x15c   : > { %v4934_v7 = vadd.f32 %v1483_v51, %v4844_v19  ;;  %2082 = vmatprep.mubr.f32.mxu1 %v5444_v8  ;;  %v3415_v19 = vld [vmem:[%s3589_s10 + $0x158] sm:$0xff]  ;;  %v3417_v8 = vld [vmem:[%s3589_s10 + $0x170] sm:$0xff] }
 0x15d   : > { %v1075_v25 = vpop.f32.mrf.mxu0  ;;  %v1485_v55 = vpop.f32.mrf.mxu1 }
 0x15f   : > { %v1078_v14 = vpop.f32.mrf.mxu0  ;;  %v1488_v44 = vpop.f32.mrf.mxu1  ;;  %2083 = vmatmul.mubr.f32.gmra.mxu1 %v3414_v39 }
 0x160   : > { %v4939_v63 = vadd.f32 %v1488_v44, %v4858_v13  ;;  %2087 = vmatprep.mubr.f32.mxu1 %v5445_v20  ;;  %v1825_v13 = vrot.slane %v4875_v16, 1 }
 0x161   : > { %v1080_v28 = vpop.f32.mrf.mxu0  ;;  %v1490_v41 = vpop.f32.mrf.mxu1 }
 0x162   : > { %v1827_v22 = vsel %vm582_vm1, %v1825_v13, %v1826_v45 }
 0x163   : > { %v1083_v60 = vpop.f32.mrf.mxu0  ;;  %v1493_v36 = vpop.f32.mrf.mxu1  ;;  %2088 = vmatmul.mubr.f32.gmra.mxu1 %v3415_v19 }
 0x164   : > { %v4944_v30 = vadd.f32 %v1493_v36, %v4868_v31  ;;  %2092 = vmatprep.mubr.f32.mxu1 %v5446_v57  ;;  %v5448_v36 = vld [vmem:[#allocation2_spill] sm:$0xff] }
 0x165   : > { %v1085_v32 = vpop.f32.mrf.mxu0  ;;  %v1495_v10 = vpop.f32.mrf.mxu1  ;;  %v1289_v19 = vadd.f32 %v5448_v36, %v4915_v50 }
 0x167   : > { %v1088_v48 = vpop.f32.mrf.mxu0  ;;  %v1498_v1 = vpop.f32.mrf.mxu1  ;;  %2093 = vmatmul.mubr.f32.gmra.mxu1 %v3416_v59 }
 0x168   : > { %v4951_v49 = vadd.f32 %v1498_v1, %v4882_v29  ;;  %2097 = vmatprep.mubr.f32.mxu1 %v5447_v62  ;;  %v1829_v29 = vsel %vm582_vm1, %v1826_v45, %v1828_v52  ;;  %v1299_v62 = vadd.f32 %v4743_v26, %v4930_v35  ;;  %v1304_v52 = vadd.f32 %v4763_v15, %v1078_v14 }
 0x169   : > { %v1090_v31 = vpop.f32.mrf.mxu0  ;;  %v1500_v3 = vpop.f32.mrf.mxu1  ;;  %v1314_v36 = vadd.f32 %v4774_v6, %v1088_v48 }
 0x16b   : > { %v1093_v51 = vpop.f32.mrf.mxu0  ;;  %v1503_v56 = vpop.f32.mrf.mxu1  ;;  %2098 = vmatmul.mubr.f32.gmra.mxu1 %v3417_v8 }
 0x16c   : > { %v4958_v25 = vadd.f32 %v1503_v56, %v4896_v27  ;;  %2102 = vmatprep.mubr.f32.mxu1 %v1827_v22 }
 0x16d   : > { %v1095_v55 = vpop.f32.mrf.mxu0  ;;  %v1505_v44 = vpop.f32.mrf.mxu1 }
 0x16f   : > { %v1098_v39 = vpop.f32.mrf.mxu0  ;;  %v1508_v20 = vpop.f32.mrf.mxu1  ;;  %2103 = vmatmul.mubr.f32.gmra.mxu1 %v4875_v16 }
 0x170   : > { %v4963_v28 = vadd.f32 %v1508_v20, %v4908_v11  ;;  %2107 = vmatprep.mubr.f32.mxu1 %v1829_v29  ;;  %v1309_v29 = vadd.f32 %v4757_v53, %v1083_v60 }
 0x171   : > { %v1100_v61 = vpop.f32.mrf.mxu0  ;;  %v1510_v41 = vpop.f32.mrf.mxu1 }
 0x173   : > { %v1103_v27 = vpop.f32.mrf.mxu0  ;;  %v1513_v57 = vpop.f32.mrf.mxu1  ;;  %2108 = vmatmul.mubr.f32.gmra.mxu1 %v4877_v5 }
 0x174   : > { %v4968_v32 = vadd.f32 %v1513_v57, %v1289_v19 }
 0x175   : > { %v1105_v10 = vpop.f32.mrf.mxu0  ;;  %v1515_v13 = vpop.f32.mrf.mxu1 }
 0x176   : > { %v1319_v13 = vadd.f32 %v4768_v47, %v1093_v51 }
 0x177   : > { %v1108_v45 = vpop.f32.mrf.mxu0  ;;  %v1518_v1 = vpop.f32.mrf.mxu1 }
 0x178   : > { %v4971_v16 = vadd.f32 %v1518_v1, %v4924_v33 }
 0x179   : > { %v1110_v11 = vpop.f32.mrf.mxu0  ;;  %v1520_v59 = vpop.f32.mrf.mxu1 }
 0x17b   : > { %v1113_v31 = vpop.f32.mrf.mxu0  ;;  %v1523_v50 = vpop.f32.mrf.mxu1 }
 0x17c   : > { %v4975_v3 = vadd.f32 %v1523_v50, %v1299_v62  ;;  %v1324_v62 = vadd.f32 %v4785_v46, %v1098_v39 }
 0x17d   : > { %v1115_v22 = vpop.f32.mrf.mxu0  ;;  %v1525_v5 = vpop.f32.mrf.mxu1 }
 0x17f   : > { %v1118_v56 = vpop.f32.mrf.mxu0  ;;  %v1528_v8 = vpop.f32.mrf.mxu1 }
 0x180   : > { %v4978_v55 = vadd.f32 %v1528_v8, %v1304_v52  ;;  %v1329_v52 = vadd.f32 %v4779_v12, %v1103_v27 }
 0x181   : > { %v1120_v44 = vpop.f32.mrf.mxu0  ;;  %v1530_v33 = vpop.f32.mrf.mxu1 }
 0x183   : > { %v1123_v20 = vpop.f32.mrf.mxu0  ;;  %v1533_v61 = vpop.f32.mrf.mxu1 }
 0x184   : > { %v4981_v41 = vadd.f32 %v1533_v61, %v1309_v29  ;;  %v1334_v29 = vadd.f32 %v4796_v34, %v1108_v45 }
 0x185   : > { %v1125_v26 = vpop.f32.mrf.mxu0  ;;  %v1535_v35 = vpop.f32.mrf.mxu1 }
 0x187   : > { %v1128_v19 = vpop.f32.mrf.mxu0  ;;  %v1538_v57 = vpop.f32.mrf.mxu1 }
 0x188   : > { %v4984_v10 = vadd.f32 %v1538_v57, %v1314_v36  ;;  %v1339_v57 = vadd.f32 %v4790_v54, %v1113_v31 }
 0x189   : > { %v1130_v15 = vpop.f32.mrf.mxu0  ;;  %v1540_v14 = vpop.f32.mrf.mxu1 }
 0x18b   : > { %v1133_v1 = vpop.f32.mrf.mxu0  ;;  %v1543_v11 = vpop.f32.mrf.mxu1 }
 0x18c   : > { %v4987_v59 = vadd.f32 %v1543_v11, %v1319_v13  ;;  %v1344_v11 = vadd.f32 %v4807_v4, %v1118_v56 }
 0x18d   : > { %v1135_v53 = vpop.f32.mrf.mxu0  ;;  %v1545_v60 = vpop.f32.mrf.mxu1 }
 0x18f   : > { %v1138_v50 = vpop.f32.mrf.mxu0  ;;  %v1548_v22 = vpop.f32.mrf.mxu1 }
 0x190   : > { %v4990_v5 = vadd.f32 %v1548_v22, %v1324_v62  ;;  %v1349_v22 = vadd.f32 %v4801_v9, %v1123_v20 }
 0x191   : > { %v1140_v6 = vpop.f32.mrf.mxu0  ;;  %v1550_v48 = vpop.f32.mrf.mxu1 }
 0x193   : > { %v1143_v8 = vpop.f32.mrf.mxu0  ;;  %v1553_v44 = vpop.f32.mrf.mxu1 }
 0x194   : > { %v4993_v33 = vadd.f32 %v1553_v44, %v1329_v52  ;;  %v1354_v44 = vadd.f32 %v4818_v18, %v1128_v19 }
 0x195   : > { %v1145_v47 = vpop.f32.mrf.mxu0  ;;  %v1555_v51 = vpop.f32.mrf.mxu1 }
 0x197   : > { %v1558_v61 = vpop.f32.mrf.mxu1  ;;  %v3234_v26 = vpop.f32.mrf.mxu0 }
 0x198   : > { %v4996_v35 = vadd.f32 %v1558_v61, %v1334_v29  ;;  %v4999_v46 = vadd.f32 %v3234_v26, %v4847_v43  ;;  %v1359_v61 = vadd.f32 %v4812_v40, %v1133_v1 }
 0x199   : > { %v1560_v39 = vpop.f32.mrf.mxu1  ;;  %v1663_v36 = vpop.f32.mrf.mxu0 }
 0x19a   : > { %v5003_v12 = vadd.f32 %v1663_v36, %v4837_v23 }
 0x19b   : > { %v1563_v27 = vpop.f32.mrf.mxu1  ;;  %v3237_v15 = vpop.f32.mrf.mxu0 }
 0x19c   : > { %v5005_v14 = vadd.f32 %v1563_v27, %v1339_v57  ;;  %v5008_v34 = vadd.f32 %v3237_v15, %v4871_v37  ;;  %v1364_v57 = vadd.f32 %v4829_v24, %v1138_v50 }
 0x19d   : > { %v1565_v45 = vpop.f32.mrf.mxu1  ;;  %v1673_v13 = vpop.f32.mrf.mxu0 }
 0x19e   : > { %v5012_v43 = vadd.f32 %v1673_v13, %v4861_v38  ;;  %v1369_v13 = vadd.f32 %v4823_v0, %v1143_v8 }
 0x19f   : > { %v1568_v53 = vpop.f32.mrf.mxu1  ;;  %v3240_v60 = vpop.f32.mrf.mxu0 }
 0x1a0   : > { %v5014_v54 = vadd.f32 %v1568_v53, %v1344_v11  ;;  %v5017_v23 = vadd.f32 %v3240_v60, %v4899_v2 }
 0x1a1   : > { %v1570_v31 = vpop.f32.mrf.mxu1  ;;  %v1683_v62 = vpop.f32.mrf.mxu0 }
 0x1a2   : > { %v5021_v37 = vadd.f32 %v1683_v62, %v4885_v58 }
 0x1a3   : > { %v1573_v6 = vpop.f32.mrf.mxu1  ;;  %v3243_v48 = vpop.f32.mrf.mxu0 }
 0x1a4   : > { %v5023_v4 = vadd.f32 %v1573_v6, %v1349_v22  ;;  %v5026_v38 = vadd.f32 %v3243_v48, %v4919_v21 }
 0x1a5   : > { %v1575_v56 = vpop.f32.mrf.mxu1  ;;  %v1693_v52 = vpop.f32.mrf.mxu0 }
 0x1a6   : > { %v5030_v2 = vadd.f32 %v1693_v52, %v4911_v17 }
 0x1a7   : > { %v1578_v47 = vpop.f32.mrf.mxu1  ;;  %v3246_v51 = vpop.f32.mrf.mxu0 }
 0x1a8   : > { %v5032_v9 = vadd.f32 %v1578_v47, %v1354_v44  ;;  %v5035_v58 = vadd.f32 %v3246_v51, %v4934_v7 }
 0x1a9   : > { %v1580_v20 = vpop.f32.mrf.mxu1  ;;  %v1703_v29 = vpop.f32.mrf.mxu0 }
 0x1aa   : > { %v5039_v21 = vadd.f32 %v1703_v29, %v4927_v42 }
 0x1ab   : > { %v1583_v26 = vpop.f32.mrf.mxu1  ;;  %v3249_v39 = vpop.f32.mrf.mxu0 }
 0x1ac   : > { %v1584_v18 = vadd.f32 %v1583_v26, %v1359_v61  ;;  %v5042_v17 = vadd.f32 %v3249_v39, %v4944_v30 }
 0x1ad   : > { %v1585_v19 = vpop.f32.mrf.mxu1  ;;  %v1713_v36 = vpop.f32.mrf.mxu0 }
 0x1ae   : > { %v5046_v7 = vadd.f32 %v1713_v36, %v4939_v63 }
 0x1af   : > { %v1588_v27 = vpop.f32.mrf.mxu1  ;;  %v3252_v15 = vpop.f32.mrf.mxu0 }
 0x1b0   : > { %v1589_v45 = vadd.f32 %v1588_v27, %v1364_v57  ;;  %v5049_v40 = vadd.f32 %v3252_v15, %v4958_v25 }
 0x1b1   : > { %v1590_v42 = vpop.f32.mrf.mxu1  ;;  %v1723_v1 = vpop.f32.mrf.mxu0 }
 0x1b2   : > { %v5053_v30 = vadd.f32 %v1723_v1, %v4951_v49 }
 0x1b3   : > { %v1593_v11 = vpop.f32.mrf.mxu1  ;;  %v3255_v53 = vpop.f32.mrf.mxu0 }
 0x1b4   : > { %v1594_v60 = vadd.f32 %v1593_v11, %v1369_v13  ;;  %v5056_v24 = vadd.f32 %v3255_v53, %v4968_v32 }
 0x1b5   : > { %v1595_v63 = vpop.f32.mrf.mxu1  ;;  %v1733_v50 = vpop.f32.mrf.mxu0 }
 0x1b6   : > { %v5059_v31 = vadd.f32 %v1733_v50, %v4963_v28 }
 0x1b7   : > { %v3258_v25 = vpop.f32.mrf.mxu0  ;;  %v1954_v62 = vpop.f32.mrf.mxu1 }
 0x1b8   : > { %v5062_v22 = vadd.f32 %v3258_v25, %v4975_v3 }
 0x1b9   : > { %v1743_v0 = vpop.f32.mrf.mxu0  ;;  %v1956_v8 = vpop.f32.mrf.mxu1 }
 0x1ba   : > { %v5065_v49 = vadd.f32 %v1743_v0, %v4971_v16 }
 0x1bb   : > { %v3261_v6 = vpop.f32.mrf.mxu0  ;;  %v1959_v48 = vpop.f32.mrf.mxu1 }
 0x1bc   : > { %v5068_v32 = vadd.f32 %v3261_v6, %v4981_v41 }
 0x1bd   : > { %v1753_v56 = vpop.f32.mrf.mxu0  ;;  %v1961_v52 = vpop.f32.mrf.mxu1 }
 0x1be   : > { %v5071_v28 = vadd.f32 %v1753_v56, %v4978_v55 }
 0x1bf   : > { %v3264_v44 = vpop.f32.mrf.mxu0  ;;  %v1964_v47 = vpop.f32.mrf.mxu1 }
 0x1c0   : > { %v5074_v3 = vadd.f32 %v3264_v44, %v4987_v59 }
 0x1c1   : > { %v1763_v51 = vpop.f32.mrf.mxu0  ;;  %v1966_v20 = vpop.f32.mrf.mxu1 }
 0x1c2   : > { %v5077_v16 = vadd.f32 %v1763_v51, %v4984_v10 }
 0x1c3   : > { %v3267_v29 = vpop.f32.mrf.mxu0  ;;  %v1969_v61 = vpop.f32.mrf.mxu1 }
 0x1c4   : > { %v5080_v41 = vadd.f32 %v3267_v29, %v4993_v33 }
 0x1c5   : > { %v1773_v26 = vpop.f32.mrf.mxu0  ;;  %v1971_v39 = vpop.f32.mrf.mxu1 }
 0x1c6   : > { %v5083_v55 = vadd.f32 %v1773_v26, %v4990_v5 }
 0x1c7   : > { %v3270_v19 = vpop.f32.mrf.mxu0  ;;  %v1974_v36 = vpop.f32.mrf.mxu1 }
 0x1c8   : > { %v5086_v59 = vadd.f32 %v3270_v19, %v5005_v14 }
 0x1c9   : > { %v1783_v57 = vpop.f32.mrf.mxu0  ;;  %v1976_v27 = vpop.f32.mrf.mxu1 }
 0x1ca   : > { %v5089_v10 = vadd.f32 %v1783_v57, %v4996_v35 }
 0x1cb   : > { %v3273_v15 = vpop.f32.mrf.mxu0  ;;  %v1979_v42 = vpop.f32.mrf.mxu1 }
 0x1cc   : > { %v5092_v33 = vadd.f32 %v3273_v15, %v5023_v4 }
 0x1cd   : > { %v1793_v1 = vpop.f32.mrf.mxu0  ;;  %v1981_v13 = vpop.f32.mrf.mxu1 }
 0x1ce   : > { %v5095_v5 = vadd.f32 %v1793_v1, %v5014_v54 }
 0x1cf   : > { %v3276_v11 = vpop.f32.mrf.mxu0  ;;  %v5097_v53 = vpop.f32.mrf.mxu1 }
 0x1d0   : > { %v5099_v14 = vadd.f32 %v3276_v11, %v1584_v18 }
 0x1d1   : > { %v1803_v63 = vpop.f32.mrf.mxu0  ;;  %v1986_v50 = vpop.f32.mrf.mxu1 }
 0x1d2   : > { %v5102_v35 = vadd.f32 %v1803_v63, %v5032_v9 }
 0x1d3   : > { %v3279_v25 = vpop.f32.mrf.mxu0  ;;  %v1989_v0 = vpop.f32.mrf.mxu1 }
 0x1d4   : > { %v5104_v4 = vadd.f32 %v3279_v25, %v1594_v60 }
 0x1d5   : > { %v1813_v8 = vpop.f32.mrf.mxu0  ;;  %v1991_v6 = vpop.f32.mrf.mxu1 }
 0x1d6   : > { %v5106_v56 = vadd.f32 %v1813_v8, %v1589_v45 }
 0x1d7   : > { %v5108_v54 = vpop.f32.mrf.mxu1  ;;  %v3314_v52 = vpop.f32.mrf.mxu0 }
 0x1d8   : > { %v2185_v44 = vadd.f32 %v3314_v52, %v1959_v48 }
 0x1d9   : > { %v1996_v18 = vpop.f32.mrf.mxu1  ;;  %v2179_v51 = vpop.f32.mrf.mxu0 }
 0x1da   : > { %v2339_v20 = vadd.f32 %v2185_v44, %v4999_v46  ;;  %v2180_v29 = vadd.f32 %v2179_v51, %v1954_v62 }
 0x1db   : > { %v5111_v9 = vpop.f32.mrf.mxu1  ;;  %v3317_v26 = vpop.f32.mrf.mxu0 }
 0x1dc   : > { %v2512_v45 = vrot.slane %v2339_v20, 7  ;;  %v2338_v60 = vadd.f32 %v2180_v29, %v5003_v12  ;;  %v2195_v39 = vadd.f32 %v3317_v26, %v1969_v61  ;;  %v2408_v48 = vmul.f32 %v2339_v20, %v2339_v20 }
 0x1dd   : > { %v2001_v19 = vpop.f32.mrf.mxu1  ;;  %v2189_v46 = vpop.f32.mrf.mxu0 }
 0x1de   : > { %v2623_v62 = vsel %vm2476_vm2, %v2512_v45, 0.0  ;;  %v2370_v57 = vadd.f32 %v2339_v20, %v2338_v60  ;;  %v2407_v27 = vmul.f32 %v2338_v60, %v2338_v60  ;;  %v2511_v15 = vrot.slane %v2338_v60, 7 }
 0x1df   : > { %2641 = vst [vmem:[%s5117_s14 + $0x10] sm:$0x3] %v2623_v62  ;;  %v2341_v1 = vadd.f32 %v2195_v39, %v5008_v34  ;;  %v2190_v13 = vadd.f32 %v2189_v46, %v1964_v47  ;;  %v5123_v11 = vpop.f32.mrf.mxu1  ;;  %v3320_v63 = vpop.f32.mrf.mxu0 }
 0x1e0   : > { %v2439_v50 = vadd.f32 %v2408_v48, %v2407_v27  ;;  %v2513_v12 = vsel %vm2476_vm2, %v2511_v15, %v2512_v45  ;;  %v2607_v61 = vsel %vm2476_vm2, 0.0, %v2511_v15  ;;  %v2205_v25 = vadd.f32 %v3320_v63, %v1979_v42 }
 0x1e1   : > { %2639 = vst [vmem:[%s5117_s14] sm:$0xff] %v2607_v61  ;;  %2640 = vst [vmem:[%s5117_s14 + $0x8] sm:$0xff] %v2513_v12  ;;  %v2515_v8 = vrot.slane %v2341_v1, 7  ;;  %v2340_v6 = vadd.f32 %v2190_v13, %v5012_v43  ;;  %v2006_v52 = vpop.f32.mrf.mxu1  ;;  %v2199_v44 = vpop.f32.mrf.mxu0  ;;  %v2410_v45 = vmul.f32 %v2341_v1, %v2341_v1 }
 0x1e2   : > { %v2343_v34 = vadd.f32 %v2205_v25, %v5017_v23  ;;  %v2200_v47 = vadd.f32 %v2199_v44, %v1974_v36 }
 0x1e3   : > { %v2624_v18 = vsel %vm2476_vm2, %v2515_v8, 0.0  ;;  %v2371_v51 = vadd.f32 %v2370_v57, %v2340_v6  ;;  %v2409_v20 = vmul.f32 %v2340_v6, %v2340_v6  ;;  %v2514_v29 = vrot.slane %v2340_v6, 7  ;;  %v2009_v26 = vpop.f32.mrf.mxu1  ;;  %v3323_v42 = vpop.f32.mrf.mxu0 }
 0x1e4   : > { %2644 = vst [vmem:[%s5117_s14 + $0x28] sm:$0x3] %v2624_v18  ;;  %v2518_v60 = vrot.slane %v2343_v34, 7  ;;  %v2342_v43 = vadd.f32 %v2200_v47, %v5021_v37  ;;  %v2215_v39 = vadd.f32 %v3323_v42, %v1989_v0  ;;  %v2412_v12 = vmul.f32 %v2343_v34, %v2343_v34 }
 0x1e5   : > { %v2440_v48 = vadd.f32 %v2439_v50, %v2409_v20  ;;  %v2516_v23 = vsel %vm2476_vm2, %v2514_v29, %v2515_v8  ;;  %v2608_v36 = vsel %vm2476_vm2, 0.0, %v2514_v29  ;;  %v2372_v19 = vadd.f32 %v2371_v51, %v2341_v1  ;;  %v2011_v46 = vpop.f32.mrf.mxu1  ;;  %v2209_v62 = vpop.f32.mrf.mxu0 }
 0x1e6   : > { %2642 = vst [vmem:[%s5117_s14 + $0x18] sm:$0xff] %v2608_v36  ;;  %2643 = vst [vmem:[%s5117_s14 + $0x20] sm:$0xff] %v2516_v23  ;;  %v2625_v57 = vsel %vm2476_vm2, %v2518_v60, 0.0  ;;  %v2411_v27 = vmul.f32 %v2342_v43, %v2342_v43  ;;  %v2517_v15 = vrot.slane %v2342_v43, 7  ;;  %v2345_v13 = vadd.f32 %v2215_v39, %v5026_v38 }
 0x1e7   : > { %2647 = vst [vmem:[%s5117_s14 + $0x40] sm:$0x3] %v2625_v57  ;;  %v2373_v37 = vadd.f32 %v2372_v19, %v2342_v43  ;;  %v2441_v0 = vadd.f32 %v2440_v48, %v2410_v45  ;;  %v2210_v63 = vadd.f32 %v2209_v62, %v5097_v53  ;;  %v2014_v50 = vpop.f32.mrf.mxu1  ;;  %v3326_v1 = vpop.f32.mrf.mxu0 }
 0x1e8   : > { %v2519_v61 = vsel %vm2476_vm2, %v2517_v15, %v2518_v60  ;;  %v2609_v25 = vsel %vm2476_vm2, 0.0, %v2517_v15  ;;  %v2521_v8 = vrot.slane %v2345_v13, 7  ;;  %v2225_v44 = vadd.f32 %v3326_v1, %v5111_v9 }
 0x1e9   : > { %v2442_v6 = vadd.f32 %v2441_v0, %v2411_v27  ;;  %2645 = vst [vmem:[%s5117_s14 + $0x30] sm:$0xff] %v2609_v25  ;;  %2646 = vst [vmem:[%s5117_s14 + $0x38] sm:$0xff] %v2519_v61  ;;  %v2344_v52 = vadd.f32 %v2210_v63, %v5030_v2  ;;  %v2374_v38 = vadd.f32 %v2373_v37, %v2343_v34  ;;  %v2016_v47 = vpop.f32.mrf.mxu1  ;;  %v2219_v18 = vpop.f32.mrf.mxu0 }
 0x1ea   : > { %v2626_v53 = vsel %vm2476_vm2, %v2521_v8, 0.0  ;;  %v2220_v51 = vadd.f32 %v2219_v18, %v5108_v54  ;;  %v2414_v39 = vmul.f32 %v2345_v13, %v2345_v13  ;;  %v2347_v2 = vadd.f32 %v2225_v44, %v5035_v58 }
 0x1eb   : > { %2650 = vst [vmem:[%s5117_s14 + $0x58] sm:$0x3] %v2626_v53  ;;  %v2375_v20 = vadd.f32 %v2374_v38, %v2344_v52  ;;  %v2413_v29 = vmul.f32 %v2344_v52, %v2344_v52  ;;  %v2443_v42 = vadd.f32 %v2442_v6, %v2412_v12  ;;  %v2520_v45 = vrot.slane %v2344_v52, 7  ;;  %v2019_v60 = vpop.f32.mrf.mxu1  ;;  %v3329_v43 = vpop.f32.mrf.mxu0 }
 0x1ec   : > { %v2346_v9 = vadd.f32 %v2220_v51, %v5039_v21  ;;  %v2235_v34 = vadd.f32 %v3329_v43, %v2009_v26  ;;  %v2524_v62 = vrot.slane %v2347_v2, 7  ;;  %v2416_v61 = vmul.f32 %v2347_v2, %v2347_v2 }
 0x1ed   : > { %v2444_v48 = vadd.f32 %v2443_v42, %v2413_v29  ;;  %v2522_v23 = vsel %vm2476_vm2, %v2520_v45, %v2521_v8  ;;  %v2610_v54 = vsel %vm2476_vm2, 0.0, %v2520_v45  ;;  %v2376_v36 = vadd.f32 %v2375_v20, %v2345_v13  ;;  %v2021_v19 = vpop.f32.mrf.mxu1  ;;  %v2229_v46 = vpop.f32.mrf.mxu0 }
 0x1ee   : > { %2648 = vst [vmem:[%s5117_s14 + $0x48] sm:$0xff] %v2610_v54  ;;  %2649 = vst [vmem:[%s5117_s14 + $0x50] sm:$0xff] %v2522_v23  ;;  %v2415_v57 = vmul.f32 %v2346_v9, %v2346_v9  ;;  %v2523_v27 = vrot.slane %v2346_v9, 7  ;;  %v2349_v21 = vadd.f32 %v2235_v34, %v5042_v17  ;;  %v2230_v26 = vadd.f32 %v2229_v46, %v5123_v11 }
 0x1ef   : > { %v2377_v58 = vadd.f32 %v2376_v36, %v2346_v9  ;;  %v2445_v15 = vadd.f32 %v2444_v48, %v2414_v39  ;;  %v2024_v37 = vpop.f32.mrf.mxu1  ;;  %v3332_v0 = vpop.f32.mrf.mxu0  ;;  %v2627_v13 = vsel %vm2476_vm2, %v2524_v62, 0.0 }
 0x1f0   : > { %v2525_v63 = vsel %vm2476_vm2, %v2523_v27, %v2524_v62  ;;  %v2611_v1 = vsel %vm2476_vm2, 0.0, %v2523_v27  ;;  %v2245_v12 = vadd.f32 %v3332_v0, %v2019_v60  ;;  %2653 = vst [vmem:[%s5117_s14 + $0x70] sm:$0x3] %v2627_v13  ;;  %v2527_v8 = vrot.slane %v2349_v21, 7 }
 0x1f1   : > { %v2446_v25 = vadd.f32 %v2445_v15, %v2415_v57  ;;  %2651 = vst [vmem:[%s5117_s14 + $0x60] sm:$0xff] %v2611_v1  ;;  %2652 = vst [vmem:[%s5117_s14 + $0x68] sm:$0xff] %v2525_v63  ;;  %v2348_v17 = vadd.f32 %v2230_v26, %v5046_v7  ;;  %v2026_v6 = vpop.f32.mrf.mxu1  ;;  %v2239_v11 = vpop.f32.mrf.mxu0  ;;  %v2378_v52 = vadd.f32 %v2377_v58, %v2347_v2 }
 0x1f2   : > { %v2351_v38 = vadd.f32 %v2245_v12, %v5049_v40  ;;  %v2240_v44 = vadd.f32 %v2239_v11, %v2014_v50  ;;  %v2628_v47 = vsel %vm2476_vm2, %v2527_v8, 0.0  ;;  %v2418_v42 = vmul.f32 %v2349_v21, %v2349_v21 }
 0x1f3   : > { %v2417_v18 = vmul.f32 %v2348_v17, %v2348_v17  ;;  %v2447_v53 = vadd.f32 %v2446_v25, %v2416_v61  ;;  %v2526_v51 = vrot.slane %v2348_v17, 7  ;;  %v2029_v20 = vpop.f32.mrf.mxu1  ;;  %v3335_v29 = vpop.f32.mrf.mxu0  ;;  %2656 = vst [vmem:[%s5117_s14 + $0x88] sm:$0x3] %v2628_v47  ;;  %v2379_v45 = vadd.f32 %v2378_v52, %v2348_v17 }
 0x1f4   : > { %v2530_v7 = vrot.slane %v2351_v38, 7  ;;  %v2350_v60 = vadd.f32 %v2240_v44, %v5053_v30  ;;  %v2255_v39 = vadd.f32 %v3335_v29, %v2029_v20  ;;  %v2420_v15 = vmul.f32 %v2351_v38, %v2351_v38 }
 0x1f5   : > { %v2448_v43 = vadd.f32 %v2447_v53, %v2417_v18  ;;  %v2528_v40 = vsel %vm2476_vm2, %v2526_v51, %v2527_v8  ;;  %v2612_v50 = vsel %vm2476_vm2, 0.0, %v2526_v51  ;;  %v2031_v2 = vpop.f32.mrf.mxu1  ;;  %v2249_v9 = vpop.f32.mrf.mxu0  ;;  %v2380_v48 = vadd.f32 %v2379_v45, %v2349_v21 }
 0x1f6   : > { %2654 = vst [vmem:[%s5117_s14 + $0x78] sm:$0xff] %v2612_v50  ;;  %2655 = vst [vmem:[%s5117_s14 + $0x80] sm:$0xff] %v2528_v40  ;;  %v2629_v34 = vsel %vm2476_vm2, %v2530_v7, 0.0  ;;  %v2419_v23 = vmul.f32 %v2350_v60, %v2350_v60  ;;  %v2529_v54 = vrot.slane %v2350_v60, 7  ;;  %v2353_v30 = vadd.f32 %v2255_v39, %v5056_v24 }
 0x1f7   : > { %2659 = vst [vmem:[%s5117_s14 + $0xa0] sm:$0x3] %v2629_v34  ;;  %v2449_v36 = vadd.f32 %v2448_v43, %v2418_v42  ;;  %v2250_v19 = vadd.f32 %v2249_v9, %v2024_v37  ;;  %v2034_v46 = vpop.f32.mrf.mxu1  ;;  %v3338_v62 = vpop.f32.mrf.mxu0  ;;  %v2381_v57 = vadd.f32 %v2380_v48, %v2350_v60 }
 0x1f8   : > { %v2531_v27 = vsel %vm2476_vm2, %v2529_v54, %v2530_v7  ;;  %v2613_v58 = vsel %vm2476_vm2, 0.0, %v2529_v54  ;;  %v2533_v21 = vrot.slane %v2353_v30, 7  ;;  %v2422_v44 = vmul.f32 %v2353_v30, %v2353_v30 }
 0x1f9   : > { %v2450_v26 = vadd.f32 %v2449_v36, %v2419_v23  ;;  %2657 = vst [vmem:[%s5117_s14 + $0x90] sm:$0xff] %v2613_v58  ;;  %2658 = vst [vmem:[%s5117_s14 + $0x98] sm:$0xff] %v2531_v27  ;;  %v2352_v0 = vadd.f32 %v2250_v19, %v5059_v31  ;;  %v2036_v13 = vpop.f32.mrf.mxu1  ;;  %v2259_v63 = vpop.f32.mrf.mxu0  ;;  %v2382_v1 = vadd.f32 %v2381_v57, %v2351_v38 }
 0x1fa   : > { %v2260_v24 = vadd.f32 %v2259_v63, %v2034_v46  ;;  %v2630_v37 = vsel %vm2476_vm2, %v2533_v21, 0.0 }
 0x1fb   : > { %v2421_v12 = vmul.f32 %v2352_v0, %v2352_v0  ;;  %v2451_v61 = vadd.f32 %v2450_v26, %v2420_v15  ;;  %v2532_v25 = vrot.slane %v2352_v0, 7  ;;  %v2039_v8 = vpop.f32.mrf.mxu1  ;;  %v3341_v17 = vpop.f32.mrf.mxu0  ;;  %2662 = vst [vmem:[%s5117_s14 + $0xb8] sm:$0x3] %v2630_v37  ;;  %v2383_v6 = vadd.f32 %v2382_v1, %v2352_v0 }
 0x1fc   : > { %v2354_v11 = vadd.f32 %v2260_v24, %v5065_v49  ;;  %v2265_v52 = vadd.f32 %v3338_v62, %v2039_v8 }
 0x1fd   : > { %v2452_v31 = vadd.f32 %v2451_v61, %v2421_v12  ;;  %v2534_v47 = vsel %vm2476_vm2, %v2532_v25, %v2533_v21  ;;  %v2614_v38 = vsel %vm2476_vm2, 0.0, %v2532_v25  ;;  %v2041_v18 = vpop.f32.mrf.mxu1  ;;  %v2384_v53 = vadd.f32 %v2383_v6, %v2353_v30  ;;  %v2269_v42 = vpop.f32.mrf.mxu0 }
 0x1fe   : > { %2660 = vst [vmem:[%s5117_s14 + $0xa8] sm:$0xff] %v2614_v38  ;;  %2661 = vst [vmem:[%s5117_s14 + $0xb0] sm:$0xff] %v2534_v47  ;;  %v2423_v51 = vmul.f32 %v2354_v11, %v2354_v11  ;;  %v2535_v20 = vrot.slane %v2354_v11, 7  ;;  %v2355_v29 = vadd.f32 %v2265_v52, %v5062_v22 }
 0x1ff   : > { %v2453_v45 = vadd.f32 %v2452_v31, %v2422_v44  ;;  %v2044_v49 = vpop.f32.mrf.mxu1  ;;  %v2385_v7 = vadd.f32 %v2384_v53, %v2354_v11  ;;  %v3344_v9 = vpop.f32.mrf.mxu0 }
 0x200   : > { %v2615_v60 = vsel %vm2476_vm2, 0.0, %v2535_v20  ;;  %v2424_v43 = vmul.f32 %v2355_v29, %v2355_v29  ;;  %v2536_v40 = vrot.slane %v2355_v29, 7  ;;  %v2270_v39 = vadd.f32 %v2269_v42, %v2044_v49 }
 0x201   : > { %v2454_v50 = vadd.f32 %v2453_v45, %v2423_v51  ;;  %2663 = vst [vmem:[%s5117_s14 + $0xc0] sm:$0xff] %v2615_v60  ;;  %v2046_v2 = vpop.f32.mrf.mxu1  ;;  %v2386_v34 = vadd.f32 %v2385_v7, %v2355_v29  ;;  %v2279_v27 = vpop.f32.mrf.mxu0 }
 0x202   : > { %v2537_v48 = vsel %vm2476_vm2, %v2535_v20, %v2536_v40  ;;  %v2631_v22 = vsel %vm2476_vm2, %v2536_v40, 0.0  ;;  %v2356_v54 = vadd.f32 %v2270_v39, %v5071_v28 }
 0x203   : > { %v2455_v23 = vadd.f32 %v2454_v50, %v2424_v43  ;;  %2664 = vst [vmem:[%s5117_s14 + $0xc8] sm:$0xff] %v2537_v48  ;;  %2665 = vst [vmem:[%s5117_s14 + $0xd0] sm:$0x3] %v2631_v22  ;;  %v2049_v36 = vpop.f32.mrf.mxu1  ;;  %v3347_v24 = vpop.f32.mrf.mxu0 }
 0x204   : > { %v2275_v30 = vadd.f32 %v3341_v17, %v2049_v36  ;;  %v2387_v19 = vadd.f32 %v2386_v34, %v2356_v54  ;;  %v2425_v46 = vmul.f32 %v2356_v54, %v2356_v54  ;;  %v2538_v62 = vrot.slane %v2356_v54, 7 }
 0x205   : > { %v2051_v57 = vpop.f32.mrf.mxu1  ;;  %v2289_v44 = vpop.f32.mrf.mxu0 }
 0x206   : > { %v2357_v58 = vadd.f32 %v2275_v30, %v5068_v32  ;;  %v2456_v15 = vadd.f32 %v2455_v23, %v2425_v46  ;;  %v2616_v26 = vsel %vm2476_vm2, 0.0, %v2538_v62 }
 0x207   : > { %v2054_v21 = vpop.f32.mrf.mxu1  ;;  %2666 = vst [vmem:[%s5117_s14 + $0xd8] sm:$0xff] %v2616_v26  ;;  %v3350_v42 = vpop.f32.mrf.mxu0 }
 0x208   : > { %v2388_v0 = vadd.f32 %v2387_v19, %v2357_v58  ;;  %v2426_v13 = vmul.f32 %v2357_v58, %v2357_v58  ;;  %v2539_v63 = vrot.slane %v2357_v58, 7  ;;  %v2280_v28 = vadd.f32 %v2279_v27, %v2054_v21 }
 0x209   : > { %v2056_v1 = vpop.f32.mrf.mxu1 }
 0x20a   : > { %v2457_v37 = vadd.f32 %v2456_v15, %v2426_v13  ;;  %v2540_v12 = vsel %vm2476_vm2, %v2538_v62, %v2539_v63  ;;  %v2632_v61 = vsel %vm2476_vm2, %v2539_v63, 0.0  ;;  %v2358_v32 = vadd.f32 %v2280_v28, %v5077_v16 }
 0x20b   : > { %2667 = vst [vmem:[%s5117_s14 + $0xe0] sm:$0xff] %v2540_v12  ;;  %2668 = vst [vmem:[%s5117_s14 + $0xe8] sm:$0x3] %v2632_v61  ;;  %v2059_v25 = vpop.f32.mrf.mxu1 }
 0x20c   : > { %v2389_v8 = vadd.f32 %v2388_v0, %v2358_v32  ;;  %v2427_v17 = vmul.f32 %v2358_v32, %v2358_v32  ;;  %v2541_v6 = vrot.slane %v2358_v32, 7  ;;  %v2285_v11 = vadd.f32 %v3344_v9, %v2059_v25  ;;  %v2299_v9 = vpop.f32.mrf.mxu0 }
 0x20d   : > { %v2061_v52 = vpop.f32.mrf.mxu1 }
 0x20e   : > { %v2458_v31 = vadd.f32 %v2457_v37, %v2427_v17  ;;  %v2617_v47 = vsel %vm2476_vm2, 0.0, %v2541_v6  ;;  %v2359_v38 = vadd.f32 %v2285_v11, %v5074_v3  ;;  %v3353_v46 = vpop.f32.mrf.mxu0 }
 0x20f   : > { %2669 = vst [vmem:[%s5117_s14 + $0xf0] sm:$0xff] %v2617_v47  ;;  %v2064_v18 = vpop.f32.mrf.mxu1 }
 0x210   : > { %v2390_v53 = vadd.f32 %v2389_v8, %v2359_v38  ;;  %v2428_v16 = vmul.f32 %v2359_v38, %v2359_v38  ;;  %v2542_v51 = vrot.slane %v2359_v38, 7  ;;  %v2290_v20 = vadd.f32 %v2289_v44, %v2064_v18  ;;  %v2309_v63 = vpop.f32.mrf.mxu0 }
 0x211   : > { %v2066_v29 = vpop.f32.mrf.mxu1 }
 0x212   : > { %v2459_v45 = vadd.f32 %v2458_v31, %v2428_v16  ;;  %v2543_v49 = vsel %vm2476_vm2, %v2541_v6, %v2542_v51  ;;  %v2633_v7 = vsel %vm2476_vm2, %v2542_v51, 0.0  ;;  %v2360_v60 = vadd.f32 %v2290_v20, %v5083_v55  ;;  %v3356_v8 = vpop.f32.mrf.mxu0 }
 0x213   : > { %2670 = vst [vmem:[%s5117_s14 + $0xf8] sm:$0xff] %v2543_v49  ;;  %2671 = vst [vmem:[%s5117_s14 + $0x100] sm:$0x3] %v2633_v7  ;;  %v2069_v43 = vpop.f32.mrf.mxu1 }
 0x214   : > { %v2391_v3 = vadd.f32 %v2390_v53, %v2360_v60  ;;  %v2429_v40 = vmul.f32 %v2360_v60, %v2360_v60  ;;  %v2544_v50 = vrot.slane %v2360_v60, 7  ;;  %v2295_v39 = vadd.f32 %v3347_v24, %v2069_v43  ;;  %v2319_v53 = vpop.f32.mrf.mxu0 }
 0x215   : > { %v2071_v2 = vpop.f32.mrf.mxu1 }
 0x216   : > { %v2460_v34 = vadd.f32 %v2459_v45, %v2429_v40  ;;  %v2618_v48 = vsel %vm2476_vm2, 0.0, %v2544_v50  ;;  %v2361_v22 = vadd.f32 %v2295_v39, %v5080_v41  ;;  %v3359_v60 = vpop.f32.mrf.mxu0 }
 0x217   : > { %2672 = vst [vmem:[%s5117_s14 + $0x108] sm:$0xff] %v2618_v48  ;;  %v2074_v23 = vpop.f32.mrf.mxu1 }
 0x218   : > { %v2392_v54 = vadd.f32 %v2391_v3, %v2361_v22  ;;  %v2430_v55 = vmul.f32 %v2361_v22, %v2361_v22  ;;  %v2545_v36 = vrot.slane %v2361_v22, 7  ;;  %v2300_v30 = vadd.f32 %v2299_v9, %v2074_v23  ;;  %v2329_v22 = vpop.f32.mrf.mxu0 }
 0x219   : > { %v2076_v19 = vpop.f32.mrf.mxu1 }
 0x21a   : > { %v2461_v62 = vadd.f32 %v2460_v34, %v2430_v55  ;;  %v2546_v57 = vsel %vm2476_vm2, %v2544_v50, %v2545_v36  ;;  %v2634_v27 = vsel %vm2476_vm2, %v2545_v36, 0.0  ;;  %v2362_v58 = vadd.f32 %v2300_v30, %v5089_v10 }
 0x21b   : > { %2673 = vst [vmem:[%s5117_s14 + $0x110] sm:$0xff] %v2546_v57  ;;  %2674 = vst [vmem:[%s5117_s14 + $0x118] sm:$0x3] %v2634_v27  ;;  %v2079_v15 = vpop.f32.mrf.mxu1 }
 0x21c   : > { %v2393_v41 = vadd.f32 %v2392_v54, %v2362_v58  ;;  %v2431_v26 = vmul.f32 %v2362_v58, %v2362_v58  ;;  %v2547_v21 = vrot.slane %v2362_v58, 7  ;;  %v2305_v0 = vadd.f32 %v3350_v42, %v2079_v15 }
 0x21d   : > { %v2081_v13 = vpop.f32.mrf.mxu1 }
 0x21e   : > { %v2462_v28 = vadd.f32 %v2461_v62, %v2431_v26  ;;  %v2619_v1 = vsel %vm2476_vm2, 0.0, %v2547_v21  ;;  %v2363_v24 = vadd.f32 %v2305_v0, %v5086_v59 }
 0x21f   : > { %2675 = vst [vmem:[%s5117_s14 + $0x120] sm:$0xff] %v2619_v1  ;;  %v2084_v37 = vpop.f32.mrf.mxu1 }
 0x220   : > { %v2394_v12 = vadd.f32 %v2393_v41, %v2363_v24  ;;  %v2432_v10 = vmul.f32 %v2363_v24, %v2363_v24  ;;  %v2548_v61 = vrot.slane %v2363_v24, 7  ;;  %v2310_v32 = vadd.f32 %v2309_v63, %v2084_v37 }
 0x221   : > { %v2086_v25 = vpop.f32.mrf.mxu1 }
 0x222   : > { %v2463_v17 = vadd.f32 %v2462_v28, %v2432_v10  ;;  %v2549_v6 = vsel %vm2476_vm2, %v2547_v21, %v2548_v61  ;;  %v2635_v11 = vsel %vm2476_vm2, %v2548_v61, 0.0  ;;  %v2364_v52 = vadd.f32 %v2310_v32, %v5095_v5 }
 0x223   : > { %2676 = vst [vmem:[%s5117_s14 + $0x128] sm:$0xff] %v2549_v6  ;;  %2677 = vst [vmem:[%s5117_s14 + $0x130] sm:$0x3] %v2635_v11  ;;  %v2089_v44 = vpop.f32.mrf.mxu1 }
 0x224   : > { %v2395_v59 = vadd.f32 %v2394_v12, %v2364_v52  ;;  %v2433_v31 = vmul.f32 %v2364_v52, %v2364_v52  ;;  %v2550_v47 = vrot.slane %v2364_v52, 7  ;;  %v2315_v38 = vadd.f32 %v3353_v46, %v2089_v44 }
 0x225   : > { %v2091_v18 = vpop.f32.mrf.mxu1 }
 0x226   : > { %v2464_v16 = vadd.f32 %v2463_v17, %v2433_v31  ;;  %v2620_v51 = vsel %vm2476_vm2, 0.0, %v2550_v47  ;;  %v2365_v20 = vadd.f32 %v2315_v38, %v5092_v33 }
 0x227   : > { %2678 = vst [vmem:[%s5117_s14 + $0x138] sm:$0xff] %v2620_v51  ;;  %v2094_v29 = vpop.f32.mrf.mxu1 }
 0x228   : > { %v2396_v42 = vadd.f32 %v2395_v59, %v2365_v20  ;;  %v2434_v5 = vmul.f32 %v2365_v20, %v2365_v20  ;;  %v2551_v45 = vrot.slane %v2365_v20, 7  ;;  %v2320_v49 = vadd.f32 %v2319_v53, %v2094_v29 }
 0x229   : > { %v2096_v7 = vpop.f32.mrf.mxu1 }
 0x22a   : > { %v2465_v43 = vadd.f32 %v2464_v16, %v2434_v5  ;;  %v2552_v3 = vsel %vm2476_vm2, %v2550_v47, %v2551_v45  ;;  %v2636_v40 = vsel %vm2476_vm2, %v2551_v45, 0.0  ;;  %v2366_v50 = vadd.f32 %v2320_v49, %v5102_v35 }
 0x22b   : > { %2679 = vst [vmem:[%s5117_s14 + $0x140] sm:$0xff] %v2552_v3  ;;  %2680 = vst [vmem:[%s5117_s14 + $0x148] sm:$0x3] %v2636_v40  ;;  %v2099_v39 = vpop.f32.mrf.mxu1 }
 0x22c   : > { %v2397_v33 = vadd.f32 %v2396_v42, %v2366_v50  ;;  %v2435_v2 = vmul.f32 %v2366_v50, %v2366_v50  ;;  %v2553_v9 = vrot.slane %v2366_v50, 7  ;;  %v2325_v34 = vadd.f32 %v3356_v8, %v2099_v39 }
 0x22d   : > { %v2101_v48 = vpop.f32.mrf.mxu1 }
 0x22e   : > { %v2466_v23 = vadd.f32 %v2465_v43, %v2435_v2  ;;  %v2621_v54 = vsel %vm2476_vm2, 0.0, %v2553_v9  ;;  %v2367_v55 = vadd.f32 %v2325_v34, %v5099_v14 }
 0x22f   : > { %2681 = vst [vmem:[%s5117_s14 + $0x150] sm:$0xff] %v2621_v54  ;;  %v2104_v36 = vpop.f32.mrf.mxu1 }
 0x230   : > { %v2398_v30 = vadd.f32 %v2397_v33, %v2367_v55  ;;  %v2436_v35 = vmul.f32 %v2367_v55, %v2367_v55  ;;  %v2554_v19 = vrot.slane %v2367_v55, 7  ;;  %v2330_v46 = vadd.f32 %v2329_v22, %v2104_v36 }
 0x231   : > { %v2106_v62 = vpop.f32.mrf.mxu1 }
 0x232   : > { %v2467_v57 = vadd.f32 %v2466_v23, %v2436_v35  ;;  %v2555_v27 = vsel %vm2476_vm2, %v2553_v9, %v2554_v19  ;;  %v2637_v58 = vsel %vm2476_vm2, %v2554_v19, 0.0  ;;  %v2368_v15 = vadd.f32 %v2330_v46, %v5106_v56 }
 0x233   : > { %2682 = vst [vmem:[%s5117_s14 + $0x158] sm:$0xff] %v2555_v27  ;;  %2683 = vst [vmem:[%s5117_s14 + $0x160] sm:$0x3] %v2637_v58  ;;  %v2109_v41 = vpop.f32.mrf.mxu1 }
 0x234   : > { %v2399_v26 = vadd.f32 %v2398_v30, %v2368_v15  ;;  %v2437_v14 = vmul.f32 %v2368_v15, %v2368_v15  ;;  %v2556_v21 = vrot.slane %v2368_v15, 7  ;;  %v2335_v0 = vadd.f32 %v3359_v60, %v2109_v41 }
 0x235   : > { %v2111_v13 = vpop.f32.mrf.mxu1 }
 0x236   : > { %v2468_v63 = vadd.f32 %v2467_v57, %v2437_v14  ;;  %v2622_v28 = vsel %vm2476_vm2, 0.0, %v2556_v21  ;;  %v2369_v1 = vadd.f32 %v2335_v0, %v5104_v4 }
 0x237   : > { %2684 = vst [vmem:[%s5117_s14 + $0x168] sm:$0xff] %v2622_v28 }
 0x238   : > { %v2400_v24 = vadd.f32 %v2399_v26, %v2369_v1  ;;  %v2438_v37 = vmul.f32 %v2369_v1, %v2369_v1  ;;  %v2557_v56 = vrot.slane %v2369_v1, 7 }
 0x23a   : > { %v2401_v12 = vrot.slane %v2400_v24, 4  ;;  %v2469_v10 = vadd.f32 %v2468_v63, %v2438_v37  ;;  %v2558_v61 = vsel %vm2476_vm2, %v2556_v21, %v2557_v56  ;;  %v2638_v32 = vsel %vm2476_vm2, %v2557_v56, 0.0 }
 0x23b   : > { %2685 = vst [vmem:[%s5117_s14 + $0x170] sm:$0xff] %v2558_v61  ;;  %2686 = vst [vmem:[%s5117_s14 + $0x178] sm:$0x3] %v2638_v32 }
 0x23c   : > { %v2402_v25 = vadd.f32 %v2401_v12, %v2400_v24  ;;  %v2470_v8 = vrot.slane %v2469_v10, 4 }
 0x23e   : > { %v2403_v17 = vrot.slane %v2402_v25, 2  ;;  %v2471_v6 = vadd.f32 %v2470_v8, %v2469_v10 }
 0x240   : > { %v2404_v11 = vadd.f32 %v2403_v17, %v2402_v25  ;;  %v2472_v52 = vrot.slane %v2471_v6, 2 }
 0x242   : > { %v2405_v4 = vrot.slane %v2404_v11, 1  ;;  %v2473_v44 = vadd.f32 %v2472_v52, %v2471_v6 }
 0x244   : > { %v2474_v59 = vrot.slane %v2473_v44, 1  ;;  %v2406_v31 = vadd.f32 %v2405_v4, %v2404_v11 }
 0x246   : > { %v2475_v47 = vadd.f32 %v2474_v59, %v2473_v44 }
 0x248   : > { %v2477_v38 = vsel %vm2476_vm2, %v2406_v31, %v2475_v47 }
 0x249   : > { %2478 = vst [vmem:[%s465_s17] sm:$0x3] %v2477_v38 }
 0x24a PF: > { %s18_s26 = sadd.s32 1, %s3440_s26   ;;  %s5449_s24 = smov %s3436_s25 }
 0x24b   : > { %p15_p5 = scmp.ge.s32.totalorder %s18_s26, 4   ;;  %s5450_s25 = smov %s5452_s4 }
 0x24d   :  { %17 = sbr.rel (!%p15_p5) target bundleno = 2 (0x2), region = 94 }

// kernel: double_conv.4
= control target key start
LH: loop header
LB: loop body
LE: loop exit
PB: predicated region body
PF: predicated region fallthrough
CT: control target
= control target key end

     0   :  { %s3753_s24 = smov 0   ;;  %s3755_s25 = smov 0   ;;  %s5872_s0 = inlined_call_operand.vmem [shape: f32[2,16,18,128], index: 0, kind: input, shape index: {}, may-alias: {0,1,2}]   ;;  %s5873_s1 = inlined_call_operand.vmem [shape: f32[2,16,18,128], index: 1, kind: input, shape index: {}, may-alias: {0,1,2}]   ;;  %s5874_s2 = inlined_call_operand.vmem [shape: f32[2,16,18,128], index: 2, kind: input, shape index: {}, may-alias: {0,1,2}]   ;;  %s5875_s3 = inlined_call_operand.vmem [shape: f32[3,384,128], index: 3, kind: input, shape index: {}]   ;;  %s5876_s4 = inlined_call_operand.vmem [shape: f32[1,128], index: 4, kind: input, shape index: {}]   ;;  %s5877_s5 = inlined_call_operand.vmem [shape: f32[1,128], index: 5, kind: input, shape index: {}]   ;;  %s5878_s6 = inlined_call_operand.vmem [shape: f32[2,16,18,128], index: 6, kind: output, shape index: {0}]   ;;  %s5879_s7 = inlined_call_operand.vmem [shape: f32[2,1,2,128], index: 7, kind: output, shape index: {1}]  }
   0x1   :  { %s3757_s26 = smov 0  }
   0x2 LB: > { %s30_s27 = sadd.s32 1, %s3706_s25  ;;  %p3119_p0 = scmp.ge.s32.totalorder %s3710_s26, 1  ;;  %s3710_s26 = sphi %s3757_s26, %s18_s26   ;;  %s3706_s25 = sphi %s3755_s25, %s6182_s25   ;;  %s3702_s24 = sphi %s3753_s24, %s6181_s24  }
   0x3   : > { %p32_p1 = scmp.ge.s32.totalorder %s30_s27, 2  ;;  %p328_p2 = scmp.lt.s32.totalorder %s3710_s26, 3 }
   0x5   : > { %s6184_s27 = smov (%p32_p1, %s30_s27), 0  ;;  %p329_p3 = pnand %p3119_p0, %p328_p2 }
   0x7   : > { %332 = sbr.rel (%p329_p3) target bundleno = 586 (0x24a), region = 44 }
   0xc   : > { %v3174_v0 = vld [vmem:[%s5875_s3 + $0x2f8] sm:$0xff]  ;;  %v3173_v2 = vld [vmem:[%s5875_s3 + $0x2f0] sm:$0xff]  ;;  %p404_p4 = scmp.lt.s32.totalorder %s3702_s24, 1  ;;  %v5882_v3 = vmov 0.0   ;;  %v3172_v5 = vld [vmem:[%s5875_s3 + $0x2e8] sm:$0xff]  ;;  %v522_v11 = vlaneseq  ;;  %vm944_vm2 = vcmask 1045504  }
   0xd   : > { %v3142_v1 = vld [vmem:[%s5875_s3 + $0x1f8] sm:$0xff]  ;;  %1171 = vmatprep.subr.mxu0 %v5882_v3  ;;  %3417 = vmatprep.subr.mxu1 %v3174_v0  ;;  %v3141_v4 = vld [vmem:[%s5875_s3 + $0x1f0] sm:$0xff]  ;;  %v3140_v6 = vld [vmem:[%s5875_s3 + $0x1e8] sm:$0xff]  ;;  %vm831_vm3 = vcmask 1046528   ;;  %vm2725_vm4 = vcmask 1040384  }
   0xe   : > { %1172 = vmatpush1.msra.mxu0 %v3142_v1  ;;  %3418 = vmatpush3.msra.mxu1 %v3174_v0  ;;  %s6186_s24 = smov (!%p404_p4, %s3702_s24), 1  ;;  %v3171_v7 = vld [vmem:[%s5875_s3 + $0x2e0] sm:$0xff]  ;;  %v3170_v9 = vld [vmem:[%s5875_s3 + $0x2d8] sm:$0xff]  ;;  %v3169_v12 = vld [vmem:[%s5875_s3 + $0x2d0] sm:$0xff]  ;;  %v3842_v20 = vshrl.u32 %v522_v11, 7 }
   0xf   : > { %1173 = vmatprep.subr.mxu0 %v5882_v3  ;;  %3419 = vmatprep.subr.mxu1 %v3173_v2  ;;  %s3797_s19 = smul.u32 384, %s6186_s24  ;;  %v3139_v8 = vld [vmem:[%s5875_s3 + $0x1e0] sm:$0xff]  ;;  %v3138_v10 = vld [vmem:[%s5875_s3 + $0x1d8] sm:$0xff]  ;;  %v3137_v13 = vld [vmem:[%s5875_s3 + $0x1d0] sm:$0xff] }
  0x10   : > { %1174 = vmatpush1.msra.mxu0 %v3141_v4  ;;  %3420 = vmatpush3.msra.mxu1 %v3173_v2  ;;  %v3168_v14 = vld [vmem:[%s5875_s3 + $0x2c8] sm:$0xff]  ;;  %v3835_v18 = vld [vmem:[%s5876_s4] ss:$0 sm:$0xff]  ;;  %v3166_v28 = vld [vmem:[%s5875_s3 + $0x2b8] sm:$0xff]  ;;  %v3868_v34 = vadd.s32 16, %v3842_v20  ;;  %vm526_vm0 = vcmp.ge.s32.totalorder %v3842_v20, 1 }
  0x11   : > { %1175 = vmatprep.subr.mxu0 %v5882_v3  ;;  %3421 = vmatprep.subr.mxu1 %v3172_v5  ;;  %s3814_s9 = scalar_lea.vmem %s5872_s0, %s3797_s19  ;;  %v3136_v15 = vld [vmem:[%s5875_s3 + $0x1c8] sm:$0xff]  ;;  %v3840_v19 = vld [vmem:[%s5877_s5] ss:$0 sm:$0xff]  ;;  %v3134_v33 = vld [vmem:[%s5875_s3 + $0x1b8] sm:$0xff]  ;;  %s4464_s8 = scalar_lea.vmem %s5873_s1, %s3797_s19 }
  0x12   : > { %1176 = vmatpush1.msra.mxu0 %v3140_v6  ;;  %3422 = vmatpush3.msra.mxu1 %v3172_v5  ;;  %v466_v16 = vld [vmem:[%s3814_s9] sm:$0xff]  ;;  %v467_v17 = vld [vmem:[%s3814_s9 + $0x8] sm:$0xff]  ;;  %v468_v24 = vld [vmem:[%s3814_s9 + $0x10] sm:$0x3]  ;;  %6004 = vst [vmem:[#allocation2_spill] sm:$0xff] %v3868_v34  ;;  %vm531_vm1 = vcmp.le.s32.totalorder %v3868_v34, 16 }
  0x13   : > { %1177 = vmatprep.subr.mxu0 %v5882_v3  ;;  %3423 = vmatprep.subr.mxu1 %v3171_v7  ;;  %v3167_v21 = vld [vmem:[%s5875_s3 + $0x2c0] sm:$0xff]  ;;  %v541_v22 = vmul.f32 %v3835_v18, %v466_v16  ;;  %v542_v23 = vmul.f32 %v3835_v18, %v467_v17  ;;  %v543_v26 = vmul.f32 %v3835_v18, %v468_v24  ;;  %v469_v27 = vld [vmem:[%s3814_s9 + $0x18] sm:$0xff]  ;;  %v471_v32 = vld [vmem:[%s3814_s9 + $0x28] sm:$0x3]  ;;  %s3272_s28 = sadd.s32 360, %s3797_s19 }
  0x14   : > { %1178 = vmatpush1.msra.mxu0 %v3139_v8  ;;  %3424 = vmatpush3.msra.mxu1 %v3171_v7  ;;  %v3135_v25 = vld [vmem:[%s5875_s3 + $0x1c0] sm:$0xff]  ;;  %v544_v31 = vmul.f32 %v3835_v18, %v469_v27  ;;  %v546_v36 = vmul.f32 %v3835_v18, %v471_v32  ;;  %v472_v37 = vld [vmem:[%s3814_s9 + $0x30] sm:$0xff]  ;;  %v3164_v44 = vld [vmem:[%s5875_s3 + $0x2a8] sm:$0xff] }
  0x15   : > { %1179 = vmatprep.subr.mxu0 %v5882_v3  ;;  %3425 = vmatprep.subr.mxu1 %v3170_v9  ;;  %v595_v29 = vadd.f32 %v3840_v19, %v541_v22  ;;  %v470_v30 = vld [vmem:[%s3814_s9 + $0x20] sm:$0xff]  ;;  %v597_v35 = vadd.f32 %v3840_v19, %v543_v26  ;;  %v3165_v38 = vld [vmem:[%s5875_s3 + $0x2b0] sm:$0xff]  ;;  %v596_v39 = vadd.f32 %v3840_v19, %v542_v23  ;;  %v3132_v48 = vld [vmem:[%s5875_s3 + $0x1a8] sm:$0xff] }
  0x16   : > { %1180 = vmatpush1.msra.mxu0 %v3138_v10  ;;  %3426 = vmatpush3.msra.mxu1 %v3170_v9  ;;  %v3133_v40 = vld [vmem:[%s5875_s3 + $0x1b0] sm:$0xff]  ;;  %v545_v42 = vmul.f32 %v3835_v18, %v470_v30  ;;  %v598_v43 = vadd.f32 %v3840_v19, %v544_v31  ;;  %v600_v46 = vadd.f32 %v3840_v19, %v546_v36  ;;  %v473_v49 = vld [vmem:[%s3814_s9 + $0x38] sm:$0xff]  ;;  %v3163_v50 = vld [vmem:[%s5875_s3 + $0x2a0] sm:$0xff] }
  0x17   : > { %1181 = vmatprep.subr.mxu0 %v5882_v3  ;;  %3427 = vmatprep.subr.mxu1 %v3169_v12  ;;  %v3881_v41 = vmax.f32 %v595_v29, 0.0  ;;  %v645_v45 = vmax.f32 %v597_v35, 0.0  ;;  %v547_v47 = vmul.f32 %v3835_v18, %v472_v37  ;;  %v3900_v51 = vmax.f32 %v596_v39, 0.0  ;;  %v474_v52 = vld [vmem:[%s3814_s9 + $0x40] sm:$0x3]  ;;  %v475_v53 = vld [vmem:[%s3814_s9 + $0x48] sm:$0xff] }
  0x18   : > { %1182 = vmatpush1.msra.mxu0 %v3137_v13  ;;  %3428 = vmatpush3.msra.mxu1 %v3169_v12  ;;  %v3131_v54 = vld [vmem:[%s5875_s3 + $0x1a0] sm:$0xff]  ;;  %v599_v56 = vadd.f32 %v3840_v19, %v545_v42  ;;  %v3914_v57 = vmax.f32 %v598_v43, 0.0  ;;  %v3162_v58 = vld [vmem:[%s5875_s3 + $0x298] sm:$0xff]  ;;  %v648_v60 = vmax.f32 %v600_v46, 0.0  ;;  %v548_v61 = vmul.f32 %v3835_v18, %v473_v49  ;;  %v3161_v2 = vld [vmem:[%s5875_s3 + $0x290] sm:$0xff] }
  0x19   : > { %1183 = vmatprep.subr.mxu0 %v5882_v3  ;;  %3429 = vmatprep.subr.mxu1 %v3168_v14  ;;  %v3911_v55 = vsel %vm526_vm0, %v3881_v41, 0.0  ;;  %v3921_v59 = vsel %vm531_vm1, %v645_v45, 0.0  ;;  %v601_v62 = vadd.f32 %v3840_v19, %v547_v47  ;;  %v3130_v63 = vld [vmem:[%s5875_s3 + $0x198] sm:$0xff]  ;;  %v549_v0 = vmul.f32 %v3835_v18, %v474_v52  ;;  %v476_v6 = vld [vmem:[%s3814_s9 + $0x50] sm:$0xff]  ;;  %v3160_v12 = vld [vmem:[%s5875_s3 + $0x288] sm:$0xff] }
  0x1a   : > { %1184 = vmatpush1.msra.mxu0 %v3136_v15  ;;  %3430 = vmatpush3.msra.mxu1 %v3168_v14  ;;  %v550_v1 = vmul.f32 %v3835_v18, %v475_v53  ;;  %v950_v4 = vrot.slane %v3911_v55, 2  ;;  %v951_v5 = vrot.slane %v3900_v51, 2  ;;  %v477_v7 = vld [vmem:[%s3814_s9 + $0x58] sm:$0x3]  ;;  %v3129_v8 = vld [vmem:[%s5875_s3 + $0x190] sm:$0xff]  ;;  %v953_v9 = vrot.slane %v3921_v59, 2 }
  0x1b   : > { %1185 = vmatprep.subr.mxu0 %v5882_v3  ;;  %3431 = vmatprep.subr.mxu1 %v3167_v21  ;;  %v3943_v10 = vmax.f32 %v599_v56, 0.0  ;;  %v3948_v11 = vsel %vm526_vm0, %v3914_v57, 0.0  ;;  %v3955_v13 = vsel %vm531_vm1, %v648_v60, 0.0  ;;  %v602_v14 = vadd.f32 %v3840_v19, %v548_v61  ;;  %v3128_v17 = vld [vmem:[%s5875_s3 + $0x188] sm:$0xff]  ;;  %v478_v24 = vld [vmem:[%s3814_s9 + $0x60] sm:$0xff]  ;;  %v3158_v45 = vld [vmem:[%s5875_s3 + $0x278] sm:$0xff] }
  0x1c   : > { %1186 = vmatpush1.msra.mxu0 %v3135_v25  ;;  %3432 = vmatpush3.msra.mxu1 %v3167_v21  ;;  %v3958_v15 = vmax.f32 %v601_v62, 0.0  ;;  %v603_v16 = vadd.f32 %v3840_v19, %v549_v0  ;;  %v551_v21 = vmul.f32 %v3835_v18, %v476_v6  ;;  %v604_v22 = vadd.f32 %v3840_v19, %v550_v1  ;;  %v3159_v25 = vld [vmem:[%s5875_s3 + $0x280] sm:$0xff]  ;;  %v480_v27 = vld [vmem:[%s3814_s9 + $0x70] sm:$0x3]  ;;  %v1072_v46 = vld [vmem:[%s5875_s3 + $0x78] sm:$0xff] }
  0x1d   : > { %1187 = vmatprep.subr.mxu0 %v5882_v3  ;;  %3433 = vmatprep.subr.mxu1 %v3166_v28  ;;  %v552_v23 = vmul.f32 %v3835_v18, %v477_v7  ;;  %v3973_v26 = vsel %vm944_vm2, %v950_v4, %v951_v5  ;;  %v3981_v29 = vsel %vm944_vm2, %v951_v5, %v953_v9  ;;  %v955_v30 = vrot.slane %v3948_v11, 2  ;;  %v482_v52 = vld [vmem:[%s3814_s9 + $0x80] sm:$0xff]  ;;  %v483_v53 = vld [vmem:[%s3814_s9 + $0x88] sm:$0x3]  ;;  %v1071_v62 = vld [vmem:[%s5875_s3 + $0x70] sm:$0xff] }
  0x1e   : > { %1188 = vmatpush1.msra.mxu0 %v3134_v33  ;;  %3434 = vmatpush3.msra.mxu1 %v3166_v28  ;;  %6005 = vst [vmem:[#allocation3_spill] sm:$0xff] %v3973_v26  ;;  %v3127_v28 = vld [vmem:[%s5875_s3 + $0x180] sm:$0xff]  ;;  %6006 = vst [vmem:[#allocation4_spill] sm:$0xff] %v3981_v29  ;;  %v956_v31 = vrot.slane %v3943_v10, 2  ;;  %v958_v32 = vrot.slane %v3955_v13, 2  ;;  %v481_v33 = vld [vmem:[%s3814_s9 + $0x78] sm:$0xff]  ;;  %v553_v39 = vmul.f32 %v3835_v18, %v478_v24 }
  0x1f   : > { %1189 = vmatprep.subr.mxu0 %v5882_v3  ;;  %3435 = vmatprep.subr.mxu1 %v3165_v38  ;;  %v3987_v35 = vmax.f32 %v602_v14, 0.0  ;;  %v3992_v36 = vsel %vm526_vm0, %v3958_v15, 0.0  ;;  %v651_v37 = vmax.f32 %v603_v16, 0.0  ;;  %v3998_v42 = vmax.f32 %v604_v22, 0.0  ;;  %v484_v7 = vld [vmem:[%s3814_s9 + $0x90] sm:$0xff]  ;;  %v1070_v9 = vld [vmem:[%s5875_s3 + $0x68] sm:$0xff] }
  0x20   : > { %1190 = vmatpush1.msra.mxu0 %v3133_v40  ;;  %3436 = vmatpush3.msra.mxu1 %v3165_v38  ;;  %v479_v38 = vld [vmem:[%s3814_s9 + $0x68] sm:$0xff]  ;;  %v605_v40 = vadd.f32 %v3840_v19, %v551_v21  ;;  %v606_v43 = vadd.f32 %v3840_v19, %v552_v23  ;;  %v556_v47 = vmul.f32 %v3835_v18, %v481_v33  ;;  %v960_v49 = vrot.slane %v3992_v36, 2  ;;  %v486_v22 = vld [vmem:[%s3814_s9 + $0xa0] sm:$0x3] }
  0x21   : > { %1191 = vmatprep.subr.mxu0 %v5882_v3  ;;  %3437 = vmatprep.subr.mxu1 %v3164_v44  ;;  %v4024_v56 = vsel %vm944_vm2, %v956_v31, %v958_v32  ;;  %v4029_v60 = vsel %vm531_vm1, %v651_v37, 0.0  ;;  %v607_v61 = vadd.f32 %v3840_v19, %v553_v39  ;;  %v4040_v0 = vsel %vm526_vm0, %v3998_v42, 0.0  ;;  %v3155_v23 = vld [vmem:[%s5875_s3 + $0x260] sm:$0xff] }
  0x22   : > { %1192 = vmatpush1.msra.mxu0 %v3132_v48  ;;  %3438 = vmatpush3.msra.mxu1 %v3164_v44  ;;  %v555_v44 = vmul.f32 %v3835_v18, %v480_v27  ;;  %v4012_v48 = vsel %vm944_vm2, %v955_v30, %v956_v31  ;;  %6008 = vst [vmem:[#allocation6_spill] sm:$0xff] %v4024_v56  ;;  %v654_v1 = vmax.f32 %v606_v43, 0.0  ;;  %v1069_v31 = vld [vmem:[%s5875_s3 + $0x60] sm:$0xff]  ;;  %v487_v43 = vld [vmem:[%s3814_s9 + $0xa8] sm:$0xff] }
  0x23   : > { %1193 = vmatprep.subr.mxu0 %v5882_v3  ;;  %3439 = vmatprep.subr.mxu1 %v3163_v50  ;;  %6007 = vst [vmem:[#allocation5_spill] sm:$0xff] %v4012_v48  ;;  %v557_v4 = vmul.f32 %v3835_v18, %v482_v52  ;;  %v610_v5 = vadd.f32 %v3840_v19, %v556_v47  ;;  %v4063_v21 = vmax.f32 %v607_v61, 0.0  ;;  %v3153_v61 = vld [vmem:[%s5875_s3 + $0x250] sm:$0xff] }
  0x24   : > { %1194 = vmatpush1.msra.mxu0 %v3131_v54  ;;  %3440 = vmatpush3.msra.mxu1 %v3163_v50  ;;  %v554_v50 = vmul.f32 %v3835_v18, %v479_v38  ;;  %v3157_v54 = vld [vmem:[%s5875_s3 + $0x270] sm:$0xff]  ;;  %v558_v6 = vmul.f32 %v3835_v18, %v483_v53  ;;  %v559_v30 = vmul.f32 %v3835_v18, %v484_v7 }
  0x25   : > { %1195 = vmatprep.subr.mxu0 %v5882_v3  ;;  %3441 = vmatprep.subr.mxu1 %v3162_v58  ;;  %6010 = vst [vmem:[#allocation8_spill] sm:$0xff] %v4063_v21  ;;  %v611_v32 = vadd.f32 %v3840_v19, %v557_v4  ;;  %v4082_v33 = vmax.f32 %v610_v5, 0.0  ;;  %v4105_v47 = vsel %vm526_vm0, %v4063_v21, 0.0  ;;  %v562_v4 = vmul.f32 %v3835_v18, %v487_v43  ;;  %v1067_v5 = vld [vmem:[%s5875_s3 + $0x50] sm:$0xff] }
  0x26   : > { %1196 = vmatpush1.msra.mxu0 %v3130_v63  ;;  %3442 = vmatpush3.msra.mxu1 %v3162_v58  ;;  %v961_v58 = vrot.slane %v3987_v35, 2  ;;  %v4035_v63 = vmax.f32 %v605_v40, 0.0  ;;  %v608_v14 = vadd.f32 %v3840_v19, %v554_v50  ;;  %v612_v37 = vadd.f32 %v3840_v19, %v558_v6  ;;  %v489_v50 = vld [vmem:[%s3814_s9 + $0xb8] sm:$0x3] }
  0x27   : > { %1197 = vmatprep.subr.mxu0 %v5882_v3  ;;  %3443 = vmatprep.subr.mxu1 %v3161_v2  ;;  %6011 = vst [vmem:[#allocation9_spill] sm:$0xff] %v4082_v33  ;;  %v561_v40 = vmul.f32 %v3835_v18, %v486_v22  ;;  %v970_v6 = vrot.slane %v4105_v47, 2 }
  0x28   : > { %1198 = vmatpush1.msra.mxu0 %v3129_v8  ;;  %3444 = vmatpush3.msra.mxu1 %v3161_v2  ;;  %v609_v2 = vadd.f32 %v3840_v19, %v555_v44  ;;  %v3156_v8 = vld [vmem:[%s5875_s3 + $0x268] sm:$0xff]  ;;  %v4060_v16 = vsel %vm944_vm2, %v960_v49, %v961_v58  ;;  %v966_v24 = vrot.slane %v4035_v63, 2  ;;  %v4090_v39 = vmax.f32 %v608_v14, 0.0  ;;  %v3154_v44 = vld [vmem:[%s5875_s3 + $0x258] sm:$0xff] }
  0x29   : > { %1199 = vmatprep.subr.mxu0 %v5882_v3  ;;  %3445 = vmatprep.subr.mxu1 %v3160_v12  ;;  %6009 = vst [vmem:[#allocation7_spill] sm:$0xff] %v4060_v16 }
  0x2a   : > { %1200 = vmatpush1.msra.mxu0 %v3128_v17  ;;  %3446 = vmatpush3.msra.mxu1 %v3160_v12  ;;  %v963_v12 = vrot.slane %v4029_v60, 2  ;;  %v965_v17 = vrot.slane %v4040_v0, 2  ;;  %v657_v27 = vmax.f32 %v609_v2, 0.0  ;;  %6013 = vst [vmem:[#allocation11_spill] sm:$0xff] %v4090_v39  ;;  %v660_v2 = vmax.f32 %v612_v37, 0.0 }
  0x2b   : > { %1201 = vmatprep.subr.mxu0 %v5882_v3  ;;  %3447 = vmatprep.subr.mxu1 %v3159_v25  ;;  %v971_v7 = vrot.slane %v4090_v39, 2 }
  0x2c   : > { %1202 = vmatpush1.msra.mxu0 %v3127_v28  ;;  %3448 = vmatpush3.msra.mxu1 %v3159_v25  ;;  %v4074_v25 = vsel %vm531_vm1, %v654_v1, 0.0  ;;  %v485_v28 = vld [vmem:[%s3814_s9 + $0x98] sm:$0xff]  ;;  %v4088_v38 = vsel %vm944_vm2, %v961_v58, %v963_v12  ;;  %v4111_v52 = vsel %vm944_vm2, %v965_v17, %v966_v24  ;;  %v4115_v53 = vsel %vm531_vm1, %v657_v27, 0.0  ;;  %v490_v58 = vld [vmem:[%s3814_s9 + $0xc0] sm:$0xff]  ;;  %v3152_v17 = vld [vmem:[%s5875_s3 + $0x248] sm:$0xff] }
  0x2d   : > { %3449 = vmatprep.mubr.f32.mxu1 %v3973_v26  ;;  %1203 = vmatprep.subr.mxu0 %v5882_v3  ;;  %6012 = vst [vmem:[#allocation10_spill] sm:$0xff] %v4088_v38  ;;  %v560_v49 = vmul.f32 %v3835_v18, %v485_v28  ;;  %6014 = vst [vmem:[#allocation12_spill] sm:$0xff] %v4111_v52  ;;  %v4129_v1 = vsel %vm526_vm0, %v4082_v33, 0.0  ;;  %v564_v12 = vmul.f32 %v3835_v18, %v489_v50  ;;  %v1066_v28 = vld [vmem:[%s5875_s3 + $0x48] sm:$0xff] }
  0x2e   : > { %3450 = vmatmul.mubr.f32.vlgmr.msra.gmra.mxu1 %v3981_v29  ;;  %1621 = vmatprep.subr.mxu1 %v5882_v3  ;;  %v565_v27 = vmul.f32 %v3835_v18, %v490_v58  ;;  %v1065_v58 = vld [vmem:[%s5875_s3 + $0x40] sm:$0xff]  ;;  %v501_v29 = vld [vmem:[%s3814_s9 + $0x118] sm:$0x3] }
  0x2f   : > { %1204 = vmatpush2.msra.mxu0 %v3158_v45  ;;  %1622 = vmatpush1.msra.mxu1 %v1072_v46  ;;  %v1068_v45 = vld [vmem:[%s5875_s3 + $0x58] sm:$0xff]  ;;  %v968_v46 = vrot.slane %v4074_v25, 2  ;;  %v614_v22 = vadd.f32 %v3840_v19, %v560_v49  ;;  %v618_v50 = vadd.f32 %v3840_v19, %v564_v12 }
  0x30   : > { %1205 = vmatprep.subr.mxu0 %v5882_v3  ;;  %1623 = vmatprep.subr.mxu1 %v5882_v3 }
  0x31   : > { %1206 = vmatpush2.msra.mxu0 %v3157_v54  ;;  %3452 = vmatprep.mubr.f32.mxu1 %v4012_v48  ;;  %v613_v54 = vadd.f32 %v3840_v19, %v559_v30  ;;  %v4143_v14 = vsel %vm944_vm2, %v966_v24, %v968_v46  ;;  %v973_v30 = vrot.slane %v4115_v53, 2  ;;  %v975_v24 = vrot.slane %v4129_v1, 2 }
  0x32   : > { %1624 = vmatpush1.msra.mxu1 %v1071_v62  ;;  %1207 = vmatprep.subr.mxu0 %v5882_v3  ;;  %v4124_v62 = vmax.f32 %v611_v32, 0.0  ;;  %6016 = vst [vmem:[#allocation14_spill] sm:$0xff] %v4143_v14  ;;  %v492_v32 = vld [vmem:[%s3814_s9 + $0xd0] sm:$0x3]  ;;  %v4174_v46 = vsel %vm944_vm2, %v970_v6, %v971_v7 }
  0x33   : > { %3453 = vmatmul.mubr.f32.gmra.mxu1 %v4024_v56  ;;  %1625 = vmatprep.subr.mxu1 %v5882_v3  ;;  %6017 = vst [vmem:[#allocation15_spill] sm:$0xff] %v4174_v46  ;;  %v4189_v6 = vsel %vm944_vm2, %v971_v7, %v973_v30  ;;  %v1064_v7 = vld [vmem:[%s5875_s3 + $0x38] sm:$0xff]  ;;  %v495_v30 = vld [vmem:[%s3814_s9 + $0xe8] sm:$0x3] }
  0x34   : > { %1208 = vmatpush2.msra.mxu0 %v3156_v8  ;;  %1626 = vmatpush1.msra.mxu1 %v1070_v9  ;;  %6015 = vst [vmem:[#allocation13_spill] sm:$0xff] %v4124_v62  ;;  %v615_v8 = vadd.f32 %v3840_v19, %v561_v40  ;;  %v488_v9 = vld [vmem:[%s3814_s9 + $0xb0] sm:$0xff]  ;;  %v976_v37 = vrot.slane %v4124_v62, 2  ;;  %v4164_v40 = vsel %vm531_vm1, %v660_v2, 0.0  ;;  %v619_v2 = vadd.f32 %v3840_v19, %v565_v27 }
  0x35   : > { %1209 = vmatprep.subr.mxu0 %v5882_v3  ;;  %1627 = vmatprep.subr.mxu1 %v5882_v3  ;;  %v563_v43 = vmul.f32 %v3835_v18, %v488_v9  ;;  %6019 = vst [vmem:[#allocation17_spill] sm:$0xff] %v4189_v6  ;;  %v978_v9 = vrot.slane %v4164_v40, 2 }
  0x36   : > { %1210 = vmatpush2.msra.mxu0 %v3155_v23  ;;  %3455 = vmatprep.mubr.f32.mxu1 %v4060_v16  ;;  %v491_v23 = vld [vmem:[%s3814_s9 + $0xc8] sm:$0xff]  ;;  %v663_v49 = vmax.f32 %v615_v8, 0.0  ;;  %v3150_v8 = vld [vmem:[%s5875_s3 + $0x238] sm:$0xff] }
  0x37   : > { %1628 = vmatpush1.msra.mxu1 %v1069_v31  ;;  %1211 = vmatprep.subr.mxu0 %v5882_v3  ;;  %v4157_v31 = vmax.f32 %v613_v54, 0.0  ;;  %v566_v54 = vmul.f32 %v3835_v18, %v491_v23  ;;  %v617_v23 = vadd.f32 %v3840_v19, %v563_v43 }
  0x38   : > { %3456 = vmatmul.mubr.f32.gmra.mxu1 %v4088_v38  ;;  %1629 = vmatprep.subr.mxu1 %v5882_v3  ;;  %v6024_v38 = vmov 0.0  }
  0x39   : > { %1212 = vmatpush2.msra.mxu0 %v3154_v44  ;;  %1630 = vmatpush1.msra.mxu1 %v1068_v45  ;;  %v616_v44 = vadd.f32 %v3840_v19, %v562_v4  ;;  %v3151_v45 = vld [vmem:[%s5875_s3 + $0x240] sm:$0xff]  ;;  %v567_v4 = vmul.f32 %v3835_v18, %v492_v32  ;;  %v4198_v12 = vsel %vm526_vm0, %v4157_v31, 0.0  ;;  %v496_v32 = vld [vmem:[%s3814_s9 + $0xf0] sm:$0xff] }
  0x3a   : > { %1213 = vmatprep.subr.mxu0 %v5882_v3  ;;  %1631 = vmatprep.subr.mxu1 %v5882_v3 }
  0x3b   : > { %1214 = vmatpush2.msra.mxu0 %v3153_v61  ;;  %3458 = vmatprep.mubr.f32.mxu1 %v4111_v52  ;;  %v4181_v61 = vmax.f32 %v614_v22, 0.0  ;;  %v4206_v22 = vsel %vm944_vm2, %v975_v24, %v976_v37  ;;  %v4209_v27 = vmax.f32 %v616_v44, 0.0  ;;  %v620_v24 = vadd.f32 %v3840_v19, %v566_v54  ;;  %v3149_v44 = vld [vmem:[%s5875_s3 + $0x230] sm:$0xff]  ;;  %v494_v54 = vld [vmem:[%s3814_s9 + $0xe0] sm:$0xff]  ;;  %v497_v52 = vld [vmem:[%s3814_s9 + $0xf8] sm:$0xff] }
  0x3c   : > { %1632 = vmatpush1.msra.mxu1 %v1067_v5  ;;  %1215 = vmatprep.subr.mxu0 %v5882_v3  ;;  %v493_v5 = vld [vmem:[%s3814_s9 + $0xd8] sm:$0xff]  ;;  %6020 = vst [vmem:[#allocation18_spill] sm:$0xff] %v4206_v22 }
  0x3d   : > { %3459 = vmatmul.mubr.f32.gmra.mxu1 %v4143_v14  ;;  %1633 = vmatprep.subr.mxu1 %v5882_v3  ;;  %6018 = vst [vmem:[#allocation16_spill] sm:$0xff] %v4181_v61  ;;  %6021 = vst [vmem:[#allocation19_spill] sm:$0xff] %v4209_v27  ;;  %v568_v43 = vmul.f32 %v3835_v18, %v493_v5  ;;  %v1063_v5 = vld [vmem:[%s5875_s3 + $0x30] sm:$0xff]  ;;  %v570_v14 = vmul.f32 %v3835_v18, %v495_v30 }
  0x3e   : > { %1216 = vmatpush2.msra.mxu0 %v3152_v17  ;;  %1634 = vmatpush1.msra.mxu1 %v1066_v28  ;;  %v837_v17 = vrot.slane %v3911_v55, 1  ;;  %v838_v28 = vrot.slane %v3900_v51, 1  ;;  %v4217_v55 = vsel %vm531_vm1, %v663_v49, 0.0  ;;  %v4228_v49 = vmax.f32 %v619_v2, 0.0 }
  0x3f   : > { %1217 = vmatprep.subr.mxu0 %v5882_v3  ;;  %1635 = vmatprep.subr.mxu1 %v5882_v3  ;;  %v571_v2 = vmul.f32 %v3835_v18, %v496_v32  ;;  %v4267_v32 = vmax.f32 %v620_v24, 0.0  ;;  %v3147_v24 = vld [vmem:[%s5875_s3 + $0x220] sm:$0xff] }
  0x40   : > { %1218 = vmatpush2.msra.mxu0 %v3151_v45  ;;  %3461 = vmatprep.mubr.f32.mxu1 %v4174_v46  ;;  %v666_v45 = vmax.f32 %v618_v50, 0.0  ;;  %v981_v46 = vrot.slane %v4181_v61, 2  ;;  %6022 = vst [vmem:[#allocation20_spill] sm:$0xff] %v4228_v49  ;;  %v621_v50 = vadd.f32 %v3840_v19, %v567_v4  ;;  %v983_v4 = vrot.slane %v4217_v55, 2 }
  0x41   : > { %1636 = vmatpush1.msra.mxu1 %v1065_v58  ;;  %1219 = vmatprep.subr.mxu0 %v5882_v3  ;;  %v980_v58 = vrot.slane %v4198_v12, 2  ;;  %6026 = vst [vmem:[#allocation23_spill] sm:$0xff] %v4267_v32  ;;  %v4278_v16 = vsel %vm526_vm0, %v4228_v49, 0.0  ;;  %v502_v49 = vld [vmem:[%s3814_s9 + $0x120] sm:$0xff] }
  0x42   : > { %3462 = vmatmul.mubr.f32.gmra.mxu1 %v4189_v6  ;;  %1637 = vmatprep.subr.mxu1 %v5882_v3  ;;  %v4236_v3 = vsel %vm944_vm2, %v976_v37, %v978_v9  ;;  %v840_v6 = vrot.slane %v3921_v59, 1  ;;  %v4250_v37 = vsel %vm526_vm0, %v4209_v27, 0.0  ;;  %v4253_v59 = vsel %vm831_vm3, %v837_v17, %v838_v28  ;;  %v498_v9 = vld [vmem:[%s3814_s9 + $0x100] sm:$0x3]  ;;  %6028 = vst [vmem:[#allocation25_spill] sm:$0xff] %v4278_v16 }
  0x43   : > { %1220 = vmatpush2.msra.mxu0 %v3150_v8  ;;  %1638 = vmatpush1.msra.mxu1 %v1064_v7  ;;  %6023 = vst [vmem:[#allocation21_spill] sm:$0xff] %v4236_v3  ;;  %v4245_v8 = vmax.f32 %v617_v23, 0.0  ;;  %v3148_v7 = vld [vmem:[%s5875_s3 + $0x228] sm:$0xff]  ;;  %v4265_v30 = vsel %vm531_vm1, %v666_v45, 0.0  ;;  %v569_v17 = vmul.f32 %v3835_v18, %v494_v54  ;;  %v669_v56 = vmax.f32 %v621_v50, 0.0 }
  0x44   : > { %1221 = vmatprep.subr.mxu0 %v6024_v38  ;;  %1639 = vmatprep.subr.mxu1 %v6024_v38  ;;  %v1062_v23 = vld [vmem:[%s5875_s3 + $0x28] sm:$0xff]  ;;  %6025 = vst [vmem:[#allocation22_spill] sm:$0xff] %v4265_v30  ;;  %v572_v45 = vmul.f32 %v3835_v18, %v497_v52  ;;  %v625_v54 = vadd.f32 %v3840_v19, %v571_v2  ;;  %v1061_v52 = vld [vmem:[%s5875_s3 + $0x20] sm:$0xff]  ;;  %v988_v48 = vrot.slane %v4265_v30, 2 }
  0x45   : > { %1222 = vmatpush2.msra.mxu0 %v3149_v44  ;;  %3464 = vmatprep.mubr.f32.mxu1 %v4206_v22  ;;  %v622_v44 = vadd.f32 %v3840_v19, %v568_v43  ;;  %v4273_v22 = vsel %vm944_vm2, %v980_v58, %v981_v46  ;;  %v985_v43 = vrot.slane %v4250_v37, 2  ;;  %v624_v58 = vadd.f32 %v3840_v19, %v570_v14  ;;  %v499_v2 = vld [vmem:[%s3814_s9 + $0x108] sm:$0xff] }
  0x46   : > { %1640 = vmatpush1.msra.mxu1 %v1063_v5  ;;  %1223 = vmatprep.subr.mxu0 %v6024_v38  ;;  %6027 = vst [vmem:[#allocation24_spill] sm:$0xff] %v4273_v22  ;;  %v573_v50 = vmul.f32 %v3835_v18, %v498_v9  ;;  %v4294_v5 = vsel %vm944_vm2, %v981_v46, %v983_v4  ;;  %v990_v9 = vrot.slane %v4278_v16, 2  ;;  %v4320_v26 = vsel %vm531_vm1, %v669_v56, 0.0  ;;  %v515_v30 = vld [vmem:[%s4464_s8 + $0x8] sm:$0xff] }
  0x47   : > { %3465 = vmatmul.mubr.f32.gmra.mxu1 %v4236_v3  ;;  %1641 = vmatprep.subr.mxu1 %v6024_v38  ;;  %6029 = vst [vmem:[#allocation26_spill] sm:$0xff] %v4294_v5  ;;  %v986_v3 = vrot.slane %v4245_v8, 2  ;;  %v4299_v14 = vsel %vm831_vm3, %v838_v28, %v840_v6  ;;  %v623_v46 = vadd.f32 %v3840_v19, %v569_v17  ;;  %v4307_v4 = vmax.f32 %v622_v44, 0.0  ;;  %v3146_v6 = vld [vmem:[%s5875_s3 + $0x218] sm:$0xff] }
  0x48   : > { %1224 = vmatpush2.msra.mxu0 %v3148_v7  ;;  %1642 = vmatpush1.msra.mxu1 %v1062_v23  ;;  %v991_v7 = vrot.slane %v4267_v32, 2  ;;  %v500_v23 = vld [vmem:[%s3814_s9 + $0x110] sm:$0xff]  ;;  %v1060_v28 = vld [vmem:[%s5875_s3 + $0x18] sm:$0xff]  ;;  %6031 = vst [vmem:[#allocation28_spill] sm:$0xff] %v4320_v26  ;;  %v842_v17 = vrot.slane %v3948_v11, 1  ;;  %v5915_v44 = vrot.slane %v3943_v10, 1  ;;  %v627_v32 = vadd.f32 %v3840_v19, %v573_v50 }
  0x49   : > { %1225 = vmatprep.subr.mxu0 %v6024_v38  ;;  %1643 = vmatprep.subr.mxu1 %v6024_v38  ;;  %6030 = vst [vmem:[#allocation27_spill] sm:$0xff] %v4307_v4  ;;  %v4327_v27 = vmax.f32 %v625_v54, 0.0  ;;  %v574_v16 = vmul.f32 %v3835_v18, %v499_v2  ;;  %v3145_v11 = vld [vmem:[%s5875_s3 + $0x210] sm:$0xff]  ;;  %v4337_v56 = vsel %vm944_vm2, %v985_v43, %v986_v3  ;;  %v993_v50 = vrot.slane %v4320_v26, 2  ;;  %v503_v2 = vld [vmem:[%s3814_s9 + $0x128] sm:$0xff] }
  0x4a   : > { %1226 = vmatpush2.msra.mxu0 %v3147_v24  ;;  %3467 = vmatprep.mubr.f32.mxu1 %v4273_v22  ;;  %v626_v24 = vadd.f32 %v3840_v19, %v572_v45  ;;  %v672_v22 = vmax.f32 %v624_v58, 0.0  ;;  %6033 = vst [vmem:[#allocation30_spill] sm:$0xff] %v4337_v56  ;;  %v575_v45 = vmul.f32 %v3835_v18, %v500_v23  ;;  %v1059_v54 = vld [vmem:[%s5875_s3 + $0x10] sm:$0xff]  ;;  %v4350_v43 = vsel %vm526_vm0, %v4307_v4, 0.0  ;;  %v505_v4 = vld [vmem:[%s3814_s9 + $0x138] sm:$0xff] }
  0x4b   : > { %1644 = vmatpush1.msra.mxu1 %v1061_v52  ;;  %1227 = vmatprep.subr.mxu0 %v6024_v38  ;;  %6032 = vst [vmem:[#allocation29_spill] sm:$0xff] %v4327_v27  ;;  %v576_v58 = vmul.f32 %v3835_v18, %v501_v29  ;;  %v4345_v52 = vmax.f32 %v623_v46, 0.0  ;;  %6035 = vst [vmem:[#allocation32_spill] sm:$0xff] %v4350_v43  ;;  %v577_v23 = vmul.f32 %v3835_v18, %v502_v49 }
  0x4c   : > { %3468 = vmatmul.mubr.f32.gmra.mxu1 %v4294_v5  ;;  %1645 = vmatprep.subr.mxu1 %v6024_v38  ;;  %v4357_v29 = vsel %vm944_vm2, %v986_v3, %v988_v48  ;;  %v4365_v46 = vsel %vm831_vm3, %v842_v17, %v5915_v44  ;;  %v504_v5 = vld [vmem:[%s3814_s9 + $0x130] sm:$0x3]  ;;  %v3144_v3 = vld [vmem:[%s5875_s3 + $0x208] sm:$0xff]  ;;  %v4379_v49 = vsel %vm531_vm1, %v672_v22, 0.0  ;;  %v675_v17 = vmax.f32 %v627_v32, 0.0  ;;  %v1057_v32 = vld [vmem:[%s5875_s3] sm:$0xff] }
  0x4d   : > { %1228 = vmatpush2.msra.mxu0 %v3146_v6  ;;  %1646 = vmatpush1.msra.mxu1 %v1060_v28  ;;  %6034 = vst [vmem:[#allocation31_spill] sm:$0xff] %v4345_v52  ;;  %6036 = vst [vmem:[#allocation33_spill] sm:$0xff] %v4357_v29  ;;  %v4360_v6 = vsel %vm944_vm2, %v990_v9, %v991_v7  ;;  %v4367_v28 = vmax.f32 %v626_v24, 0.0  ;;  %v1058_v48 = vld [vmem:[%s5875_s3 + $0x8] sm:$0xff]  ;;  %v4384_v9 = vsel %vm526_vm0, %v4327_v27, 0.0  ;;  %v845_v26 = vrot.slane %v3955_v13, 1 }
  0x4e   : > { %1229 = vmatprep.subr.mxu0 %v6024_v38  ;;  %1647 = vmatprep.subr.mxu1 %v6024_v38  ;;  %6037 = vst [vmem:[#allocation34_spill] sm:$0xff] %v4360_v6  ;;  %6039 = vst [vmem:[#allocation36_spill] sm:$0xff] %v4379_v49  ;;  %v628_v24 = vadd.f32 %v3840_v19, %v574_v16  ;;  %v629_v44 = vadd.f32 %v3840_v19, %v575_v45  ;;  %v3143_v16 = vld [vmem:[%s5875_s3 + $0x200] sm:$0xff]  ;;  %v1000_v27 = vrot.slane %v4384_v9, 2 }
  0x4f   : > { %6038 = vst [vmem:[#allocation35_spill] sm:$0xff] %v4367_v28  ;;  %1230 = vmatpush2.msra.mxu0 %v3145_v11  ;;  %3470 = vmatprep.mubr.f32.mxu1 %v4337_v56  ;;  %6040 = vst [vmem:[#allocation37_spill] sm:$0xff] %v4384_v9  ;;  %v995_v11 = vrot.slane %v4350_v43, 2  ;;  %v630_v56 = vadd.f32 %v3840_v19, %v576_v58  ;;  %v578_v22 = vmul.f32 %v3835_v18, %v503_v2 }
  0x50   : > { %1648 = vmatpush1.msra.mxu1 %v1059_v54  ;;  %1231 = vmatprep.subr.mxu0 %v6024_v38  ;;  %v4402_v45 = vsel %vm944_vm2, %v991_v7, %v993_v50  ;;  %v996_v58 = vrot.slane %v4345_v52, 2  ;;  %v631_v54 = vadd.f32 %v3840_v19, %v577_v23  ;;  %v579_v2 = vmul.f32 %v3835_v18, %v504_v5  ;;  %v507_v7 = vld [vmem:[%s3814_s9 + $0x148] sm:$0x3] }
  0x51   : > { %3471 = vmatmul.mubr.f32.gmra.mxu1 %v4357_v29  ;;  %1649 = vmatprep.subr.mxu1 %v6024_v38  ;;  %6041 = vst [vmem:[#allocation38_spill] sm:$0xff] %v4402_v45  ;;  %v998_v29 = vrot.slane %v4379_v49, 2  ;;  %v1001_v43 = vrot.slane %v4367_v28, 2  ;;  %v4416_v50 = vsel %vm531_vm1, %v675_v17, 0.0  ;;  %v4418_v5 = vmax.f32 %v628_v24, 0.0  ;;  %v508_v17 = vld [vmem:[%s3814_s9 + $0x150] sm:$0xff] }
  0x52   : > { %1232 = vmatpush2.msra.mxu0 %v3144_v3  ;;  %1650 = vmatpush1.msra.mxu1 %v1058_v48  ;;  %6042 = vst [vmem:[#allocation39_spill] sm:$0xff] %v4416_v50  ;;  %v847_v23 = vrot.slane %v3992_v36, 1  ;;  %v506_v3 = vld [vmem:[%s3814_s9 + $0x140] sm:$0xff]  ;;  %v580_v48 = vmul.f32 %v3835_v18, %v505_v4  ;;  %v4424_v13 = vmax.f32 %v629_v44, 0.0  ;;  %v678_v28 = vmax.f32 %v630_v56, 0.0  ;;  %v1088_v36 = vld [vmem:[%s5875_s3 + $0xf8] sm:$0xff] }
  0x53   : > { %1233 = vmatprep.subr.mxu0 %v6024_v38  ;;  %1651 = vmatprep.subr.mxu1 %v6024_v38  ;;  %6043 = vst [vmem:[#allocation40_spill] sm:$0xff] %v4418_v5  ;;  %v632_v49 = vadd.f32 %v3840_v19, %v578_v22  ;;  %v4434_v4 = vsel %vm944_vm2, %v995_v11, %v996_v58  ;;  %v4436_v44 = vmax.f32 %v631_v54, 0.0  ;;  %v6048_v11 = vrot.slane %v3943_v10, 1 }
  0x54   : > { %1234 = vmatpush2.msra.mxu0 %v3143_v16  ;;  %1235 = vmatprep.mubr.f32.mxu0 %v4253_v59  ;;  %6044 = vst [vmem:[#allocation41_spill] sm:$0xff] %v4424_v13  ;;  %6045 = vst [vmem:[#allocation42_spill] sm:$0xff] %v4434_v4  ;;  %v633_v56 = vadd.f32 %v3840_v19, %v579_v2  ;;  %v582_v24 = vmul.f32 %v3835_v18, %v507_v7  ;;  %v1003_v16 = vrot.slane %v4416_v50, 2  ;;  %v510_v2 = vld [vmem:[%s3814_s9 + $0x160] sm:$0x3]  ;;  %v4458_v7 = vld [vmem:[%s5875_s3 + $0x178] sm:$0xff] }
  0x55   : > { %3473 = vmatprep.mubr.f32.mxu1 %v4360_v6  ;;  %1652 = vmatpush1.msra.mxu1 %v1057_v32  ;;  %6046 = vst [vmem:[#allocation43_spill] sm:$0xff] %v4436_v44  ;;  %v4445_v22 = vsel %vm944_vm2, %v996_v58, %v998_v29  ;;  %v4451_v32 = vsel %vm831_vm3, %v6048_v11, %v845_v26  ;;  %v1087_v26 = vld [vmem:[%s5875_s3 + $0xf0] sm:$0xff]  ;;  %v4477_v58 = vsel %vm526_vm0, %v4418_v5, 0.0  ;;  %v509_v11 = vld [vmem:[%s3814_s9 + $0x158] sm:$0xff]  ;;  %v6052_v6 = vrot.slane %v3987_v35, 1 }
  0x56   : > { %3175 = vmatmul.mubr.msk.f32.vlgmr.msra.gmra.mxu0 %vm526_vm0, %v3881_v41  ;;  %3474 = vmatmul.mubr.f32.gmra.mxu1 %v4402_v45  ;;  %6047 = vst [vmem:[#allocation44_spill] sm:$0xff] %v4445_v22  ;;  %v581_v54 = vmul.f32 %v3835_v18, %v506_v3  ;;  %v4472_v29 = vsel %vm944_vm2, %v1000_v27, %v1001_v43  ;;  %6050 = vst [vmem:[#allocation46_spill] sm:$0xff] %v4477_v58  ;;  %v1006_v45 = vrot.slane %v4424_v13, 2 }
  0x57   : > { %1653 = vmatprep.subr.mxu1 %v6024_v38  ;;  %1240 = vmatprep.mubr.f32.mxu0 %v4299_v14  ;;  %6049 = vst [vmem:[#allocation45_spill] sm:$0xff] %v4472_v29  ;;  %v634_v3 = vadd.f32 %v3840_v19, %v580_v48  ;;  %v583_v9 = vmul.f32 %v3835_v18, %v508_v17  ;;  %v4486_v27 = vsel %vm531_vm1, %v678_v28, 0.0  ;;  %v4493_v50 = vmax.f32 %v632_v49, 0.0  ;;  %v511_v48 = vld [vmem:[%s3814_s9 + $0x168] sm:$0xff]  ;;  %v514_v49 = vld [vmem:[%s4464_s8] sm:$0xff] }
  0x58   : > { %1654 = vmatpush2.msra.mxu1 %v1088_v36  ;;  %3476 = vmatprep.mubr.f32.mxu1 %v4434_v4  ;;  %6051 = vst [vmem:[#allocation47_spill] sm:$0xff] %v4486_v27  ;;  %v4491_v5 = vsel %vm831_vm3, %v847_v23, %v6052_v6  ;;  %v1086_v17 = vld [vmem:[%s5875_s3 + $0xe8] sm:$0xff]  ;;  %v4503_v28 = vsel %vm526_vm0, %v4436_v44, 0.0  ;;  %v681_v36 = vmax.f32 %v633_v56, 0.0  ;;  %v636_v4 = vadd.f32 %v3840_v19, %v582_v24  ;;  %v513_v24 = vld [vmem:[%s3814_s9 + $0x178] sm:$0x3] }
  0x59   : > { %6053 = vst [vmem:[#allocation48_spill] sm:$0xff] %v4493_v50  ;;  %1655 = vmatprep.subr.mxu1 %v6024_v38  ;;  %6054 = vst [vmem:[#allocation49_spill] sm:$0xff] %v4503_v28  ;;  %v585_v6 = vmul.f32 %v3835_v18, %v510_v2  ;;  %3497 = vmatprep.subr.mxu0 %v4458_v7  ;;  %v4511_v23 = vsel %vm944_vm2, %v1001_v43, %v1003_v16  ;;  %v1005_v13 = vrot.slane %v4477_v58, 2  ;;  %v1085_v2 = vld [vmem:[%s5875_s3 + $0xe0] sm:$0xff]  ;;  %v512_v58 = vld [vmem:[%s3814_s9 + $0x170] sm:$0xff]  ;;  %s5723_s9 = scalar_lea.vmem %s5878_s6, %s3797_s19  ;;  %s3124_s19 = sshll.u32 %s6186_s24, 1 }
  0x5a   : > { %1656 = vmatpush2.msra.mxu1 %v1087_v26  ;;  %1241 = vmatmul.mubr.f32.gmra.mxu0 %v3900_v51  ;;  %6055 = vst [vmem:[#allocation50_spill] sm:$0xff] %v4511_v23  ;;  %v635_v44 = vadd.f32 %v3840_v19, %v581_v54  ;;  %v584_v56 = vmul.f32 %v3835_v18, %v509_v11  ;;  %v1008_v26 = vrot.slane %v4486_v27, 2  ;;  %v4523_v43 = vmax.f32 %v634_v3, 0.0  ;;  %s465_s18 = scalar_lea.vmem %s5879_s7, %s3124_s19 }
  0x5b   : > { %3477 = vmatmul.mubr.f32.gmra.mxu1 %v4445_v22  ;;  %1657 = vmatprep.subr.mxu1 %v6024_v38  ;;  %v637_v16 = vadd.f32 %v3840_v19, %v583_v9  ;;  %v586_v54 = vmul.f32 %v3835_v18, %v511_v48  ;;  %v1010_v11 = vrot.slane %v4503_v28, 2  ;;  %v1011_v22 = vrot.slane %v4493_v50, 2  ;;  %v1084_v9 = vld [vmem:[%s5875_s3 + $0xd8] sm:$0xff]  ;;  %v516_v50 = vld [vmem:[%s4464_s8 + $0x10] sm:$0x3]  ;;  %s443_s8 = scalar_lea.vmem %s5874_s2, %s3272_s28 }
  0x5c   : > { %6056 = vst [vmem:[#allocation51_spill] sm:$0xff] %v4523_v43  ;;  %1658 = vmatpush2.msra.mxu1 %v1086_v17  ;;  %1245 = vmatprep.mubr.f32.mxu0 %v4365_v46  ;;  %v850_v52 = vrot.slane %v4029_v60, 1  ;;  %v745_v27 = vmul.f32 %v3835_v18, %v514_v49  ;;  %v4541_v3 = vsel %vm531_vm1, %v681_v36, 0.0  ;;  %v684_v48 = vmax.f32 %v636_v4, 0.0  ;;  %v1083_v4 = vld [vmem:[%s5875_s3 + $0xd0] sm:$0xff] }
  0x5d   : > { %1659 = vmatprep.subr.mxu1 %v6024_v38  ;;  %3479 = vmatprep.mubr.f32.mxu1 %v4472_v29  ;;  %v639_v17 = vadd.f32 %v3840_v19, %v585_v6  ;;  %v588_v60 = vmul.f32 %v3835_v18, %v513_v24  ;;  %v4550_v49 = vsel %vm944_vm2, %v1005_v13, %v1006_v45  ;;  %v4552_v29 = vmax.f32 %v635_v44, 0.0 }
  0x5e   : > { %1660 = vmatpush2.msra.mxu1 %v1085_v2  ;;  %3176 = vmatmul.mubr.msk.f32.gmra.mxu0 %vm526_vm0, %v3914_v57  ;;  %6057 = vst [vmem:[#allocation52_spill] sm:$0xff] %v4550_v49  ;;  %v638_v28 = vadd.f32 %v3840_v19, %v584_v56  ;;  %v587_v36 = vmul.f32 %v3835_v18, %v512_v58  ;;  %v4564_v6 = vsel %vm526_vm0, %v4523_v43, 0.0  ;;  %v4566_v13 = vmax.f32 %v637_v16, 0.0 }
  0x5f   : > { %6058 = vst [vmem:[#allocation53_spill] sm:$0xff] %v4552_v29  ;;  %3480 = vmatmul.mubr.f32.gmra.mxu1 %v4511_v23  ;;  %1661 = vmatprep.subr.mxu1 %v6024_v38  ;;  %v640_v44 = vadd.f32 %v3840_v19, %v586_v54  ;;  %v746_v56 = vmul.f32 %v3835_v18, %v515_v30  ;;  %v1013_v24 = vrot.slane %v4541_v3, 2  ;;  %v1082_v30 = vld [vmem:[%s5875_s3 + $0xc8] sm:$0xff] }
  0x60   : > { %6059 = vst [vmem:[#allocation54_spill] sm:$0xff] %v4566_v13  ;;  %1662 = vmatpush2.msra.mxu1 %v1084_v9  ;;  %1250 = vmatprep.mubr.f32.mxu0 %v4451_v32  ;;  %v4572_v58 = vsel %vm944_vm2, %v1006_v45, %v1008_v26  ;;  %v748_v2 = vadd.f32 %v3840_v19, %v745_v27  ;;  %v4587_v45 = vsel %vm531_vm1, %v684_v48, 0.0  ;;  %v687_v26 = vmax.f32 %v639_v17, 0.0 }
  0x61   : > { %6060 = vst [vmem:[#allocation55_spill] sm:$0xff] %v4572_v58  ;;  %v747_v23 = vmul.f32 %v3835_v18, %v516_v50  ;;  %1663 = vmatprep.subr.mxu1 %v6024_v38  ;;  %3482 = vmatprep.mubr.f32.mxu1 %v4550_v49  ;;  %v4583_v16 = vsel %vm944_vm2, %v1010_v11, %v1011_v22  ;;  %v1015_v18 = vrot.slane %v4564_v6, 2  ;;  %v1016_v50 = vrot.slane %v4552_v29, 2  ;;  %v3685_v11 = vld [vmem:[%s5877_s5] ss:$0 sm:$0xff] }
  0x62   : > { %v642_v27 = vadd.f32 %v3840_v19, %v588_v60  ;;  %1664 = vmatpush2.msra.mxu1 %v1083_v4  ;;  %1251 = vmatmul.mubr.f32.gmra.mxu0 %v3943_v10  ;;  %v4593_v54 = vmax.f32 %v638_v28, 0.0  ;;  %v641_v9 = vadd.f32 %v3685_v11, %v587_v36  ;;  %v1081_v19 = vld [vmem:[%s5875_s3 + $0xc0] sm:$0xff]  ;;  %v4606_v48 = vsel %vm526_vm0, %v4566_v13, 0.0 }
  0x63   : > { %3483 = vmatmul.mubr.f32.gmra.mxu1 %v4572_v58  ;;  %1665 = vmatprep.subr.mxu1 %v6024_v38  ;;  %v4608_v28 = vmax.f32 %v640_v44, 0.0  ;;  %v749_v17 = vadd.f32 %v3685_v11, %v746_v56  ;;  %v750_v60 = vadd.f32 %v3685_v11, %v747_v23  ;;  %v4612_v36 = vsel %vm944_vm2, %v1011_v22, %v1013_v24  ;;  %v1080_v23 = vld [vmem:[%s5875_s3 + $0xb8] sm:$0xff] }
  0x64   : > { %6061 = vst [vmem:[#allocation56_spill] sm:$0xff] %v4593_v54  ;;  %1666 = vmatpush2.msra.mxu1 %v1082_v30  ;;  %1255 = vmatprep.mubr.f32.mxu0 %v4491_v5  ;;  %6063 = vst [vmem:[#allocation58_spill] sm:$0xff] %v4612_v36  ;;  %v6064_v4 = vrot.slane %v3987_v35, 1  ;;  %v1018_v49 = vrot.slane %v4587_v45, 2  ;;  %v751_v43 = vmax.f32 %v748_v2, 0.0  ;;  %v852_v44 = vrot.slane %v4040_v0, 1 }
  0x65   : > { %6062 = vst [vmem:[#allocation57_spill] sm:$0xff] %v4608_v28  ;;  %1667 = vmatprep.subr.mxu1 %v6024_v38  ;;  %3485 = vmatprep.mubr.f32.mxu1 %v4583_v16  ;;  %v853_v22 = vrot.slane %v4035_v63, 1  ;;  %v4629_v56 = vsel %vm531_vm1, %v687_v26, 0.0  ;;  %v4635_v24 = vsel %vm944_vm2, %v1015_v18, %v1016_v50  ;;  %v1020_v2 = vrot.slane %v4606_v48, 2  ;;  %v1079_v26 = vld [vmem:[%s5875_s3 + $0xb0] sm:$0xff] }
  0x66   : > { %v4617_v58 = vsel %vm831_vm3, %v6064_v4, %v850_v52  ;;  %v690_v52 = vmax.f32 %v642_v27, 0.0  ;;  %1668 = vmatpush2.msra.mxu1 %v1081_v19  ;;  %3177 = vmatmul.mubr.msk.f32.gmra.mxu0 %vm526_vm0, %v3958_v15  ;;  %6065 = vst [vmem:[#allocation59_spill] sm:$0xff] %v4635_v24  ;;  %v1021_v30 = vrot.slane %v4593_v54, 2  ;;  %v4639_v0 = vmax.f32 %v641_v9, 0.0 }
  0x67   : > { %3486 = vmatmul.mubr.f32.gmra.mxu1 %v4612_v36  ;;  %1669 = vmatprep.subr.mxu1 %v6024_v38  ;;  %v4649_v27 = vsel %vm526_vm0, %v4608_v28, 0.0  ;;  %v752_v18 = vmax.f32 %v749_v17, 0.0  ;;  %v753_v11 = vmax.f32 %v750_v60, 0.0  ;;  %v4653_v9 = vsel %vm944_vm2, %v1016_v50, %v1018_v49  ;;  %v1078_v17 = vld [vmem:[%s5875_s3 + $0xa8] sm:$0xff] }
  0x68   : > { %6066 = vst [vmem:[#allocation60_spill] sm:$0xff] %v4639_v0  ;;  %1670 = vmatpush2.msra.mxu1 %v1080_v23  ;;  %1260 = vmatprep.mubr.f32.mxu0 %v4617_v58  ;;  %6067 = vst [vmem:[#allocation61_spill] sm:$0xff] %v4653_v9  ;;  %v1023_v19 = vrot.slane %v4629_v56, 2  ;;  %v754_v4 = vsel %vm526_vm0, %v751_v43, 0.0  ;;  %v4664_v60 = vsel %vm831_vm3, %v852_v44, %v853_v22  ;;  %v855_v23 = vrot.slane %v4074_v25, 1  ;;  %v1077_v25 = vld [vmem:[%s5875_s3 + $0xa0] sm:$0xff] }
  0x69   : > { %1671 = vmatprep.subr.mxu1 %v6024_v38  ;;  %3488 = vmatprep.mubr.f32.mxu1 %v4635_v24  ;;  %v4669_v49 = vsel %vm531_vm1, %v690_v52, 0.0  ;;  %v4673_v43 = vsel %vm944_vm2, %v1020_v2, %v1021_v30  ;;  %v1115_v50 = vrot.slane %v4649_v27, 2  ;;  %v1116_v24 = vrot.slane %v4639_v0, 2 }
  0x6a   : > { %1672 = vmatpush2.msra.mxu1 %v1079_v26  ;;  %1261 = vmatmul.mubr.f32.gmra.mxu0 %v3987_v35  ;;  %6068 = vst [vmem:[#allocation62_spill] sm:$0xff] %v4673_v43  ;;  %v773_v44 = vmul.f32 0.0, %v754_v4  ;;  %v4682_v52 = vmul.f32 0.0, %v752_v18  ;;  %v756_v26 = vsel %vm531_vm1, %v753_v11, 0.0  ;;  %v4688_v2 = vsel %vm944_vm2, %v1021_v30, %v1023_v19  ;;  %v1076_v18 = vld [vmem:[%s5875_s3 + $0x98] sm:$0xff] }
  0x6b   : > { %3489 = vmatmul.mubr.f32.gmra.mxu1 %v4653_v9  ;;  %1673 = vmatprep.subr.mxu1 %v6024_v38  ;;  %6069 = vst [vmem:[#allocation63_spill] sm:$0xff] %v4688_v2  ;;  %v1118_v9 = vrot.slane %v4669_v49, 2  ;;  %v4697_v4 = vsel %vm831_vm3, %v853_v22, %v855_v23  ;;  %v4703_v30 = vsel %vm944_vm2, %v1115_v50, %v1116_v24  ;;  %v857_v11 = vrot.slane %v4105_v47, 1  ;;  %v1075_v22 = vld [vmem:[%s5875_s3 + $0x90] sm:$0xff]  ;;  %v1074_v47 = vld [vmem:[%s5875_s3 + $0x88] sm:$0xff] }
  0x6c   : > { %1674 = vmatpush2.msra.mxu1 %v1078_v17  ;;  %1265 = vmatprep.mubr.f32.mxu0 %v4664_v60  ;;  %6070 = vst [vmem:[#allocation64_spill] sm:$0xff] %v4703_v30  ;;  %v858_v19 = vrot.slane %v4090_v39, 1  ;;  %v775_v17 = vmul.f32 0.0, %v756_v26  ;;  %v832_v23 = vrot.slane %v773_v44, 1  ;;  %v860_v26 = vrot.slane %v4115_v53, 1 }
  0x6d   : > { %1675 = vmatprep.subr.mxu1 %v6024_v38  ;;  %3491 = vmatprep.mubr.f32.mxu1 %v4673_v43  ;;  %v4715_v50 = vsel %vm944_vm2, %v1116_v24, %v1118_v9  ;;  %v945_v34 = vrot.slane %v773_v44, 2  ;;  %v946_v24 = vrot.slane %v4682_v52, 2 }
  0x6e   : > { %1676 = vmatpush2.msra.mxu1 %v1077_v25  ;;  %3178 = vmatmul.mubr.msk.f32.gmra.mxu0 %vm526_vm0, %v3998_v42  ;;  %v833_v25 = vrot.slane %v4682_v52, 1  ;;  %6071 = vst [vmem:[#allocation65_spill] sm:$0xff] %v4715_v50  ;;  %v948_v9 = vrot.slane %v775_v17, 2 }
  0x6f   : > { %3492 = vmatmul.mubr.f32.gmra.mxu1 %v4688_v2  ;;  %1677 = vmatprep.subr.mxu1 %v6024_v38  ;;  %v835_v2 = vrot.slane %v775_v17, 1  ;;  %v4744_v17 = vsel %vm831_vm3, %v858_v19, %v860_v26  ;;  %v867_v26 = vrot.slane %v4198_v12, 1 }
  0x70   : > { %1678 = vmatpush2.msra.mxu1 %v1076_v18  ;;  %1270 = vmatprep.mubr.f32.mxu0 %v4697_v4  ;;  %v4725_v18 = vsel %vm831_vm3, %v857_v11, %v858_v19  ;;  %v834_v53 = vsel %vm831_vm3, %v832_v23, %v833_v25  ;;  %v4736_v11 = vsel %vm944_vm2, %v945_v34, %v946_v24  ;;  %v3221_v23 = vld [vmem:[%s5875_s3 + $0x378] sm:$0xff]  ;;  %v862_v34 = vrot.slane %v4129_v1, 1  ;;  %v3220_v1 = vld [vmem:[%s5875_s3 + $0x370] sm:$0xff]  ;;  %v1102_v19 = vld [vmem:[%s5875_s3 + $0x168] sm:$0xff] }
  0x71   : > { %1679 = vmatprep.subr.mxu1 %v6024_v38  ;;  %3494 = vmatprep.mubr.f32.mxu1 %v4703_v30  ;;  %v1073_v30 = vld [vmem:[%s5875_s3 + $0x80] sm:$0xff]  ;;  %6072 = vst [vmem:[#allocation66_spill] sm:$0xff] %v4744_v17 }
  0x72   : > { %1680 = vmatpush2.msra.mxu1 %v1075_v22  ;;  %1271 = vmatmul.mubr.f32.gmra.mxu0 %v4035_v63  ;;  %v4739_v22 = vsel %vm944_vm2, %v946_v24, %v948_v9  ;;  %v870_v24 = vrot.slane %v4217_v55, 1  ;;  %v872_v9 = vrot.slane %v4250_v37, 1  ;;  %v3216_v37 = vld [vmem:[%s5875_s3 + $0x350] sm:$0xff] }
  0x73   : > { %3495 = vmatmul.mubr.f32.gmra.mxu1 %v4715_v50  ;;  %1681 = vmatprep.subr.mxu1 %v6024_v38  ;;  %v6087_v50 = vld [vmem:[#allocation27_spill] sm:$0xff] }
  0x74   : > { %1682 = vmatpush2.msra.mxu1 %v1074_v47  ;;  %3498 = vmatpush3.msra.mxu0 %v4458_v7  ;;  %v836_v7 = vsel %vm831_vm3, %v833_v25, %v835_v2  ;;  %v863_v47 = vrot.slane %v4124_v62, 1  ;;  %v865_v2 = vrot.slane %v4164_v40, 1  ;;  %v3219_v40 = vld [vmem:[%s5875_s3 + $0x368] sm:$0xff] }
  0x75   : > { %1683 = vmatprep.subr.mxu1 %v6024_v38  ;;  %1275 = vmatprep.mubr.f32.mxu0 %v4725_v18 }
  0x76   : > { %1684 = vmatpush2.msra.mxu1 %v1073_v30  ;;  %1685 = vmatprep.mubr.f32.mxu1 %v834_v53  ;;  %v1103_v30 = vld [vmem:[%s5875_s3 + $0x170] sm:$0xff]  ;;  %v4779_v25 = vsel %vm831_vm3, %v863_v47, %v865_v2  ;;  %v873_v53 = vrot.slane %v4245_v8, 1  ;;  %v6076_v2 = vld [vmem:[#allocation25_spill] sm:$0xff] }
  0x77   : > { %3179 = vmatmul.mubr.msk.f32.gmra.mxu0 %vm526_vm0, %v4063_v21  ;;  %1686 = vmatmul.mubr.f32.vlgmr.msra.gmra.mxu1 %v773_v44  ;;  %v4766_v44 = vsel %vm831_vm3, %v862_v34, %v863_v47  ;;  %6074 = vst [vmem:[#allocation68_spill] sm:$0xff] %v4779_v25  ;;  %v1099_v47 = vld [vmem:[%s5875_s3 + $0x150] sm:$0xff] }
  0x78   : > { %2137 = vmatprep.subr.mxu1 %v6024_v38  ;;  %1280 = vmatprep.mubr.f32.mxu0 %v4744_v17  ;;  %6073 = vst [vmem:[#allocation67_spill] sm:$0xff] %v4766_v44 }
  0x79   : > { %2138 = vmatpush1.msra.mxu1 %v3221_v23  ;;  %1690 = vmatprep.mubr.f32.mxu1 %v836_v7  ;;  %v4832_v23 = vsel %vm831_vm3, %v872_v9, %v873_v53  ;;  %v6075_v7 = vld [vmem:[#allocation22_spill] sm:$0xff] }
  0x7a   : > { %3499 = vmatprep.subr.mxu0 %v1103_v30  ;;  %2139 = vmatprep.subr.mxu1 %v6024_v38  ;;  %v875_v34 = vrot.slane %v6075_v7, 1  ;;  %v6081_v7 = vld [vmem:[#allocation32_spill] sm:$0xff] }
  0x7b   : > { %1281 = vmatmul.mubr.f32.gmra.mxu0 %v4090_v39  ;;  %1691 = vmatmul.mubr.f32.gmra.mxu1 %v4682_v52  ;;  %v868_v52 = vrot.slane %v4181_v61, 1 }
  0x7c   : > { %3500 = vmatpush3.msra.mxu0 %v1103_v30  ;;  %2140 = vmatpush1.msra.mxu1 %v3220_v1  ;;  %v3215_v30 = vld [vmem:[%s5875_s3 + $0x348] sm:$0xff]  ;;  %v4847_v1 = vsel %vm831_vm3, %v873_v53, %v875_v34  ;;  %v1097_v53 = vld [vmem:[%s5875_s3 + $0x140] sm:$0xff]  ;;  %v882_v34 = vrot.slane %v6081_v7, 1  ;;  %v6085_v7 = vld [vmem:[#allocation37_spill] sm:$0xff] }
  0x7d   : > { %1285 = vmatprep.mubr.f32.mxu0 %v4766_v44  ;;  %1695 = vmatprep.mubr.f32.mxu1 %v4253_v59  ;;  %v3218_v59 = vld [vmem:[%s5875_s3 + $0x360] sm:$0xff]  ;;  %v4797_v12 = vsel %vm831_vm3, %v867_v26, %v868_v52  ;;  %v4812_v55 = vsel %vm831_vm3, %v868_v52, %v870_v24  ;;  %v1098_v52 = vld [vmem:[%s5875_s3 + $0x148] sm:$0xff] }
  0x7e   : > { %2141 = vmatprep.subr.mxu1 %v6024_v38  ;;  %3501 = vmatprep.subr.mxu0 %v1102_v19  ;;  %v3214_v24 = vld [vmem:[%s5875_s3 + $0x340] sm:$0xff] }
  0x7f   : > { %3180 = vmatmul.mubr.msk.f32.gmra.mxu0 %vm526_vm0, %v4082_v33  ;;  %3191 = vmatmul.mubr.msk.f32.gmra.mxu1 %vm526_vm0, %v3881_v41  ;;  %v1101_v41 = vld [vmem:[%s5875_s3 + $0x160] sm:$0xff] }
  0x80   : > { %2142 = vmatpush1.msra.mxu1 %v3219_v40  ;;  %1290 = vmatprep.mubr.f32.mxu0 %v4779_v25  ;;  %v6077_v40 = vld [vmem:[#allocation23_spill] sm:$0xff] }
  0x81   : > { %1700 = vmatprep.mubr.f32.mxu1 %v4299_v14  ;;  %2143 = vmatprep.subr.mxu1 %v6024_v38  ;;  %v3217_v14 = vld [vmem:[%s5875_s3 + $0x358] sm:$0xff]  ;;  %v878_v26 = vrot.slane %v6077_v40, 1 }
  0x82   : > { %3502 = vmatpush3.msra.mxu0 %v1102_v19  ;;  %2144 = vmatpush1.msra.mxu1 %v3218_v59  ;;  %v877_v19 = vrot.slane %v6076_v2, 1  ;;  %v6078_v59 = vld [vmem:[#allocation19_spill] sm:$0xff]  ;;  %v1096_v2 = vld [vmem:[%s5875_s3 + $0x138] sm:$0xff] }
  0x83   : > { %1291 = vmatmul.mubr.f32.gmra.mxu0 %v4124_v62  ;;  %1701 = vmatmul.mubr.f32.gmra.mxu1 %v3900_v51  ;;  %v1100_v51 = vld [vmem:[%s5875_s3 + $0x158] sm:$0xff] }
  0x84   : > { %1295 = vmatprep.mubr.f32.mxu0 %v4797_v12  ;;  %1705 = vmatprep.mubr.f32.mxu1 %v4365_v46 }
  0x85   : > { %2145 = vmatprep.subr.mxu1 %v6024_v38  ;;  %3503 = vmatprep.subr.mxu0 %v1101_v41 }
  0x86   : > { %2146 = vmatpush1.msra.mxu1 %v3217_v14  ;;  %3504 = vmatpush3.msra.mxu0 %v1101_v41  ;;  %v4867_v41 = vsel %vm831_vm3, %v877_v19, %v878_v26  ;;  %v6080_v14 = vld [vmem:[#allocation28_spill] sm:$0xff] }
  0x87   : > { %3181 = vmatmul.mubr.msk.f32.gmra.mxu0 %vm526_vm0, %v4157_v31  ;;  %3192 = vmatmul.mubr.msk.f32.gmra.mxu1 %vm526_vm0, %v3914_v57  ;;  %6079 = vst [vmem:[#allocation22_spill] sm:$0xff] %v4867_v41  ;;  %v880_v9 = vrot.slane %v6080_v14, 1  ;;  %v6083_v19 = vld [vmem:[#allocation20_spill] sm:$0xff] }
  0x88   : > { %1300 = vmatprep.mubr.f32.mxu0 %v4812_v55  ;;  %1710 = vmatprep.mubr.f32.mxu1 %v4451_v32 }
  0x89   : > { %2147 = vmatprep.subr.mxu1 %v6024_v38  ;;  %3505 = vmatprep.subr.mxu0 %v1100_v51 }
  0x8a   : > { %2148 = vmatpush1.msra.mxu1 %v3216_v37  ;;  %3506 = vmatpush3.msra.mxu0 %v1100_v51  ;;  %v3213_v51 = vld [vmem:[%s5875_s3 + $0x338] sm:$0xff]  ;;  %v4882_v37 = vsel %vm831_vm3, %v878_v26, %v880_v9  ;;  %v3212_v26 = vld [vmem:[%s5875_s3 + $0x330] sm:$0xff] }
  0x8b   : > { %1301 = vmatmul.mubr.f32.gmra.mxu0 %v4181_v61  ;;  %1711 = vmatmul.mubr.f32.gmra.mxu1 %v3943_v10  ;;  %v1095_v9 = vld [vmem:[%s5875_s3 + $0x130] sm:$0xff] }
  0x8c   : > { %1305 = vmatprep.mubr.f32.mxu0 %v4832_v23  ;;  %1715 = vmatprep.mubr.f32.mxu1 %v4491_v5 }
  0x8d   : > { %2149 = vmatprep.subr.mxu1 %v6024_v38  ;;  %3507 = vmatprep.subr.mxu0 %v1099_v47 }
  0x8e   : > { %2150 = vmatpush1.msra.mxu1 %v3215_v30  ;;  %3508 = vmatpush3.msra.mxu0 %v1099_v47  ;;  %v6082_v47 = vld [vmem:[#allocation31_spill] sm:$0xff] }
  0x8f   : > { %3182 = vmatmul.mubr.msk.f32.gmra.mxu0 %vm526_vm0, %v6078_v59  ;;  %3193 = vmatmul.mubr.msk.f32.gmra.mxu1 %vm526_vm0, %v3958_v15  ;;  %v883_v30 = vrot.slane %v6082_v47, 1 }
  0x90   : > { %1310 = vmatprep.mubr.f32.mxu0 %v4847_v1  ;;  %1720 = vmatprep.mubr.f32.mxu1 %v4617_v58 }
  0x91   : > { %2151 = vmatprep.subr.mxu1 %v6024_v38  ;;  %3509 = vmatprep.subr.mxu0 %v1098_v52 }
  0x92   : > { %2152 = vmatpush1.msra.mxu1 %v3214_v24  ;;  %3510 = vmatpush3.msra.mxu0 %v1098_v52  ;;  %v4902_v52 = vsel %vm831_vm3, %v882_v34, %v883_v30  ;;  %v6084_v24 = vld [vmem:[#allocation36_spill] sm:$0xff]  ;;  %v887_v34 = vrot.slane %v6085_v7, 1  ;;  %v1093_v7 = vld [vmem:[%s5875_s3 + $0x120] sm:$0xff] }
  0x93   : > { %1311 = vmatmul.mubr.f32.gmra.mxu0 %v4245_v8  ;;  %1721 = vmatmul.mubr.f32.gmra.mxu1 %v3987_v35  ;;  %v885_v14 = vrot.slane %v6084_v24, 1  ;;  %v1094_v24 = vld [vmem:[%s5875_s3 + $0x128] sm:$0xff] }
  0x94   : > { %1315 = vmatprep.mubr.f32.mxu0 %v4867_v41  ;;  %1725 = vmatprep.mubr.f32.mxu1 %v4664_v60 }
  0x95   : > { %2153 = vmatprep.subr.mxu1 %v6024_v38  ;;  %3511 = vmatprep.subr.mxu0 %v1097_v53 }
  0x96   : > { %2154 = vmatpush1.msra.mxu1 %v3213_v51  ;;  %3512 = vmatpush3.msra.mxu0 %v1097_v53  ;;  %v3211_v53 = vld [vmem:[%s5875_s3 + $0x328] sm:$0xff]  ;;  %v4917_v51 = vsel %vm831_vm3, %v883_v30, %v885_v14  ;;  %v3210_v30 = vld [vmem:[%s5875_s3 + $0x320] sm:$0xff] }
  0x97   : > { %3183 = vmatmul.mubr.msk.f32.gmra.mxu0 %vm526_vm0, %v6083_v19  ;;  %3194 = vmatmul.mubr.msk.f32.gmra.mxu1 %vm526_vm0, %v3998_v42 }
  0x98   : > { %1320 = vmatprep.mubr.f32.mxu0 %v4882_v37  ;;  %1730 = vmatprep.mubr.f32.mxu1 %v4697_v4 }
  0x99   : > { %2155 = vmatprep.subr.mxu1 %v6024_v38  ;;  %3513 = vmatprep.subr.mxu0 %v1096_v2 }
  0x9a   : > { %2156 = vmatpush1.msra.mxu1 %v3212_v26  ;;  %3514 = vmatpush3.msra.mxu0 %v1096_v2  ;;  %v6086_v2 = vld [vmem:[#allocation35_spill] sm:$0xff] }
  0x9b   : > { %1321 = vmatmul.mubr.f32.gmra.mxu0 %v6077_v40  ;;  %1731 = vmatmul.mubr.f32.gmra.mxu1 %v4035_v63  ;;  %v888_v26 = vrot.slane %v6086_v2, 1 }
  0x9c   : > { %1325 = vmatprep.mubr.f32.mxu0 %v4902_v52  ;;  %1735 = vmatprep.mubr.f32.mxu1 %v4725_v18 }
  0x9d   : > { %2157 = vmatprep.subr.mxu1 %v6024_v38  ;;  %3515 = vmatprep.subr.mxu0 %v1095_v9  ;;  %v4937_v14 = vsel %vm831_vm3, %v887_v34, %v888_v26 }
  0x9e   : > { %2158 = vmatpush1.msra.mxu1 %v3211_v53  ;;  %3516 = vmatpush3.msra.mxu0 %v1095_v9  ;;  %v6088_v9 = vld [vmem:[#allocation39_spill] sm:$0xff] }
  0x9f   : > { %3184 = vmatmul.mubr.msk.f32.gmra.mxu0 %vm526_vm0, %v6087_v50  ;;  %3195 = vmatmul.mubr.msk.f32.gmra.mxu1 %vm526_vm0, %v4063_v21  ;;  %v890_v53 = vrot.slane %v6088_v9, 1  ;;  %v6090_v9 = vld [vmem:[#allocation41_spill] sm:$0xff] }
  0xa0   : > { %1330 = vmatprep.mubr.f32.mxu0 %v4917_v51  ;;  %1740 = vmatprep.mubr.f32.mxu1 %v4744_v17  ;;  %v3209_v17 = vld [vmem:[%s5875_s3 + $0x318] sm:$0xff]  ;;  %v893_v43 = vrot.slane %v6090_v9, 1 }
  0xa1   : > { %2159 = vmatprep.subr.mxu1 %v6024_v38  ;;  %3517 = vmatprep.subr.mxu0 %v1094_v24  ;;  %v4952_v34 = vsel %vm831_vm3, %v888_v26, %v890_v53  ;;  %v6091_v21 = vld [vmem:[#allocation29_spill] sm:$0xff]  ;;  %v3208_v26 = vld [vmem:[%s5875_s3 + $0x310] sm:$0xff]  ;;  %v6093_v53 = vld [vmem:[#allocation47_spill] sm:$0xff] }
  0xa2   : > { %2160 = vmatpush1.msra.mxu1 %v3210_v30  ;;  %3518 = vmatpush3.msra.mxu0 %v1094_v24  ;;  %v6089_v24 = vld [vmem:[#allocation46_spill] sm:$0xff] }
  0xa3   : > { %1331 = vmatmul.mubr.f32.gmra.mxu0 %v6082_v47  ;;  %1741 = vmatmul.mubr.f32.gmra.mxu1 %v4090_v39  ;;  %v892_v30 = vrot.slane %v6089_v24, 1  ;;  %v1092_v39 = vld [vmem:[%s5875_s3 + $0x118] sm:$0xff]  ;;  %v1091_v24 = vld [vmem:[%s5875_s3 + $0x110] sm:$0xff] }
  0xa4   : > { %1335 = vmatprep.mubr.f32.mxu0 %v4937_v14  ;;  %1745 = vmatprep.mubr.f32.mxu1 %v4766_v44  ;;  %v6097_v44 = vld [vmem:[#allocation40_spill] sm:$0xff] }
  0xa5   : > { %2161 = vmatprep.subr.mxu1 %v6024_v38  ;;  %3519 = vmatprep.subr.mxu0 %v1093_v7 }
  0xa6   : > { %2162 = vmatpush1.msra.mxu1 %v3209_v17  ;;  %3520 = vmatpush3.msra.mxu0 %v1093_v7  ;;  %v4972_v17 = vsel %vm831_vm3, %v892_v30, %v893_v43  ;;  %v895_v7 = vrot.slane %v6093_v53, 1  ;;  %v6095_v30 = vld [vmem:[#allocation49_spill] sm:$0xff]  ;;  %v6096_v53 = vld [vmem:[#allocation48_spill] sm:$0xff] }
  0xa7   : > { %3185 = vmatmul.mubr.msk.f32.gmra.mxu0 %vm526_vm0, %v6091_v21  ;;  %3196 = vmatmul.mubr.msk.f32.gmra.mxu1 %vm526_vm0, %v4082_v33  ;;  %6092 = vst [vmem:[#allocation25_spill] sm:$0xff] %v4972_v17  ;;  %v898_v33 = vrot.slane %v6096_v53, 1 }
  0xa8   : > { %1340 = vmatprep.mubr.f32.mxu0 %v4952_v34  ;;  %1750 = vmatprep.mubr.f32.mxu1 %v4779_v25  ;;  %v3207_v25 = vld [vmem:[%s5875_s3 + $0x308] sm:$0xff] }
  0xa9   : > { %2163 = vmatprep.subr.mxu1 %v6024_v38  ;;  %3521 = vmatprep.subr.mxu0 %v1092_v39 }
  0xaa   : > { %2164 = vmatpush1.msra.mxu1 %v3208_v26  ;;  %3522 = vmatpush3.msra.mxu0 %v1092_v39  ;;  %v4987_v39 = vsel %vm831_vm3, %v893_v43, %v895_v7  ;;  %v897_v26 = vrot.slane %v6095_v30, 1  ;;  %v3206_v43 = vld [vmem:[%s5875_s3 + $0x300] sm:$0xff]  ;;  %v900_v7 = vrot.slane %v4541_v3, 1  ;;  %v3237_v30 = vld [vmem:[%s5875_s3 + $0x3f8] sm:$0xff]  ;;  %v902_v3 = vrot.slane %v4564_v6, 1 }
  0xab   : > { %1341 = vmatmul.mubr.f32.gmra.mxu0 %v6086_v2  ;;  %1751 = vmatmul.mubr.f32.gmra.mxu1 %v4124_v62  ;;  %6094 = vst [vmem:[#allocation23_spill] sm:$0xff] %v4987_v39  ;;  %v1090_v62 = vld [vmem:[%s5875_s3 + $0x108] sm:$0xff] }
  0xac   : > { %1345 = vmatprep.mubr.f32.mxu0 %v4972_v17  ;;  %1755 = vmatprep.mubr.f32.mxu1 %v4797_v12 }
  0xad   : > { %2165 = vmatprep.subr.mxu1 %v6024_v38  ;;  %3523 = vmatprep.subr.mxu0 %v1091_v24 }
  0xae   : > { %2166 = vmatpush1.msra.mxu1 %v3207_v25  ;;  %3524 = vmatpush3.msra.mxu0 %v1091_v24  ;;  %v5007_v25 = vsel %vm831_vm3, %v897_v26, %v898_v33  ;;  %v1089_v24 = vld [vmem:[%s5875_s3 + $0x100] sm:$0xff]  ;;  %v903_v26 = vrot.slane %v4552_v29, 1 }
  0xaf   : > { %3186 = vmatmul.mubr.msk.f32.gmra.mxu0 %vm526_vm0, %v6097_v44  ;;  %3197 = vmatmul.mubr.msk.f32.gmra.mxu1 %vm526_vm0, %v4157_v31  ;;  %6098 = vst [vmem:[#allocation19_spill] sm:$0xff] %v5007_v25 }
  0xb0   : > { %1350 = vmatprep.mubr.f32.mxu0 %v4987_v39  ;;  %1760 = vmatprep.mubr.f32.mxu1 %v4812_v55  ;;  %v5044_v6 = vsel %vm831_vm3, %v902_v3, %v903_v26  ;;  %v908_v3 = vrot.slane %v4593_v54, 1 }
  0xb1   : > { %2167 = vmatprep.subr.mxu1 %v6024_v38  ;;  %3525 = vmatprep.subr.mxu0 %v1090_v62  ;;  %6101 = vst [vmem:[#allocation32_spill] sm:$0xff] %v5044_v6 }
  0xb2   : > { %2168 = vmatpush1.msra.mxu1 %v3206_v43  ;;  %3526 = vmatpush3.msra.mxu0 %v1090_v62  ;;  %v5022_v62 = vsel %vm831_vm3, %v898_v33, %v900_v7  ;;  %v5029_v43 = vld [vmem:[%s5875_s3 + $0x478] sm:$0xff]  ;;  %v3236_v33 = vld [vmem:[%s5875_s3 + $0x3f0] sm:$0xff]  ;;  %v905_v7 = vrot.slane %v4587_v45, 1  ;;  %v907_v45 = vrot.slane %v4606_v48, 1 }
  0xb3   : > { %1351 = vmatmul.mubr.f32.gmra.mxu0 %v6090_v9  ;;  %1761 = vmatmul.mubr.f32.gmra.mxu1 %v4181_v61  ;;  %6099 = vst [vmem:[#allocation28_spill] sm:$0xff] %v5022_v62  ;;  %v6100_v61 = vld [vmem:[#allocation43_spill] sm:$0xff] }
  0xb4   : > { %1355 = vmatprep.mubr.f32.mxu0 %v5007_v25  ;;  %1765 = vmatprep.mubr.f32.mxu1 %v4832_v23  ;;  %v5074_v48 = vsel %vm831_vm3, %v907_v45, %v908_v3  ;;  %v3232_v45 = vld [vmem:[%s5875_s3 + $0x3d0] sm:$0xff] }
  0xb5   : > { %2169 = vmatprep.subr.mxu1 %v6024_v38  ;;  %3527 = vmatprep.subr.mxu0 %v1089_v24  ;;  %6104 = vst [vmem:[#allocation20_spill] sm:$0xff] %v5074_v48 }
  0xb6   : > { %2170 = vmatpush2.msra.mxu1 %v3237_v30  ;;  %3528 = vmatpush3.msra.mxu0 %v1089_v24  ;;  %v3235_v24 = vld [vmem:[%s5875_s3 + $0x3e8] sm:$0xff]  ;;  %v5057_v30 = vsel %vm831_vm3, %v903_v26, %v905_v7  ;;  %v910_v26 = vrot.slane %v4629_v56, 1  ;;  %v3233_v7 = vld [vmem:[%s5875_s3 + $0x3d8] sm:$0xff]  ;;  %v1108_v56 = vrot.slane %v4649_v27, 1 }
  0xb7   : > { %3187 = vmatmul.mubr.msk.f32.gmra.mxu0 %vm526_vm0, %v6100_v61  ;;  %3198 = vmatmul.mubr.msk.f32.gmra.mxu1 %vm526_vm0, %v6078_v59  ;;  %6102 = vst [vmem:[#allocation31_spill] sm:$0xff] %v5057_v30 }
  0xb8   : > { %1360 = vmatprep.mubr.f32.mxu0 %v5022_v62  ;;  %1770 = vmatprep.mubr.f32.mxu1 %v4847_v1 }
  0xb9   : > { %2171 = vmatprep.subr.mxu1 %v6024_v38  ;;  %3577 = vmatprep.subr.mxu0 %v5029_v43 }
  0xba   : > { %2172 = vmatpush2.msra.mxu1 %v3236_v33  ;;  %v6103_v33 = vld [vmem:[#allocation51_spill] sm:$0xff] }
  0xbb   : > { %1361 = vmatmul.mubr.f32.gmra.mxu0 %v6096_v53  ;;  %1771 = vmatmul.mubr.f32.gmra.mxu1 %v4245_v8 }
  0xbc   : > { %1365 = vmatprep.mubr.f32.mxu0 %v5044_v6  ;;  %1775 = vmatprep.mubr.f32.mxu1 %v4867_v41  ;;  %v3234_v41 = vld [vmem:[%s5875_s3 + $0x3e0] sm:$0xff] }
  0xbd   : > { %2173 = vmatprep.subr.mxu1 %v6024_v38 }
  0xbe   : > { %2174 = vmatpush2.msra.mxu1 %v3235_v24  ;;  %v5086_v24 = vsel %vm831_vm3, %v908_v3, %v910_v26  ;;  %v1111_v3 = vrot.slane %v4669_v49, 1  ;;  %v3231_v26 = vld [vmem:[%s5875_s3 + $0x3c8] sm:$0xff]  ;;  %v3230_v49 = vld [vmem:[%s5875_s3 + $0x3c0] sm:$0xff] }
  0xbf   : > { %3188 = vmatmul.mubr.msk.f32.gmra.mxu0 %vm526_vm0, %v6103_v33  ;;  %3199 = vmatmul.mubr.msk.f32.gmra.mxu1 %vm526_vm0, %v6083_v19  ;;  %6105 = vst [vmem:[#allocation36_spill] sm:$0xff] %v5086_v24 }
  0xc0   : > { %1370 = vmatprep.mubr.f32.mxu0 %v5057_v30  ;;  %1780 = vmatprep.mubr.f32.mxu1 %v4882_v37 }
  0xc1   : > { %2175 = vmatprep.subr.mxu1 %v6024_v38 }
  0xc2   : > { %2176 = vmatpush2.msra.mxu1 %v3234_v41  ;;  %v1109_v41 = vrot.slane %v4639_v0, 1 }
  0xc3   : > { %1371 = vmatmul.mubr.f32.gmra.mxu0 %v4552_v29  ;;  %1781 = vmatmul.mubr.f32.gmra.mxu1 %v6077_v40 }
  0xc4   : > { %1375 = vmatprep.mubr.f32.mxu0 %v5074_v48  ;;  %1785 = vmatprep.mubr.f32.mxu1 %v4902_v52  ;;  %v5103_v27 = vsel %vm831_vm3, %v1108_v56, %v1109_v41  ;;  %v3229_v56 = vld [vmem:[%s5875_s3 + $0x3b8] sm:$0xff] }
  0xc5   : > { %2177 = vmatprep.subr.mxu1 %v6024_v38  ;;  %6106 = vst [vmem:[#allocation37_spill] sm:$0xff] %v5103_v27 }
  0xc6   : > { %2178 = vmatpush2.msra.mxu1 %v3233_v7  ;;  %v5115_v7 = vsel %vm831_vm3, %v1109_v41, %v1111_v3  ;;  %v3228_v41 = vld [vmem:[%s5875_s3 + $0x3b0] sm:$0xff]  ;;  %v3227_v3 = vld [vmem:[%s5875_s3 + $0x3a8] sm:$0xff] }
  0xc7   : > { %3189 = vmatmul.mubr.msk.f32.gmra.mxu0 %vm526_vm0, %v4566_v13  ;;  %3200 = vmatmul.mubr.msk.f32.gmra.mxu1 %vm526_vm0, %v6087_v50  ;;  %6107 = vst [vmem:[#allocation35_spill] sm:$0xff] %v5115_v7 }
  0xc8   : > { %1380 = vmatprep.mubr.f32.mxu0 %v5086_v24  ;;  %1790 = vmatprep.mubr.f32.mxu1 %v4917_v51 }
  0xc9   : > { %2179 = vmatprep.subr.mxu1 %v6024_v38 }
  0xca   : > { %2180 = vmatpush2.msra.mxu1 %v3232_v45  ;;  %v3252_v45 = vld [vmem:[%s5875_s3 + $0x470] sm:$0xff] }
  0xcb   : > { %1381 = vmatmul.mubr.f32.gmra.mxu0 %v4593_v54  ;;  %1791 = vmatmul.mubr.f32.gmra.mxu1 %v6082_v47 }
  0xcc   : > { %1385 = vmatprep.mubr.f32.mxu0 %v5103_v27  ;;  %1795 = vmatprep.mubr.f32.mxu1 %v4937_v14  ;;  %v3247_v27 = vld [vmem:[%s5875_s3 + $0x448] sm:$0xff] }
  0xcd   : > { %2181 = vmatprep.subr.mxu1 %v6024_v38 }
  0xce   : > { %2182 = vmatpush2.msra.mxu1 %v3231_v26  ;;  %v3251_v26 = vld [vmem:[%s5875_s3 + $0x468] sm:$0xff] }
  0xcf   : > { %3190 = vmatmul.mubr.msk.f32.gmra.mxu0 %vm526_vm0, %v4608_v28  ;;  %3201 = vmatmul.mubr.msk.f32.gmra.mxu1 %vm526_vm0, %v6091_v21  ;;  %v6116_v28 = vld [vmem:[#allocation15_spill] sm:$0xff] }
  0xd0   : > { %1390 = vmatprep.mubr.f32.mxu0 %v5115_v7  ;;  %1800 = vmatprep.mubr.f32.mxu1 %v4952_v34  ;;  %v3248_v7 = vld [vmem:[%s5875_s3 + $0x450] sm:$0xff] }
  0xd1   : > { %2183 = vmatprep.subr.mxu1 %v6024_v38 }
  0xd2   : > { %2184 = vmatpush2.msra.mxu1 %v3230_v49  ;;  %v6110_v49 = vld [vmem:[#allocation5_spill] sm:$0xff] }
  0xd3   : > { %1391 = vmatmul.mubr.f32.gmra.mxu0 %v4639_v0  ;;  %1801 = vmatmul.mubr.f32.gmra.mxu1 %v6086_v2  ;;  %v6114_v0 = vld [vmem:[#allocation12_spill] sm:$0xff] }
  0xd4   : > { %1805 = vmatprep.mubr.f32.mxu1 %v4972_v17  ;;  %3529 = vmatprep.mubr.f32.mxu0 %v4736_v11  ;;  %v6108_v11 = vld [vmem:[#allocation3_spill] sm:$0xff]  ;;  %v6137_v17 = vld [vmem:[#allocation8_spill] sm:$0xff] }
  0xd5   : > { %2185 = vmatprep.subr.mxu1 %v6024_v38 }
  0xd6   : > { %2186 = vmatpush2.msra.mxu1 %v3229_v56  ;;  %v3226_v56 = vld [vmem:[%s5875_s3 + $0x3a0] sm:$0xff] }
  0xd7   : > { %3202 = vmatmul.mubr.msk.f32.gmra.mxu1 %vm526_vm0, %v6097_v44  ;;  %3530 = vmatmul.mubr.f32.vlgmr.msra.gmra.mxu0 %v4739_v22  ;;  %v6109_v22 = vld [vmem:[#allocation4_spill] sm:$0xff] }
  0xd8   : > { %1810 = vmatprep.mubr.f32.mxu1 %v4987_v39  ;;  %3532 = vmatprep.mubr.f32.mxu0 %v6108_v11  ;;  %v6112_v11 = vld [vmem:[#allocation7_spill] sm:$0xff] }
  0xd9   : > { %2187 = vmatprep.subr.mxu1 %v6024_v38  ;;  %3578 = vmatpush3.msra.mxu0 %v5029_v43  ;;  %v6111_v43 = vld [vmem:[#allocation6_spill] sm:$0xff] }
  0xda   : > { %2188 = vmatpush2.msra.mxu1 %v3228_v41  ;;  %3579 = vmatprep.subr.mxu0 %v3252_v45  ;;  %v3250_v41 = vld [vmem:[%s5875_s3 + $0x460] sm:$0xff] }
  0xdb   : > { %1811 = vmatmul.mubr.f32.gmra.mxu1 %v6090_v9  ;;  %3533 = vmatmul.mubr.f32.gmra.mxu0 %v6109_v22  ;;  %v3225_v22 = vld [vmem:[%s5875_s3 + $0x398] sm:$0xff]  ;;  %v6130_v9 = vld [vmem:[#allocation52_spill] sm:$0xff] }
  0xdc   : > { %1815 = vmatprep.mubr.f32.mxu1 %v5007_v25  ;;  %3535 = vmatprep.mubr.f32.mxu0 %v6110_v49  ;;  %v6128_v25 = vld [vmem:[#allocation45_spill] sm:$0xff] }
  0xdd   : > { %2189 = vmatprep.subr.mxu1 %v6024_v38  ;;  %3580 = vmatpush3.msra.mxu0 %v3252_v45  ;;  %v6113_v45 = vld [vmem:[#allocation10_spill] sm:$0xff] }
  0xde   : > { %2190 = vmatpush2.msra.mxu1 %v3227_v3  ;;  %3581 = vmatprep.subr.mxu0 %v3251_v26  ;;  %v3249_v3 = vld [vmem:[%s5875_s3 + $0x458] sm:$0xff] }
  0xdf   : > { %3203 = vmatmul.mubr.msk.f32.gmra.mxu1 %vm526_vm0, %v6100_v61  ;;  %3536 = vmatmul.mubr.f32.gmra.mxu0 %v6111_v43 }
  0xe0   : > { %1820 = vmatprep.mubr.f32.mxu1 %v5022_v62  ;;  %3538 = vmatprep.mubr.f32.mxu0 %v6112_v11  ;;  %v6126_v62 = vld [vmem:[#allocation42_spill] sm:$0xff] }
  0xe1   : > { %2191 = vmatprep.subr.mxu1 %v6024_v38  ;;  %3582 = vmatpush3.msra.mxu0 %v3251_v26  ;;  %v6115_v26 = vld [vmem:[#allocation14_spill] sm:$0xff] }
  0xe2   : > { %2192 = vmatpush2.msra.mxu1 %v3226_v56  ;;  %3583 = vmatprep.subr.mxu0 %v3250_v41  ;;  %v3224_v56 = vld [vmem:[%s5875_s3 + $0x390] sm:$0xff] }
  0xe3   : > { %1821 = vmatmul.mubr.f32.gmra.mxu1 %v6096_v53  ;;  %3539 = vmatmul.mubr.f32.gmra.mxu0 %v6113_v45 }
  0xe4   : > { %1825 = vmatprep.mubr.f32.mxu1 %v5044_v6  ;;  %3541 = vmatprep.mubr.f32.mxu0 %v6114_v0  ;;  %v3245_v6 = vld [vmem:[%s5875_s3 + $0x438] sm:$0xff] }
  0xe5   : > { %2193 = vmatprep.subr.mxu1 %v6024_v38  ;;  %3584 = vmatpush3.msra.mxu0 %v3250_v41  ;;  %v6117_v41 = vld [vmem:[#allocation17_spill] sm:$0xff] }
  0xe6   : > { %2194 = vmatpush2.msra.mxu1 %v3225_v22  ;;  %3585 = vmatprep.subr.mxu0 %v3249_v3  ;;  %v3223_v22 = vld [vmem:[%s5875_s3 + $0x388] sm:$0xff] }
  0xe7   : > { %3204 = vmatmul.mubr.msk.f32.gmra.mxu1 %vm526_vm0, %v6103_v33  ;;  %3542 = vmatmul.mubr.f32.gmra.mxu0 %v6115_v26 }
  0xe8   : > { %1830 = vmatprep.mubr.f32.mxu1 %v5057_v30  ;;  %3544 = vmatprep.mubr.f32.mxu0 %v6116_v28  ;;  %v6118_v30 = vld [vmem:[#allocation18_spill] sm:$0xff] }
  0xe9   : > { %2195 = vmatprep.subr.mxu1 %v6024_v38  ;;  %3586 = vmatpush3.msra.mxu0 %v3249_v3 }
  0xea   : > { %2196 = vmatpush2.msra.mxu1 %v3224_v56  ;;  %3587 = vmatprep.subr.mxu0 %v3248_v7  ;;  %v6119_v56 = vld [vmem:[#allocation21_spill] sm:$0xff] }
  0xeb   : > { %1831 = vmatmul.mubr.f32.gmra.mxu1 %v4552_v29  ;;  %3545 = vmatmul.mubr.f32.gmra.mxu0 %v6117_v41  ;;  %v3222_v29 = vld [vmem:[%s5875_s3 + $0x380] sm:$0xff] }
  0xec   : > { %1835 = vmatprep.mubr.f32.mxu1 %v5074_v48  ;;  %3547 = vmatprep.mubr.f32.mxu0 %v6118_v30  ;;  %v3246_v48 = vld [vmem:[%s5875_s3 + $0x440] sm:$0xff] }
  0xed   : > { %2197 = vmatprep.subr.mxu1 %v6024_v38  ;;  %3588 = vmatpush3.msra.mxu0 %v3248_v7  ;;  %v6120_v7 = vld [vmem:[#allocation24_spill] sm:$0xff] }
  0xee   : > { %2198 = vmatpush2.msra.mxu1 %v3223_v22  ;;  %v5210_v3 = vpop.f32.mrf.mxu1  ;;  %3589 = vmatprep.subr.mxu0 %v3247_v27 }
  0xef   : > { %3205 = vmatmul.mubr.msk.f32.gmra.mxu1 %vm526_vm0, %v4566_v13  ;;  %3548 = vmatmul.mubr.f32.gmra.mxu0 %v6119_v56  ;;  %v6121_v13 = vld [vmem:[#allocation26_spill] sm:$0xff] }
  0xf0   : > { %1840 = vmatprep.mubr.f32.mxu1 %v5086_v24  ;;  %3550 = vmatprep.mubr.f32.mxu0 %v6120_v7  ;;  %v5224_v22 = vpop.f32.mrf.mxu1  ;;  %v6122_v24 = vld [vmem:[#allocation30_spill] sm:$0xff] }
  0xf1   : > { %2199 = vmatprep.subr.mxu1 %v6024_v38  ;;  %3590 = vmatpush3.msra.mxu0 %v3247_v27  ;;  %v6123_v38 = vld [vmem:[#allocation33_spill] sm:$0xff]  ;;  %v6124_v27 = vld [vmem:[#allocation34_spill] sm:$0xff] }
  0xf2   : > { %2200 = vmatpush2.msra.mxu1 %v3222_v29  ;;  %3591 = vmatprep.subr.mxu0 %v3246_v48  ;;  %v3244_v29 = vld [vmem:[%s5875_s3 + $0x430] sm:$0xff] }
  0xf3   : > { %1841 = vmatmul.mubr.f32.gmra.mxu1 %v4593_v54  ;;  %3551 = vmatmul.mubr.f32.gmra.mxu0 %v6121_v13  ;;  %v5229_v33 = vpop.f32.mrf.mxu1 }
  0xf4   : > { %3553 = vmatprep.mubr.f32.mxu0 %v6122_v24  ;;  %2201 = vmatprep.mubr.f32.mxu1 %v4365_v46 }
  0xf5   : > { %v5236_v53 = vpop.f32.mrf.mxu1  ;;  %3592 = vmatpush3.msra.mxu0 %v3246_v48  ;;  %v6125_v48 = vld [vmem:[#allocation38_spill] sm:$0xff] }
  0xf6   : > { %3593 = vmatprep.subr.mxu0 %v3245_v6 }
  0xf7   : > { %3554 = vmatmul.mubr.f32.gmra.mxu0 %v6123_v38  ;;  %3254 = vmatmul.mubr.msk.f32.vlgmr.msra.gmra.mxu1 %vm526_vm0, %v3914_v57  ;;  %v3243_v57 = vld [vmem:[%s5875_s3 + $0x428] sm:$0xff] }
  0xf8   : > { %3556 = vmatprep.mubr.f32.mxu0 %v6124_v27  ;;  %2206 = vmatprep.mubr.f32.mxu1 %v4451_v32  ;;  %v5247_v54 = vpop.f32.mrf.mxu1  ;;  %v6127_v32 = vld [vmem:[#allocation44_spill] sm:$0xff] }
  0xf9   : > { %3594 = vmatpush3.msra.mxu0 %v3245_v6 }
  0xfa   : > { %v5249_v46 = vpop.f32.mrf.mxu1  ;;  %3595 = vmatprep.subr.mxu0 %v3244_v29 }
  0xfb   : > { %3557 = vmatmul.mubr.f32.gmra.mxu0 %v6125_v48  ;;  %2207 = vmatmul.mubr.f32.gmra.mxu1 %v3943_v10  ;;  %v3242_v10 = vld [vmem:[%s5875_s3 + $0x420] sm:$0xff] }
  0xfc   : > { %3559 = vmatprep.mubr.f32.mxu0 %v6126_v62  ;;  %2211 = vmatprep.mubr.f32.mxu1 %v4491_v5 }
  0xfd   : > { %v5258_v61 = vpop.f32.mrf.mxu1  ;;  %3596 = vmatpush3.msra.mxu0 %v3244_v29  ;;  %v6129_v29 = vld [vmem:[#allocation50_spill] sm:$0xff] }
  0xfe   : > { %3597 = vmatprep.subr.mxu0 %v3243_v57 }
  0xff   : > { %3560 = vmatmul.mubr.f32.gmra.mxu0 %v6127_v32  ;;  %3255 = vmatmul.mubr.msk.f32.gmra.mxu1 %vm526_vm0, %v3958_v15  ;;  %v5264_v6 = vpop.f32.mrf.mxu1  ;;  %v3241_v15 = vld [vmem:[%s5875_s3 + $0x418] sm:$0xff] }
 0x100   : > { %3562 = vmatprep.mubr.f32.mxu0 %v6128_v25  ;;  %2216 = vmatprep.mubr.f32.mxu1 %v4617_v58  ;;  %v6131_v58 = vld [vmem:[#allocation55_spill] sm:$0xff] }
 0x101   : > { %3598 = vmatpush3.msra.mxu0 %v3243_v57 }
 0x102   : > { %v5271_v5 = vpop.f32.mrf.mxu1  ;;  %3599 = vmatprep.subr.mxu0 %v3242_v10 }
 0x103   : > { %3563 = vmatmul.mubr.f32.gmra.mxu0 %v6129_v29  ;;  %2217 = vmatmul.mubr.f32.gmra.mxu1 %v3987_v35  ;;  %v3240_v35 = vld [vmem:[%s5875_s3 + $0x410] sm:$0xff] }
 0x104   : > { %3565 = vmatprep.mubr.f32.mxu0 %v6130_v9  ;;  %2221 = vmatprep.mubr.f32.mxu1 %v4664_v60  ;;  %v5280_v39 = vpop.f32.mrf.mxu1 }
 0x105   : > { %3600 = vmatpush3.msra.mxu0 %v3242_v10  ;;  %v6133_v10 = vld [vmem:[#allocation59_spill] sm:$0xff] }
 0x106   : > { %3601 = vmatprep.subr.mxu0 %v3241_v15 }
 0x107   : > { %3566 = vmatmul.mubr.f32.gmra.mxu0 %v6131_v58  ;;  %3256 = vmatmul.mubr.msk.f32.gmra.mxu1 %vm526_vm0, %v3998_v42  ;;  %v5286_v57 = vpop.f32.mrf.mxu1  ;;  %v3239_v42 = vld [vmem:[%s5875_s3 + $0x408] sm:$0xff] }
 0x108   : > { %6132 = vst [vmem:[#allocation27_spill] sm:$0xff] %v5286_v57  ;;  %3568 = vmatprep.mubr.f32.mxu0 %v4583_v16  ;;  %2226 = vmatprep.mubr.f32.mxu1 %v4697_v4  ;;  %v6138_v57 = vld [vmem:[#allocation62_spill] sm:$0xff] }
 0x109   : > { %v5293_v60 = vpop.f32.mrf.mxu1  ;;  %3602 = vmatpush3.msra.mxu0 %v3241_v15  ;;  %v6136_v15 = vld [vmem:[#allocation61_spill] sm:$0xff] }
 0x10a   : > { %3603 = vmatprep.subr.mxu0 %v3240_v35 }
 0x10b   : > { %3569 = vmatmul.mubr.f32.gmra.mxu0 %v4612_v36  ;;  %2227 = vmatmul.mubr.f32.gmra.mxu1 %v4035_v63  ;;  %v3238_v63 = vld [vmem:[%s5875_s3 + $0x400] sm:$0xff] }
 0x10c   : > { %3571 = vmatprep.mubr.f32.mxu0 %v6133_v10  ;;  %2231 = vmatprep.mubr.f32.mxu1 %v4725_v18  ;;  %v5302_v44 = vpop.f32.mrf.mxu1  ;;  %v6139_v10 = vld [vmem:[#allocation66_spill] sm:$0xff] }
 0x10d   : > { %6134 = vst [vmem:[#allocation39_spill] sm:$0xff] %v5302_v44  ;;  %3604 = vmatpush3.msra.mxu0 %v3240_v35  ;;  %v6141_v35 = vld [vmem:[#allocation63_spill] sm:$0xff] }
 0x10e   : > { %v5304_v4 = vpop.f32.mrf.mxu1  ;;  %3605 = vmatprep.subr.mxu0 %v3239_v42  ;;  %v6142_v44 = vld [vmem:[#allocation11_spill] sm:$0xff] }
 0x10f   : > { %6135 = vst [vmem:[#allocation46_spill] sm:$0xff] %v5304_v4  ;;  %3572 = vmatmul.mubr.f32.gmra.mxu0 %v6136_v15  ;;  %3257 = vmatmul.mubr.msk.f32.gmra.mxu1 %vm526_vm0, %v6137_v17  ;;  %v6144_v15 = vld [vmem:[#allocation67_spill] sm:$0xff] }
 0x110   : > { %3574 = vmatprep.mubr.f32.mxu0 %v6138_v57  ;;  %2236 = vmatprep.mubr.f32.mxu1 %v6139_v10 }
 0x111   : > { %v5315_v18 = vpop.f32.mrf.mxu1  ;;  %3606 = vmatpush3.msra.mxu0 %v3239_v42 }
 0x112   : > { %6140 = vst [vmem:[#allocation29_spill] sm:$0xff] %v5315_v18  ;;  %3607 = vmatprep.subr.mxu0 %v3238_v63  ;;  %v6145_v18 = vld [vmem:[#allocation9_spill] sm:$0xff] }
 0x113   : > { %3575 = vmatmul.mubr.f32.gmra.mxu0 %v6141_v35  ;;  %2237 = vmatmul.mubr.f32.gmra.mxu1 %v6142_v44  ;;  %v5319_v4 = vpop.f32.mrf.mxu1 }
 0x114   : > { %6143 = vst [vmem:[#allocation47_spill] sm:$0xff] %v5319_v4  ;;  %2241 = vmatprep.mubr.f32.mxu1 %v6144_v15  ;;  %3608 = vmatpush3.msra.mxu0 %v3238_v63  ;;  %v6146_v4 = vld [vmem:[#allocation68_spill] sm:$0xff] }
 0x115   : > { %3609 = vmatprep.mubr.f32.mxu0 %v6110_v49 }
 0x116   : > { %v1237_v17 = vpop.f32.mrf.mxu0  ;;  %v5323_v36 = vpop.f32.mrf.mxu1 }
 0x117   : > { %v5326_v10 = vadd.f32 %v5224_v22, %v1237_v17  ;;  %3258 = vmatmul.mubr.msk.f32.gmra.mxu1 %vm526_vm0, %v6145_v18  ;;  %3610 = vmatmul.mubr.f32.vlgmr.msra.gmra.mxu0 %v6111_v43  ;;  %v6147_v22 = vld [vmem:[#allocation13_spill] sm:$0xff] }
 0x118   : > { %v1239_v44 = vpop.f32.mrf.mxu0  ;;  %v5332_v42 = vpop.f32.mrf.mxu1  ;;  %2246 = vmatprep.mubr.f32.mxu1 %v6146_v4  ;;  %3612 = vmatprep.mubr.f32.mxu0 %v6112_v11 }
 0x119   : > { %v6148_v44 = vld [vmem:[#allocation16_spill] sm:$0xff] }
 0x11a   : > { %v1242_v49 = vpop.f32.mrf.mxu0 }
 0x11b   : > { %v5337_v15 = vadd.f32 %v5210_v3, %v1242_v49  ;;  %v5339_v63 = vpop.f32.mrf.mxu1  ;;  %2247 = vmatmul.mubr.f32.gmra.mxu1 %v6147_v22  ;;  %3613 = vmatmul.mubr.f32.gmra.mxu0 %v6113_v45  ;;  %v6149_v22 = vld [vmem:[#allocation22_spill] sm:$0xff] }
 0x11c   : > { %v1244_v18 = vpop.f32.mrf.mxu0  ;;  %2251 = vmatprep.mubr.f32.mxu1 %v4797_v12  ;;  %3615 = vmatprep.mubr.f32.mxu0 %v6114_v0 }
 0x11d   : > { %v5345_v43 = vpop.f32.mrf.mxu1 }
 0x11e   : > { %v1247_v4 = vpop.f32.mrf.mxu0 }
 0x11f   : > { %v5348_v11 = vadd.f32 %v5236_v53, %v1247_v4  ;;  %v5350_v17 = vpop.f32.mrf.mxu1  ;;  %3259 = vmatmul.mubr.msk.f32.gmra.mxu1 %vm526_vm0, %v4157_v31  ;;  %3616 = vmatmul.mubr.f32.gmra.mxu0 %v6115_v26 }
 0x120   : > { %v1249_v45 = vpop.f32.mrf.mxu0  ;;  %2256 = vmatprep.mubr.f32.mxu1 %v4812_v55  ;;  %3618 = vmatprep.mubr.f32.mxu0 %v6116_v28 }
 0x121   : > { %v5358_v0 = vpop.f32.mrf.mxu1  ;;  %v519_v45 = vld [vmem:[%s443_s8 + $0x10] sm:$0x3] }
 0x122   : > { %v1252_v12 = vpop.f32.mrf.mxu0 }
 0x123   : > { %v5361_v3 = vadd.f32 %v5229_v33, %v1252_v12  ;;  %v5363_v53 = vpop.f32.mrf.mxu1  ;;  %2257 = vmatmul.mubr.f32.gmra.mxu1 %v6148_v44  ;;  %3619 = vmatmul.mubr.f32.gmra.mxu0 %v6117_v41 }
 0x124   : > { %v1254_v31 = vpop.f32.mrf.mxu0  ;;  %2261 = vmatprep.mubr.f32.mxu1 %v4832_v23  ;;  %3621 = vmatprep.mubr.f32.mxu0 %v6118_v30 }
 0x125   : > { %v5369_v55 = vpop.f32.mrf.mxu1 }
 0x126   : > { %v1257_v28 = vpop.f32.mrf.mxu0 }
 0x127   : > { %v5372_v26 = vadd.f32 %v5249_v46, %v1257_v28  ;;  %v5374_v49 = vpop.f32.mrf.mxu1  ;;  %3260 = vmatmul.mubr.msk.f32.gmra.mxu1 %vm526_vm0, %v6078_v59  ;;  %3622 = vmatmul.mubr.f32.gmra.mxu0 %v6119_v56 }
 0x128   : > { %v1259_v33 = vpop.f32.mrf.mxu0  ;;  %2266 = vmatprep.mubr.f32.mxu1 %v4847_v1  ;;  %3624 = vmatprep.mubr.f32.mxu0 %v6120_v7 }
 0x129   : > { %v5382_v23 = vpop.f32.mrf.mxu1 }
 0x12a   : > { %v1262_v30 = vpop.f32.mrf.mxu0 }
 0x12b   : > { %v5385_v41 = vadd.f32 %v5247_v54, %v1262_v30  ;;  %v5387_v46 = vpop.f32.mrf.mxu1  ;;  %2267 = vmatmul.mubr.f32.gmra.mxu1 %v4245_v8  ;;  %3625 = vmatmul.mubr.f32.gmra.mxu0 %v6121_v13 }
 0x12c   : > { %v1264_v59 = vpop.f32.mrf.mxu0  ;;  %2271 = vmatprep.mubr.f32.mxu1 %v6149_v22  ;;  %3627 = vmatprep.mubr.f32.mxu0 %v6122_v24 }
 0x12d   : > { %v5393_v1 = vpop.f32.mrf.mxu1 }
 0x12e   : > { %v1267_v56 = vpop.f32.mrf.mxu0 }
 0x12f   : > { %v5397_v7 = vadd.f32 %v5264_v6, %v1267_v56  ;;  %v5399_v54 = vpop.f32.mrf.mxu1  ;;  %3261 = vmatmul.mubr.msk.f32.gmra.mxu1 %vm526_vm0, %v6083_v19  ;;  %3628 = vmatmul.mubr.f32.gmra.mxu0 %v6123_v38  ;;  %v517_v19 = vld [vmem:[%s443_s8] sm:$0xff] }
 0x130   : > { %v1269_v8 = vpop.f32.mrf.mxu0  ;;  %2276 = vmatprep.mubr.f32.mxu1 %v4882_v37  ;;  %3630 = vmatprep.mubr.f32.mxu0 %v6124_v27  ;;  %v518_v27 = vld [vmem:[%s443_s8 + $0x8] sm:$0xff] }
 0x131   : > { %v5410_v13 = vpop.f32.mrf.mxu1 }
 0x132   : > { %v1272_v24 = vpop.f32.mrf.mxu0 }
 0x133   : > { %v5413_v6 = vadd.f32 %v5258_v61, %v1272_v24  ;;  %v5415_v18 = vpop.f32.mrf.mxu1  ;;  %2277 = vmatmul.mubr.f32.gmra.mxu1 %v6077_v40  ;;  %3631 = vmatmul.mubr.f32.gmra.mxu0 %v6125_v48  ;;  %v3686_v61 = vld [vmem:[%s5876_s4] ss:$0 sm:$0xff] }
 0x134   : > { %v1274_v37 = vpop.f32.mrf.mxu0  ;;  %2281 = vmatprep.mubr.f32.mxu1 %v4902_v52  ;;  %3633 = vmatprep.mubr.f32.mxu0 %v6126_v62  ;;  %v757_v4 = vmul.f32 %v3686_v61, %v517_v19  ;;  %v758_v31 = vmul.f32 %v3686_v61, %v518_v27  ;;  %v759_v28 = vmul.f32 %v3686_v61, %v519_v45  ;;  %v6153_v27 = vld [vmem:[#allocation59_spill] sm:$0xff] }
 0x135   : > { %v5421_v38 = vpop.f32.mrf.mxu1 }
 0x137   : > { %v1277_v12 = vpop.f32.mrf.mxu0  ;;  %v1687_v44 = vpop.f32.mrf.mxu1  ;;  %3262 = vmatmul.mubr.msk.f32.gmra.mxu1 %vm526_vm0, %v6087_v50  ;;  %3634 = vmatmul.mubr.f32.gmra.mxu0 %v6127_v32  ;;  %v3687_v50 = vld [vmem:[%s5877_s5] ss:$0 sm:$0xff] }
 0x138   : > { %v5431_v40 = vadd.f32 %v5280_v39, %v1277_v12  ;;  %v5434_v52 = vadd.f32 %v1687_v44, %v5326_v10  ;;  %2286 = vmatprep.mubr.f32.mxu1 %v4917_v51  ;;  %3636 = vmatprep.mubr.f32.mxu0 %v6128_v25  ;;  %v760_v33 = vadd.f32 %v3687_v50, %v757_v4 }
 0x139   : > { %v1279_v62 = vpop.f32.mrf.mxu0  ;;  %v1689_v48 = vpop.f32.mrf.mxu1  ;;  %v761_v59 = vadd.f32 %v3687_v50, %v758_v31  ;;  %v762_v22 = vadd.f32 %v3687_v50, %v759_v28  ;;  %v6155_v31 = vld [vmem:[#allocation40_spill] sm:$0xff]  ;;  %v6157_v28 = vld [vmem:[#allocation46_spill] sm:$0xff] }
 0x13a   : > { %v763_v56 = vmax.f32 %v760_v33, 0.0 }
 0x13b   : > { %v1282_v32 = vpop.f32.mrf.mxu0  ;;  %v1692_v30 = vpop.f32.mrf.mxu1  ;;  %2287 = vmatmul.mubr.f32.gmra.mxu1 %v6082_v47  ;;  %3637 = vmatmul.mubr.f32.gmra.mxu0 %v6129_v29  ;;  %v764_v29 = vmax.f32 %v761_v59, 0.0 }
 0x13c   : > { %v5444_v39 = vadd.f32 %v5271_v5, %v1282_v32  ;;  %v5447_v51 = vadd.f32 %v1692_v30, %v5337_v15  ;;  %2291 = vmatprep.mubr.f32.mxu1 %v4937_v14  ;;  %3639 = vmatprep.mubr.f32.mxu0 %v6130_v9  ;;  %v765_v15 = vmax.f32 %v762_v22, 0.0  ;;  %v766_v19 = vsel %vm526_vm0, %v763_v56, 0.0  ;;  %v6158_v32 = vld [vmem:[#allocation23_spill] sm:$0xff] }
 0x13d   : > { %v1284_v25 = vpop.f32.mrf.mxu0  ;;  %v1694_v10 = vpop.f32.mrf.mxu1  ;;  %v5475_v45 = vmul.f32 0.0, %v766_v19  ;;  %v5477_v12 = vmul.f32 0.0, %v764_v29  ;;  %v6162_v29 = vld [vmem:[#allocation64_spill] sm:$0xff] }
 0x13f   : > { %v1287_v8 = vpop.f32.mrf.mxu0  ;;  %v1697_v24 = vpop.f32.mrf.mxu1  ;;  %3263 = vmatmul.mubr.msk.f32.gmra.mxu1 %vm526_vm0, %v6091_v21  ;;  %3640 = vmatmul.mubr.f32.gmra.mxu0 %v6131_v58  ;;  %v6150_v58 = vld [vmem:[#allocation58_spill] sm:$0xff]  ;;  %v2081_v59 = vrot.slane %v5475_v45, 2  ;;  %v2082_v22 = vrot.slane %v5477_v12, 2 }
 0x140   : > { %v5456_v47 = vadd.f32 %v5293_v60, %v1287_v8  ;;  %v5459_v14 = vadd.f32 %v1697_v24, %v5348_v11  ;;  %2296 = vmatprep.mubr.f32.mxu1 %v4952_v34  ;;  %3642 = vmatprep.mubr.f32.mxu0 %v4583_v16  ;;  %v6151_v60 = vld [vmem:[#allocation27_spill] sm:$0xff]  ;;  %v6152_v16 = vld [vmem:[#allocation25_spill] sm:$0xff] }
 0x141   : > { %v1289_v9 = vpop.f32.mrf.mxu0  ;;  %v1699_v5 = vpop.f32.mrf.mxu1  ;;  %v6159_v24 = vld [vmem:[#allocation41_spill] sm:$0xff] }
 0x143   : > { %v1292_v21 = vpop.f32.mrf.mxu0  ;;  %v1702_v37 = vpop.f32.mrf.mxu1  ;;  %2297 = vmatmul.mubr.f32.gmra.mxu1 %v6086_v2  ;;  %3643 = vmatmul.mubr.f32.gmra.mxu0 %v6150_v58  ;;  %v768_v2 = vsel %vm531_vm1, %v765_v15, 0.0 }
 0x144   : > { %v5468_v11 = vadd.f32 %v6151_v60, %v1292_v21  ;;  %v5471_v34 = vadd.f32 %v1702_v37, %v5361_v3  ;;  %2301 = vmatprep.mubr.f32.mxu1 %v6152_v16  ;;  %3645 = vmatprep.mubr.f32.mxu0 %v6153_v27  ;;  %v6156_v3 = vld [vmem:[#allocation61_spill] sm:$0xff]  ;;  %v5493_v30 = vmul.f32 0.0, %v768_v2  ;;  %v2083_v37 = vsel %vm944_vm2, %v2081_v59, %v2082_v22  ;;  %v6163_v16 = vld [vmem:[#allocation43_spill] sm:$0xff] }
 0x145   : > { %v1294_v61 = vpop.f32.mrf.mxu0  ;;  %v1704_v4 = vpop.f32.mrf.mxu1 }
 0x146   : > { %v2084_v15 = vrot.slane %v5493_v30, 2  ;;  %v6166_v4 = vld [vmem:[#allocation28_spill] sm:$0xff] }
 0x147   : > { %v1297_v62 = vpop.f32.mrf.mxu0  ;;  %v1707_v48 = vpop.f32.mrf.mxu1  ;;  %3264 = vmatmul.mubr.msk.f32.gmra.mxu1 %vm526_vm0, %v6155_v31  ;;  %3646 = vmatmul.mubr.f32.gmra.mxu0 %v6156_v3  ;;  %v6167_v3 = vld [vmem:[#allocation48_spill] sm:$0xff] }
 0x148   : > { %v5486_v50 = vadd.f32 %v6157_v28, %v1297_v62  ;;  %v5489_v33 = vadd.f32 %v1707_v48, %v5372_v26  ;;  %2306 = vmatprep.mubr.f32.mxu1 %v6158_v32  ;;  %3648 = vmatprep.mubr.f32.mxu0 %v6138_v57  ;;  %v6160_v26 = vld [vmem:[#allocation39_spill] sm:$0xff]  ;;  %v2085_v44 = vsel %vm944_vm2, %v2082_v22, %v2084_v15  ;;  %v6168_v32 = vld [vmem:[#allocation32_spill] sm:$0xff]  ;;  %v6171_v15 = vld [vmem:[#allocation53_spill] sm:$0xff] }
 0x149   : > { %v1299_v25 = vpop.f32.mrf.mxu0  ;;  %v1709_v10 = vpop.f32.mrf.mxu1  ;;  %v6161_v57 = vld [vmem:[#allocation19_spill] sm:$0xff] }
 0x14b   : > { %v1302_v56 = vpop.f32.mrf.mxu0  ;;  %v1712_v8 = vpop.f32.mrf.mxu1  ;;  %2307 = vmatmul.mubr.f32.gmra.mxu1 %v6159_v24  ;;  %3649 = vmatmul.mubr.f32.gmra.mxu0 %v6141_v35  ;;  %v6164_v35 = vld [vmem:[#allocation65_spill] sm:$0xff]  ;;  %v6170_v24 = vld [vmem:[#allocation31_spill] sm:$0xff] }
 0x14c   : > { %v5500_v9 = vadd.f32 %v6160_v26, %v1302_v56  ;;  %v5503_v5 = vadd.f32 %v1712_v8, %v5385_v41  ;;  %2311 = vmatprep.mubr.f32.mxu1 %v6161_v57  ;;  %3651 = vmatprep.mubr.f32.mxu0 %v6162_v29  ;;  %v6165_v41 = vld [vmem:[#allocation47_spill] sm:$0xff] }
 0x14d   : > { %v1304_v19 = vpop.f32.mrf.mxu0  ;;  %v1714_v21 = vpop.f32.mrf.mxu1  ;;  %v6169_v56 = vld [vmem:[#allocation51_spill] sm:$0xff] }
 0x14e   : > { %v6172_v21 = vld [vmem:[#allocation20_spill] sm:$0xff] }
 0x14f   : > { %v1307_v58 = vpop.f32.mrf.mxu0  ;;  %v1717_v60 = vpop.f32.mrf.mxu1  ;;  %3265 = vmatmul.mubr.msk.f32.gmra.mxu1 %vm526_vm0, %v6163_v16  ;;  %3652 = vmatmul.mubr.f32.gmra.mxu0 %v6164_v35  ;;  %v6173_v16 = vld [vmem:[#allocation54_spill] sm:$0xff]  ;;  %v6174_v35 = vld [vmem:[#allocation36_spill] sm:$0xff] }
 0x150   : > { %v5514_v27 = vadd.f32 %v6165_v41, %v1307_v58  ;;  %v5517_v61 = vadd.f32 %v1717_v60, %v5397_v7  ;;  %2316 = vmatprep.mubr.f32.mxu1 %v6166_v4  ;;  %3654 = vmatprep.mubr.f32.mxu0 %v2083_v37 }
 0x151   : > { %v1309_v2 = vpop.f32.mrf.mxu0  ;;  %v1719_v62 = vpop.f32.mrf.mxu1 }
 0x152   : > { %v6175_v2 = vld [vmem:[#allocation56_spill] sm:$0xff] }
 0x153   : > { %v5521_v48 = vpop.f32.mrf.mxu0  ;;  %v1722_v31 = vpop.f32.mrf.mxu1  ;;  %2317 = vmatmul.mubr.f32.gmra.mxu1 %v6167_v3  ;;  %3655 = vmatmul.mubr.f32.gmra.mxu0 %v2085_v44 }
 0x154   : > { %v5525_v28 = vadd.f32 %v1722_v31, %v5413_v6  ;;  %2321 = vmatprep.mubr.f32.mxu1 %v6168_v32  ;;  %v6176_v31 = vld [vmem:[#allocation37_spill] sm:$0xff] }
 0x155   : > { %v1314_v7 = vpop.f32.mrf.mxu0  ;;  %v1724_v25 = vpop.f32.mrf.mxu1 }
 0x156   : > { %v2074_v7 = vrot.slane %v5475_v45, 1 }
 0x157   : > { %v1317_v10 = vpop.f32.mrf.mxu0  ;;  %v1727_v59 = vpop.f32.mrf.mxu1  ;;  %3266 = vmatmul.mubr.msk.f32.gmra.mxu1 %vm526_vm0, %v6169_v56 }
 0x158   : > { %v1543_v22 = vadd.f32 %v5332_v42, %v1317_v10  ;;  %v5533_v8 = vadd.f32 %v1727_v59, %v5431_v40  ;;  %2326 = vmatprep.mubr.f32.mxu1 %v6170_v24  ;;  %v6177_v59 = vld [vmem:[#allocation57_spill] sm:$0xff]  ;;  %v6178_v24 = vld [vmem:[#allocation35_spill] sm:$0xff] }
 0x159   : > { %v1319_v26 = vpop.f32.mrf.mxu0  ;;  %v1729_v6 = vpop.f32.mrf.mxu1 }
 0x15b   : > { %v1322_v57 = vpop.f32.mrf.mxu0  ;;  %v1732_v29 = vpop.f32.mrf.mxu1  ;;  %2327 = vmatmul.mubr.f32.gmra.mxu1 %v6171_v15 }
 0x15c   : > { %v5538_v19 = vadd.f32 %v1732_v29, %v5444_v39  ;;  %2331 = vmatprep.mubr.f32.mxu1 %v6172_v21  ;;  %v2077_v29 = vrot.slane %v5493_v30, 1 }
 0x15d   : > { %v1324_v37 = vpop.f32.mrf.mxu0  ;;  %v1734_v58 = vpop.f32.mrf.mxu1 }
 0x15e   : > { %v6179_v37 = vld [vmem:[#allocation60_spill] sm:$0xff] }
 0x15f   : > { %v1327_v60 = vpop.f32.mrf.mxu0  ;;  %v1737_v42 = vpop.f32.mrf.mxu1  ;;  %3267 = vmatmul.mubr.msk.f32.gmra.mxu1 %vm526_vm0, %v6173_v16 }
 0x160   : > { %v5545_v40 = vadd.f32 %v1737_v42, %v5456_v47  ;;  %2336 = vmatprep.mubr.f32.mxu1 %v6174_v35  ;;  %v2075_v47 = vrot.slane %v5477_v12, 1 }
 0x161   : > { %v1329_v41 = vpop.f32.mrf.mxu0  ;;  %v1739_v4 = vpop.f32.mrf.mxu1 }
 0x162   : > { %v2076_v6 = vsel %vm831_vm3, %v2074_v7, %v2075_v47 }
 0x163   : > { %v1332_v44 = vpop.f32.mrf.mxu0  ;;  %v1742_v39 = vpop.f32.mrf.mxu1  ;;  %2337 = vmatmul.mubr.f32.gmra.mxu1 %v6175_v2 }
 0x164   : > { %v5550_v62 = vadd.f32 %v1742_v39, %v5468_v11  ;;  %2341 = vmatprep.mubr.f32.mxu1 %v6176_v31  ;;  %v6180_v39 = vld [vmem:[#allocation29_spill] sm:$0xff] }
 0x165   : > { %v1334_v3 = vpop.f32.mrf.mxu0  ;;  %v1744_v32 = vpop.f32.mrf.mxu1  ;;  %v1538_v2 = vadd.f32 %v6180_v39, %v5521_v48 }
 0x167   : > { %v1337_v25 = vpop.f32.mrf.mxu0  ;;  %v1747_v10 = vpop.f32.mrf.mxu1  ;;  %3268 = vmatmul.mubr.msk.f32.gmra.mxu1 %vm526_vm0, %v6177_v59 }
 0x168   : > { %v5559_v56 = vadd.f32 %v1747_v10, %v5486_v50  ;;  %2346 = vmatprep.mubr.f32.mxu1 %v6178_v24  ;;  %v2078_v50 = vsel %vm831_vm3, %v2075_v47, %v2077_v29  ;;  %v1548_v24 = vadd.f32 %v5323_v36, %v1322_v57  ;;  %v1563_v39 = vadd.f32 %v5358_v0, %v1337_v25 }
 0x169   : > { %v1339_v11 = vpop.f32.mrf.mxu0  ;;  %v1749_v26 = vpop.f32.mrf.mxu1 }
 0x16b   : > { %v1342_v15 = vpop.f32.mrf.mxu0  ;;  %v1752_v21 = vpop.f32.mrf.mxu1  ;;  %2347 = vmatmul.mubr.f32.gmra.mxu1 %v6179_v37 }
 0x16c   : > { %v5566_v58 = vadd.f32 %v1752_v21, %v5500_v9  ;;  %2351 = vmatprep.mubr.f32.mxu1 %v2076_v6 }
 0x16d   : > { %v1344_v20 = vpop.f32.mrf.mxu0  ;;  %v1754_v42 = vpop.f32.mrf.mxu1 }
 0x16f   : > { %v1347_v16 = vpop.f32.mrf.mxu0  ;;  %v1757_v35 = vpop.f32.mrf.mxu1  ;;  %2352 = vmatmul.mubr.f32.gmra.mxu1 %v5475_v45 }
 0x170   : > { %v5571_v41 = vadd.f32 %v1757_v35, %v5514_v27  ;;  %2356 = vmatprep.mubr.f32.mxu1 %v2078_v50 }
 0x171   : > { %v1349_v30 = vpop.f32.mrf.mxu0  ;;  %v1759_v4 = vpop.f32.mrf.mxu1 }
 0x173   : > { %v1352_v9 = vpop.f32.mrf.mxu0  ;;  %v1762_v31 = vpop.f32.mrf.mxu1  ;;  %2357 = vmatmul.mubr.f32.gmra.mxu1 %v5477_v12  ;;  %v1553_v12 = vadd.f32 %v5345_v43, %v1327_v60 }
 0x174   : > { %v5576_v3 = vadd.f32 %v1762_v31, %v1538_v2 }
 0x175   : > { %v1354_v32 = vpop.f32.mrf.mxu0  ;;  %v1764_v7 = vpop.f32.mrf.mxu1 }
 0x176   : > { %v1568_v7 = vadd.f32 %v5350_v17, %v1342_v15 }
 0x177   : > { %v1357_v47 = vpop.f32.mrf.mxu0  ;;  %v1767_v10 = vpop.f32.mrf.mxu1 }
 0x178   : > { %v5578_v45 = vadd.f32 %v1767_v10, %v1543_v22  ;;  %v1558_v22 = vadd.f32 %v5339_v63, %v1332_v44 }
 0x179   : > { %v1359_v27 = vpop.f32.mrf.mxu0  ;;  %v1769_v59 = vpop.f32.mrf.mxu1 }
 0x17b   : > { %v1362_v11 = vpop.f32.mrf.mxu0  ;;  %v1772_v26 = vpop.f32.mrf.mxu1 }
 0x17c   : > { %v5581_v6 = vadd.f32 %v1772_v26, %v1548_v24  ;;  %v1573_v24 = vadd.f32 %v5369_v55, %v1347_v16 }
 0x17d   : > { %v1364_v48 = vpop.f32.mrf.mxu0  ;;  %v1774_v29 = vpop.f32.mrf.mxu1 }
 0x17f   : > { %v1367_v21 = vpop.f32.mrf.mxu0  ;;  %v1777_v37 = vpop.f32.mrf.mxu1 }
 0x180   : > { %v5584_v20 = vadd.f32 %v1777_v37, %v1553_v12  ;;  %v1578_v12 = vadd.f32 %v5363_v53, %v1352_v9 }
 0x181   : > { %v1369_v42 = vpop.f32.mrf.mxu0  ;;  %v1779_v50 = vpop.f32.mrf.mxu1 }
 0x183   : > { %v1372_v35 = vpop.f32.mrf.mxu0  ;;  %v1782_v30 = vpop.f32.mrf.mxu1 }
 0x184   : > { %v5587_v4 = vadd.f32 %v1782_v30, %v1558_v22  ;;  %v1583_v22 = vadd.f32 %v5382_v23, %v1357_v47 }
 0x185   : > { %v1374_v36 = vpop.f32.mrf.mxu0  ;;  %v1784_v57 = vpop.f32.mrf.mxu1 }
 0x187   : > { %v1377_v2 = vpop.f32.mrf.mxu0  ;;  %v1787_v31 = vpop.f32.mrf.mxu1 }
 0x188   : > { %v5590_v32 = vadd.f32 %v1787_v31, %v1563_v39  ;;  %v1588_v31 = vadd.f32 %v5374_v49, %v1362_v11 }
 0x189   : > { %v1379_v43 = vpop.f32.mrf.mxu0  ;;  %v1789_v60 = vpop.f32.mrf.mxu1 }
 0x18b   : > { %v1382_v10 = vpop.f32.mrf.mxu0  ;;  %v1792_v27 = vpop.f32.mrf.mxu1 }
 0x18c   : > { %v5593_v59 = vadd.f32 %v1792_v27, %v1568_v7  ;;  %v1593_v27 = vadd.f32 %v5393_v1, %v1367_v21 }
 0x18d   : > { %v1384_v63 = vpop.f32.mrf.mxu0  ;;  %v1794_v44 = vpop.f32.mrf.mxu1 }
 0x18f   : > { %v1387_v26 = vpop.f32.mrf.mxu0  ;;  %v1797_v48 = vpop.f32.mrf.mxu1 }
 0x190   : > { %v5596_v29 = vadd.f32 %v1797_v48, %v1573_v24  ;;  %v1598_v48 = vadd.f32 %v5387_v46, %v1372_v35 }
 0x191   : > { %v1389_v0 = vpop.f32.mrf.mxu0  ;;  %v1799_v25 = vpop.f32.mrf.mxu1 }
 0x193   : > { %v1392_v37 = vpop.f32.mrf.mxu0  ;;  %v1802_v42 = vpop.f32.mrf.mxu1 }
 0x194   : > { %v5599_v50 = vadd.f32 %v1802_v42, %v1578_v12  ;;  %v1603_v42 = vadd.f32 %v5410_v13, %v1377_v2 }
 0x195   : > { %v1394_v17 = vpop.f32.mrf.mxu0  ;;  %v1804_v15 = vpop.f32.mrf.mxu1 }
 0x197   : > { %v1807_v30 = vpop.f32.mrf.mxu1  ;;  %v3531_v36 = vpop.f32.mrf.mxu0 }
 0x198   : > { %v5602_v57 = vadd.f32 %v1807_v30, %v1583_v22  ;;  %v5605_v55 = vadd.f32 %v3531_v36, %v5447_v51  ;;  %v1608_v30 = vadd.f32 %v5399_v54, %v1382_v10 }
 0x199   : > { %v1809_v16 = vpop.f32.mrf.mxu1  ;;  %v1912_v39 = vpop.f32.mrf.mxu0 }
 0x19a   : > { %v5609_v53 = vadd.f32 %v1912_v39, %v5434_v52 }
 0x19b   : > { %v1812_v9 = vpop.f32.mrf.mxu1  ;;  %v3534_v43 = vpop.f32.mrf.mxu0 }
 0x19c   : > { %v5611_v60 = vadd.f32 %v1812_v9, %v1588_v31  ;;  %v5614_v23 = vadd.f32 %v3534_v43, %v5471_v34  ;;  %v1613_v31 = vadd.f32 %v5421_v38, %v1387_v26 }
 0x19d   : > { %v1814_v47 = vpop.f32.mrf.mxu1  ;;  %v1922_v7 = vpop.f32.mrf.mxu0 }
 0x19e   : > { %v5618_v51 = vadd.f32 %v1922_v7, %v5459_v14  ;;  %v1618_v7 = vadd.f32 %v5415_v18, %v1392_v37 }
 0x19f   : > { %v1817_v63 = vpop.f32.mrf.mxu1  ;;  %v3537_v44 = vpop.f32.mrf.mxu0 }
 0x1a0   : > { %v5620_v49 = vadd.f32 %v1817_v63, %v1593_v27  ;;  %v5623_v52 = vadd.f32 %v3537_v44, %v5503_v5 }
 0x1a1   : > { %v1819_v11 = vpop.f32.mrf.mxu1  ;;  %v1932_v24 = vpop.f32.mrf.mxu0 }
 0x1a2   : > { %v5627_v34 = vadd.f32 %v1932_v24, %v5489_v33 }
 0x1a3   : > { %v1822_v0 = vpop.f32.mrf.mxu1  ;;  %v3540_v25 = vpop.f32.mrf.mxu0 }
 0x1a4   : > { %v5629_v1 = vadd.f32 %v1822_v0, %v1598_v48  ;;  %v5632_v14 = vadd.f32 %v3540_v25, %v5525_v28 }
 0x1a5   : > { %v1824_v21 = vpop.f32.mrf.mxu1  ;;  %v1942_v12 = vpop.f32.mrf.mxu0 }
 0x1a6   : > { %v5636_v5 = vadd.f32 %v1942_v12, %v5517_v61 }
 0x1a7   : > { %v1827_v17 = vpop.f32.mrf.mxu1  ;;  %v3543_v15 = vpop.f32.mrf.mxu0 }
 0x1a8   : > { %v5638_v46 = vadd.f32 %v1827_v17, %v1603_v42  ;;  %v5641_v33 = vadd.f32 %v3543_v15, %v5538_v19 }
 0x1a9   : > { %v1829_v35 = vpop.f32.mrf.mxu1  ;;  %v1952_v22 = vpop.f32.mrf.mxu0 }
 0x1aa   : > { %v5645_v28 = vadd.f32 %v1952_v22, %v5533_v8 }
 0x1ab   : > { %v1832_v36 = vpop.f32.mrf.mxu1  ;;  %v3546_v16 = vpop.f32.mrf.mxu0 }
 0x1ac   : > { %v1833_v13 = vadd.f32 %v1832_v36, %v1608_v30  ;;  %v5648_v61 = vadd.f32 %v3546_v16, %v5550_v62 }
 0x1ad   : > { %v1834_v2 = vpop.f32.mrf.mxu1  ;;  %v1962_v39 = vpop.f32.mrf.mxu0 }
 0x1ae   : > { %v5652_v19 = vadd.f32 %v1962_v39, %v5545_v40 }
 0x1af   : > { %v1837_v9 = vpop.f32.mrf.mxu1  ;;  %v3549_v43 = vpop.f32.mrf.mxu0 }
 0x1b0   : > { %v1838_v47 = vadd.f32 %v1837_v9, %v1613_v31  ;;  %v5655_v54 = vadd.f32 %v3549_v43, %v5566_v58 }
 0x1b1   : > { %v1839_v8 = vpop.f32.mrf.mxu1  ;;  %v1972_v10 = vpop.f32.mrf.mxu0 }
 0x1b2   : > { %v5659_v62 = vadd.f32 %v1972_v10, %v5559_v56 }
 0x1b3   : > { %v1842_v27 = vpop.f32.mrf.mxu1  ;;  %v3552_v63 = vpop.f32.mrf.mxu0 }
 0x1b4   : > { %v1843_v44 = vadd.f32 %v1842_v27, %v1618_v7  ;;  %v5662_v38 = vadd.f32 %v3552_v63, %v5576_v3 }
 0x1b5   : > { %v1844_v40 = vpop.f32.mrf.mxu1  ;;  %v1982_v26 = vpop.f32.mrf.mxu0 }
 0x1b6   : > { %v5665_v11 = vadd.f32 %v1982_v26, %v5571_v41 }
 0x1b7   : > { %v3555_v58 = vpop.f32.mrf.mxu0  ;;  %v2203_v24 = vpop.f32.mrf.mxu1 }
 0x1b8   : > { %v5668_v48 = vadd.f32 %v3555_v58, %v5581_v6 }
 0x1b9   : > { %v1992_v18 = vpop.f32.mrf.mxu0  ;;  %v2205_v37 = vpop.f32.mrf.mxu1 }
 0x1ba   : > { %v5671_v56 = vadd.f32 %v1992_v18, %v5578_v45 }
 0x1bb   : > { %v3558_v0 = vpop.f32.mrf.mxu0  ;;  %v2208_v25 = vpop.f32.mrf.mxu1 }
 0x1bc   : > { %v5674_v3 = vadd.f32 %v3558_v0, %v5587_v4 }
 0x1bd   : > { %v2002_v21 = vpop.f32.mrf.mxu0  ;;  %v2210_v12 = vpop.f32.mrf.mxu1 }
 0x1be   : > { %v5677_v41 = vadd.f32 %v2002_v21, %v5584_v20 }
 0x1bf   : > { %v3561_v42 = vpop.f32.mrf.mxu0  ;;  %v2213_v17 = vpop.f32.mrf.mxu1 }
 0x1c0   : > { %v5680_v6 = vadd.f32 %v3561_v42, %v5593_v59 }
 0x1c1   : > { %v2012_v15 = vpop.f32.mrf.mxu0  ;;  %v2215_v35 = vpop.f32.mrf.mxu1 }
 0x1c2   : > { %v5683_v45 = vadd.f32 %v2012_v15, %v5590_v32 }
 0x1c3   : > { %v3564_v22 = vpop.f32.mrf.mxu0  ;;  %v2218_v30 = vpop.f32.mrf.mxu1 }
 0x1c4   : > { %v5686_v4 = vadd.f32 %v3564_v22, %v5599_v50 }
 0x1c5   : > { %v2022_v36 = vpop.f32.mrf.mxu0  ;;  %v2220_v16 = vpop.f32.mrf.mxu1 }
 0x1c6   : > { %v5689_v20 = vadd.f32 %v2022_v36, %v5596_v29 }
 0x1c7   : > { %v3567_v2 = vpop.f32.mrf.mxu0  ;;  %v2223_v39 = vpop.f32.mrf.mxu1 }
 0x1c8   : > { %v5692_v59 = vadd.f32 %v3567_v2, %v5611_v60 }
 0x1c9   : > { %v2032_v31 = vpop.f32.mrf.mxu0  ;;  %v2225_v9 = vpop.f32.mrf.mxu1 }
 0x1ca   : > { %v5695_v32 = vadd.f32 %v2032_v31, %v5602_v57 }
 0x1cb   : > { %v3570_v43 = vpop.f32.mrf.mxu0  ;;  %v2228_v8 = vpop.f32.mrf.mxu1 }
 0x1cc   : > { %v5698_v50 = vadd.f32 %v3570_v43, %v5629_v1 }
 0x1cd   : > { %v2042_v10 = vpop.f32.mrf.mxu0  ;;  %v2230_v7 = vpop.f32.mrf.mxu1 }
 0x1ce   : > { %v5701_v29 = vadd.f32 %v2042_v10, %v5620_v49 }
 0x1cf   : > { %v3573_v27 = vpop.f32.mrf.mxu0  ;;  %v5703_v63 = vpop.f32.mrf.mxu1 }
 0x1d0   : > { %v5705_v60 = vadd.f32 %v3573_v27, %v1833_v13 }
 0x1d1   : > { %v2052_v40 = vpop.f32.mrf.mxu0  ;;  %v2235_v26 = vpop.f32.mrf.mxu1 }
 0x1d2   : > { %v5708_v57 = vadd.f32 %v2052_v40, %v5638_v46 }
 0x1d3   : > { %v3576_v58 = vpop.f32.mrf.mxu0  ;;  %v2238_v18 = vpop.f32.mrf.mxu1 }
 0x1d4   : > { %v5710_v1 = vadd.f32 %v3576_v58, %v1843_v44 }
 0x1d5   : > { %v2062_v37 = vpop.f32.mrf.mxu0  ;;  %v2240_v0 = vpop.f32.mrf.mxu1 }
 0x1d6   : > { %v5712_v21 = vadd.f32 %v2062_v37, %v1838_v47 }
 0x1d7   : > { %v5714_v49 = vpop.f32.mrf.mxu1  ;;  %v3611_v12 = vpop.f32.mrf.mxu0 }
 0x1d8   : > { %v2434_v42 = vadd.f32 %v3611_v12, %v2208_v25 }
 0x1d9   : > { %v2245_v13 = vpop.f32.mrf.mxu1  ;;  %v2428_v15 = vpop.f32.mrf.mxu0 }
 0x1da   : > { %v2588_v35 = vadd.f32 %v2434_v42, %v5605_v55  ;;  %v2429_v22 = vadd.f32 %v2428_v15, %v2203_v24 }
 0x1db   : > { %v5717_v46 = vpop.f32.mrf.mxu1  ;;  %v3614_v36 = vpop.f32.mrf.mxu0 }
 0x1dc   : > { %v2761_v47 = vrot.slane %v2588_v35, 7  ;;  %v2587_v44 = vadd.f32 %v2429_v22, %v5609_v53  ;;  %v2444_v16 = vadd.f32 %v3614_v36, %v2218_v30  ;;  %v2657_v25 = vmul.f32 %v2588_v35, %v2588_v35 }
 0x1dd   : > { %v2250_v2 = vpop.f32.mrf.mxu1  ;;  %v2438_v55 = vpop.f32.mrf.mxu0 }
 0x1de   : > { %v2872_v24 = vsel %vm2725_vm4, %v2761_v47, 0.0  ;;  %v2619_v31 = vadd.f32 %v2588_v35, %v2587_v44  ;;  %v2656_v9 = vmul.f32 %v2587_v44, %v2587_v44  ;;  %v2760_v43 = vrot.slane %v2587_v44, 7 }
 0x1df   : > { %2890 = vst [vmem:[%s5723_s9 + $0x10] sm:$0x3] %v2872_v24  ;;  %v2590_v10 = vadd.f32 %v2444_v16, %v5614_v23  ;;  %v2439_v7 = vadd.f32 %v2438_v55, %v2213_v17  ;;  %v5729_v27 = vpop.f32.mrf.mxu1  ;;  %v3617_v40 = vpop.f32.mrf.mxu0 }
 0x1e0   : > { %v2688_v26 = vadd.f32 %v2657_v25, %v2656_v9  ;;  %v2762_v53 = vsel %vm2725_vm4, %v2760_v43, %v2761_v47  ;;  %v2856_v30 = vsel %vm2725_vm4, 0.0, %v2760_v43  ;;  %v2454_v58 = vadd.f32 %v3617_v40, %v2228_v8 }
 0x1e1   : > { %2888 = vst [vmem:[%s5723_s9] sm:$0xff] %v2856_v30  ;;  %2889 = vst [vmem:[%s5723_s9 + $0x8] sm:$0xff] %v2762_v53  ;;  %v2764_v37 = vrot.slane %v2590_v10, 7  ;;  %v2589_v0 = vadd.f32 %v2439_v7, %v5618_v51  ;;  %v2255_v12 = vpop.f32.mrf.mxu1  ;;  %v2448_v42 = vpop.f32.mrf.mxu0  ;;  %v2659_v47 = vmul.f32 %v2590_v10, %v2590_v10 }
 0x1e2   : > { %v2592_v23 = vadd.f32 %v2454_v58, %v5623_v52  ;;  %v2449_v17 = vadd.f32 %v2448_v42, %v2223_v39 }
 0x1e3   : > { %v2873_v13 = vsel %vm2725_vm4, %v2764_v37, 0.0  ;;  %v2620_v15 = vadd.f32 %v2619_v31, %v2589_v0  ;;  %v2658_v35 = vmul.f32 %v2589_v0, %v2589_v0  ;;  %v2763_v22 = vrot.slane %v2589_v0, 7  ;;  %v2258_v36 = vpop.f32.mrf.mxu1  ;;  %v3620_v8 = vpop.f32.mrf.mxu0 }
 0x1e4   : > { %2893 = vst [vmem:[%s5723_s9 + $0x28] sm:$0x3] %v2873_v13  ;;  %v2767_v44 = vrot.slane %v2592_v23, 7  ;;  %v2591_v51 = vadd.f32 %v2449_v17, %v5627_v34  ;;  %v2464_v16 = vadd.f32 %v3620_v8, %v2238_v18  ;;  %v2661_v53 = vmul.f32 %v2592_v23, %v2592_v23 }
 0x1e5   : > { %v2689_v25 = vadd.f32 %v2688_v26, %v2658_v35  ;;  %v2765_v52 = vsel %vm2725_vm4, %v2763_v22, %v2764_v37  ;;  %v2857_v39 = vsel %vm2725_vm4, 0.0, %v2763_v22  ;;  %v2621_v2 = vadd.f32 %v2620_v15, %v2590_v10  ;;  %v2260_v55 = vpop.f32.mrf.mxu1  ;;  %v2458_v24 = vpop.f32.mrf.mxu0 }
 0x1e6   : > { %2891 = vst [vmem:[%s5723_s9 + $0x18] sm:$0xff] %v2857_v39  ;;  %2892 = vst [vmem:[%s5723_s9 + $0x20] sm:$0xff] %v2765_v52  ;;  %v2874_v31 = vsel %vm2725_vm4, %v2767_v44, 0.0  ;;  %v2660_v9 = vmul.f32 %v2591_v51, %v2591_v51  ;;  %v2766_v43 = vrot.slane %v2591_v51, 7  ;;  %v2594_v7 = vadd.f32 %v2464_v16, %v5632_v14 }
 0x1e7   : > { %2896 = vst [vmem:[%s5723_s9 + $0x40] sm:$0x3] %v2874_v31  ;;  %v2622_v34 = vadd.f32 %v2621_v2, %v2591_v51  ;;  %v2690_v18 = vadd.f32 %v2689_v25, %v2659_v47  ;;  %v2459_v40 = vadd.f32 %v2458_v24, %v5703_v63  ;;  %v2263_v26 = vpop.f32.mrf.mxu1  ;;  %v3623_v10 = vpop.f32.mrf.mxu0 }
 0x1e8   : > { %v2768_v30 = vsel %vm2725_vm4, %v2766_v43, %v2767_v44  ;;  %v2858_v58 = vsel %vm2725_vm4, 0.0, %v2766_v43  ;;  %v2770_v37 = vrot.slane %v2594_v7, 7  ;;  %v2474_v42 = vadd.f32 %v3623_v10, %v5717_v46 }
 0x1e9   : > { %v2691_v0 = vadd.f32 %v2690_v18, %v2660_v9  ;;  %2894 = vst [vmem:[%s5723_s9 + $0x30] sm:$0xff] %v2858_v58  ;;  %2895 = vst [vmem:[%s5723_s9 + $0x38] sm:$0xff] %v2768_v30  ;;  %v2593_v12 = vadd.f32 %v2459_v40, %v5636_v5  ;;  %v2623_v14 = vadd.f32 %v2622_v34, %v2592_v23  ;;  %v2265_v17 = vpop.f32.mrf.mxu1  ;;  %v2468_v13 = vpop.f32.mrf.mxu0 }
 0x1ea   : > { %v2875_v63 = vsel %vm2725_vm4, %v2770_v37, 0.0  ;;  %v2469_v15 = vadd.f32 %v2468_v13, %v5714_v49  ;;  %v2663_v16 = vmul.f32 %v2594_v7, %v2594_v7  ;;  %v2596_v5 = vadd.f32 %v2474_v42, %v5641_v33 }
 0x1eb   : > { %2899 = vst [vmem:[%s5723_s9 + $0x58] sm:$0x3] %v2875_v63  ;;  %v2624_v35 = vadd.f32 %v2623_v14, %v2593_v12  ;;  %v2662_v22 = vmul.f32 %v2593_v12, %v2593_v12  ;;  %v2692_v8 = vadd.f32 %v2691_v0, %v2661_v53  ;;  %v2769_v47 = vrot.slane %v2593_v12, 7  ;;  %v2268_v44 = vpop.f32.mrf.mxu1  ;;  %v3626_v51 = vpop.f32.mrf.mxu0 }
 0x1ec   : > { %v2595_v46 = vadd.f32 %v2469_v15, %v5645_v28  ;;  %v2484_v23 = vadd.f32 %v3626_v51, %v2258_v36  ;;  %v2773_v24 = vrot.slane %v2596_v5, 7  ;;  %v2665_v30 = vmul.f32 %v2596_v5, %v2596_v5 }
 0x1ed   : > { %v2693_v25 = vadd.f32 %v2692_v8, %v2662_v22  ;;  %v2771_v52 = vsel %vm2725_vm4, %v2769_v47, %v2770_v37  ;;  %v2859_v49 = vsel %vm2725_vm4, 0.0, %v2769_v47  ;;  %v2625_v39 = vadd.f32 %v2624_v35, %v2594_v7  ;;  %v2270_v2 = vpop.f32.mrf.mxu1  ;;  %v2478_v55 = vpop.f32.mrf.mxu0 }
 0x1ee   : > { %2897 = vst [vmem:[%s5723_s9 + $0x48] sm:$0xff] %v2859_v49  ;;  %2898 = vst [vmem:[%s5723_s9 + $0x50] sm:$0xff] %v2771_v52  ;;  %v2664_v31 = vmul.f32 %v2595_v46, %v2595_v46  ;;  %v2772_v9 = vrot.slane %v2595_v46, 7  ;;  %v2598_v28 = vadd.f32 %v2484_v23, %v5648_v61  ;;  %v2479_v36 = vadd.f32 %v2478_v55, %v5729_v27 }
 0x1ef   : > { %v2626_v33 = vadd.f32 %v2625_v39, %v2595_v46  ;;  %v2694_v43 = vadd.f32 %v2693_v25, %v2663_v16  ;;  %v2273_v34 = vpop.f32.mrf.mxu1  ;;  %v3629_v18 = vpop.f32.mrf.mxu0  ;;  %v2876_v7 = vsel %vm2725_vm4, %v2773_v24, 0.0 }
 0x1f0   : > { %v2774_v40 = vsel %vm2725_vm4, %v2772_v9, %v2773_v24  ;;  %v2860_v10 = vsel %vm2725_vm4, 0.0, %v2772_v9  ;;  %v2494_v53 = vadd.f32 %v3629_v18, %v2268_v44  ;;  %2902 = vst [vmem:[%s5723_s9 + $0x70] sm:$0x3] %v2876_v7  ;;  %v2776_v37 = vrot.slane %v2598_v28, 7 }
 0x1f1   : > { %v2695_v58 = vadd.f32 %v2694_v43, %v2664_v31  ;;  %2900 = vst [vmem:[%s5723_s9 + $0x60] sm:$0xff] %v2860_v10  ;;  %2901 = vst [vmem:[%s5723_s9 + $0x68] sm:$0xff] %v2774_v40  ;;  %v2597_v61 = vadd.f32 %v2479_v36, %v5652_v19  ;;  %v2275_v0 = vpop.f32.mrf.mxu1  ;;  %v2488_v27 = vpop.f32.mrf.mxu0  ;;  %v2627_v12 = vadd.f32 %v2626_v33, %v2596_v5 }
 0x1f2   : > { %v2600_v14 = vadd.f32 %v2494_v53, %v5655_v54  ;;  %v2489_v42 = vadd.f32 %v2488_v27, %v2263_v26  ;;  %v2877_v17 = vsel %vm2725_vm4, %v2776_v37, 0.0  ;;  %v2667_v8 = vmul.f32 %v2598_v28, %v2598_v28 }
 0x1f3   : > { %v2666_v13 = vmul.f32 %v2597_v61, %v2597_v61  ;;  %v2696_v63 = vadd.f32 %v2695_v58, %v2665_v30  ;;  %v2775_v15 = vrot.slane %v2597_v61, 7  ;;  %v2278_v35 = vpop.f32.mrf.mxu1  ;;  %v3632_v22 = vpop.f32.mrf.mxu0  ;;  %2905 = vst [vmem:[%s5723_s9 + $0x88] sm:$0x3] %v2877_v17  ;;  %v2628_v47 = vadd.f32 %v2627_v12, %v2597_v61 }
 0x1f4   : > { %v2779_v19 = vrot.slane %v2600_v14, 7  ;;  %v2599_v44 = vadd.f32 %v2489_v42, %v5659_v62  ;;  %v2504_v16 = vadd.f32 %v3632_v22, %v2278_v35  ;;  %v2669_v43 = vmul.f32 %v2600_v14, %v2600_v14 }
 0x1f5   : > { %v2697_v51 = vadd.f32 %v2696_v63, %v2666_v13  ;;  %v2777_v54 = vsel %vm2725_vm4, %v2775_v15, %v2776_v37  ;;  %v2861_v26 = vsel %vm2725_vm4, 0.0, %v2775_v15  ;;  %v2280_v5 = vpop.f32.mrf.mxu1  ;;  %v2498_v46 = vpop.f32.mrf.mxu0  ;;  %v2629_v25 = vadd.f32 %v2628_v47, %v2598_v28 }
 0x1f6   : > { %2903 = vst [vmem:[%s5723_s9 + $0x78] sm:$0xff] %v2861_v26  ;;  %2904 = vst [vmem:[%s5723_s9 + $0x80] sm:$0xff] %v2777_v54  ;;  %v2878_v23 = vsel %vm2725_vm4, %v2779_v19, 0.0  ;;  %v2668_v52 = vmul.f32 %v2599_v44, %v2599_v44  ;;  %v2778_v49 = vrot.slane %v2599_v44, 7  ;;  %v2602_v62 = vadd.f32 %v2504_v16, %v5662_v38 }
 0x1f7   : > { %2908 = vst [vmem:[%s5723_s9 + $0xa0] sm:$0x3] %v2878_v23  ;;  %v2698_v39 = vadd.f32 %v2697_v51, %v2667_v8  ;;  %v2499_v2 = vadd.f32 %v2498_v46, %v2273_v34  ;;  %v2283_v55 = vpop.f32.mrf.mxu1  ;;  %v3635_v24 = vpop.f32.mrf.mxu0  ;;  %v2630_v31 = vadd.f32 %v2629_v25, %v2599_v44 }
 0x1f8   : > { %v2780_v9 = vsel %vm2725_vm4, %v2778_v49, %v2779_v19  ;;  %v2862_v33 = vsel %vm2725_vm4, 0.0, %v2778_v49  ;;  %v2782_v28 = vrot.slane %v2602_v62, 7  ;;  %v2671_v42 = vmul.f32 %v2602_v62, %v2602_v62 }
 0x1f9   : > { %v2699_v36 = vadd.f32 %v2698_v39, %v2668_v52  ;;  %2906 = vst [vmem:[%s5723_s9 + $0x90] sm:$0xff] %v2862_v33  ;;  %2907 = vst [vmem:[%s5723_s9 + $0x98] sm:$0xff] %v2780_v9  ;;  %v2601_v18 = vadd.f32 %v2499_v2, %v5665_v11  ;;  %v2285_v7 = vpop.f32.mrf.mxu1  ;;  %v2508_v40 = vpop.f32.mrf.mxu0  ;;  %v2631_v10 = vadd.f32 %v2630_v31, %v2600_v14 }
 0x1fa   : > { %v2509_v38 = vadd.f32 %v2508_v40, %v2283_v55  ;;  %v2879_v34 = vsel %vm2725_vm4, %v2782_v28, 0.0 }
 0x1fb   : > { %v2670_v53 = vmul.f32 %v2601_v18, %v2601_v18  ;;  %v2700_v30 = vadd.f32 %v2699_v36, %v2669_v43  ;;  %v2781_v58 = vrot.slane %v2601_v18, 7  ;;  %v2288_v37 = vpop.f32.mrf.mxu1  ;;  %v3638_v61 = vpop.f32.mrf.mxu0  ;;  %2911 = vst [vmem:[%s5723_s9 + $0xb8] sm:$0x3] %v2879_v34  ;;  %v2632_v0 = vadd.f32 %v2631_v10, %v2601_v18 }
 0x1fc   : > { %v2603_v27 = vadd.f32 %v2509_v38, %v5671_v56  ;;  %v2514_v12 = vadd.f32 %v3635_v24, %v2288_v37 }
 0x1fd   : > { %v2701_v11 = vadd.f32 %v2700_v30, %v2670_v53  ;;  %v2783_v17 = vsel %vm2725_vm4, %v2781_v58, %v2782_v28  ;;  %v2863_v14 = vsel %vm2725_vm4, 0.0, %v2781_v58  ;;  %v2290_v13 = vpop.f32.mrf.mxu1  ;;  %v2633_v63 = vadd.f32 %v2632_v0, %v2602_v62  ;;  %v2518_v8 = vpop.f32.mrf.mxu0 }
 0x1fe   : > { %2909 = vst [vmem:[%s5723_s9 + $0xa8] sm:$0xff] %v2863_v14  ;;  %2910 = vst [vmem:[%s5723_s9 + $0xb0] sm:$0xff] %v2783_v17  ;;  %v2672_v15 = vmul.f32 %v2603_v27, %v2603_v27  ;;  %v2784_v35 = vrot.slane %v2603_v27, 7  ;;  %v2604_v22 = vadd.f32 %v2514_v12, %v5668_v48 }
 0x1ff   : > { %v2702_v47 = vadd.f32 %v2701_v11, %v2671_v42  ;;  %v2293_v56 = vpop.f32.mrf.mxu1  ;;  %v2634_v19 = vadd.f32 %v2633_v63, %v2603_v27  ;;  %v3641_v46 = vpop.f32.mrf.mxu0 }
 0x200   : > { %v2864_v44 = vsel %vm2725_vm4, 0.0, %v2784_v35  ;;  %v2673_v51 = vmul.f32 %v2604_v22, %v2604_v22  ;;  %v2785_v54 = vrot.slane %v2604_v22, 7  ;;  %v2519_v16 = vadd.f32 %v2518_v8, %v2293_v56 }
 0x201   : > { %v2703_v26 = vadd.f32 %v2702_v47, %v2672_v15  ;;  %2912 = vst [vmem:[%s5723_s9 + $0xc0] sm:$0xff] %v2864_v44  ;;  %v2295_v5 = vpop.f32.mrf.mxu1  ;;  %v2635_v23 = vadd.f32 %v2634_v19, %v2604_v22  ;;  %v2528_v9 = vpop.f32.mrf.mxu0 }
 0x202   : > { %v2786_v25 = vsel %vm2725_vm4, %v2784_v35, %v2785_v54  ;;  %v2880_v48 = vsel %vm2725_vm4, %v2785_v54, 0.0  ;;  %v2605_v49 = vadd.f32 %v2519_v16, %v5677_v41 }
 0x203   : > { %v2704_v52 = vadd.f32 %v2703_v26, %v2673_v51  ;;  %2913 = vst [vmem:[%s5723_s9 + $0xc8] sm:$0xff] %v2786_v25  ;;  %2914 = vst [vmem:[%s5723_s9 + $0xd0] sm:$0x3] %v2880_v48  ;;  %v2298_v39 = vpop.f32.mrf.mxu1  ;;  %v3644_v38 = vpop.f32.mrf.mxu0 }
 0x204   : > { %v2524_v62 = vadd.f32 %v3638_v61, %v2298_v39  ;;  %v2636_v2 = vadd.f32 %v2635_v23, %v2605_v49  ;;  %v2674_v55 = vmul.f32 %v2605_v49, %v2605_v49  ;;  %v2787_v24 = vrot.slane %v2605_v49, 7 }
 0x205   : > { %v2300_v31 = vpop.f32.mrf.mxu1  ;;  %v2538_v42 = vpop.f32.mrf.mxu0 }
 0x206   : > { %v2606_v33 = vadd.f32 %v2524_v62, %v5674_v3  ;;  %v2705_v43 = vadd.f32 %v2704_v52, %v2674_v55  ;;  %v2865_v36 = vsel %vm2725_vm4, 0.0, %v2787_v24 }
 0x207   : > { %v2303_v28 = vpop.f32.mrf.mxu1  ;;  %2915 = vst [vmem:[%s5723_s9 + $0xd8] sm:$0xff] %v2865_v36  ;;  %v3647_v8 = vpop.f32.mrf.mxu0 }
 0x208   : > { %v2637_v18 = vadd.f32 %v2636_v2, %v2606_v33  ;;  %v2675_v7 = vmul.f32 %v2606_v33, %v2606_v33  ;;  %v2788_v40 = vrot.slane %v2606_v33, 7  ;;  %v2529_v41 = vadd.f32 %v2528_v9, %v2303_v28 }
 0x209   : > { %v2305_v10 = vpop.f32.mrf.mxu1 }
 0x20a   : > { %v2706_v34 = vadd.f32 %v2705_v43, %v2675_v7  ;;  %v2789_v53 = vsel %vm2725_vm4, %v2787_v24, %v2788_v40  ;;  %v2881_v30 = vsel %vm2725_vm4, %v2788_v40, 0.0  ;;  %v2607_v3 = vadd.f32 %v2529_v41, %v5683_v45 }
 0x20b   : > { %2916 = vst [vmem:[%s5723_s9 + $0xe0] sm:$0xff] %v2789_v53  ;;  %2917 = vst [vmem:[%s5723_s9 + $0xe8] sm:$0x3] %v2881_v30  ;;  %v2308_v58 = vpop.f32.mrf.mxu1 }
 0x20c   : > { %v2638_v37 = vadd.f32 %v2637_v18, %v2607_v3  ;;  %v2676_v61 = vmul.f32 %v2607_v3, %v2607_v3  ;;  %v2790_v0 = vrot.slane %v2607_v3, 7  ;;  %v2534_v27 = vadd.f32 %v3641_v46, %v2308_v58  ;;  %v2548_v46 = vpop.f32.mrf.mxu0 }
 0x20d   : > { %v2310_v12 = vpop.f32.mrf.mxu1 }
 0x20e   : > { %v2707_v11 = vadd.f32 %v2706_v34, %v2676_v61  ;;  %v2866_v17 = vsel %vm2725_vm4, 0.0, %v2790_v0  ;;  %v2608_v14 = vadd.f32 %v2534_v27, %v5680_v6  ;;  %v3650_v55 = vpop.f32.mrf.mxu0 }
 0x20f   : > { %2918 = vst [vmem:[%s5723_s9 + $0xf0] sm:$0xff] %v2866_v17  ;;  %v2313_v13 = vpop.f32.mrf.mxu1 }
 0x210   : > { %v2639_v63 = vadd.f32 %v2638_v37, %v2608_v14  ;;  %v2677_v45 = vmul.f32 %v2608_v14, %v2608_v14  ;;  %v2791_v15 = vrot.slane %v2608_v14, 7  ;;  %v2539_v35 = vadd.f32 %v2538_v42, %v2313_v13  ;;  %v2558_v40 = vpop.f32.mrf.mxu0 }
 0x211   : > { %v2315_v22 = vpop.f32.mrf.mxu1 }
 0x212   : > { %v2708_v47 = vadd.f32 %v2707_v11, %v2677_v45  ;;  %v2792_v56 = vsel %vm2725_vm4, %v2790_v0, %v2791_v15  ;;  %v2882_v19 = vsel %vm2725_vm4, %v2791_v15, 0.0  ;;  %v2609_v44 = vadd.f32 %v2539_v35, %v5689_v20  ;;  %v3653_v37 = vpop.f32.mrf.mxu0 }
 0x213   : > { %2919 = vst [vmem:[%s5723_s9 + $0xf8] sm:$0xff] %v2792_v56  ;;  %2920 = vst [vmem:[%s5723_s9 + $0x100] sm:$0x3] %v2882_v19  ;;  %v2318_v51 = vpop.f32.mrf.mxu1 }
 0x214   : > { %v2640_v6 = vadd.f32 %v2639_v63, %v2609_v44  ;;  %v2678_v54 = vmul.f32 %v2609_v44, %v2609_v44  ;;  %v2793_v26 = vrot.slane %v2609_v44, 7  ;;  %v2544_v16 = vadd.f32 %v3644_v38, %v2318_v51  ;;  %v2568_v63 = vpop.f32.mrf.mxu0 }
 0x215   : > { %v2320_v5 = vpop.f32.mrf.mxu1 }
 0x216   : > { %v2709_v23 = vadd.f32 %v2708_v47, %v2678_v54  ;;  %v2867_v25 = vsel %vm2725_vm4, 0.0, %v2793_v26  ;;  %v2610_v48 = vadd.f32 %v2544_v16, %v5686_v4  ;;  %v3656_v44 = vpop.f32.mrf.mxu0 }
 0x217   : > { %2921 = vst [vmem:[%s5723_s9 + $0x108] sm:$0xff] %v2867_v25  ;;  %v2323_v52 = vpop.f32.mrf.mxu1 }
 0x218   : > { %v2641_v49 = vadd.f32 %v2640_v6, %v2610_v48  ;;  %v2679_v20 = vmul.f32 %v2610_v48, %v2610_v48  ;;  %v2794_v39 = vrot.slane %v2610_v48, 7  ;;  %v2549_v62 = vadd.f32 %v2548_v46, %v2323_v52  ;;  %v2578_v48 = vpop.f32.mrf.mxu0 }
 0x219   : > { %v2325_v2 = vpop.f32.mrf.mxu1 }
 0x21a   : > { %v2710_v24 = vadd.f32 %v2709_v23, %v2679_v20  ;;  %v2795_v31 = vsel %vm2725_vm4, %v2793_v26, %v2794_v39  ;;  %v2883_v9 = vsel %vm2725_vm4, %v2794_v39, 0.0  ;;  %v2611_v33 = vadd.f32 %v2549_v62, %v5695_v32 }
 0x21b   : > { %2922 = vst [vmem:[%s5723_s9 + $0x110] sm:$0xff] %v2795_v31  ;;  %2923 = vst [vmem:[%s5723_s9 + $0x118] sm:$0x3] %v2883_v9  ;;  %v2328_v43 = vpop.f32.mrf.mxu1 }
 0x21c   : > { %v2642_v4 = vadd.f32 %v2641_v49, %v2611_v33  ;;  %v2680_v36 = vmul.f32 %v2611_v33, %v2611_v33  ;;  %v2796_v28 = vrot.slane %v2611_v33, 7  ;;  %v2554_v18 = vadd.f32 %v3647_v8, %v2328_v43 }
 0x21d   : > { %v2330_v7 = vpop.f32.mrf.mxu1 }
 0x21e   : > { %v2711_v41 = vadd.f32 %v2710_v24, %v2680_v36  ;;  %v2868_v10 = vsel %vm2725_vm4, 0.0, %v2796_v28  ;;  %v2612_v38 = vadd.f32 %v2554_v18, %v5692_v59 }
 0x21f   : > { %2924 = vst [vmem:[%s5723_s9 + $0x120] sm:$0xff] %v2868_v10  ;;  %v2333_v34 = vpop.f32.mrf.mxu1 }
 0x220   : > { %v2643_v53 = vadd.f32 %v2642_v4, %v2612_v38  ;;  %v2681_v32 = vmul.f32 %v2612_v38, %v2612_v38  ;;  %v2797_v30 = vrot.slane %v2612_v38, 7  ;;  %v2559_v3 = vadd.f32 %v2558_v40, %v2333_v34 }
 0x221   : > { %v2335_v58 = vpop.f32.mrf.mxu1 }
 0x222   : > { %v2712_v61 = vadd.f32 %v2711_v41, %v2681_v32  ;;  %v2798_v0 = vsel %vm2725_vm4, %v2796_v28, %v2797_v30  ;;  %v2884_v27 = vsel %vm2725_vm4, %v2797_v30, 0.0  ;;  %v2613_v12 = vadd.f32 %v2559_v3, %v5701_v29 }
 0x223   : > { %2925 = vst [vmem:[%s5723_s9 + $0x128] sm:$0xff] %v2798_v0  ;;  %2926 = vst [vmem:[%s5723_s9 + $0x130] sm:$0x3] %v2884_v27  ;;  %v2338_v42 = vpop.f32.mrf.mxu1 }
 0x224   : > { %v2644_v59 = vadd.f32 %v2643_v53, %v2613_v12  ;;  %v2682_v11 = vmul.f32 %v2613_v12, %v2613_v12  ;;  %v2799_v17 = vrot.slane %v2613_v12, 7  ;;  %v2564_v14 = vadd.f32 %v3650_v55, %v2338_v42 }
 0x225   : > { %v2340_v13 = vpop.f32.mrf.mxu1 }
 0x226   : > { %v2713_v45 = vadd.f32 %v2712_v61, %v2682_v11  ;;  %v2869_v15 = vsel %vm2725_vm4, 0.0, %v2799_v17  ;;  %v2614_v35 = vadd.f32 %v2564_v14, %v5698_v50 }
 0x227   : > { %2927 = vst [vmem:[%s5723_s9 + $0x138] sm:$0xff] %v2869_v15  ;;  %v2343_v22 = vpop.f32.mrf.mxu1 }
 0x228   : > { %v2645_v8 = vadd.f32 %v2644_v59, %v2614_v35  ;;  %v2683_v29 = vmul.f32 %v2614_v35, %v2614_v35  ;;  %v2800_v47 = vrot.slane %v2614_v35, 7  ;;  %v2569_v56 = vadd.f32 %v2568_v63, %v2343_v22 }
 0x229   : > { %v2345_v19 = vpop.f32.mrf.mxu1 }
 0x22a   : > { %v2714_v51 = vadd.f32 %v2713_v45, %v2683_v29  ;;  %v2801_v6 = vsel %vm2725_vm4, %v2799_v17, %v2800_v47  ;;  %v2885_v54 = vsel %vm2725_vm4, %v2800_v47, 0.0  ;;  %v2615_v26 = vadd.f32 %v2569_v56, %v5708_v57 }
 0x22b   : > { %2928 = vst [vmem:[%s5723_s9 + $0x140] sm:$0xff] %v2801_v6  ;;  %2929 = vst [vmem:[%s5723_s9 + $0x148] sm:$0x3] %v2885_v54  ;;  %v2348_v16 = vpop.f32.mrf.mxu1 }
 0x22c   : > { %v2646_v50 = vadd.f32 %v2645_v8, %v2615_v26  ;;  %v2684_v5 = vmul.f32 %v2615_v26, %v2615_v26  ;;  %v2802_v46 = vrot.slane %v2615_v26, 7  ;;  %v2574_v23 = vadd.f32 %v3653_v37, %v2348_v16 }
 0x22d   : > { %v2350_v25 = vpop.f32.mrf.mxu1 }
 0x22e   : > { %v2715_v52 = vadd.f32 %v2714_v51, %v2684_v5  ;;  %v2870_v49 = vsel %vm2725_vm4, 0.0, %v2802_v46  ;;  %v2616_v20 = vadd.f32 %v2574_v23, %v5705_v60 }
 0x22f   : > { %2930 = vst [vmem:[%s5723_s9 + $0x150] sm:$0xff] %v2870_v49  ;;  %v2353_v39 = vpop.f32.mrf.mxu1 }
 0x230   : > { %v2647_v62 = vadd.f32 %v2646_v50, %v2616_v20  ;;  %v2685_v57 = vmul.f32 %v2616_v20, %v2616_v20  ;;  %v2803_v2 = vrot.slane %v2616_v20, 7  ;;  %v2579_v55 = vadd.f32 %v2578_v48, %v2353_v39 }
 0x231   : > { %v2355_v24 = vpop.f32.mrf.mxu1 }
 0x232   : > { %v2716_v31 = vadd.f32 %v2715_v52, %v2685_v57  ;;  %v2804_v9 = vsel %vm2725_vm4, %v2802_v46, %v2803_v2  ;;  %v2886_v33 = vsel %vm2725_vm4, %v2803_v2, 0.0  ;;  %v2617_v43 = vadd.f32 %v2579_v55, %v5712_v21 }
 0x233   : > { %2931 = vst [vmem:[%s5723_s9 + $0x158] sm:$0xff] %v2804_v9  ;;  %2932 = vst [vmem:[%s5723_s9 + $0x160] sm:$0x3] %v2886_v33  ;;  %v2358_v4 = vpop.f32.mrf.mxu1 }
 0x234   : > { %v2648_v36 = vadd.f32 %v2647_v62, %v2617_v43  ;;  %v2686_v60 = vmul.f32 %v2617_v43, %v2617_v43  ;;  %v2805_v28 = vrot.slane %v2617_v43, 7  ;;  %v2584_v18 = vadd.f32 %v3656_v44, %v2358_v4 }
 0x235   : > { %v2360_v7 = vpop.f32.mrf.mxu1 }
 0x236   : > { %v2717_v40 = vadd.f32 %v2716_v31, %v2686_v60  ;;  %v2871_v41 = vsel %vm2725_vm4, 0.0, %v2805_v28  ;;  %v2618_v10 = vadd.f32 %v2584_v18, %v5710_v1 }
 0x237   : > { %2933 = vst [vmem:[%s5723_s9 + $0x168] sm:$0xff] %v2871_v41 }
 0x238   : > { %v2649_v38 = vadd.f32 %v2648_v36, %v2618_v10  ;;  %v2687_v34 = vmul.f32 %v2618_v10, %v2618_v10  ;;  %v2806_v21 = vrot.slane %v2618_v10, 7 }
 0x23a   : > { %v2650_v53 = vrot.slane %v2649_v38, 4  ;;  %v2718_v32 = vadd.f32 %v2717_v40, %v2687_v34  ;;  %v2807_v30 = vsel %vm2725_vm4, %v2805_v28, %v2806_v21  ;;  %v2887_v3 = vsel %vm2725_vm4, %v2806_v21, 0.0 }
 0x23b   : > { %2934 = vst [vmem:[%s5723_s9 + $0x170] sm:$0xff] %v2807_v30  ;;  %2935 = vst [vmem:[%s5723_s9 + $0x178] sm:$0x3] %v2887_v3 }
 0x23c   : > { %v2651_v58 = vadd.f32 %v2650_v53, %v2649_v38  ;;  %v2719_v37 = vrot.slane %v2718_v32, 4 }
 0x23e   : > { %v2652_v61 = vrot.slane %v2651_v58, 2  ;;  %v2720_v0 = vadd.f32 %v2719_v37, %v2718_v32 }
 0x240   : > { %v2653_v27 = vadd.f32 %v2652_v61, %v2651_v58  ;;  %v2721_v12 = vrot.slane %v2720_v0, 2 }
 0x242   : > { %v2654_v1 = vrot.slane %v2653_v27, 1  ;;  %v2722_v42 = vadd.f32 %v2721_v12, %v2720_v0 }
 0x244   : > { %v2723_v59 = vrot.slane %v2722_v42, 1  ;;  %v2655_v11 = vadd.f32 %v2654_v1, %v2653_v27 }
 0x246   : > { %v2724_v17 = vadd.f32 %v2723_v59, %v2722_v42 }
 0x248   : > { %v2726_v14 = vsel %vm2725_vm4, %v2655_v11, %v2724_v17 }
 0x249   : > { %2727 = vst [vmem:[%s465_s18] sm:$0x3] %v2726_v14 }
 0x24a PF: > { %s18_s26 = sadd.s32 1, %s3710_s26   ;;  %s6181_s24 = smov %s3706_s25 }
 0x24b   : > { %p15_p5 = scmp.ge.s32.totalorder %s18_s26, 4   ;;  %s6182_s25 = smov %s6184_s27 }
 0x24d   :  { %17 = sbr.rel (!%p15_p5) target bundleno = 2 (0x2), region = 94 }

</bundles_post_ra>
